<compile_context>
chip_gen: v7x
topology: tpu7x:2x2x1
jax: 0.10.0
libtpu: 0.0.40
codegen_flags: <defaults>
</compile_context>

<pallas_src>
import functools

import numpy as np
import jax
import jax.numpy as jnp
from jax.experimental import pallas as pl
from jax.experimental.pallas import tpu as pltpu

BN_EPS = 1e-5


def _mish(y, approx_recip):
    # mish(y) = y * tanh(softplus(y)) = y * ((1+e^y)^2 - 1) / ((1+e^y)^2 + 1)
    e = jnp.exp(jnp.minimum(y, 20.0))   # for y>=20, tanh(softplus(y)) == 1 in f32
    t = (1.0 + e) * (1.0 + e)
    num = y * (t - 1.0)
    if approx_recip:
        return num * pl.reciprocal(t + 1.0, approx=True)   # EUP slot, ~free
    return num / (t + 1.0)


# ----------------------------------------------------------------------------
# Fused Pallas kernel: grid = (image, block); state carried in the output block.
# ----------------------------------------------------------------------------
def _resblock_kernel(x_ref, w1_ref, s1_ref, w2_ref, s2_ref, o_ref, hbuf_ref,
                     *, h, w, wp, margin, shortcut, cdt, approx_recip):
    blk = pl.program_id(1)
    mpi, c = o_ref.shape

    @pl.when(blk == 0)
    def _init():
        # Load this image's zero-padded activation into the resident state and
        # zero only the two margin strips of the staging buffer (the interior
        # is fully overwritten every block before it is read).
        o_ref[...] = x_ref[...]
        zeros = jnp.zeros((margin, c), cdt)
        hbuf_ref[pl.ds(0, margin), :] = zeros
        hbuf_ref[pl.ds(margin + mpi, margin), :] = zeros

    # Interior-row predicate from a row iota (replaces the HBM mask stream).
    # r < hp*wp << 2^23, so the float divide-by-wp trick below is exact:
    # floor((r+0.5)/wp) == r // wp because (r+0.5)/wp is >= 0.5/wp away from
    # any integer, far larger than f32 rounding error at these magnitudes.
    r = jax.lax.broadcasted_iota(jnp.int32, (mpi, c), 0).astype(jnp.float32)
    q = jnp.floor((r + 0.5) * (1.0 / wp))          # == r // wp   (row y in padded frame)
    xc = r - q * wp                                # == r %  wp   (col x in padded frame)
    interior = ((xc >= 1.0) & (xc <= float(w)) &
                (q >= 1.0) & (q <= float(h)))

    x = o_ref[...]                                 # resident f32 state (mpi, c)

    # ---- 1x1 conv (BN scale folded into weights) + shift + Mish -------------
    y1 = jnp.dot(x.astype(cdt), w1_ref[...], preferred_element_type=jnp.float32)
    h1 = jnp.where(interior, _mish(y1 + s1_ref[...], approx_recip), 0.0)
    # Stage once, already in compute dtype (single cast; bf16 halves re-reads).
    hbuf_ref[pl.ds(margin, mpi), :] = h1.astype(cdt)

    # ---- 3x3 conv as 9 shifted-window matmuls, f32 accumulation --------------
    def win(k):
        ky, kx = k // 3, k % 3
        shift = (ky - 1) * wp + (kx - 1)           # row offset in padded layout
        return hbuf_ref[pl.ds(margin + shift, mpi), :]

    acc = jnp.dot(win(0), w2_ref[0], preferred_element_type=jnp.float32)
    for k in range(1, 9):
        acc = acc + jnp.dot(win(k), w2_ref[k], preferred_element_type=jnp.float32)
    h2 = _mish(acc + s2_ref[...], approx_recip)

    x_new = (x + h2) if shortcut else h2
    o_ref[...] = jnp.where(interior, x_new, 0.0)   # keep pad rows exactly zero


# ----------------------------------------------------------------------------
# Wrapper: BN folding, padded per-image 2-D layout, pallas_call plumbing.
# ----------------------------------------------------------------------------
def _fold_bn(p):
    scale = p["gamma"] * jax.lax.rsqrt(p["var"] + BN_EPS)
    shift = p["beta"] - p["mean"] * scale
    return scale, shift


def resblock_forward(x_nchw, params, *, shortcut=True,
                     compute_dtype=jnp.bfloat16):
    """Pallas forward of ResBlock(ch, nblocks, shortcut).  x: NCHW float32."""
    n, c, h, w = x_nchw.shape
    assert c % 128 == 0, "channels must be a multiple of the 128-lane width"
    nblocks = len(params)

    hp, wp = h + 2, w + 2
    mpi = hp * wp                                  # padded rows per image
    margin = ((wp + 1 + 15) // 16) * 16            # > wp+1, 16-row aligned

    # NHWC, embedded in a zero-padded frame, flattened per image to (rows, C).
    x = jnp.transpose(x_nchw, (0, 2, 3, 1)).astype(jnp.float32)
    xp = jnp.zeros((n, hp, wp, c), jnp.float32)
    xp = xp.at[:, 1:h + 1, 1:w + 1, :].set(x).reshape(n, mpi, c)

    # Fold eval-mode BatchNorm into the weights; pack per-block weight stacks.
    w1l, s1l, w2l, s2l = [], [], [], []
    for blk in params:
        sc1, sh1 = _fold_bn(blk["c1"])
        sc2, sh2 = _fold_bn(blk["c2"])
        # torch Conv2d weight layout is (O, I, kh, kw); matmul wants (I, O).
        w1b = jnp.transpose(blk["c1"]["w"][:, :, 0, 0], (1, 0)) * sc1[None, :]
        w2b = (jnp.transpose(blk["c2"]["w"], (2, 3, 1, 0)).reshape(9, c, c)
               * sc2[None, None, :])
        w1l.append(w1b.astype(compute_dtype))
        w2l.append(w2b.astype(compute_dtype))
        s1l.append(sh1.reshape(1, c).astype(jnp.float32))
        s2l.append(sh2.reshape(1, c).astype(jnp.float32))
    w1 = jnp.stack(w1l)          # (nblocks, C, C)
    s1 = jnp.stack(s1l)          # (nblocks, 1, C)
    w2 = jnp.stack(w2l)          # (nblocks, 9, C, C)
    s2 = jnp.stack(s2l)          # (nblocks, 1, C)

    approx_recip = jnp.dtype(compute_dtype) != jnp.dtype(jnp.float32)
    kernel = functools.partial(_resblock_kernel, h=h, w=w, wp=wp, margin=margin,
                               shortcut=shortcut, cdt=compute_dtype,
                               approx_recip=approx_recip)

    # VMEM budget from the actual footprint (double-buffered in/out + weights).
    itemsize = jnp.dtype(compute_dtype).itemsize
    act_win = mpi * c * 4
    wgt_blk = 10 * c * c * itemsize + 2 * c * 4
    hbuf_bytes = (mpi + 2 * margin) * c * itemsize
    footprint = 4 * act_win + 2 * wgt_blk + hbuf_bytes
    vmem_limit = int(min(max(2 * footprint + (4 << 20), 16 << 20), 64 << 20))

    out3d = pl.pallas_call(
        kernel,
        out_shape=jax.ShapeDtypeStruct((n, mpi, c), jnp.float32),
        grid_spec=pltpu.PrefetchScalarGridSpec(
            num_scalar_prefetch=0,
            grid=(n, nblocks),
            in_specs=[
                pl.BlockSpec((None, mpi, c), lambda i, b: (i, 0, 0)),      # activation
                pl.BlockSpec((None, c, c), lambda i, b: (b, 0, 0)),        # 1x1 weights
                pl.BlockSpec((None, 1, c), lambda i, b: (b, 0, 0)),        # 1x1 BN shift
                pl.BlockSpec((None, 9, c, c), lambda i, b: (b, 0, 0, 0)),  # 3x3 weights
                pl.BlockSpec((None, 1, c), lambda i, b: (b, 0, 0)),        # 3x3 BN shift
            ],
            out_specs=pl.BlockSpec((None, mpi, c), lambda i, b: (i, 0, 0)),
            scratch_shapes=[
                pltpu.VMEM((mpi + 2 * margin, c), compute_dtype),  # 3x3 staging buffer
            ],
        ),
        compiler_params=pltpu.CompilerParams(
            # images independent (both v7x TCs); blocks carry state sequentially
            dimension_semantics=("parallel", "arbitrary"),
            vmem_limit_bytes=vmem_limit),
    )(xp, w1, s1, w2, s2)

    out = out3d.reshape(n, hp, wp, c)[:, 1:h + 1, 1:w + 1, :]
    return jnp.transpose(out, (0, 3, 1, 2))                          # -> NCHW


# ----------------------------------------------------------------------------
# Pure-JAX (lax.conv) reference for correctness cross-checks
# ----------------------------------------------------------------------------
def _ref_cba(x_nhwc, p, ksize, compute_dtype):
    scale = p["gamma"] * jax.lax.rsqrt(p["var"] + BN_EPS)
    shift = p["beta"] - p["mean"] * scale
    wgt = jnp.transpose(p["w"], (2, 3, 1, 0)) * scale[None, None, None, :]
    pad = (ksize - 1) // 2
    y = jax.lax.conv_general_dilated(
        x_nhwc.astype(compute_dtype), wgt.astype(compute_dtype),
        window_strides=(1, 1), padding=[(pad, pad), (pad, pad)],
        dimension_numbers=("NHWC", "HWIO", "NHWC"),
        preferred_element_type=jnp.float32)
    y = y + shift
    return y * jnp.tanh(jax.nn.softplus(y))          # torch Mish formula


def resblock_reference(x_nchw, params, *, shortcut=True,
                       compute_dtype=jnp.float32):
    x = jnp.transpose(x_nchw, (0, 2, 3, 1)).astype(jnp.float32)
    for blk in params:
        hh = _ref_cba(x, blk["c1"], 1, compute_dtype)
        hh = _ref_cba(hh, blk["c2"], 3, compute_dtype)
        x = (x + hh) if shortcut else hh
    return jnp.transpose(x, (0, 3, 1, 2))


# ----------------------------------------------------------------------------
# Deterministic synthetic parameters mirroring Conv_Bn_Activation shapes
# ----------------------------------------------------------------------------
def _init_cba_params(key, cin, cout, k):
    k1, k2, k3, k4, k5 = jax.random.split(key, 5)
    return dict(
        w=jax.random.normal(k1, (cout, cin, k, k), jnp.float32)
          * (1.0 / np.sqrt(cin * k * k)),
        gamma=1.0 + 0.1 * jax.random.normal(k2, (cout,), jnp.float32),
        beta=0.1 * jax.random.normal(k3, (cout,), jnp.float32),
        mean=0.1 * jax.random.normal(k4, (cout,), jnp.float32),
        var=0.5 + 0.5 * jnp.abs(jax.random.normal(k5, (cout,), jnp.float32)),
    )


def init_resblock_params(key, ch, nblocks):
    keys = jax.random.split(key, 2 * nblocks)
    return [dict(c1=_init_cba_params(keys[2 * i], ch, ch, 1),
                 c2=_init_cba_params(keys[2 * i + 1], ch, ch, 3))
            for i in range(nblocks)]


# ----------------------------------------------------------------------------
if __name__ == "__main__":
    key = jax.random.PRNGKey(0)
    kx, kp = jax.random.split(key)

    # ResBlock(ch=128, nblocks=2, shortcut=True); small batch / spatial.
    N, CH, S, NBLOCKS = 2, 128, 16, 2
    x = jax.random.normal(kx, (N, CH, S, S), jnp.float32)      # NCHW
    params = init_resblock_params(kp, CH, NBLOCKS)

    # Performance configuration: bf16 MXU operands, f32 accumulation.
    fwd_bf16 = jax.jit(functools.partial(resblock_forward, shortcut=True,
                                         compute_dtype=jnp.bfloat16))
    out_bf16 = jax.block_until_ready(fwd_bf16(x, params))
    assert out_bf16.shape == (N, CH, S, S), out_bf16.shape

    # Numerics configuration (f32 operands, exact divide): tight check against
    # an XLA conv reference with identical f32 arithmetic.
    fwd_f32 = jax.jit(functools.partial(resblock_forward, shortcut=True,
                                        compute_dtype=jnp.float32))
    out_f32 = jax.block_until_ready(fwd_f32(x, params))
    ref_f32 = jax.block_until_ready(
        resblock_reference(x, params, compute_dtype=jnp.float32))
    np.testing.assert_allclose(np.asarray(out_f32), np.asarray(ref_f32),
                               rtol=2e-3, atol=2e-3)

    # bf16 path sanity check against a quantization-matched XLA reference
    # (bf16 operands, f32 accumulation); looser tol for rounding divergence.
    ref_bf16 = jax.block_until_ready(
        resblock_reference(x, params, compute_dtype=jnp.bfloat16))
    np.testing.assert_allclose(np.asarray(out_bf16), np.asarray(ref_bf16),
                               rtol=5e-2, atol=5e-2)

    print("KERNEL_OK")
</pallas_src>

<mosaic_0001>
module attributes {stable_mosaic.version = 11 : i64} {
  func.func @_resblock_kernel(%arg0: i32, %arg1: i32, %arg2: memref<1x324x128xf32, #tpu.memory_space<vmem>>, %arg3: memref<1x128x128xbf16, #tpu.memory_space<vmem>>, %arg4: memref<1x1x128xf32, #tpu.memory_space<vmem>>, %arg5: memref<1x9x128x128xbf16, #tpu.memory_space<vmem>>, %arg6: memref<1x1x128xf32, #tpu.memory_space<vmem>>, %arg7: memref<1x324x128xf32, #tpu.memory_space<vmem>>, %arg8: memref<388x128xbf16, #tpu.memory_space<vmem>>) attributes {dimension_semantics = [#tpu.dimension_semantics<parallel>, #tpu.dimension_semantics<arbitrary>], iteration_bounds = array<i64: 2, 2>, scalar_prefetch = 0 : i64, scratch_operands = 1 : i64, tpu.core_type = #tpu.core_type<tc>, window_params = [{transform_indices = @transform_0, window_bounds = array<i64: 1, 324, 128>}, {transform_indices = @transform_1, window_bounds = array<i64: 1, 128, 128>}, {transform_indices = @transform_2, window_bounds = array<i64: 1, 1, 128>}, {transform_indices = @transform_3, window_bounds = array<i64: 1, 9, 128, 128>}, {transform_indices = @transform_4, window_bounds = array<i64: 1, 1, 128>}, {transform_indices = @transform_5, window_bounds = array<i64: 1, 324, 128>}]} {
    %c0_i32 = arith.constant 0 : i32
    %0 = arith.cmpi eq, %arg1, %c0_i32 : i32
    %1 = arith.extui %0 : i1 to i32
    %c0_i32_0 = arith.constant 0 : i32
    %2 = arith.cmpi ne, %1, %c0_i32_0 : i32
    scf.if %2 {
      %c0_82 = arith.constant 0 : index
      %c0_83 = arith.constant 0 : index
      %c0_84 = arith.constant 0 : index
      %122 = vector.load %arg2[%c0_82, %c0_83, %c0_84] : memref<1x324x128xf32, #tpu.memory_space<vmem>>, vector<1x324x128xf32>
      %123 = vector.shape_cast %122 : vector<1x324x128xf32> to vector<324x128xf32>
      %c0_85 = arith.constant 0 : index
      %c0_86 = arith.constant 0 : index
      %c0_87 = arith.constant 0 : index
      %124 = vector.load %arg7[%c0_85, %c0_86, %c0_87] : memref<1x324x128xf32, #tpu.memory_space<vmem>>, vector<1x324x128xf32>
      %125 = vector.shape_cast %124 : vector<1x324x128xf32> to vector<324x128xf32>
      %126 = vector.shape_cast %123 : vector<324x128xf32> to vector<1x324x128xf32>
      tpu.vector_store %arg7[%c0_85, %c0_86, %c0_87], %126 {strides = array<i32>} : memref<1x324x128xf32, #tpu.memory_space<vmem>>, vector<1x324x128xf32>,
      %cst_88 = arith.constant 0.000000e+00 : bf16
      %127 = vector.broadcast %cst_88 : bf16 to vector<32x128xbf16>
      %c0_89 = arith.constant 0 : index
      %c0_90 = arith.constant 0 : index
      %128 = vector.load %arg8[%c0_89, %c0_90] : memref<388x128xbf16, #tpu.memory_space<vmem>>, vector<32x128xbf16>
      tpu.vector_store %arg8[%c0_89, %c0_90], %127 {strides = array<i32>} : memref<388x128xbf16, #tpu.memory_space<vmem>>, vector<32x128xbf16>,
      %c356 = arith.constant 356 : index
      %c0_91 = arith.constant 0 : index
      %129 = vector.load %arg8[%c356, %c0_91] : memref<388x128xbf16, #tpu.memory_space<vmem>>, vector<32x128xbf16>
      tpu.vector_store %arg8[%c356, %c0_91], %127 {strides = array<i32>} : memref<388x128xbf16, #tpu.memory_space<vmem>>, vector<32x128xbf16>,
    } else {
    }
    %3 = tpu.iota {dimensions = array<i32: 0>} : vector<324x128xi32>
    %4 = arith.sitofp %3 : vector<324x128xi32> to vector<324x128xf32>
    %cst = arith.constant 5.000000e-01 : f32
    %5 = vector.broadcast %cst : f32 to vector<324x128xf32>
    %6 = arith.addf %4, %5 : vector<324x128xf32>
    %cst_1 = arith.constant 0.055555556 : f32
    %7 = vector.broadcast %cst_1 : f32 to vector<324x128xf32>
    %8 = arith.mulf %6, %7 : vector<324x128xf32>
    %9 = math.floor %8 : vector<324x128xf32>
    %cst_2 = arith.constant 1.800000e+01 : f32
    %10 = vector.broadcast %cst_2 : f32 to vector<324x128xf32>
    %11 = arith.mulf %9, %10 : vector<324x128xf32>
    %12 = arith.subf %4, %11 : vector<324x128xf32>
    %cst_3 = arith.constant 1.000000e+00 : f32
    %13 = vector.broadcast %cst_3 : f32 to vector<324x128xf32>
    %14 = arith.cmpf oge, %12, %13 : vector<324x128xf32>
    %cst_4 = arith.constant 1.600000e+01 : f32
    %15 = vector.broadcast %cst_4 : f32 to vector<324x128xf32>
    %16 = arith.cmpf ole, %12, %15 : vector<324x128xf32>
    %17 = arith.andi %14, %16 : vector<324x128xi1>
    %cst_5 = arith.constant 1.000000e+00 : f32
    %18 = vector.broadcast %cst_5 : f32 to vector<324x128xf32>
    %19 = arith.cmpf oge, %9, %18 : vector<324x128xf32>
    %20 = arith.andi %17, %19 : vector<324x128xi1>
    %cst_6 = arith.constant 1.600000e+01 : f32
    %21 = vector.broadcast %cst_6 : f32 to vector<324x128xf32>
    %22 = arith.cmpf ole, %9, %21 : vector<324x128xf32>
    %23 = arith.andi %20, %22 : vector<324x128xi1>
    %c0 = arith.constant 0 : index
    %c0_7 = arith.constant 0 : index
    %c0_8 = arith.constant 0 : index
    %24 = vector.load %arg7[%c0, %c0_7, %c0_8] : memref<1x324x128xf32, #tpu.memory_space<vmem>>, vector<1x324x128xf32>
    %25 = vector.shape_cast %24 : vector<1x324x128xf32> to vector<324x128xf32>
    %26 = arith.truncf %25 : vector<324x128xf32> to vector<324x128xbf16>
    %c0_9 = arith.constant 0 : index
    %c0_10 = arith.constant 0 : index
    %c0_11 = arith.constant 0 : index
    %27 = vector.load %arg3[%c0_9, %c0_10, %c0_11] : memref<1x128x128xbf16, #tpu.memory_space<vmem>>, vector<1x128x128xbf16>
    %28 = vector.shape_cast %27 : vector<1x128x128xbf16> to vector<128x128xbf16>
    %cst_12 = arith.constant dense<0.000000e+00> : vector<324x128xf32>
    %29 = tpu.matmul %26, %28, %cst_12 {dimension_numbers = #tpu.dot_dimension_numbers<[1], [0], [0], [1], [0, 0, 1, 1], [], []>} : vector<324x128xbf16>, vector<128x128xbf16>, vector<324x128xf32> -> vector<324x128xf32>
    %c0_13 = arith.constant 0 : index
    %c0_14 = arith.constant 0 : index
    %c0_15 = arith.constant 0 : index
    %30 = vector.load %arg4[%c0_13, %c0_14, %c0_15] : memref<1x1x128xf32, #tpu.memory_space<vmem>>, vector<1x1x128xf32>
    %31 = vector.shape_cast %30 : vector<1x1x128xf32> to vector<1x128xf32>
    %32 = vector.broadcast %31 : vector<1x128xf32> to vector<324x128xf32>
    %33 = arith.addf %29, %32 : vector<324x128xf32>
    %cst_16 = arith.constant 2.000000e+01 : f32
    %34 = vector.broadcast %cst_16 : f32 to vector<324x128xf32>
    %35 = arith.minimumf %33, %34 : vector<324x128xf32>
    %36 = math.exp %35 : vector<324x128xf32>
    %cst_17 = arith.constant 1.000000e+00 : f32
    %37 = vector.broadcast %cst_17 : f32 to vector<324x128xf32>
    %38 = arith.addf %37, %36 : vector<324x128xf32>
    %cst_18 = arith.constant 1.000000e+00 : f32
    %39 = vector.broadcast %cst_18 : f32 to vector<324x128xf32>
    %40 = arith.addf %39, %36 : vector<324x128xf32>
    %41 = arith.mulf %38, %40 : vector<324x128xf32>
    %cst_19 = arith.constant 1.000000e+00 : f32
    %42 = vector.broadcast %cst_19 : f32 to vector<324x128xf32>
    %43 = arith.subf %41, %42 : vector<324x128xf32>
    %44 = arith.mulf %33, %43 : vector<324x128xf32>
    %cst_20 = arith.constant 1.000000e+00 : f32
    %45 = vector.broadcast %cst_20 : f32 to vector<324x128xf32>
    %46 = arith.addf %41, %45 : vector<324x128xf32>
    %47 = tpu.reciprocal %46 {approx = true} : vector<324x128xf32> -> vector<324x128xf32>
    %48 = arith.mulf %44, %47 : vector<324x128xf32>
    %cst_21 = arith.constant 0.000000e+00 : f32
    %49 = vector.broadcast %cst_21 : f32 to vector<324x128xf32>
    %50 = arith.select %23, %48, %49 : vector<324x128xi1>, vector<324x128xf32>
    %51 = arith.truncf %50 : vector<324x128xf32> to vector<324x128xbf16>
    %c32 = arith.constant 32 : index
    %c0_22 = arith.constant 0 : index
    %52 = vector.load %arg8[%c32, %c0_22] : memref<388x128xbf16, #tpu.memory_space<vmem>>, vector<324x128xbf16>
    tpu.vector_store %arg8[%c32, %c0_22], %51 {strides = array<i32>} : memref<388x128xbf16, #tpu.memory_space<vmem>>, vector<324x128xbf16>,
    %c13 = arith.constant 13 : index
    %c0_23 = arith.constant 0 : index
    %53 = vector.load %arg8[%c13, %c0_23] : memref<388x128xbf16, #tpu.memory_space<vmem>>, vector<324x128xbf16>
    %c0_24 = arith.constant 0 : index
    %c0_25 = arith.constant 0 : index
    %c0_26 = arith.constant 0 : index
    %c0_27 = arith.constant 0 : index
    %54 = vector.load %arg5[%c0_24, %c0_25, %c0_26, %c0_27] : memref<1x9x128x128xbf16, #tpu.memory_space<vmem>>, vector<1x1x128x128xbf16>
    %55 = vector.shape_cast %54 : vector<1x1x128x128xbf16> to vector<128x128xbf16>
    %cst_28 = arith.constant dense<0.000000e+00> : vector<324x128xf32>
    %56 = tpu.matmul %53, %55, %cst_28 {dimension_numbers = #tpu.dot_dimension_numbers<[1], [0], [0], [1], [0, 0, 1, 1], [], []>} : vector<324x128xbf16>, vector<128x128xbf16>, vector<324x128xf32> -> vector<324x128xf32>
    %c14 = arith.constant 14 : index
    %c0_29 = arith.constant 0 : index
    %57 = vector.load %arg8[%c14, %c0_29] : memref<388x128xbf16, #tpu.memory_space<vmem>>, vector<324x128xbf16>
    %c0_30 = arith.constant 0 : index
    %c1 = arith.constant 1 : index
    %c0_31 = arith.constant 0 : index
    %c0_32 = arith.constant 0 : index
    %58 = vector.load %arg5[%c0_30, %c1, %c0_31, %c0_32] : memref<1x9x128x128xbf16, #tpu.memory_space<vmem>>, vector<1x1x128x128xbf16>
    %59 = vector.shape_cast %58 : vector<1x1x128x128xbf16> to vector<128x128xbf16>
    %cst_33 = arith.constant dense<0.000000e+00> : vector<324x128xf32>
    %60 = tpu.matmul %57, %59, %cst_33 {dimension_numbers = #tpu.dot_dimension_numbers<[1], [0], [0], [1], [0, 0, 1, 1], [], []>} : vector<324x128xbf16>, vector<128x128xbf16>, vector<324x128xf32> -> vector<324x128xf32>
    %61 = arith.addf %56, %60 : vector<324x128xf32>
    %c15 = arith.constant 15 : index
    %c0_34 = arith.constant 0 : index
    %62 = vector.load %arg8[%c15, %c0_34] : memref<388x128xbf16, #tpu.memory_space<vmem>>, vector<324x128xbf16>
    %c0_35 = arith.constant 0 : index
    %c2 = arith.constant 2 : index
    %c0_36 = arith.constant 0 : index
    %c0_37 = arith.constant 0 : index
    %63 = vector.load %arg5[%c0_35, %c2, %c0_36, %c0_37] : memref<1x9x128x128xbf16, #tpu.memory_space<vmem>>, vector<1x1x128x128xbf16>
    %64 = vector.shape_cast %63 : vector<1x1x128x128xbf16> to vector<128x128xbf16>
    %cst_38 = arith.constant dense<0.000000e+00> : vector<324x128xf32>
    %65 = tpu.matmul %62, %64, %cst_38 {dimension_numbers = #tpu.dot_dimension_numbers<[1], [0], [0], [1], [0, 0, 1, 1], [], []>} : vector<324x128xbf16>, vector<128x128xbf16>, vector<324x128xf32> -> vector<324x128xf32>
    %66 = arith.addf %61, %65 : vector<324x128xf32>
    %c31 = arith.constant 31 : index
    %c0_39 = arith.constant 0 : index
    %67 = vector.load %arg8[%c31, %c0_39] : memref<388x128xbf16, #tpu.memory_space<vmem>>, vector<324x128xbf16>
    %c0_40 = arith.constant 0 : index
    %c3 = arith.constant 3 : index
    %c0_41 = arith.constant 0 : index
    %c0_42 = arith.constant 0 : index
    %68 = vector.load %arg5[%c0_40, %c3, %c0_41, %c0_42] : memref<1x9x128x128xbf16, #tpu.memory_space<vmem>>, vector<1x1x128x128xbf16>
    %69 = vector.shape_cast %68 : vector<1x1x128x128xbf16> to vector<128x128xbf16>
    %cst_43 = arith.constant dense<0.000000e+00> : vector<324x128xf32>
    %70 = tpu.matmul %67, %69, %cst_43 {dimension_numbers = #tpu.dot_dimension_numbers<[1], [0], [0], [1], [0, 0, 1, 1], [], []>} : vector<324x128xbf16>, vector<128x128xbf16>, vector<324x128xf32> -> vector<324x128xf32>
    %71 = arith.addf %66, %70 : vector<324x128xf32>
    %c32_44 = arith.constant 32 : index
    %c0_45 = arith.constant 0 : index
    %72 = vector.load %arg8[%c32_44, %c0_45] : memref<388x128xbf16, #tpu.memory_space<vmem>>, vector<324x128xbf16>
    %c0_46 = arith.constant 0 : index
    %c4 = arith.constant 4 : index
    %c0_47 = arith.constant 0 : index
    %c0_48 = arith.constant 0 : index
    %73 = vector.load %arg5[%c0_46, %c4, %c0_47, %c0_48] : memref<1x9x128x128xbf16, #tpu.memory_space<vmem>>, vector<1x1x128x128xbf16>
    %74 = vector.shape_cast %73 : vector<1x1x128x128xbf16> to vector<128x128xbf16>
    %cst_49 = arith.constant dense<0.000000e+00> : vector<324x128xf32>
    %75 = tpu.matmul %72, %74, %cst_49 {dimension_numbers = #tpu.dot_dimension_numbers<[1], [0], [0], [1], [0, 0, 1, 1], [], []>} : vector<324x128xbf16>, vector<128x128xbf16>, vector<324x128xf32> -> vector<324x128xf32>
    %76 = arith.addf %71, %75 : vector<324x128xf32>
    %c33 = arith.constant 33 : index
    %c0_50 = arith.constant 0 : index
    %77 = vector.load %arg8[%c33, %c0_50] : memref<388x128xbf16, #tpu.memory_space<vmem>>, vector<324x128xbf16>
    %c0_51 = arith.constant 0 : index
    %c5 = arith.constant 5 : index
    %c0_52 = arith.constant 0 : index
    %c0_53 = arith.constant 0 : index
    %78 = vector.load %arg5[%c0_51, %c5, %c0_52, %c0_53] : memref<1x9x128x128xbf16, #tpu.memory_space<vmem>>, vector<1x1x128x128xbf16>
    %79 = vector.shape_cast %78 : vector<1x1x128x128xbf16> to vector<128x128xbf16>
    %cst_54 = arith.constant dense<0.000000e+00> : vector<324x128xf32>
    %80 = tpu.matmul %77, %79, %cst_54 {dimension_numbers = #tpu.dot_dimension_numbers<[1], [0], [0], [1], [0, 0, 1, 1], [], []>} : vector<324x128xbf16>, vector<128x128xbf16>, vector<324x128xf32> -> vector<324x128xf32>
    %81 = arith.addf %76, %80 : vector<324x128xf32>
    %c49 = arith.constant 49 : index
    %c0_55 = arith.constant 0 : index
    %82 = vector.load %arg8[%c49, %c0_55] : memref<388x128xbf16, #tpu.memory_space<vmem>>, vector<324x128xbf16>
    %c0_56 = arith.constant 0 : index
    %c6 = arith.constant 6 : index
    %c0_57 = arith.constant 0 : index
    %c0_58 = arith.constant 0 : index
    %83 = vector.load %arg5[%c0_56, %c6, %c0_57, %c0_58] : memref<1x9x128x128xbf16, #tpu.memory_space<vmem>>, vector<1x1x128x128xbf16>
    %84 = vector.shape_cast %83 : vector<1x1x128x128xbf16> to vector<128x128xbf16>
    %cst_59 = arith.constant dense<0.000000e+00> : vector<324x128xf32>
    %85 = tpu.matmul %82, %84, %cst_59 {dimension_numbers = #tpu.dot_dimension_numbers<[1], [0], [0], [1], [0, 0, 1, 1], [], []>} : vector<324x128xbf16>, vector<128x128xbf16>, vector<324x128xf32> -> vector<324x128xf32>
    %86 = arith.addf %81, %85 : vector<324x128xf32>
    %c50 = arith.constant 50 : index
    %c0_60 = arith.constant 0 : index
    %87 = vector.load %arg8[%c50, %c0_60] : memref<388x128xbf16, #tpu.memory_space<vmem>>, vector<324x128xbf16>
    %c0_61 = arith.constant 0 : index
    %c7 = arith.constant 7 : index
    %c0_62 = arith.constant 0 : index
    %c0_63 = arith.constant 0 : index
    %88 = vector.load %arg5[%c0_61, %c7, %c0_62, %c0_63] : memref<1x9x128x128xbf16, #tpu.memory_space<vmem>>, vector<1x1x128x128xbf16>
    %89 = vector.shape_cast %88 : vector<1x1x128x128xbf16> to vector<128x128xbf16>
    %cst_64 = arith.constant dense<0.000000e+00> : vector<324x128xf32>
    %90 = tpu.matmul %87, %89, %cst_64 {dimension_numbers = #tpu.dot_dimension_numbers<[1], [0], [0], [1], [0, 0, 1, 1], [], []>} : vector<324x128xbf16>, vector<128x128xbf16>, vector<324x128xf32> -> vector<324x128xf32>
    %91 = arith.addf %86, %90 : vector<324x128xf32>
    %c51 = arith.constant 51 : index
    %c0_65 = arith.constant 0 : index
    %92 = vector.load %arg8[%c51, %c0_65] : memref<388x128xbf16, #tpu.memory_space<vmem>>, vector<324x128xbf16>
    %c0_66 = arith.constant 0 : index
    %c8 = arith.constant 8 : index
    %c0_67 = arith.constant 0 : index
    %c0_68 = arith.constant 0 : index
    %93 = vector.load %arg5[%c0_66, %c8, %c0_67, %c0_68] : memref<1x9x128x128xbf16, #tpu.memory_space<vmem>>, vector<1x1x128x128xbf16>
    %94 = vector.shape_cast %93 : vector<1x1x128x128xbf16> to vector<128x128xbf16>
    %cst_69 = arith.constant dense<0.000000e+00> : vector<324x128xf32>
    %95 = tpu.matmul %92, %94, %cst_69 {dimension_numbers = #tpu.dot_dimension_numbers<[1], [0], [0], [1], [0, 0, 1, 1], [], []>} : vector<324x128xbf16>, vector<128x128xbf16>, vector<324x128xf32> -> vector<324x128xf32>
    %96 = arith.addf %91, %95 : vector<324x128xf32>
    %c0_70 = arith.constant 0 : index
    %c0_71 = arith.constant 0 : index
    %c0_72 = arith.constant 0 : index
    %97 = vector.load %arg6[%c0_70, %c0_71, %c0_72] : memref<1x1x128xf32, #tpu.memory_space<vmem>>, vector<1x1x128xf32>
    %98 = vector.shape_cast %97 : vector<1x1x128xf32> to vector<1x128xf32>
    %99 = vector.broadcast %98 : vector<1x128xf32> to vector<324x128xf32>
    %100 = arith.addf %96, %99 : vector<324x128xf32>
    %cst_73 = arith.constant 2.000000e+01 : f32
    %101 = vector.broadcast %cst_73 : f32 to vector<324x128xf32>
    %102 = arith.minimumf %100, %101 : vector<324x128xf32>
    %103 = math.exp %102 : vector<324x128xf32>
    %cst_74 = arith.constant 1.000000e+00 : f32
    %104 = vector.broadcast %cst_74 : f32 to vector<324x128xf32>
    %105 = arith.addf %104, %103 : vector<324x128xf32>
    %cst_75 = arith.constant 1.000000e+00 : f32
    %106 = vector.broadcast %cst_75 : f32 to vector<324x128xf32>
    %107 = arith.addf %106, %103 : vector<324x128xf32>
    %108 = arith.mulf %105, %107 : vector<324x128xf32>
    %cst_76 = arith.constant 1.000000e+00 : f32
    %109 = vector.broadcast %cst_76 : f32 to vector<324x128xf32>
    %110 = arith.subf %108, %109 : vector<324x128xf32>
    %111 = arith.mulf %100, %110 : vector<324x128xf32>
    %cst_77 = arith.constant 1.000000e+00 : f32
    %112 = vector.broadcast %cst_77 : f32 to vector<324x128xf32>
    %113 = arith.addf %108, %112 : vector<324x128xf32>
    %114 = tpu.reciprocal %113 {approx = true} : vector<324x128xf32> -> vector<324x128xf32>
    %115 = arith.mulf %111, %114 : vector<324x128xf32>
    %116 = arith.addf %25, %115 : vector<324x128xf32>
    %cst_78 = arith.constant 0.000000e+00 : f32
    %117 = vector.broadcast %cst_78 : f32 to vector<324x128xf32>
    %118 = arith.select %23, %116, %117 : vector<324x128xi1>, vector<324x128xf32>
    %c0_79 = arith.constant 0 : index
    %c0_80 = arith.constant 0 : index
    %c0_81 = arith.constant 0 : index
    %119 = vector.load %arg7[%c0_79, %c0_80, %c0_81] : memref<1x324x128xf32, #tpu.memory_space<vmem>>, vector<1x324x128xf32>
    %120 = vector.shape_cast %119 : vector<1x324x128xf32> to vector<324x128xf32>
    %121 = vector.shape_cast %118 : vector<324x128xf32> to vector<1x324x128xf32>
    tpu.vector_store %arg7[%c0_79, %c0_80, %c0_81], %121 {strides = array<i32>} : memref<1x324x128xf32, #tpu.memory_space<vmem>>, vector<1x324x128xf32>,
    return
  }
  func.func @transform_0(%arg0: i32, %arg1: i32) -> (i32, i32, i32) {
    %c0_i32 = arith.constant 0 : i32
    %c0_i32_0 = arith.constant 0 : i32
    %c0_i32_1 = arith.constant 0 : i32
    return %arg0, %c0_i32, %c0_i32_0 : i32, i32, i32
  }
  func.func @transform_1(%arg0: i32, %arg1: i32) -> (i32, i32, i32) {
    %c0_i32 = arith.constant 0 : i32
    %c0_i32_0 = arith.constant 0 : i32
    %c0_i32_1 = arith.constant 0 : i32
    return %arg1, %c0_i32, %c0_i32_0 : i32, i32, i32
  }
  func.func @transform_2(%arg0: i32, %arg1: i32) -> (i32, i32, i32) {
    %c0_i32 = arith.constant 0 : i32
    %c0_i32_0 = arith.constant 0 : i32
    %c0_i32_1 = arith.constant 0 : i32
    return %arg1, %c0_i32, %c0_i32_0 : i32, i32, i32
  }
  func.func @transform_3(%arg0: i32, %arg1: i32) -> (i32, i32, i32, i32) {
    %c0_i32 = arith.constant 0 : i32
    %c0_i32_0 = arith.constant 0 : i32
    %c0_i32_1 = arith.constant 0 : i32
    %c0_i32_2 = arith.constant 0 : i32
    return %arg1, %c0_i32, %c0_i32_0, %c0_i32_1 : i32, i32, i32, i32
  }
  func.func @transform_4(%arg0: i32, %arg1: i32) -> (i32, i32, i32) {
    %c0_i32 = arith.constant 0 : i32
    %c0_i32_0 = arith.constant 0 : i32
    %c0_i32_1 = arith.constant 0 : i32
    return %arg1, %c0_i32, %c0_i32_0 : i32, i32, i32
  }
  func.func @transform_5(%arg0: i32, %arg1: i32) -> (i32, i32, i32) {
    %c0_i32 = arith.constant 0 : i32
    %c0_i32_0 = arith.constant 0 : i32
    %c0_i32_1 = arith.constant 0 : i32
    return %arg0, %c0_i32, %c0_i32_0 : i32, i32, i32
  }
}

</mosaic_0001>

<bundles_post_ra>
// kernel: resblock_forward.1
= control target key start
LH: loop header
LB: loop body
LE: loop exit
PB: predicated region body
PF: predicated region fallthrough
CT: control target
= control target key end

     0   :  { %s9555_s18 = smov 0   ;;  %s9557_s19 = smov 0   ;;  %s14404_s0 = inlined_call_operand.vmem [shape: f32[2,324,128], index: 0, kind: input, shape index: {}]   ;;  %s14405_s1 = inlined_call_operand.vmem [shape: bf16[2,128,128], index: 1, kind: input, shape index: {}]   ;;  %s14406_s2 = inlined_call_operand.vmem [shape: f32[2,1,128], index: 2, kind: input, shape index: {}]   ;;  %s14407_s3 = inlined_call_operand.vmem [shape: bf16[2,9,128,128], index: 3, kind: input, shape index: {}]   ;;  %s14408_s4 = inlined_call_operand.vmem [shape: f32[2,1,128], index: 4, kind: input, shape index: {}]   ;;  %s14409_s5 = inlined_call_operand.vmem [shape: f32[2,324,128], index: 5, kind: output, shape index: {}]  }
   0x1   :  { %s9559_s20 = smov 0   ;;  %s9561_s21 = smov 0  }
   0x2   :  { %s9563_s22 = smov 0  }
   0x3 LB: > { %s24_s23 = sadd.s32 1, %s9512_s20  ;;  %s27_s24 = sadd.s32 1, %s9516_s21  ;;  %s9520_s22 = sphi %s9563_s22, %s15_s22   ;;  %s9516_s21 = sphi %s9561_s21, %s15588_s21   ;;  %s9512_s20 = sphi %s9559_s20, %s15587_s20   ;;  %s9508_s19 = sphi %s9557_s19, %s15586_s19   ;;  %s9504_s18 = sphi %s9555_s18, %s15585_s18  }
   0x4   : > { %p25_p0 = scmp.ge.s32.totalorder %s24_s23, 2  ;;  %p6982_p1 = scmp.ge.s32.totalorder %s9520_s22, 1 }
   0x5   : > { %p235_p2 = scmp.lt.s32.totalorder %s9520_s22, 5 }
   0x6   : > { %s15590_s23 = smov (%p25_p0, %s24_s23), 0  ;;  %s15592_s24 = smov (!%p25_p0, %s27_s24), %s9516_s21 }
   0x7   : > { %p236_p3 = pnand %p6982_p1, %p235_p2  ;;  %p29_p4 = scmp.ge.s32.totalorder %s15592_s24, 2 }
   0x9   : > { %s15594_s24 = smov (%p29_p4, %s15592_s24), 0  ;;  %239 = sbr.rel (%p236_p3) target bundleno = 1518 (0x5ee), region = 40 }
  0x10   : > { %p279_p5 = scmp.lt.s32.totalorder %s9508_s19, 1  ;;  %p284_p6 = scmp.lt.s32.totalorder %s9504_s18, 1 }
  0x11   : > { %p6988_p7 = scmp.ne.s32.totalorder %s9504_s18, 0 }
  0x12   : > { %s15596_s19 = smov (!%p279_p5, %s9508_s19), 1  ;;  %v9522_v6 = vmov (!%p6988_p7), 0  }
  0x13   : > { %s285_s25 = scalar_select %p284_p6, %s9504_s18, 1 }
  0x14   : > { %s8865_s26 = smul.u32 328, %s15596_s19  ;;  %393 = vst [vmem:[#allocation2 + $0x4] sm:$0xf] (!%p6988_p7), %v9522_v6  ;;  %394 = vst [vmem:[#allocation2 + $0x8] sm:$0xf] (!%p6988_p7), %v9522_v6 }
  0x15   : > { %s7413_s27 = sshll.u32 %s285_s25, 6  ;;  %s9592_s30 = scalar_lea.vmem %s14406_s2, %s285_s25  ;;  %395 = vst [vmem:[#allocation2 + $0xc] sm:$0xf] (!%p6988_p7), %v9522_v6  ;;  %396 = vst [vmem:[#allocation2 + $0xb0] sm:$0xc] (!%p6988_p7), %v9522_v6 }
  0x16   : > { %s9597_s8 = scalar_lea.vmem %s14404_s0, %s8865_s26  ;;  %s9602_s11 = scalar_lea.vmem %s14405_s1, %s7413_s27  ;;  %397 = vst [vmem:[#allocation2 + $0xb4] sm:$0xf] (!%p6988_p7), %v9522_v6  ;;  %398 = vst [vmem:[#allocation2 + $0xb8] sm:$0xf] (!%p6988_p7), %v9522_v6 }
  0x17   : > { %s8866_s12 = smul.u32 576, %s285_s25  ;;  %s9607_s15 = scalar_lea.vmem %s14408_s4, %s285_s25  ;;  %v310_v0 = vld [vmem:[%s9597_s8] sm:$0xff] (!%p6988_p7)  ;;  %v311_v1 = vld [vmem:[%s9597_s8 + $0x8] sm:$0xff] (!%p6988_p7)  ;;  %v312_v2 = vld [vmem:[%s9597_s8 + $0x10] sm:$0xff] (!%p6988_p7) }
  0x18   : > { %s9612_s19 = scalar_lea.vmem %s14409_s5, %s8865_s26  ;;  %309 = sbr.rel (%p6988_p7) target bundleno = 46 (0x2e), region = 44  ;;  %v313_v3 = vld [vmem:[%s9597_s8 + $0x18] sm:$0xff] (!%p6988_p7)  ;;  %v314_v4 = vld [vmem:[%s9597_s8 + $0x20] sm:$0xff] (!%p6988_p7)  ;;  %v315_v5 = vld [vmem:[%s9597_s8 + $0x28] sm:$0xff] (!%p6988_p7) }
  0x19   : > { %s9617_s6 = scalar_lea.vmem %s14407_s3, %s8866_s12  ;;  %351 = vst [vmem:[%s9612_s19] sm:$0xff] (!%p6988_p7), %v310_v0  ;;  %352 = vst [vmem:[%s9612_s19 + $0x8] sm:$0xff] (!%p6988_p7), %v311_v1  ;;  %v316_v7 = vld [vmem:[%s9597_s8 + $0x30] sm:$0xff] (!%p6988_p7)  ;;  %v317_v8 = vld [vmem:[%s9597_s8 + $0x38] sm:$0xff] (!%p6988_p7) }
  0x1a   : > { %353 = vst [vmem:[%s9612_s19 + $0x10] sm:$0xff] (!%p6988_p7), %v312_v2  ;;  %354 = vst [vmem:[%s9612_s19 + $0x18] sm:$0xff] (!%p6988_p7), %v313_v3  ;;  %v318_v9 = vld [vmem:[%s9597_s8 + $0x40] sm:$0xff] (!%p6988_p7)  ;;  %v319_v10 = vld [vmem:[%s9597_s8 + $0x48] sm:$0xff] (!%p6988_p7) }
  0x1b   : > { %355 = vst [vmem:[%s9612_s19 + $0x20] sm:$0xff] (!%p6988_p7), %v314_v4  ;;  %356 = vst [vmem:[%s9612_s19 + $0x28] sm:$0xff] (!%p6988_p7), %v315_v5  ;;  %v320_v11 = vld [vmem:[%s9597_s8 + $0x50] sm:$0xff] (!%p6988_p7)  ;;  %v321_v12 = vld [vmem:[%s9597_s8 + $0x58] sm:$0xff] (!%p6988_p7) }
  0x1c   : > { %357 = vst [vmem:[%s9612_s19 + $0x30] sm:$0xff] (!%p6988_p7), %v316_v7  ;;  %358 = vst [vmem:[%s9612_s19 + $0x38] sm:$0xff] (!%p6988_p7), %v317_v8  ;;  %v322_v13 = vld [vmem:[%s9597_s8 + $0x60] sm:$0xff] (!%p6988_p7)  ;;  %v323_v14 = vld [vmem:[%s9597_s8 + $0x68] sm:$0xff] (!%p6988_p7) }
  0x1d   : > { %359 = vst [vmem:[%s9612_s19 + $0x40] sm:$0xff] (!%p6988_p7), %v318_v9  ;;  %360 = vst [vmem:[%s9612_s19 + $0x48] sm:$0xff] (!%p6988_p7), %v319_v10  ;;  %v324_v15 = vld [vmem:[%s9597_s8 + $0x70] sm:$0xff] (!%p6988_p7)  ;;  %v325_v16 = vld [vmem:[%s9597_s8 + $0x78] sm:$0xff] (!%p6988_p7) }
  0x1e   : > { %361 = vst [vmem:[%s9612_s19 + $0x50] sm:$0xff] (!%p6988_p7), %v320_v11  ;;  %362 = vst [vmem:[%s9612_s19 + $0x58] sm:$0xff] (!%p6988_p7), %v321_v12  ;;  %v326_v17 = vld [vmem:[%s9597_s8 + $0x80] sm:$0xff] (!%p6988_p7)  ;;  %v327_v18 = vld [vmem:[%s9597_s8 + $0x88] sm:$0xff] (!%p6988_p7) }
  0x1f   : > { %363 = vst [vmem:[%s9612_s19 + $0x60] sm:$0xff] %v322_v13  ;;  %364 = vst [vmem:[%s9612_s19 + $0x68] sm:$0xff] %v323_v14  ;;  %v328_v19 = vld [vmem:[%s9597_s8 + $0x90] sm:$0xff]  ;;  %v329_v20 = vld [vmem:[%s9597_s8 + $0x98] sm:$0xff] }
  0x20   : > { %365 = vst [vmem:[%s9612_s19 + $0x70] sm:$0xff] %v324_v15  ;;  %366 = vst [vmem:[%s9612_s19 + $0x78] sm:$0xff] %v325_v16  ;;  %v330_v21 = vld [vmem:[%s9597_s8 + $0xa0] sm:$0xff]  ;;  %v331_v22 = vld [vmem:[%s9597_s8 + $0xa8] sm:$0xff] }
  0x21   : > { %367 = vst [vmem:[%s9612_s19 + $0x80] sm:$0xff] %v326_v17  ;;  %368 = vst [vmem:[%s9612_s19 + $0x88] sm:$0xff] %v327_v18  ;;  %v332_v23 = vld [vmem:[%s9597_s8 + $0xb0] sm:$0xff]  ;;  %v333_v24 = vld [vmem:[%s9597_s8 + $0xb8] sm:$0xff] }
  0x22   : > { %369 = vst [vmem:[%s9612_s19 + $0x90] sm:$0xff] %v328_v19  ;;  %370 = vst [vmem:[%s9612_s19 + $0x98] sm:$0xff] %v329_v20  ;;  %v334_v25 = vld [vmem:[%s9597_s8 + $0xc0] sm:$0xff]  ;;  %v335_v26 = vld [vmem:[%s9597_s8 + $0xc8] sm:$0xff] }
  0x23   : > { %371 = vst [vmem:[%s9612_s19 + $0xa0] sm:$0xff] %v330_v21  ;;  %372 = vst [vmem:[%s9612_s19 + $0xa8] sm:$0xff] %v331_v22  ;;  %v336_v27 = vld [vmem:[%s9597_s8 + $0xd0] sm:$0xff]  ;;  %v337_v28 = vld [vmem:[%s9597_s8 + $0xd8] sm:$0xff] }
  0x24   : > { %373 = vst [vmem:[%s9612_s19 + $0xb0] sm:$0xff] %v332_v23  ;;  %374 = vst [vmem:[%s9612_s19 + $0xb8] sm:$0xff] %v333_v24  ;;  %v338_v29 = vld [vmem:[%s9597_s8 + $0xe0] sm:$0xff]  ;;  %v339_v30 = vld [vmem:[%s9597_s8 + $0xe8] sm:$0xff] }
  0x25   : > { %375 = vst [vmem:[%s9612_s19 + $0xc0] sm:$0xff] %v334_v25  ;;  %376 = vst [vmem:[%s9612_s19 + $0xc8] sm:$0xff] %v335_v26  ;;  %v340_v31 = vld [vmem:[%s9597_s8 + $0xf0] sm:$0xff]  ;;  %v341_v32 = vld [vmem:[%s9597_s8 + $0xf8] sm:$0xff] }
  0x26   : > { %377 = vst [vmem:[%s9612_s19 + $0xd0] sm:$0xff] %v336_v27  ;;  %378 = vst [vmem:[%s9612_s19 + $0xd8] sm:$0xff] %v337_v28  ;;  %v342_v33 = vld [vmem:[%s9597_s8 + $0x100] sm:$0xff]  ;;  %v343_v34 = vld [vmem:[%s9597_s8 + $0x108] sm:$0xff] }
  0x27   : > { %379 = vst [vmem:[%s9612_s19 + $0xe0] sm:$0xff] %v338_v29  ;;  %380 = vst [vmem:[%s9612_s19 + $0xe8] sm:$0xff] %v339_v30  ;;  %v344_v35 = vld [vmem:[%s9597_s8 + $0x110] sm:$0xff]  ;;  %v345_v36 = vld [vmem:[%s9597_s8 + $0x118] sm:$0xff] }
  0x28   : > { %381 = vst [vmem:[%s9612_s19 + $0xf0] sm:$0xff] %v340_v31  ;;  %382 = vst [vmem:[%s9612_s19 + $0xf8] sm:$0xff] %v341_v32  ;;  %v346_v37 = vld [vmem:[%s9597_s8 + $0x120] sm:$0xff]  ;;  %v347_v38 = vld [vmem:[%s9597_s8 + $0x128] sm:$0xff] }
  0x29   : > { %383 = vst [vmem:[%s9612_s19 + $0x100] sm:$0xff] %v342_v33  ;;  %384 = vst [vmem:[%s9612_s19 + $0x108] sm:$0xff] %v343_v34  ;;  %v348_v39 = vld [vmem:[%s9597_s8 + $0x130] sm:$0xff]  ;;  %v349_v40 = vld [vmem:[%s9597_s8 + $0x138] sm:$0xff] }
  0x2a   : > { %385 = vst [vmem:[%s9612_s19 + $0x110] sm:$0xff] %v344_v35  ;;  %386 = vst [vmem:[%s9612_s19 + $0x118] sm:$0xff] %v345_v36  ;;  %v350_v41 = vld [vmem:[%s9597_s8 + $0x140] sm:$0xf] }
  0x2b   : > { %387 = vst [vmem:[%s9612_s19 + $0x120] sm:$0xff] %v346_v37  ;;  %388 = vst [vmem:[%s9612_s19 + $0x128] sm:$0xff] %v347_v38 }
  0x2c   : > { %389 = vst [vmem:[%s9612_s19 + $0x130] sm:$0xff] %v348_v39  ;;  %390 = vst [vmem:[%s9612_s19 + $0x138] sm:$0xff] %v349_v40 }
  0x2d   : > { %391 = vst [vmem:[%s9612_s19 + $0x140] sm:$0xf] %v350_v41 }
  0x2e PF: > { %v8910_v42 = vld [vmem:[%s9602_s11] sm:$0xff]   ;;  %v14410_v43 = vmov 0.0   ;;  %v8911_v44 = vld [vmem:[%s9602_s11 + $0x8] sm:$0xff]   ;;  %vm14460_vm0 = vmmov 0   ;;  %v8912_v45 = vld [vmem:[%s9602_s11 + $0x10] sm:$0xff]  }
  0x2f   : > { %7865 = vmatprep.subr.bf16.mxu0 %v14410_v43  ;;  %7965 = vmatprep.subr.bf16.mxu1 %v14410_v43  ;;  %v8913_v46 = vld [vmem:[%s9602_s11 + $0x18] sm:$0xff]   ;;  %v8914_v47 = vld [vmem:[%s9602_s11 + $0x20] sm:$0xff]   ;;  %v8915_v48 = vld [vmem:[%s9602_s11 + $0x28] sm:$0xff]  }
  0x30   : > { %7866 = vmatpush3.bf16.msra.mxu0 %v8910_v42  ;;  %7881 = vmatprep.mubr.msk.bf16.mxu0 %vm14460_vm0, %v14410_v43  ;;  %v8916_v49 = vld [vmem:[%s9602_s11 + $0x30] sm:$0xff]   ;;  %v8917_v50 = vld [vmem:[%s9602_s11 + $0x38] sm:$0xff]   ;;  %v976_v51 = vld [vmem:[%s9612_s19] sm:$0xff] }
  0x31   : > { %7867 = vmatprep.subr.bf16.mxu0 %v14410_v43  ;;  %7981 = vmatprep.mubr.msk.bf16.mxu1 %vm14460_vm0, %v14410_v43  ;;  %v977_v52 = vld [vmem:[%s9612_s19 + $0x8] sm:$0xff]  ;;  %v978_v54 = vld [vmem:[%s9612_s19 + $0x10] sm:$0xff]  ;;  %v979_v55 = vld [vmem:[%s9612_s19 + $0x18] sm:$0xff] }
  0x32   : > { %v1017_v53 = vpack.c.bf16 %v977_v52, %v976_v51  ;;  %v1018_v56 = vpack.c.bf16 %v979_v55, %v978_v54  ;;  %v980_v57 = vld [vmem:[%s9612_s19 + $0x20] sm:$0xff]  ;;  %v981_v58 = vld [vmem:[%s9612_s19 + $0x28] sm:$0xff]  ;;  %v982_v60 = vld [vmem:[%s9612_s19 + $0x30] sm:$0xff] }
  0x33   : > { %v1019_v59 = vpack.c.bf16 %v981_v58, %v980_v57  ;;  %v983_v61 = vld [vmem:[%s9612_s19 + $0x38] sm:$0xff]  ;;  %v984_v63 = vld [vmem:[%s9612_s19 + $0x40] sm:$0xff]  ;;  %v985_v0 = vld [vmem:[%s9612_s19 + $0x48] sm:$0xff] }
  0x34   : > { %7868 = vmatpush3.bf16.msra.mxu0 %v8911_v44  ;;  %v1020_v62 = vpack.c.bf16 %v983_v61, %v982_v60  ;;  %v1021_v1 = vpack.c.bf16 %v985_v0, %v984_v63  ;;  %v986_v2 = vld [vmem:[%s9612_s19 + $0x50] sm:$0xff]  ;;  %v987_v3 = vld [vmem:[%s9612_s19 + $0x58] sm:$0xff]  ;;  %v988_v5 = vld [vmem:[%s9612_s19 + $0x60] sm:$0xff] }
  0x35   : > { %7869 = vmatprep.subr.bf16.mxu0 %v14410_v43  ;;  %v1022_v4 = vpack.c.bf16 %v987_v3, %v986_v2  ;;  %v989_v6 = vld [vmem:[%s9612_s19 + $0x68] sm:$0xff]  ;;  %v990_v8 = vld [vmem:[%s9612_s19 + $0x70] sm:$0xff]  ;;  %v991_v9 = vld [vmem:[%s9612_s19 + $0x78] sm:$0xff]  ;;  %v401_v2 = vlaneseq }
  0x36   : > { %v1023_v7 = vpack.c.bf16 %v989_v6, %v988_v5  ;;  %v1024_v10 = vpack.c.bf16 %v991_v9, %v990_v8  ;;  %v992_v11 = vld [vmem:[%s9612_s19 + $0x80] sm:$0xff]  ;;  %v993_v12 = vld [vmem:[%s9612_s19 + $0x88] sm:$0xff]  ;;  %v994_v14 = vld [vmem:[%s9612_s19 + $0x90] sm:$0xff] }
  0x37   : > { %v1025_v13 = vpack.c.bf16 %v993_v12, %v992_v11  ;;  %v995_v15 = vld [vmem:[%s9612_s19 + $0x98] sm:$0xff]  ;;  %v996_v17 = vld [vmem:[%s9612_s19 + $0xa0] sm:$0xff]  ;;  %v997_v18 = vld [vmem:[%s9612_s19 + $0xa8] sm:$0xff]  ;;  %v9839_v3 = vshrl.u32 %v401_v2, 7 }
  0x38   : > { %7870 = vmatpush3.bf16.msra.mxu0 %v8912_v45  ;;  %v1026_v16 = vpack.c.bf16 %v995_v15, %v994_v14  ;;  %v1027_v19 = vpack.c.bf16 %v997_v18, %v996_v17  ;;  %v998_v20 = vld [vmem:[%s9612_s19 + $0xb0] sm:$0xff]  ;;  %v999_v21 = vld [vmem:[%s9612_s19 + $0xb8] sm:$0xff]  ;;  %v1000_v23 = vld [vmem:[%s9612_s19 + $0xc0] sm:$0xff] }
  0x39   : > { %7871 = vmatprep.subr.bf16.mxu0 %v14410_v43  ;;  %v1028_v22 = vpack.c.bf16 %v999_v21, %v998_v20  ;;  %v1001_v24 = vld [vmem:[%s9612_s19 + $0xc8] sm:$0xff]  ;;  %v1002_v26 = vld [vmem:[%s9612_s19 + $0xd0] sm:$0xff]  ;;  %v1003_v27 = vld [vmem:[%s9612_s19 + $0xd8] sm:$0xff]  ;;  %v443_v5 = vcvt.s32.f32 %v9839_v3  ;;  %v9844_v6 = vadd.s32 16, %v9839_v3  ;;  %v9850_v9 = vadd.s32 32, %v9839_v3 }
  0x3a   : > { %v1029_v25 = vpack.c.bf16 %v1001_v24, %v1000_v23  ;;  %v1030_v28 = vpack.c.bf16 %v1003_v27, %v1002_v26  ;;  %v1004_v29 = vld [vmem:[%s9612_s19 + $0xe0] sm:$0xff]  ;;  %v1005_v30 = vld [vmem:[%s9612_s19 + $0xe8] sm:$0xff]  ;;  %v1006_v35 = vld [vmem:[%s9612_s19 + $0xf0] sm:$0xff]  ;;  %v9860_v23 = vadd.s32 48, %v9839_v3  ;;  %v9863_v24 = vadd.s32 56, %v9839_v3 }
  0x3b   : > { %v8918_v31 = vld [vmem:[%s9617_s6 + $0x40] sm:$0xff]   ;;  %v1031_v32 = vpack.c.bf16 %v1005_v30, %v1004_v29  ;;  %v8919_v33 = vld [vmem:[%s9617_s6 + $0x48] sm:$0xff]   ;;  %v1007_v36 = vld [vmem:[%s9612_s19 + $0xf8] sm:$0xff]  ;;  %v484_v11 = vadd.f32 0.5, %v443_v5  ;;  %v445_v12 = vcvt.s32.f32 %v9844_v6  ;;  %v447_v15 = vcvt.s32.f32 %v9850_v9 }
  0x3c   : > { %7872 = vmatpush3.bf16.msra.mxu0 %v8913_v46  ;;  %7966 = vmatpush3.bf16.msra.mxu1 %v8918_v31  ;;  %v8920_v34 = vld [vmem:[%s9617_s6] sm:$0xff]   ;;  %v8921_v37 = vld [vmem:[%s9617_s6 + $0x50] sm:$0xff]   ;;  %v8922_v38 = vld [vmem:[%s9617_s6 + $0x8] sm:$0xff]   ;;  %v1032_v39 = vpack.c.bf16 %v1007_v36, %v1006_v35  ;;  %v9870_v29 = vadd.s32 64, %v9839_v3  ;;  %v9873_v30 = vadd.s32 72, %v9839_v3  ;;  %v9878_v35 = vadd.s32 80, %v9839_v3 }
  0x3d   : > { %7873 = vmatprep.subr.bf16.mxu0 %v14410_v43  ;;  %7967 = vmatprep.subr.bf16.mxu1 %v14410_v43  ;;  %v8923_v40 = vld [vmem:[%s9617_s6 + $0x58] sm:$0xff]   ;;  %v8924_v41 = vld [vmem:[%s9617_s6 + $0x10] sm:$0xff]   ;;  %v1008_v42 = vld [vmem:[%s9612_s19 + $0x100] sm:$0xff]  ;;  %v525_v17 = vmul.f32 0.055555556, %v484_v11  ;;  %v486_v18 = vadd.f32 0.5, %v445_v12 }
  0x3e   : > { %v1009_v44 = vld [vmem:[%s9612_s19 + $0x108] sm:$0xff]  ;;  %v8925_v45 = vld [vmem:[%s9617_s6 + $0x60] sm:$0xff]   ;;  %v8926_v46 = vld [vmem:[%s9617_s6 + $0x18] sm:$0xff]   ;;  %v488_v21 = vadd.f32 0.5, %v447_v15 }
  0x3f   : > { %v1011_v51 = vld [vmem:[%s9612_s19 + $0x118] sm:$0xff]  ;;  %v8929_v52 = vld [vmem:[%s9617_s6 + $0x70] sm:$0xff]   ;;  %v1012_v57 = vld [vmem:[%s9612_s19 + $0x120] sm:$0xff]  ;;  %v527_v26 = vmul.f32 0.055555556, %v486_v18 }
  0x40   : > { %7874 = vmatpush3.bf16.msra.mxu0 %v8914_v47  ;;  %7968 = vmatpush3.bf16.msra.mxu1 %v8919_v33  ;;  %v1033_v47 = vpack.c.bf16 %v1009_v44, %v1008_v42  ;;  %v8931_v55 = vld [vmem:[%s9617_s6 + $0x78] sm:$0xff]   ;;  %v1013_v58 = vld [vmem:[%s9612_s19 + $0x128] sm:$0xff]  ;;  %v1014_v61 = vld [vmem:[%s9612_s19 + $0x130] sm:$0xff]  ;;  %v529_v31 = vmul.f32 0.055555556, %v488_v21  ;;  %v449_v33 = vcvt.s32.f32 %v9860_v23  ;;  %v9889_v42 = vadd.s32 88, %v9839_v3 }
  0x41   : > { %7875 = vmatprep.subr.bf16.mxu0 %v14410_v43  ;;  %7969 = vmatprep.subr.bf16.mxu1 %v14410_v43  ;;  %v1035_v60 = vpack.c.bf16 %v1013_v58, %v1012_v57  ;;  %v1016_v0 = vld [vmem:[%s9612_s19 + $0x140] sm:$0xf]  ;;  %v10009_v23 = vadd.s32 160, %v9839_v3 }
  0x42   : > { %v9891_v44 = vfloor.f32 %v529_v31 }
  0x44   : > { %7876 = vmatpush3.bf16.msra.mxu0 %v8915_v48  ;;  %7970 = vmatpush3.bf16.msra.mxu1 %v8921_v37  ;;  %v8927_v48 = vld [vmem:[%s9617_s6 + $0x68] sm:$0xff]   ;;  %v9881_v37 = vfloor.f32 %v527_v26 }
  0x45   : > { %7877 = vmatprep.subr.bf16.mxu0 %v14410_v43  ;;  %7971 = vmatprep.subr.bf16.mxu1 %v14410_v43 }
  0x46   : > { %vm814_vm14 = vcmp.ge.f32.partialorder %v9881_v37, 1.0 }
  0x48   : > { %7878 = vmatpush3.bf16.msra.mxu0 %v8916_v49  ;;  %7972 = vmatpush3.bf16.msra.mxu1 %v8923_v40  ;;  %v8928_v49 = vld [vmem:[%s9617_s6 + $0x20] sm:$0xff]   ;;  %v451_v40 = vcvt.s32.f32 %v9870_v29 }
  0x49   : > { %7879 = vmatprep.subr.bf16.mxu0 %v14410_v43  ;;  %7973 = vmatprep.subr.bf16.mxu1 %v14410_v43 }
  0x4a   : > { %v492_v57 = vadd.f32 0.5, %v451_v40 }
  0x4c   : > { %7880 = vmatpush3.bf16.msra.mxu0 %v8917_v50  ;;  %7974 = vmatpush3.bf16.msra.mxu1 %v8925_v45  ;;  %v1010_v50 = vld [vmem:[%s9612_s19 + $0x110] sm:$0xff] }
  0x4d   : > { %8065 = vmatprep.subr.bf16.mxu0 %v14410_v43  ;;  %7975 = vmatprep.subr.bf16.mxu1 %v14410_v43  ;;  %v1034_v54 = vpack.c.bf16 %v1011_v51, %v1010_v50  ;;  %v9904_v50 = vadd.s32 104, %v9839_v3 }
  0x4f   : > { %7882 = vmatmul.mubr.bf16.vlgmr.msra.gmra.mrb[0].mxu0 %v1017_v53  ;;  %v8930_v53 = vld [vmem:[%s9617_s6 + $0x28] sm:$0xff]   ;;  %v14418_v6 = vcvt.s32.f32 %v9904_v50 }
  0x50   : > { %7885 = vmatprep.mubr.msk.bf16.mxu0 %vm14460_vm0, %v14410_v43  ;;  %8066 = vmatpush3.bf16.msra.mxu0 %v8920_v34  ;;  %v450_v34 = vcvt.s32.f32 %v9863_v24 }
  0x51   : > { %8067 = vmatprep.subr.bf16.mxu0 %v14410_v43  ;;  %7976 = vmatpush3.bf16.msra.mxu1 %v8927_v48 }
  0x52   : > { %7977 = vmatprep.subr.bf16.mxu1 %v14410_v43  ;;  %v491_v48 = vadd.f32 0.5, %v450_v34 }
  0x54   : > { %8068 = vmatpush3.bf16.msra.mxu0 %v8922_v38 }
  0x55   : > { %8069 = vmatprep.subr.bf16.mxu0 %v14410_v43  ;;  %7978 = vmatpush3.bf16.msra.mxu1 %v8929_v52  ;;  %v609_v52 = vmul.f32 18.0, %v9881_v37 }
  0x56   : > { %7979 = vmatprep.subr.bf16.mxu1 %v14410_v43 }
  0x57   : > { %7886 = vmatmul.mubr.bf16.gmra.mrb[4].mxu0 %v1018_v56  ;;  %v8932_v56 = vld [vmem:[%s9617_s6 + $0x30] sm:$0xff]  }
  0x58   : > { %7889 = vmatprep.mubr.msk.bf16.mxu0 %vm14460_vm0, %v14410_v43  ;;  %8070 = vmatpush3.bf16.msra.mxu0 %v8924_v41  ;;  %v452_v41 = vcvt.s32.f32 %v9873_v30 }
  0x59   : > { %8071 = vmatprep.subr.bf16.mxu0 %v14410_v43  ;;  %7980 = vmatpush3.bf16.msra.mxu1 %v8931_v55  ;;  %v9911_v55 = vadd.s32 112, %v9839_v3 }
  0x5a   : > { %8165 = vmatprep.subr.bf16.mxu1 %v14410_v43  ;;  %v493_v58 = vadd.f32 0.5, %v452_v41 }
  0x5c   : > { %8072 = vmatpush3.bf16.msra.mxu0 %v8926_v46  ;;  %v9896_v46 = vadd.s32 96, %v9839_v3 }
  0x5d   : > { %8073 = vmatprep.subr.bf16.mxu0 %v14410_v43 }
  0x5f   : > { %7890 = vmatmul.mubr.bf16.gmra.mrb[8].mxu0 %v1019_v59  ;;  %v8937_v59 = vld [vmem:[%s9617_s6 + $0x38] sm:$0xff]  }
  0x60   : > { %7893 = vmatprep.mubr.msk.bf16.mxu0 %vm14460_vm0, %v14410_v43  ;;  %8074 = vmatpush3.bf16.msra.mxu0 %v8928_v49  ;;  %v453_v49 = vcvt.s32.f32 %v9878_v35 }
  0x61   : > { %8075 = vmatprep.subr.bf16.mxu0 %v14410_v43 }
  0x64   : > { %8076 = vmatpush3.bf16.msra.mxu0 %v8930_v53 }
  0x65   : > { %8077 = vmatprep.subr.bf16.mxu0 %v14410_v43 }
  0x67   : > { %7894 = vmatmul.mubr.bf16.gmra.mrb[12].mxu0 %v1020_v62  ;;  %v1015_v62 = vld [vmem:[%s9612_s19 + $0x138] sm:$0xff] }
  0x68   : > { %7897 = vmatprep.mubr.msk.bf16.mxu0 %vm14460_vm0, %v14410_v43  ;;  %8078 = vmatpush3.bf16.msra.mxu0 %v8932_v56  ;;  %v1036_v63 = vpack.c.bf16 %v1015_v62, %v1014_v61  ;;  %v2024_v61 = vld [vmem:[#allocation2 + $0x4] sm:$0x8]  ;;  %v611_v62 = vmul.f32 18.0, %v9891_v44 }
  0x69   : > { %8079 = vmatprep.subr.bf16.mxu0 %v14410_v43 }
  0x6c   : > { %8080 = vmatpush3.bf16.msra.mxu0 %v8937_v59  ;;  %v454_v59 = vcvt.s32.f32 %v9889_v42 }
  0x6d   : > { %8265 = vmatprep.subr.bf16.mxu0 %v14410_v43 }
  0x6e   : > { %v495_v18 = vadd.f32 0.5, %v454_v59 }
  0x6f   : > { %7898 = vmatmul.mubr.bf16.gmra.mrb[16].mxu0 %v1021_v1  ;;  %v1037_v1 = vpack.c.bf16 %v1016_v0, %v1016_v0  ;;  %v455_v0 = vcvt.s32.f32 %v9896_v46 }
  0x70   : > { %7901 = vmatprep.mubr.msk.bf16.mxu0 %vm14460_vm0, %v14410_v43 }
  0x77   : > { %7902 = vmatmul.mubr.bf16.gmra.mrb[20].mxu0 %v1022_v4  ;;  %v403_v4 = vadd.s32 8, %v9839_v3 }
  0x78   : > { %7905 = vmatprep.mubr.msk.bf16.mxu0 %vm14460_vm0, %v14410_v43 }
  0x79   : > { %v444_v8 = vcvt.s32.f32 %v403_v4  ;;  %v532_v4 = vmul.f32 0.055555556, %v491_v48 }
  0x7b   : > { %v485_v14 = vadd.f32 0.5, %v444_v8  ;;  %v9947_v26 = vfloor.f32 %v532_v4 }
  0x7d   : > { %v526_v20 = vmul.f32 0.055555556, %v485_v14  ;;  %v533_v14 = vmul.f32 0.055555556, %v492_v57  ;;  %v9967_v57 = vadd.s32 144, %v9839_v3 }
  0x7f   : > { %7906 = vmatmul.mubr.bf16.gmra.mrb[24].mxu0 %v1023_v7  ;;  %v9847_v7 = vadd.s32 24, %v9839_v3 }
  0x80   : > { %7909 = vmatprep.mubr.msk.bf16.mxu0 %vm14460_vm0, %v14410_v43 }
  0x87   : > { %7910 = vmatmul.mubr.bf16.gmra.mrb[28].mxu0 %v1024_v10  ;;  %v9853_v10 = vadd.s32 40, %v9839_v3 }
  0x88   : > { %7913 = vmatprep.mubr.msk.bf16.mxu0 %vm14460_vm0, %v14410_v43 }
  0x8f   : > { %7914 = vmatmul.mubr.bf16.gmra.mrb[32].mxu0 %v1025_v13  ;;  %v446_v13 = vcvt.s32.f32 %v9847_v7  ;;  %v9929_v7 = vsub.f32 %v445_v12, %v609_v52  ;;  %v496_v12 = vadd.f32 0.5, %v455_v0 }
  0x90   : > { %7917 = vmatprep.mubr.msk.bf16.mxu0 %vm14460_vm0, %v14410_v43 }
  0x91   : > { %v537_v52 = vmul.f32 0.055555556, %v496_v12  ;;  %vm691_vm9 = vcmp.ge.f32.partialorder %v9929_v7, 1.0  ;;  %vm732_vm10 = vcmp.le.f32.partialorder %v9929_v7, 16.0 }
  0x93   : > { %v9985_v12 = vfloor.f32 %v537_v52 }
  0x95   : > { %14644 = vst [vmem:[#allocation5_spill] sm:$0xff] %v9985_v12 }
  0x97   : > { %7918 = vmatmul.mubr.bf16.gmra.mrb[36].mxu0 %v1026_v16  ;;  %v448_v16 = vcvt.s32.f32 %v9853_v10  ;;  %v14416_v10 = vcvt.s32.f32 %v9911_v55 }
  0x98   : > { %7921 = vmatprep.mubr.msk.bf16.mxu0 %vm14460_vm0, %v14410_v43 }
  0x9f   : > { %7922 = vmatmul.mubr.bf16.gmra.mrb[40].mxu0 %v1027_v19  ;;  %v487_v19 = vadd.f32 0.5, %v446_v13 }
  0xa0   : > { %7925 = vmatprep.mubr.msk.bf16.mxu0 %vm14460_vm0, %v14410_v43 }
  0xa1   : > { %v528_v27 = vmul.f32 0.055555556, %v487_v19  ;;  %v9938_v19 = vsub.f32 %v447_v15, %v611_v62  ;;  %v498_v15 = vadd.f32 0.5, %v14416_v10  ;;  %v10053_v10 = vadd.s32 176, %v9839_v3 }
  0xa3   : > { %v9883_v38 = vfloor.f32 %v528_v27  ;;  %v497_v27 = vadd.f32 0.5, %v14418_v6 }
  0xa5   : > { %v610_v53 = vmul.f32 18.0, %v9883_v38  ;;  %v538_v62 = vmul.f32 0.055555556, %v497_v27 }
  0xa7   : > { %7926 = vmatmul.mubr.bf16.gmra.mrb[44].mxu0 %v1028_v22  ;;  %v489_v22 = vadd.f32 0.5, %v448_v16  ;;  %v9934_v11 = vsub.f32 %v446_v13, %v610_v53  ;;  %v9998_v31 = vfloor.f32 %v538_v62  ;;  %v619_v62 = vmul.f32 18.0, %v9985_v12 }
  0xa8   : > { %7929 = vmatprep.mubr.msk.bf16.mxu0 %vm14460_vm0, %v14410_v43 }
  0xa9   : > { %14645 = vst [vmem:[#allocation6_spill] sm:$0xff] %v9998_v31  ;;  %vm692_vm11 = vcmp.ge.f32.partialorder %v9934_v11, 1.0  ;;  %vm733_vm12 = vcmp.le.f32.partialorder %v9934_v11, 16.0  ;;  %v14715_v11 = vmov 0 }
  0xaf   : > { %7930 = vmatmul.mubr.bf16.gmra.mrb[48].mxu0 %v1029_v25  ;;  %v9865_v25 = vfloor.f32 %v525_v17  ;;  %v534_v17 = vmul.f32 0.055555556, %v493_v58 }
  0xb0   : > { %7933 = vmatprep.mubr.msk.bf16.mxu0 %vm14460_vm0, %v14410_v43 }
  0xb1   : > { %v607_v36 = vmul.f32 18.0, %v9865_v25  ;;  %vm812_vm5 = vcmp.ge.f32.partialorder %v9865_v25, 1.0  ;;  %vm894_vm7 = vcmp.le.f32.partialorder %v9865_v25, 16.0 }
  0xb3   : > { %v9906_v51 = vsub.f32 %v443_v5, %v607_v36  ;;  %v494_v5 = vadd.f32 0.5, %v453_v49  ;;  %v9957_v36 = vfloor.f32 %v533_v14 }
  0xb5   : > { %v535_v13 = vmul.f32 0.055555556, %v494_v5  ;;  %v9977_v5 = vadd.s32 152, %v9839_v3  ;;  %vm689_vm1 = vcmp.ge.f32.partialorder %v9906_v51, 1.0  ;;  %vm730_vm2 = vcmp.le.f32.partialorder %v9906_v51, 16.0 }
  0xb6   : > { %vm10211_vm13 = vmand %vm689_vm1, %vm730_vm2  ;;  %vm815_vm1 = vcmp.ge.f32.partialorder %v9883_v38, 1.0 }
  0xb7   : > { %7934 = vmatmul.mubr.bf16.gmra.mrb[52].mxu0 %v1030_v28  ;;  %v9867_v28 = vfloor.f32 %v526_v20  ;;  %vm10236_vm2 = vmand %vm10211_vm13, %vm812_vm5  ;;  %vm897_vm5 = vcmp.le.f32.partialorder %v9883_v38, 16.0 }
  0xb8   : > { %7937 = vmatprep.mubr.msk.bf16.mxu0 %vm14460_vm0, %v14410_v43 }
  0xb9   : > { %vm813_vm6 = vcmp.ge.f32.partialorder %v9867_v28, 1.0  ;;  %vm895_vm8 = vcmp.le.f32.partialorder %v9867_v28, 16.0 }
  0xbf   : > { %7938 = vmatmul.mubr.bf16.gmra.mrb[56].mxu0 %v1031_v32  ;;  %v530_v32 = vmul.f32 0.055555556, %v489_v22 }
  0xc0   : > { %7941 = vmatprep.mubr.msk.bf16.mxu0 %vm14460_vm0, %v14410_v43 }
  0xc1   : > { %v9893_v45 = vfloor.f32 %v530_v32  ;;  %v9955_v32 = vadd.s32 128, %v9839_v3 }
  0xc3   : > { %v14413_v4 = vcvt.s32.f32 %v9955_v32 }
  0xc7   : > { %7942 = vmatmul.mubr.bf16.gmra.mrb[60].mxu0 %v1032_v39  ;;  %v608_v39 = vmul.f32 18.0, %v9867_v28 }
  0xc8   : > { %7945 = vmatprep.mubr.msk.bf16.mxu0 %vm14460_vm0, %v14410_v43 }
  0xc9   : > { %v9913_v56 = vsub.f32 %v444_v8, %v608_v39  ;;  %v9959_v39 = vfloor.f32 %v534_v17 }
  0xcb   : > { %v616_v14 = vmul.f32 18.0, %v9959_v39  ;;  %vm690_vm3 = vcmp.ge.f32.partialorder %v9913_v56, 1.0  ;;  %vm731_vm4 = vcmp.le.f32.partialorder %v9913_v56, 16.0 }
  0xcc   : > { %vm10223_vm15 = vmand %vm690_vm3, %vm731_vm4  ;;  %vm896_vm3 = vcmp.le.f32.partialorder %v9881_v37, 16.0 }
  0xcd   : > { %vm10249_vm4 = vmand %vm10223_vm15, %vm813_vm6  ;;  %vm734_vm6 = vcmp.le.f32.partialorder %v9938_v19, 16.0 }
  0xce   : > { %vm10273_vm15 = vmand %vm10236_vm2, %vm894_vm7 }
  0xcf   : > { %7946 = vmatmul.mubr.bf16.gmra.mrb[64].mxu0 %v1033_v47  ;;  %v490_v47 = vadd.f32 0.5, %v449_v33  ;;  %vm10289_vm7 = vmand %vm10249_vm4, %vm895_vm8  ;;  %vm816_vm8 = vcmp.ge.f32.partialorder %v9891_v44, 1.0 }
  0xd0   : > { %7949 = vmatprep.mubr.msk.bf16.mxu0 %vm14460_vm0, %v14410_v43  ;;  %vm10302_vm2 = vmand %vm691_vm9, %vm732_vm10  ;;  %vm899_vm10 = vcmp.le.f32.partialorder %v9893_v45, 16.0 }
  0xd1   : > { %v531_v2 = vmul.f32 0.055555556, %v490_v47  ;;  %v536_v47 = vmul.f32 0.055555556, %v495_v18  ;;  %vm10318_vm9 = vmand %vm692_vm11, %vm733_vm12  ;;  %vm898_vm12 = vcmp.le.f32.partialorder %v9891_v44, 16.0 }
  0xd2   : > { %vm10332_vm11 = vmand %vm10302_vm2, %vm814_vm14 }
  0xd3   : > { %v9945_v22 = vfloor.f32 %v531_v2  ;;  %v9981_v17 = vfloor.f32 %v536_v47  ;;  %vm10341_vm4 = vmand %vm10318_vm9, %vm815_vm1 }
  0xd4   : > { %vm10360_vm2 = vmand %vm10332_vm11, %vm896_vm3  ;;  %vm14718_vm11 = vcmp.ge.f32.partialorder %v9938_v19, 1.0 }
  0xd5   : > { %v613_v58 = vmul.f32 18.0, %v9945_v22  ;;  %vm10376_vm3 = vmand %vm10341_vm4, %vm897_vm5  ;;  %vm818_vm5 = vcmp.ge.f32.partialorder %v9945_v22, 1.0  ;;  %vm14467_vm4 = vcmask 1044480  }
  0xd6   : > { %v14716_v11 = vsel %vm10376_vm3, 4294967295, %v14715_v11  ;;  %vm10388_vm9 = vmand %vm14718_vm11, %vm734_vm6  ;;  %vm900_vm6 = vcmp.le.f32.partialorder %v9945_v22, 16.0  ;;  %v14755_v22 = vmov 0 }
  0xd7   : > { %7950 = vmatmul.mubr.bf16.gmra.mrb[68].mxu0 %v1034_v54  ;;  %v1966_v54 = vld [vmem:[#allocation2 + $0x4] sm:$0xc]  ;;  %14717 = vst [vmem:[#allocation31_spill] sm:$0xff] %v14716_v11 }
  0xd8   : > { %7953 = vmatprep.mubr.msk.bf16.mxu0 %vm14460_vm0, %v14410_v43 }
  0xdf   : > { %7954 = vmatmul.mubr.bf16.gmra.mrb[72].mxu0 %v1035_v60  ;;  %v1967_v60 = vld [vmem:[#allocation2 + $0x8] sm:$0xf] }
  0xe0   : > { %7957 = vmatprep.mubr.msk.bf16.mxu0 %vm14460_vm0, %v14410_v43  ;;  %v9931_v8 = vcombine.low %v2024_v61, %v1967_v60  ;;  %v7125_v9 = vcombine.low %v1966_v54, %v1967_v60  ;;  %v9964_v54 = vadd.s32 136, %v9839_v3  ;;  %v614_v60 = vmul.f32 18.0, %v9947_v26 }
  0xe1   : > { %v9971_v61 = vfloor.f32 %v535_v13 }
  0xe2   : > { %v2466_v48 = vshll.u32 %v7125_v9, 16  ;;  %v14414_v27 = vcvt.s32.f32 %v9964_v54 }
  0xe3   : > { %v617_v47 = vmul.f32 18.0, %v9971_v61 }
  0xe4   : > { %v9983_v18 = vrot.slane %v2466_v48, 3  ;;  %v10001_v48 = vld [vmem:[%s9592_s30] ss:$0 sm:$0xff] }
  0xe6   : > { %14643 = vst [vmem:[#allocation4_spill] sm:$0xff] %v9983_v18 }
  0xe7   : > { %7958 = vmatmul.mubr.bf16.gmra.mrb[76].mxu0 %v1036_v63  ;;  %v612_v63 = vmul.f32 18.0, %v9893_v45 }
  0xe8   : > { %7961 = vmatprep.mubr.msk.bf16.mxu0 %vm14460_vm0, %v14410_v43 }
  0xe9   : > { %v9940_v20 = vsub.f32 %v448_v16, %v612_v63  ;;  %v2463_v16 = vshrl.u32 %v7125_v9, 16  ;;  %v539_v63 = vmul.f32 0.055555556, %v498_v15  ;;  %v615_v9 = vmul.f32 18.0, %v9957_v36 }
  0xea   : > { %v14415_v15 = vcvt.s32.f32 %v9967_v57 }
  0xeb   : > { %v9973_v2 = vrot.slane %v2463_v16, 2  ;;  %v9991_v16 = vsub.f32 %v449_v33, %v613_v58  ;;  %v10003_v52 = vfloor.f32 %v539_v63  ;;  %v10013_v24 = vsub.f32 %v451_v40, %v615_v9 }
  0xec   : > { %v10017_v33 = vsub.f32 %v452_v41, %v616_v14  ;;  %v502_v29 = vadd.f32 0.5, %v14415_v15  ;;  %v10034_v41 = vsub.f32 %v453_v49, %v617_v47  ;;  %v620_v9 = vmul.f32 18.0, %v9998_v31 }
  0xed   : > { %14642 = vst [vmem:[#allocation3_spill] sm:$0xff] %v9973_v2  ;;  %14646 = vst [vmem:[#allocation7_spill] sm:$0xff] %v10003_v52  ;;  %v10038_v14 = vadd.s32 168, %v9839_v3  ;;  %v621_v58 = vmul.f32 18.0, %v10003_v52  ;;  %vm735_vm13 = vcmp.le.f32.partialorder %v9940_v20, 16.0  ;;  %vm736_vm1 = vcmp.le.f32.partialorder %v9991_v16, 16.0 }
  0xee   : > { %v543_v6 = vmul.f32 0.055555556, %v502_v29 }
  0xef   : > { %7962 = vmatmul.mubr.bf16.gmra.mrb[80].mxu0 %v1037_v1  ;;  %v9924_v1 = vadd.s32 120, %v9839_v3 }
  0xf0   : > { %8081 = vmatprep.mubr.msk.bf16.mxu0 %vm14460_vm0, %v14410_v43  ;;  %v9995_v43 = vsub.f32 %v450_v34, %v614_v60  ;;  %v618_v34 = vmul.f32 18.0, %v9981_v17  ;;  %vm694_vm0 = vcmp.ge.f32.partialorder %v9940_v20, 1.0 }
  0xf1   : > { %v14412_v21 = vcvt.s32.f32 %v9924_v1  ;;  %vm10399_vm14 = vmand %vm694_vm0, %vm735_vm13  ;;  %vm14725_vm13 = vcmp.ge.f32.partialorder %v9893_v45, 1.0 }
  0xf2   : > { %v10050_v47 = vsub.f32 %v454_v59, %v618_v34  ;;  %v14651_v59 = vcvt.s32.f32 %v9911_v55  ;;  %vm10415_vm0 = vmand %vm10388_vm9, %vm816_vm8  ;;  %vm14739_vm9 = vcmp.ge.f32.partialorder %v9995_v43, 1.0 }
  0xf3   : > { %v499_v53 = vadd.f32 0.5, %v14412_v21  ;;  %v14417_v21 = vcvt.s32.f32 %v9977_v5  ;;  %vm10424_vm11 = vmand %vm10399_vm14, %vm14725_vm13  ;;  %vm14735_vm13 = vcmp.ge.f32.partialorder %v9991_v16, 1.0 }
  0xf4   : > { %v10068_v34 = vsub.f32 %v14651_v59, %v621_v58  ;;  %vm10441_vm14 = vmand %vm10415_vm0, %vm898_vm12  ;;  %vm14738_vm0 = vcmp.le.f32.partialorder %v9995_v43, 16.0 }
  0xf5   : > { %v540_v13 = vmul.f32 0.055555556, %v499_v53  ;;  %v500_v53 = vadd.f32 0.5, %v14413_v4  ;;  %v501_v4 = vadd.f32 0.5, %v14414_v27  ;;  %v503_v15 = vadd.f32 0.5, %v14417_v21  ;;  %vm10460_vm12 = vmand %vm10424_vm11, %vm899_vm10 }
  0xf6   : > { %14652 = vst [vmem:[#allocation11_spill] sm:$0xff] %v10068_v34  ;;  %vm10474_vm10 = vmand %vm14735_vm13, %vm736_vm1  ;;  %vm14754_vm1 = vcmp.le.f32.partialorder %v9947_v26, 16.0 }
  0xf7   : > { %v10023_v63 = vfloor.f32 %v540_v13  ;;  %v541_v27 = vmul.f32 0.055555556, %v500_v53  ;;  %v10057_v53 = vsub.f32 %v455_v0, %v619_v62  ;;  %v544_v0 = vmul.f32 0.055555556, %v503_v15  ;;  %vm10485_vm8 = vmand %vm14739_vm9, %vm14738_vm0 }
  0xf8   : > { %v14654_v62 = vcvt.s32.f32 %v10009_v23  ;;  %v10087_v15 = vadd.s32 192, %v9839_v3  ;;  %vm10500_vm9 = vmand %vm10474_vm10, %vm818_vm5  ;;  %vm14745_vm0 = vcmp.ge.f32.partialorder %v9947_v26, 1.0 }
  0xf9   : > { %14647 = vst [vmem:[#allocation8_spill] sm:$0xff] %v10023_v63  ;;  %14648 = vst [vmem:[#allocation9_spill] sm:$0xff] %v10057_v53  ;;  %v622_v21 = vmul.f32 18.0, %v10023_v63  ;;  %v10070_v46 = vfloor.f32 %v541_v27  ;;  %v10084_v27 = vfloor.f32 %v543_v6 }
  0xfa   : > { %vm10515_vm13 = vmand %vm10485_vm8, %vm14745_vm0  ;;  %vm14749_vm8 = vmmov 0   ;;  %vm14759_vm0 = vcmp.ge.f32.partialorder %v10013_v24, 1.0 }
  0xfb   : > { %14653 = vst [vmem:[#allocation12_spill] sm:$0xff] %v10070_v46  ;;  %14658 = vst [vmem:[#allocation15_spill] sm:$0xff] %v10084_v27 }
  0xfc   : > { %vm10544_vm5 = vmand %vm10500_vm9, %vm900_vm6  ;;  %vm14758_vm9 = vcmp.le.f32.partialorder %v10013_v24, 16.0 }
  0xfd   : > { %vm10558_vm6 = vmand %vm10515_vm13, %vm14754_vm1  ;;  %vm14762_vm13 = vcmp.le.f32.partialorder %v10017_v33, 16.0 }
  0xfe   : > { %v14756_v22 = vsel %vm10558_vm6, 4294967295, %v14755_v22  ;;  %vm10569_vm10 = vmand %vm14759_vm0, %vm14758_vm9  ;;  %vm14769_vm9 = vsmask.f32 5376 }
  0xff   : > { %14757 = vst [vmem:[#allocation35_spill] sm:$0xff] %v14756_v22 }
 0x122   : > { %v1143_v60 = vpop.f32.mrb[0].mxu0 }
 0x123   : > { %v10030_v30 = vadd.f32 %v10001_v48, %v1143_v60  ;;  %v7883_v40 = vpop.f32.mrb[1].mxu0  ;;  %v542_v60 = vmul.f32 0.055555556, %v501_v4  ;;  %v504_v4 = vadd.f32 0.5, %v14654_v62  ;;  %v10095_v62 = vadd.s32 200, %v9839_v3 }
 0x124   : > { %v1146_v13 = vpop.f32.mrb[2].mxu0 }
 0x125   : > { %v1309_v40 = vmin.f32 %v10030_v30, 20.0  ;;  %v10046_v35 = vadd.f32 %v10001_v48, %v1146_v13  ;;  %v7884_v49 = vpop.f32.mrb[3].mxu0  ;;  %v10082_v55 = vfloor.f32 %v542_v60  ;;  %v10098_v60 = vfloor.f32 %v544_v0 }
 0x126   : > { %v14649_v49 = vcvt.s32.f32 %v9904_v50  ;;  %v10076_v50 = vadd.s32 184, %v9839_v3  ;;  %v545_v6 = vmul.f32 0.055555556, %v504_v4  ;;  %v625_v0 = vmul.f32 18.0, %v10084_v27 }
 0x127   : > { %v1350_v52 = vmul.f32 1.442695, %v1309_v40  ;;  %v1310_v13 = vmin.f32 %v10046_v35, 20.0  ;;  %v14432_v40 = vcvt.s32.f32 %v10053_v10  ;;  %14657 = vst [vmem:[#allocation14_spill] sm:$0xff] %v10082_v55  ;;  %14660 = vst [vmem:[#allocation16_spill] sm:$0xff] %v10098_v60  ;;  %v626_v63 = vmul.f32 18.0, %v10098_v60 }
 0x128   : > { %v10063_v31 = vsub.f32 %v14649_v49, %v620_v9  ;;  %v14655_v49 = vcvt.s32.f32 %v9924_v1 }
 0x129   : > { %9079 = vpow2.f32 %v1350_v52  ;;  %v1352_v29 = vmul.f32 1.442695, %v1310_v13  ;;  %v14659_v13 = vcvt.s32.f32 %v10038_v14 }
 0x12a   : > { %14650 = vst [vmem:[#allocation10_spill] sm:$0xff] %v10063_v31  ;;  %v1151_v9 = vpop.f32.mrb[4].mxu0  ;;  %v10080_v42 = vsub.f32 %v14655_v49, %v622_v21  ;;  %v623_v21 = vmul.f32 18.0, %v10070_v46  ;;  %v10101_v49 = vadd.s32 208, %v9839_v3  ;;  %v10114_v46 = vadd.s32 216, %v9839_v3 }
 0x12b   : > { %9081 = vpow2.f32 %v1352_v29  ;;  %v10090_v52 = vadd.f32 %v10001_v48, %v1151_v9  ;;  %v7887_v58 = vpop.f32.mrb[5].mxu0  ;;  %v505_v59 = vadd.f32 0.5, %v14659_v13  ;;  %v506_v13 = vadd.f32 0.5, %v14432_v40 }
 0x12c   : > { %14656 = vst [vmem:[#allocation13_spill] sm:$0xff] %v10080_v42  ;;  %v1154_v1 = vpop.f32.mrb[6].mxu0  ;;  %v624_v42 = vmul.f32 18.0, %v10082_v55  ;;  %v14661_v31 = vcvt.s32.f32 %v9955_v32  ;;  %v10123_v55 = vfloor.f32 %v545_v6 }
 0x12d   : > { %v1311_v29 = vmin.f32 %v10090_v52, 20.0  ;;  %v10105_v9 = vadd.f32 %v10001_v48, %v1154_v1  ;;  %v7888_v58 = vpop.f32.mrb[7].mxu0  ;;  %v546_v1 = vmul.f32 0.055555556, %v505_v59  ;;  %v547_v53 = vmul.f32 0.055555556, %v506_v13 }
 0x12e   : > { %v10120_v40 = vsub.f32 %v14661_v31, %v623_v21  ;;  %14663 = vst [vmem:[#allocation18_spill] sm:$0xff] %v10123_v55  ;;  %v14665_v59 = vcvt.s32.f32 %v9964_v54  ;;  %v14667_v31 = vcvt.s32.f32 %v9967_v57  ;;  %v14669_v21 = vcvt.s32.f32 %v10087_v15 }
 0x12f   : > { %v1354_v34 = vmul.f32 1.442695, %v1311_v29  ;;  %v1312_v12 = vmin.f32 %v10105_v9, 20.0  ;;  %v14664_v29 = vcvt.s32.f32 %v10076_v50  ;;  %v14671_v57 = vcvt.s32.f32 %v10095_v62 }
 0x130   : > { %14662 = vst [vmem:[#allocation17_spill] sm:$0xff] %v10120_v40  ;;  %v10130_v58 = vsub.f32 %v14665_v59, %v624_v42  ;;  %v10134_v32 = vsub.f32 %v14667_v31, %v625_v0  ;;  %v508_v6 = vadd.f32 0.5, %v14669_v21  ;;  %v10144_v42 = vfloor.f32 %v546_v1 }
 0x131   : > { %9083 = vpow2.f32 %v1354_v34  ;;  %v1356_v4 = vmul.f32 1.442695, %v1312_v12  ;;  %v507_v2 = vadd.f32 0.5, %v14664_v29  ;;  %v509_v13 = vadd.f32 0.5, %v14671_v57 }
 0x132   : > { %v1159_v18 = vpop.f32.mrb[8].mxu0  ;;  %14666 = vst [vmem:[#allocation19_spill] sm:$0xff] %v10130_v58  ;;  %14668 = vst [vmem:[#allocation20_spill] sm:$0xff] %v10134_v32  ;;  %v14672_v59 = vcvt.s32.f32 %v9977_v5  ;;  %v10161_v27 = vfloor.f32 %v547_v53 }
 0x133   : > { %v9080_v34 = vpop.eup %9079  ;;  %9085 = vpow2.f32 %v1356_v4  ;;  %v10142_v12 = vadd.f32 %v10001_v48, %v1159_v18  ;;  %v7891_v54 = vpop.f32.mrb[9].mxu0  ;;  %14670 = vst [vmem:[#allocation21_spill] sm:$0xff] %v10144_v42  ;;  %v627_v4 = vmul.f32 18.0, %v10123_v55  ;;  %v14674_v18 = vcvt.s32.f32 %v10101_v49 }
 0x134   : > { %v1432_v0 = vadd.f32 1.0, %v9080_v34  ;;  %v1162_v29 = vpop.f32.mrb[10].mxu0  ;;  %v10152_v31 = vsub.f32 %v14672_v59, %v626_v63  ;;  %14675 = vst [vmem:[#allocation23_spill] sm:$0xff] %v10161_v27  ;;  %v548_v60 = vmul.f32 0.055555556, %v507_v2  ;;  %v14676_v55 = vcvt.s32.f32 %v10114_v46 }
 0x135   : > { %v510_v21 = vadd.f32 0.5, %v14674_v18  ;;  %v9082_v1 = vpop.eup %9081  ;;  %v1313_v54 = vmin.f32 %v10142_v12, 20.0  ;;  %v10159_v57 = vadd.f32 %v10001_v48, %v1162_v29  ;;  %v7892_v34 = vpop.f32.mrb[11].mxu0  ;;  %v549_v59 = vmul.f32 0.055555556, %v508_v6 }
 0x136   : > { %14673 = vst [vmem:[#allocation22_spill] sm:$0xff] %v10152_v31  ;;  %v1473_v5 = vmul.f32 %v1432_v0, %v1432_v0  ;;  %v1433_v63 = vadd.f32 1.0, %v9082_v1  ;;  %v511_v31 = vadd.f32 0.5, %v14676_v55  ;;  %v628_v29 = vmul.f32 18.0, %v10144_v42 }
 0x137   : > { %v1358_v18 = vmul.f32 1.442695, %v1313_v54  ;;  %v1314_v32 = vmin.f32 %v10159_v57, 20.0  ;;  %v550_v58 = vmul.f32 0.055555556, %v509_v13  ;;  %v14677_v2 = vcvt.s32.f32 %v10009_v23 }
 0x138   : > { %v1596_v34 = vadd.f32 1.0, %v1473_v5  ;;  %v1474_v53 = vmul.f32 %v1433_v63, %v1433_v63  ;;  %v551_v0 = vmul.f32 0.055555556, %v510_v21  ;;  %v629_v55 = vmul.f32 18.0, %v10161_v27 }
 0x139   : > { %v10171_v40 = vsub.f32 %v14677_v2, %v627_v4  ;;  %9087 = vpow2.f32 %v1358_v18  ;;  %v1360_v6 = vmul.f32 1.442695, %v1314_v32  ;;  %v10175_v1 = vfloor.f32 %v548_v60 }
 0x13a   : > { %9089 = vrcp.f32 %v1596_v34  ;;  %v1597_v54 = vadd.f32 1.0, %v1474_v53  ;;  %v1167_v13 = vpop.f32.mrb[12].mxu0  ;;  %v10178_v42 = vfloor.f32 %v549_v59  ;;  %v552_v63 = vmul.f32 0.055555556, %v511_v31 }
 0x13b   : > { %14678 = vst [vmem:[#allocation24_spill] sm:$0xff] %v10175_v1  ;;  %v9084_v23 = vpop.eup %9083  ;;  %9091 = vpow2.f32 %v1360_v6  ;;  %v10183_v32 = vadd.f32 %v10001_v48, %v1167_v13  ;;  %v7895_v4 = vpop.f32.mrb[13].mxu0  ;;  %v14680_v60 = vcvt.s32.f32 %v10038_v14  ;;  %v10189_v18 = vfloor.f32 %v550_v58 }
 0x13c   : > { %14679 = vst [vmem:[#allocation25_spill] sm:$0xff] %v10178_v42  ;;  %9093 = vrcp.f32 %v1597_v54  ;;  %v1434_v59 = vadd.f32 1.0, %v9084_v23  ;;  %v1170_v31 = vpop.f32.mrb[14].mxu0  ;;  %v10193_v34 = vfloor.f32 %v551_v0  ;;  %v10196_v2 = vadd.s32 224, %v9839_v3 }
 0x13d   : > { %v10187_v21 = vsub.f32 %v14680_v60, %v628_v29  ;;  %14681 = vst [vmem:[#allocation26_spill] sm:$0xff] %v10189_v18  ;;  %v9086_v6 = vpop.eup %9085  ;;  %v1315_v13 = vmin.f32 %v10183_v32, 20.0  ;;  %v10200_v14 = vadd.f32 %v10001_v48, %v1170_v31  ;;  %v7896_v58 = vpop.f32.mrb[15].mxu0  ;;  %v14683_v29 = vcvt.s32.f32 %v10053_v10 }
 0x13e   : > { %14682 = vst [vmem:[#allocation27_spill] sm:$0xff] %v10193_v34  ;;  %v630_v23 = vmul.f32 18.0, %v10175_v1  ;;  %v1475_v4 = vmul.f32 %v1434_v59, %v1434_v59  ;;  %v1435_v60 = vadd.f32 1.0, %v9086_v6  ;;  %v631_v31 = vmul.f32 18.0, %v10178_v42 }
 0x13f   : > { %v10204_v54 = vsub.f32 %v14683_v29, %v629_v55  ;;  %v10217_v58 = vfloor.f32 %v552_v63  ;;  %v6998_v10 = vadd.f32 -1.0, %v1473_v5  ;;  %v1362_v51 = vmul.f32 1.442695, %v1315_v13 }
 0x140   : > { %v1316_v29 = vmin.f32 %v10200_v14, 20.0  ;;  %v632_v59 = vmul.f32 18.0, %v10189_v18  ;;  %v1598_v6 = vadd.f32 1.0, %v1475_v4  ;;  %v1476_v42 = vmul.f32 %v1435_v60, %v1435_v60 }
 0x141   : > { %v633_v63 = vmul.f32 18.0, %v10193_v34  ;;  %v6999_v1 = vadd.f32 -1.0, %v1474_v53  ;;  %9095 = vpow2.f32 %v1362_v51  ;;  %v14690_v18 = vcvt.s32.f32 %v10076_v50 }
 0x142   : > { %v1364_v13 = vmul.f32 1.442695, %v1316_v29  ;;  %9097 = vrcp.f32 %v1598_v6  ;;  %v1599_v53 = vadd.f32 1.0, %v1476_v42  ;;  %v1175_v0 = vpop.f32.mrb[16].mxu0  ;;  %v14693_v51 = vcvt.s32.f32 %v10087_v15 }
 0x143   : > { %v10243_v60 = vsub.f32 %v14690_v18, %v630_v23  ;;  %v634_v50 = vmul.f32 18.0, %v10217_v58  ;;  %v9088_v18 = vpop.eup %9087  ;;  %v1555_v23 = vmul.f32 %v6998_v10, %v10030_v30  ;;  %v10263_v55 = vadd.f32 %v10001_v48, %v1175_v0  ;;  %v7899_v6 = vpop.f32.mrb[17].mxu0 }
 0x144   : > { %v10256_v29 = vsub.f32 %v14693_v51, %v631_v31  ;;  %9099 = vpow2.f32 %v1364_v13  ;;  %v14694_v34 = vcvt.s32.f32 %v10095_v62  ;;  %v9090_v15 = vpop.eup %9089  ;;  %v14695_v30 = vmov 0  ;;  %v1178_v10 = vpop.f32.mrb[18].mxu0 }
 0x145   : > { %v14696_v30 = vsel %vm10273_vm15, 4294967295, %v14695_v30  ;;  %9101 = vrcp.f32 %v1599_v53  ;;  %v1436_v31 = vadd.f32 1.0, %v9088_v18  ;;  %v14698_v62 = vcvt.s32.f32 %v10101_v49  ;;  %v9092_v13 = vpop.eup %9091 }
 0x146   : > { %v10267_v27 = vsub.f32 %v14694_v34, %v632_v59  ;;  %14697 = vst [vmem:[#allocation28_spill] sm:$0xff] %v14696_v30  ;;  %v14699_v59 = vcvt.s32.f32 %v10196_v2  ;;  %v1678_v56 = vmul.f32 %v9090_v15, %v1555_v23  ;;  %v14700_v53 = vmov 0  ;;  %v9094_v18 = vpop.eup %9093 }
 0x147   : > { %v10281_v34 = vsub.f32 %v14698_v62, %v633_v63  ;;  %v14701_v53 = vsel %vm10289_vm7, 4294967295, %v14700_v53  ;;  %v1556_v0 = vmul.f32 %v6999_v1, %v10046_v35  ;;  %v1317_v51 = vmin.f32 %v10263_v55, 20.0  ;;  %v7900_v63 = vpop.f32.mrb[19].mxu0 }
 0x148   : > { %v512_v25 = vadd.f32 0.5, %v14699_v59  ;;  %14702 = vst [vmem:[#allocation29_spill] sm:$0xff] %v14701_v53  ;;  %v10296_v49 = vadd.f32 %v10001_v48, %v1178_v10  ;;  %v1477_v5 = vmul.f32 %v1436_v31, %v1436_v31  ;;  %v1437_v23 = vadd.f32 1.0, %v9092_v13 }
 0x149   : > { %v14705_v35 = vcvt.s32.f32 %v10114_v46  ;;  %v10312_v6 = vadd.s32 232, %v9839_v3  ;;  %v1679_v15 = vmul.f32 %v9094_v18, %v1556_v0  ;;  %v7000_v10 = vadd.f32 -1.0, %v1475_v4 }
 0x14a   : > { %v1366_v31 = vmul.f32 1.442695, %v1317_v51  ;;  %v1318_v46 = vmin.f32 %v10296_v49, 20.0  ;;  %v1600_v62 = vadd.f32 1.0, %v1477_v5  ;;  %v1478_v59 = vmul.f32 %v1437_v23, %v1437_v23 }
 0x14b   : > { %v10309_v1 = vsub.f32 %v14705_v35, %v634_v50  ;;  %v7001_v50 = vadd.f32 -1.0, %v1476_v42  ;;  %v553_v13 = vmul.f32 0.055555556, %v512_v25  ;;  %v1719_v4 = vsel %vm10273_vm15, %v1678_v56, 0.0  ;;  %v1183_v56 = vpop.f32.mrb[20].mxu0  ;;  %v9096_v28 = vpop.eup %9095 }
 0x14c   : > { %v1720_v0 = vsel %vm10289_vm7, %v1679_v15, 0.0  ;;  %9103 = vpow2.f32 %v1366_v31  ;;  %v1368_v42 = vmul.f32 1.442695, %v1318_v46  ;;  %v14462_v63 = vcvt.s32.f32 %v10312_v6  ;;  %v7903_v7 = vpop.f32.mrb[21].mxu0  ;;  %v9098_v31 = vpop.eup %9097 }
 0x14d   : > { %v7458_v51 = vpack.c.bf16 %v1720_v0, %v1719_v4  ;;  %9105 = vrcp.f32 %v1600_v62  ;;  %v10348_v18 = vadd.s32 240, %v9839_v3  ;;  %v1557_v23 = vmul.f32 %v7000_v10, %v10090_v52  ;;  %v1186_v62 = vpop.f32.mrb[22].mxu0 }
 0x14e   : > { %v1601_v35 = vadd.f32 1.0, %v1478_v59  ;;  %9107 = vpow2.f32 %v1368_v42  ;;  %v10354_v15 = vadd.f32 %v10001_v48, %v1183_v56  ;;  %v14712_v46 = vmov 0  ;;  %v9100_v37 = vpop.eup %9099 }
 0x14f   : > { %7555 = vst [vmem:[#allocation2 + $0x10] sm:$0xff] %v7458_v51   ;;  %v14713_v46 = vsel %vm10360_vm2, 4294967295, %v14712_v46  ;;  %v1558_v52 = vmul.f32 %v7001_v50, %v10105_v9  ;;  %v1438_v10 = vadd.f32 1.0, %v9096_v28  ;;  %v10367_v4 = vfloor.f32 %v553_v13  ;;  %v7904_v13 = vpop.f32.mrb[23].mxu0  ;;  %v9102_v51 = vpop.eup %9101 }
 0x150   : > { %14714 = vst [vmem:[#allocation30_spill] sm:$0xff] %v14713_v46  ;;  %v10370_v0 = vadd.s32 248, %v9839_v3  ;;  %v1680_v42 = vmul.f32 %v9098_v31, %v1557_v23  ;;  %9109 = vrcp.f32 %v1601_v35  ;;  %v1319_v9 = vmin.f32 %v10354_v15, 20.0 }
 0x151   : > { %v10382_v50 = vadd.f32 %v10001_v48, %v1186_v62  ;;  %v7002_v25 = vadd.f32 -1.0, %v1477_v5  ;;  %v1479_v56 = vmul.f32 %v1438_v10, %v1438_v10  ;;  %v1439_v28 = vadd.f32 1.0, %v9100_v37 }
 0x152   : > { %v513_v23 = vadd.f32 0.5, %v14462_v63  ;;  %v1681_v35 = vmul.f32 %v9102_v51, %v1558_v52  ;;  %v1370_v5 = vmul.f32 1.442695, %v1319_v9  ;;  %v14463_v31 = vcvt.s32.f32 %v10348_v18  ;;  %v1191_v38 = vpop.f32.mrb[24].mxu0 }
 0x153   : > { %v1320_v7 = vmin.f32 %v10382_v50, 20.0  ;;  %v7003_v10 = vadd.f32 -1.0, %v1478_v59  ;;  %v1602_v62 = vadd.f32 1.0, %v1479_v56  ;;  %v1480_v37 = vmul.f32 %v1439_v28, %v1439_v28 }
 0x154   : > { %v635_v52 = vmul.f32 18.0, %v10367_v4  ;;  %v1721_v13 = vsel %vm10360_vm2, %v1680_v42, 0.0  ;;  %v1722_v20 = vsel %vm10376_vm3, %v1681_v35, 0.0  ;;  %9111 = vpow2.f32 %v1370_v5 }
 0x155   : > { %v1372_v59 = vmul.f32 1.442695, %v1320_v7  ;;  %v7463_v51 = vpack.c.bf16 %v1722_v20, %v1721_v13  ;;  %v1559_v28 = vmul.f32 %v7002_v25, %v10142_v12  ;;  %9113 = vrcp.f32 %v1602_v62  ;;  %v7907_v25 = vpop.f32.mrb[25].mxu0 }
 0x156   : > { %v10429_v35 = vmul.f32 0.055555556, %v513_v23  ;;  %v9104_v63 = vpop.eup %9103  ;;  %v7004_v5 = vadd.f32 -1.0, %v1479_v56  ;;  %v1603_v7 = vadd.f32 1.0, %v1480_v37  ;;  %v10433_v12 = vadd.f32 %v10001_v48, %v1191_v38  ;;  %v10435_v19 = vld [vmem:[#allocation2 + $0xc] sm:$0xff]   ;;  %v1194_v20 = vpop.f32.mrb[26].mxu0 }
 0x157   : > { %9115 = vpow2.f32 %v1372_v59  ;;  %v9106_v13 = vpop.eup %9105  ;;  %7556 = vst [vmem:[#allocation2 + $0x18] sm:$0xff] %v7463_v51   ;;  %v14728_v23 = vmov 0  ;;  %v1560_v56 = vmul.f32 %v7003_v10, %v10159_v57  ;;  %v1440_v62 = vadd.f32 1.0, %v9104_v63  ;;  %v7908_v10 = vpop.f32.mrb[27].mxu0 }
 0x158   : > { %v14729_v23 = vsel %vm10441_vm14, 4294967295, %v14728_v23  ;;  %v14731_v59 = vcvt.s32.f32 %v10196_v2  ;;  %v10454_v44 = vadd.f32 0.5, %v14463_v31  ;;  %v9108_v9 = vpop.eup %9107  ;;  %v1682_v51 = vmul.f32 %v9106_v13, %v1559_v28 }
 0x159   : > { %14730 = vst [vmem:[#allocation32_spill] sm:$0xff] %v14729_v23  ;;  %v14732_v57 = vmov 0  ;;  %9117 = vrcp.f32 %v1603_v7  ;;  %v1321_v2 = vmin.f32 %v10433_v12, 20.0  ;;  %v10468_v63 = vadd.f32 %v10001_v48, %v1194_v20 }
 0x15a   : > { %v10450_v38 = vsub.f32 %v14731_v59, %v635_v52  ;;  %v14733_v57 = vsel %vm10460_vm12, 4294967295, %v14732_v57  ;;  %v1481_v52 = vmul.f32 %v1440_v62, %v1440_v62  ;;  %v1441_v28 = vadd.f32 1.0, %v9108_v9  ;;  %v9110_v25 = vpop.eup %9109  ;;  %v8936_v9 = vld [vmem:[%s9617_s6 + $0x80] sm:$0xff]  }
 0x15b   : > { %14734 = vst [vmem:[#allocation33_spill] sm:$0xff] %v14733_v57  ;;  %v14464_v42 = vrot.slane %v10435_v19, 3  ;;  %v14466_v7 = vshrl.u32 %v10435_v19, 16  ;;  %v1561_v13 = vmul.f32 %v7004_v5, %v10183_v32  ;;  %v7005_v20 = vadd.f32 -1.0, %v1480_v37 }
 0x15c   : > { %v1374_v62 = vmul.f32 1.442695, %v1321_v2  ;;  %v1322_v59 = vmin.f32 %v10468_v63, 20.0  ;;  %v1683_v10 = vmul.f32 %v9110_v25, %v1560_v56  ;;  %v1604_v31 = vadd.f32 1.0, %v1481_v52 }
 0x15d   : > { %v1482_v32 = vmul.f32 %v1441_v28, %v1441_v28  ;;  %v1723_v43 = vsel %vm10441_vm14, %v1682_v51, 0.0  ;;  %v14744_v56 = vrot.slane %v9931_v8, 3  ;;  %v7006_v45 = vadd.f32 -1.0, %v1481_v52  ;;  %v8940_v52 = vld [vmem:[%s9617_s6 + $0x88] sm:$0xff]  }
 0x15e   : > { %9119 = vpow2.f32 %v1374_v62  ;;  %v1376_v2 = vmul.f32 1.442695, %v1322_v59  ;;  %v1724_v25 = vsel %vm10460_vm12, %v1683_v10, 0.0  ;;  %v1199_v62 = vpop.f32.mrb[28].mxu0  ;;  %v2473_v59 = vrot.slane %v14466_v7, 2 }
 0x15f   : > { %v2150_v28 = vsel %vm14467_vm4, %v14744_v56, %v14464_v42  ;;  %9121 = vrcp.f32 %v1604_v31  ;;  %v9112_v56 = vpop.eup %9111  ;;  %v7468_v10 = vpack.c.bf16 %v1724_v25, %v1723_v43  ;;  %v1605_v42 = vadd.f32 1.0, %v1482_v32  ;;  %v7911_v5 = vpop.f32.mrb[29].mxu0  ;;  %v10528_v31 = vld [vmem:[#allocation2 + $0x14] sm:$0xff]  }
 0x160   : > { %7982 = vmatmul.mubr.bf16.vlgmr.msra.gmra.mrb[0].mxu1 %v2150_v28  ;;  %9123 = vpow2.f32 %v1376_v2  ;;  %v10524_v16 = vadd.f32 %v10001_v48, %v1199_v62  ;;  %v14748_v57 = vmov 0.0   ;;  %v9114_v28 = vpop.eup %9113  ;;  %v1562_v7 = vmul.f32 %v7005_v20, %v10200_v14  ;;  %v1202_v2 = vpop.f32.mrb[30].mxu0 }
 0x161   : > { %8166 = vmatpush3.bf16.msra.mxu1 %v8936_v9  ;;  %7985 = vmatprep.mubr.msk.bf16.mxu1 %vm14749_vm8, %v14748_v57  ;;  %v1442_v43 = vadd.f32 1.0, %v9112_v56  ;;  %v14750_v9 = vshll.u32 %v10435_v19, 16  ;;  %v10538_v5 = vfloor.f32 %v10429_v35  ;;  %v9116_v62 = vpop.eup %9115  ;;  %7557 = vst [vmem:[#allocation2 + $0x20] sm:$0xff] %v7468_v10   ;;  %v14751_v14 = vmov 0  ;;  %v7912_v10 = vpop.f32.mrb[31].mxu0 }
 0x162   : > { %8167 = vmatprep.subr.bf16.mxu1 %v14748_v57  ;;  %v14752_v14 = vsel %vm10544_vm5, 4294967295, %v14751_v14  ;;  %v1684_v20 = vmul.f32 %v9114_v28, %v1561_v13  ;;  %9125 = vrcp.f32 %v1605_v42  ;;  %v1323_v56 = vmin.f32 %v10524_v16, 20.0 }
 0x163   : > { %v2476_v25 = vrot.slane %v14750_v9, 3  ;;  %14753 = vst [vmem:[#allocation34_spill] sm:$0xff] %v14752_v14  ;;  %v10552_v35 = vadd.f32 %v10001_v48, %v1202_v2  ;;  %v1483_v13 = vmul.f32 %v1442_v43, %v1442_v43  ;;  %v1443_v42 = vadd.f32 1.0, %v9116_v62  ;;  %v9118_v9 = vpop.eup %9117  ;;  %v8951_v14 = vld [vmem:[%s9617_s6 + $0xa0] sm:$0xff]  }
 0x164   : > { %v14469_v28 = vrot.slane %v10528_v31, 3  ;;  %v1563_v51 = vmul.f32 %v7006_v45, %v10263_v55  ;;  %v7007_v2 = vadd.f32 -1.0, %v1482_v32  ;;  %v1378_v43 = vmul.f32 1.442695, %v1323_v56  ;;  %v8944_v45 = vld [vmem:[%s9617_s6 + $0x90] sm:$0xff]   ;;  %v14767_v56 = vld [vmem:[#allocation3_spill] sm:$0xff] }
 0x165   : > { %v10562_v37 = vor.u32 %v2476_v25, %v2473_v59  ;;  %v1324_v59 = vmin.f32 %v10552_v35, 20.0  ;;  %8168 = vmatpush3.bf16.msra.mxu1 %v8940_v52  ;;  %v1685_v25 = vmul.f32 %v9118_v9, %v1562_v7  ;;  %vm14763_vm4 = vcmp.ge.f32.partialorder %v10017_v33, 1.0  ;;  %v14766_v7 = vld [vmem:[#allocation4_spill] sm:$0xff] }
 0x166   : > { %vm10580_vm11 = vmand %vm14763_vm4, %vm14762_vm13  ;;  %v1606_v62 = vadd.f32 1.0, %v1483_v13  ;;  %v1484_v55 = vmul.f32 %v1443_v42, %v1443_v42  ;;  %8169 = vmatprep.subr.bf16.mxu1 %v14748_v57  ;;  %9127 = vpow2.f32 %v1378_v43  ;;  %v14768_v10 = vor.u32 %v14766_v7, %v14767_v56  ;;  %v1207_v7 = vpop.f32.mrb[32].mxu0 }
 0x167   : > { %v1380_v52 = vmul.f32 1.442695, %v1324_v59  ;;  %v14770_v9 = vrot.slane %v10435_v19, 3  ;;  %vm14771_vm4 = vcmask 1044480   ;;  %v1725_v42 = vsel %vm10544_vm5, %v1684_v20, 0.0 }
 0x168   : > { %v2478_v33 = vsel %vm14769_vm9, %v14768_v10, %v10562_v37  ;;  %v1726_v32 = vsel %vm10558_vm6, %v1685_v25, 0.0  ;;  %vm14772_vm13 = vcmp.ge.f32.partialorder %v9957_v36, 1.0  ;;  %v7008_v59 = vadd.f32 -1.0, %v1483_v13  ;;  %v9120_v20 = vpop.eup %9119  ;;  %v14778_v10 = vld [vmem:[#allocation9_spill] sm:$0xff] }
 0x169   : > { %v2152_v23 = vsel %vm14771_vm4, %v14770_v9, %v14469_v28  ;;  %vm10606_vm0 = vmand %vm10569_vm10, %vm14772_vm13  ;;  %9129 = vrcp.f32 %v1606_v62  ;;  %8082 = vmatmul.mubr.bf16.vlgmr.msra.gmra.mrb[84].mxu0 %v2478_v33  ;;  %v7473_v56 = vpack.c.bf16 %v1726_v32, %v1725_v42  ;;  %vm14775_vm4 = vcmp.ge.f32.partialorder %v9959_v39, 1.0  ;;  %v7915_v62 = vpop.f32.mrb[33].mxu0  ;;  %v9122_v24 = vpop.eup %9121  ;;  %8170 = vmatpush3.bf16.msra.mxu1 %v8944_v45  ;;  %v10648_v28 = vld [vmem:[#allocation2 + $0x1c] sm:$0xff]  }
 0x16a   : > { %7986 = vmatmul.mubr.bf16.gmra.mrb[4].mxu1 %v2152_v23  ;;  %vm10615_vm1 = vmand %vm10580_vm11, %vm14775_vm4  ;;  %v1607_v25 = vadd.f32 1.0, %v1484_v55  ;;  %9131 = vpow2.f32 %v1380_v52  ;;  %v10621_v13 = vadd.f32 %v10001_v48, %v1207_v7  ;;  %8085 = vmatprep.mubr.msk.bf16.mxu0 %vm14749_vm8, %v14748_v57  ;;  %v8947_v23 = vld [vmem:[%s9617_s6 + $0x98] sm:$0xff]   ;;  %v1564_v32 = vmul.f32 %v7007_v2, %v10296_v49  ;;  %v1210_v52 = vpop.f32.mrb[34].mxu0  ;;  %v9124_v62 = vpop.eup %9123 }
 0x16b   : > { %7989 = vmatprep.mubr.msk.bf16.mxu1 %vm14749_vm8, %v14748_v57  ;;  %v1444_v33 = vadd.f32 1.0, %v9120_v20  ;;  %v14779_v9 = vshrl.u32 %v10528_v31, 16  ;;  %v14472_v7 = vshll.u32 %v10528_v31, 16  ;;  %7558 = vst [vmem:[#allocation2 + $0x28] sm:$0xff] %v7473_v56   ;;  %vm14780_vm4 = vcmp.le.f32.partialorder %v9957_v36, 16.0  ;;  %v14784_v20 = vld [vmem:[#allocation10_spill] sm:$0xff]  ;;  %8171 = vmatprep.subr.bf16.mxu1 %v14748_v57 }
 0x16c   : > { %vm10638_vm10 = vmand %vm10606_vm0, %vm14780_vm4  ;;  %v14781_v49 = vmov 0  ;;  %v1686_v2 = vmul.f32 %v9122_v24, %v1563_v51  ;;  %9133 = vrcp.f32 %v1607_v25  ;;  %v10646_v45 = vadd.f32 %v10001_v48, %v1210_v52  ;;  %v7916_v56 = vpop.f32.mrb[35].mxu0  ;;  %v9126_v52 = vpop.eup %9125 }
 0x16d   : > { %v2482_v42 = vrot.slane %v14779_v9, 2  ;;  %v14782_v49 = vsel %vm10638_vm10, 4294967295, %v14781_v49  ;;  %v1325_v9 = vmin.f32 %v10621_v13, 20.0  ;;  %vm14785_vm0 = vcmp.le.f32.partialorder %v9959_v39, 16.0  ;;  %v14793_v56 = vld [vmem:[#allocation5_spill] sm:$0xff]  ;;  %8172 = vmatpush3.bf16.msra.mxu1 %v8947_v23 }
 0x16e   : > { %14783 = vst [vmem:[#allocation4_spill] sm:$0xff] %v14782_v49  ;;  %vm10655_vm4 = vmand %vm10615_vm1, %vm14785_vm0  ;;  %v14786_v36 = vmov 0  ;;  %v1565_v51 = vmul.f32 %v7008_v59, %v10354_v15  ;;  %v1485_v43 = vmul.f32 %v1444_v33, %v1444_v33  ;;  %v1445_v25 = vadd.f32 1.0, %v9124_v62  ;;  %8173 = vmatprep.subr.bf16.mxu1 %v14748_v57  ;;  %v14830_v49 = vld [vmem:[#allocation17_spill] sm:$0xff] }
 0x16f   : > { %v14787_v36 = vsel %vm10655_vm4, 4294967295, %v14786_v36  ;;  %v2485_v24 = vrot.slane %v14472_v7, 3  ;;  %vm14789_vm11 = vcmp.le.f32.partialorder %v10034_v41, 16.0  ;;  %vm14790_vm13 = vcmp.ge.f32.partialorder %v10034_v41, 1.0  ;;  %v14798_v7 = vld [vmem:[#allocation6_spill] sm:$0xff]  ;;  %v14809_v41 = vld [vmem:[#allocation11_spill] sm:$0xff] }
 0x170   : > { %14788 = vst [vmem:[#allocation3_spill] sm:$0xff] %v14787_v36  ;;  %vm10666_vm9 = vmand %vm14790_vm13, %vm14789_vm11  ;;  %v7009_v26 = vadd.f32 -1.0, %v1484_v55  ;;  %v1382_v22 = vmul.f32 1.442695, %v1325_v9  ;;  %v1326_v15 = vmin.f32 %v10646_v45, 20.0  ;;  %v1727_v33 = vsel %vm10638_vm10, %v1686_v2, 0.0 }
 0x171   : > { %v1687_v62 = vmul.f32 %v9126_v52, %v1564_v32  ;;  %vm14794_vm0 = vcmp.le.f32.partialorder %v10050_v47, 16.0  ;;  %vm14795_vm6 = vcmp.ge.f32.partialorder %v10050_v47, 1.0  ;;  %v1608_v55 = vadd.f32 1.0, %v1485_v43  ;;  %8174 = vmatpush3.bf16.msra.mxu1 %v8951_v14 }
 0x172   : > { %vm10679_vm11 = vmand %vm14795_vm6, %vm14794_vm0  ;;  %v1486_v9 = vmul.f32 %v1445_v25, %v1445_v25  ;;  %9135 = vpow2.f32 %v1382_v22  ;;  %v1384_v59 = vmul.f32 1.442695, %v1326_v15  ;;  %v10685_v11 = vor.u32 %v2485_v24, %v2482_v42  ;;  %v1215_v25 = vpop.f32.mrb[36].mxu0  ;;  %v9128_v24 = vpop.eup %9127  ;;  %8175 = vmatprep.subr.bf16.mxu1 %v14748_v57 }
 0x173   : > { %v14799_v32 = vrot.slane %v10648_v28, 3  ;;  %v14800_v2 = vrot.slane %v10528_v31, 3  ;;  %vm14801_vm1 = vcmask 1044480   ;;  %v1728_v52 = vsel %vm10655_vm4, %v1687_v62, 0.0 }
 0x174   : > { %vm14802_vm6 = vcmp.ge.f32.partialorder %v9971_v61, 1.0  ;;  %v7010_v23 = vadd.f32 -1.0, %v1485_v43  ;;  %9137 = vrcp.f32 %v1608_v55  ;;  %v7011_v42 = vadd.f32 -1.0, %v1486_v9  ;;  %v7919_v55 = vpop.f32.mrb[37].mxu0 }
 0x175   : > { %v2154_v47 = vsel %vm14801_vm1, %v14800_v2, %v14799_v32  ;;  %vm10699_vm0 = vmand %vm10666_vm9, %vm14802_vm6  ;;  %v7478_v15 = vpack.c.bf16 %v1728_v52, %v1727_v33  ;;  %vm14805_vm1 = vcmp.ge.f32.partialorder %v9981_v17, 1.0  ;;  %v1609_v39 = vadd.f32 1.0, %v1486_v9  ;;  %v9130_v33 = vpop.eup %9129  ;;  %v1218_v9 = vpop.f32.mrb[38].mxu0 }
 0x176   : > { %7990 = vmatmul.mubr.bf16.gmra.mrb[8].mxu1 %v2154_v47  ;;  %vm10708_vm4 = vmand %vm10679_vm11, %vm14805_vm1  ;;  %9139 = vpow2.f32 %v1384_v59  ;;  %vm14808_vm6 = vsmask.f32 5376  ;;  %v1566_v32 = vmul.f32 %v7009_v26, %v10382_v50  ;;  %v1446_v2 = vadd.f32 1.0, %v9128_v24  ;;  %v10725_v47 = vld [vmem:[#allocation2 + $0x24] sm:$0xff]   ;;  %v9132_v52 = vpop.eup %9131 }
 0x177   : > { %v2487_v43 = vsel %vm14808_vm6, %v10562_v37, %v10685_v11  ;;  %7993 = vmatprep.mubr.msk.bf16.mxu1 %vm14749_vm8, %v14748_v57  ;;  %v10722_v59 = vadd.f32 %v10001_v48, %v1215_v25  ;;  %v14477_v37 = vshrl.u32 %v10648_v28, 16  ;;  %14810 = vst [vmem:[#allocation9_spill] sm:$0xff] %v10725_v47  ;;  %7559 = vst [vmem:[#allocation2 + $0x30] sm:$0xff] %v7478_v15   ;;  %vm14811_vm6 = vcmp.le.f32.partialorder %v9971_v61, 16.0  ;;  %v14815_v48 = vld [vmem:[#allocation13_spill] sm:$0xff]  ;;  %v7920_v61 = vpop.f32.mrb[39].mxu0  ;;  %v9134_v55 = vpop.eup %9133 }
 0x178   : > { %8086 = vmatmul.mubr.bf16.gmra.mrb[88].mxu0 %v2487_v43  ;;  %vm10731_vm11 = vmand %vm10699_vm0, %vm14811_vm6  ;;  %v14812_v50 = vmov 0  ;;  %v1688_v26 = vmul.f32 %v9130_v33, %v1565_v51  ;;  %9141 = vrcp.f32 %v1609_v39  ;;  %v10738_v25 = vld [vmem:[%s9592_s30] ss:$0 sm:$0xff]  ;;  %v14481_v22 = vshll.u32 %v10648_v28, 16  ;;  %v14824_v33 = vld [vmem:[#allocation7_spill] sm:$0xff] }
 0x179   : > { %v14813_v50 = vsel %vm10731_vm11, 4294967295, %v14812_v50  ;;  %v10741_v14 = vadd.f32 %v10738_v25, %v1218_v9  ;;  %8089 = vmatprep.mubr.msk.bf16.mxu0 %vm14749_vm8, %v14748_v57  ;;  %vm14816_vm0 = vcmp.le.f32.partialorder %v9981_v17, 16.0  ;;  %v14817_v51 = vmov 0 }
 0x17a   : > { %14814 = vst [vmem:[#allocation10_spill] sm:$0xff] %v14813_v50  ;;  %vm10751_vm6 = vmand %vm10708_vm4, %vm14816_vm0  ;;  %v1487_v24 = vmul.f32 %v1446_v2, %v1446_v2  ;;  %v1447_v15 = vadd.f32 1.0, %v9132_v52  ;;  %v1327_v39 = vmin.f32 %v10722_v59, 20.0  ;;  %v2491_v43 = vrot.slane %v14477_v37, 2  ;;  %v14829_v37 = vld [vmem:[#allocation8_spill] sm:$0xff] }
 0x17b   : > { %v14818_v51 = vsel %vm10751_vm6, 4294967295, %v14817_v51  ;;  %vm14820_vm1 = vcmp.le.f32.partialorder %v14778_v10, 16.0  ;;  %vm14821_vm9 = vcmp.ge.f32.partialorder %v14778_v10, 1.0  ;;  %v1567_v62 = vmul.f32 %v7010_v23, %v10433_v12 }
 0x17c   : > { %14819 = vst [vmem:[#allocation5_spill] sm:$0xff] %v14818_v51  ;;  %vm10762_vm13 = vmand %vm14821_vm9, %vm14820_vm1  ;;  %v1328_v2 = vmin.f32 %v10741_v14, 20.0  ;;  %v2494_v9 = vrot.slane %v14481_v22, 3  ;;  %v14483_v52 = vrot.slane %v10725_v47, 3  ;;  %v1689_v61 = vmul.f32 %v9134_v55, %v1566_v32  ;;  %v14858_v51 = vld [vmem:[#allocation14_spill] sm:$0xff] }
 0x17d   : > { %vm14825_vm0 = vcmp.le.f32.partialorder %v14784_v20, 16.0  ;;  %vm14826_vm10 = vcmp.ge.f32.partialorder %v14784_v20, 1.0  ;;  %v1568_v12 = vmul.f32 %v7011_v42, %v10468_v63  ;;  %v1610_v23 = vadd.f32 1.0, %v1487_v24 }
 0x17e   : > { %vm10776_vm9 = vmand %vm14826_vm10, %vm14825_vm0  ;;  %v1488_v36 = vmul.f32 %v1447_v15, %v1447_v15  ;;  %v1386_v22 = vmul.f32 1.442695, %v1327_v39  ;;  %v1388_v32 = vmul.f32 1.442695, %v1328_v2  ;;  %v10784_v55 = vor.u32 %v2494_v9, %v2491_v43  ;;  %v1223_v43 = vpop.f32.mrb[40].mxu0  ;;  %v9136_v2 = vpop.eup %9135 }
 0x17f   : > { %v14831_v20 = vrot.slane %v10648_v28, 3  ;;  %vm14832_vm10 = vcmask 1044480   ;;  %v1729_v63 = vsel %vm10731_vm11, %v1688_v26, 0.0  ;;  %v1730_v42 = vsel %vm10751_vm6, %v1689_v61, 0.0  ;;  %v9138_v61 = vpop.eup %9137 }
 0x180   : > { %vm14833_vm0 = vcmp.ge.f32.partialorder %v14793_v56, 1.0  ;;  %v7012_v39 = vadd.f32 -1.0, %v1487_v24  ;;  %9143 = vrcp.f32 %v1610_v23  ;;  %v7483_v9 = vpack.c.bf16 %v1730_v42, %v1729_v63 }
 0x181   : > { %v2156_v46 = vsel %vm14832_vm10, %v14831_v20, %v14483_v52  ;;  %vm10799_vm4 = vmand %vm10762_vm13, %vm14833_vm0  ;;  %vm14836_vm10 = vcmp.ge.f32.partialorder %v14798_v7, 1.0  ;;  %v1611_v17 = vadd.f32 1.0, %v1488_v36  ;;  %9145 = vpow2.f32 %v1386_v22  ;;  %v14840_v20 = vld [vmem:[#allocation12_spill] sm:$0xff]  ;;  %v9140_v52 = vpop.eup %9139 }
 0x182   : > { %7994 = vmatmul.mubr.bf16.gmra.mrb[12].mxu1 %v2156_v46  ;;  %vm10808_vm1 = vmand %vm10776_vm9, %vm14836_vm10  ;;  %vm14839_vm0 = vsmask.f32 5376  ;;  %v7923_v46 = vpop.f32.mrb[41].mxu0  ;;  %v7013_v23 = vadd.f32 -1.0, %v1488_v36  ;;  %v1448_v10 = vadd.f32 1.0, %v9136_v2  ;;  %9147 = vpow2.f32 %v1388_v32  ;;  %v10822_v22 = vld [vmem:[#allocation2 + $0x2c] sm:$0xff]  }
 0x183   : > { %v2496_v24 = vsel %vm14839_vm0, %v10685_v11, %v10784_v55  ;;  %7997 = vmatprep.mubr.msk.bf16.mxu1 %vm14749_vm8, %v14748_v57  ;;  %v10820_v63 = vadd.f32 %v10738_v25, %v1223_v43  ;;  %v1226_v42 = vpop.f32.mrb[42].mxu0  ;;  %7560 = vst [vmem:[#allocation2 + $0x38] sm:$0xff] %v7483_v9   ;;  %vm14841_vm9 = vcmp.le.f32.partialorder %v14793_v56, 16.0  ;;  %v14842_v11 = vmov 0  ;;  %v14845_v32 = vld [vmem:[#allocation19_spill] sm:$0xff]  ;;  %v9142_v46 = vpop.eup %9141 }
 0x184   : > { %8090 = vmatmul.mubr.bf16.gmra.mrb[92].mxu0 %v2496_v24  ;;  %vm10828_vm10 = vmand %vm10799_vm4, %vm14841_vm9  ;;  %v1690_v36 = vmul.f32 %v9138_v61, %v1567_v62  ;;  %9149 = vrcp.f32 %v1611_v17  ;;  %v10835_v43 = vadd.f32 %v10738_v25, %v1226_v42  ;;  %v7924_v2 = vpop.f32.mrb[43].mxu0  ;;  %v14485_v56 = vshrl.u32 %v10725_v47, 16 }
 0x185   : > { %v14843_v11 = vsel %vm10828_vm10, 4294967295, %v14842_v11  ;;  %8093 = vmatprep.mubr.msk.bf16.mxu0 %vm14749_vm8, %v14748_v57  ;;  %vm14846_vm4 = vcmp.le.f32.partialorder %v14798_v7, 16.0  ;;  %v14847_v62 = vmov 0  ;;  %v1489_v15 = vmul.f32 %v1448_v10, %v1448_v10 }
 0x186   : > { %14844 = vst [vmem:[#allocation6_spill] sm:$0xff] %v14843_v11  ;;  %vm10844_vm9 = vmand %vm10808_vm1, %vm14846_vm4  ;;  %v1449_v9 = vadd.f32 1.0, %v9140_v52  ;;  %v1329_v17 = vmin.f32 %v10820_v63, 20.0  ;;  %vm14850_vm0 = vcmp.le.f32.partialorder %v14809_v41, 16.0  ;;  %vm14851_vm5 = vcmp.ge.f32.partialorder %v14809_v41, 1.0 }
 0x187   : > { %v14848_v62 = vsel %vm10844_vm9, 4294967295, %v14847_v62  ;;  %vm10854_vm13 = vmand %vm14851_vm5, %vm14850_vm0  ;;  %v1330_v7 = vmin.f32 %v10835_v43, 20.0  ;;  %v2500_v52 = vrot.slane %v14485_v56, 2  ;;  %v10864_v10 = vmul.f32 0.055555556, %v10454_v44 }
 0x188   : > { %14849 = vst [vmem:[#allocation11_spill] sm:$0xff] %v14848_v62  ;;  %v1691_v42 = vmul.f32 %v9142_v46, %v1568_v12  ;;  %v1569_v2 = vmul.f32 %v7012_v39, %v10524_v16  ;;  %vm14854_vm5 = vcmp.le.f32.partialorder %v14815_v48, 16.0  ;;  %vm14855_vm0 = vcmp.ge.f32.partialorder %v14815_v48, 1.0 }
 0x189   : > { %vm10871_vm4 = vmand %vm14855_vm0, %vm14854_vm5  ;;  %v1612_v24 = vadd.f32 1.0, %v1489_v15  ;;  %v1490_v56 = vmul.f32 %v1449_v9, %v1449_v9  ;;  %v1390_v50 = vmul.f32 1.442695, %v1329_v17  ;;  %v1392_v26 = vmul.f32 1.442695, %v1330_v7  ;;  %v14866_v7 = vld [vmem:[#allocation20_spill] sm:$0xff] }
 0x18a   : > { %v14859_v44 = vshll.u32 %v10725_v47, 16  ;;  %v14860_v12 = vrot.slane %v10822_v22, 3  ;;  %v14861_v16 = vrot.slane %v10725_v47, 3  ;;  %vm14862_vm6 = vcmask 1044480  }
 0x18b   : > { %v1731_v48 = vsel %vm10828_vm10, %v1690_v36, 0.0  ;;  %v1732_v46 = vsel %vm10844_vm9, %v1691_v42, 0.0  ;;  %vm14863_vm5 = vcmp.ge.f32.partialorder %v14824_v33, 1.0  ;;  %v1570_v17 = vmul.f32 %v7013_v23, %v10552_v35  ;;  %v1231_v36 = vpop.f32.mrb[44].mxu0 }
 0x18c   : > { %v2503_v53 = vrot.slane %v14859_v44, 3  ;;  %v2158_v39 = vsel %vm14862_vm6, %v14861_v16, %v14860_v12  ;;  %vm10891_vm0 = vmand %vm10854_vm13, %vm14863_vm5  ;;  %9151 = vrcp.f32 %v1612_v24  ;;  %v7488_v44 = vpack.c.bf16 %v1732_v46, %v1731_v48  ;;  %v7927_v23 = vpop.f32.mrb[45].mxu0  ;;  %v9144_v24 = vpop.eup %9143  ;;  %v14874_v16 = vld [vmem:[#allocation22_spill] sm:$0xff] }
 0x18d   : > { %7998 = vmatmul.mubr.bf16.gmra.mrb[16].mxu1 %v2158_v39  ;;  %vm14867_vm9 = vcmp.ge.f32.partialorder %v14829_v37, 1.0  ;;  %v1613_v42 = vadd.f32 1.0, %v1490_v56  ;;  %9153 = vpow2.f32 %v1390_v50  ;;  %vm14870_vm5 = vcmp.le.f32.partialorder %v14830_v49, 16.0  ;;  %v1234_v50 = vpop.f32.mrb[46].mxu0  ;;  %v10925_v39 = vld [vmem:[#allocation2 + $0x34] sm:$0xff]   ;;  %v9146_v48 = vpop.eup %9145 }
 0x18e   : > { %vm10902_vm10 = vmand %vm10871_vm4, %vm14867_vm9  ;;  %v10907_v35 = vor.u32 %v2503_v53, %v2500_v52  ;;  %8001 = vmatprep.mubr.msk.bf16.mxu1 %vm14749_vm8, %v14748_v57  ;;  %vm14871_vm1 = vcmp.ge.f32.partialorder %v14830_v49, 1.0  ;;  %v7014_v12 = vadd.f32 -1.0, %v1489_v15  ;;  %9155 = vpow2.f32 %v1392_v26  ;;  %7561 = vst [vmem:[#allocation2 + $0x40] sm:$0xff] %v7488_v44   ;;  %v14879_v26 = vld [vmem:[#allocation15_spill] sm:$0xff]  ;;  %v7928_v44 = vpop.f32.mrb[47].mxu0  ;;  %v9148_v23 = vpop.eup %9147 }
 0x18f   : > { %vm10915_vm6 = vmand %vm14871_vm1, %vm14870_vm5  ;;  %v10922_v53 = vadd.f32 %v10738_v25, %v1231_v36  ;;  %vm14875_vm1 = vcmp.le.f32.partialorder %v14824_v33, 16.0  ;;  %v14876_v49 = vmov 0  ;;  %v7015_v15 = vadd.f32 -1.0, %v1490_v56  ;;  %v9150_v52 = vpop.eup %9149 }
 0x190   : > { %vm10931_vm5 = vmand %vm10891_vm0, %vm14875_vm1  ;;  %9157 = vrcp.f32 %v1613_v42  ;;  %vm14880_vm4 = vsmask.f32 5376  ;;  %v10940_v36 = vadd.f32 %v10738_v25, %v1234_v50  ;;  %v1692_v33 = vmul.f32 %v9144_v24, %v1569_v2 }
 0x191   : > { %v14877_v49 = vsel %vm10931_vm5, 4294967295, %v14876_v49  ;;  %v2505_v46 = vsel %vm14880_vm4, %v10784_v55, %v10907_v35  ;;  %vm14881_vm13 = vcmp.le.f32.partialorder %v14829_v37, 16.0  ;;  %v14882_v9 = vmov 0  ;;  %v14888_v37 = vld [vmem:[#allocation16_spill] sm:$0xff] }
 0x192   : > { %14878 = vst [vmem:[#allocation13_spill] sm:$0xff] %v14877_v49  ;;  %vm10946_vm0 = vmand %vm10902_vm10, %vm14881_vm13  ;;  %v1450_v56 = vadd.f32 1.0, %v9146_v48  ;;  %8094 = vmatmul.mubr.bf16.gmra.mrb[96].mxu0 %v2505_v46  ;;  %v1331_v42 = vmin.f32 %v10922_v53, 20.0  ;;  %vm14885_vm4 = vcmp.ge.f32.partialorder %v14840_v20, 1.0  ;;  %v1451_v61 = vadd.f32 1.0, %v9148_v23 }
 0x193   : > { %v14883_v9 = vsel %vm10946_vm0, 4294967295, %v14882_v9  ;;  %vm10956_vm1 = vmand %vm10915_vm6, %vm14885_vm4  ;;  %v1332_v24 = vmin.f32 %v10940_v36, 20.0  ;;  %8097 = vmatprep.mubr.msk.bf16.mxu0 %vm14749_vm8, %v14748_v57  ;;  %v14889_v50 = vshrl.u32 %v10822_v22, 16  ;;  %v1693_v44 = vmul.f32 %v9150_v52, %v1570_v17 }
 0x194   : > { %14884 = vst [vmem:[#allocation7_spill] sm:$0xff] %v14883_v9  ;;  %vm14890_vm13 = vcmp.le.f32.partialorder %v14845_v32, 16.0  ;;  %vm14891_vm6 = vcmp.ge.f32.partialorder %v14845_v32, 1.0  ;;  %v1491_v23 = vmul.f32 %v1450_v56, %v1450_v56  ;;  %v1394_v55 = vmul.f32 1.442695, %v1331_v42 }
 0x195   : > { %v2509_v48 = vrot.slane %v14889_v50, 2  ;;  %vm10971_vm4 = vmand %vm14891_vm6, %vm14890_vm13  ;;  %v14894_v62 = vshll.u32 %v10822_v22, 16  ;;  %v1571_v50 = vmul.f32 %v7014_v12, %v10621_v13  ;;  %v1492_v30 = vmul.f32 %v1451_v61, %v1451_v61  ;;  %v1239_v12 = vpop.f32.mrb[48].mxu0  ;;  %v11018_v41 = vld [vmem:[#allocation2 + $0x3c] sm:$0xff]  }
 0x196   : > { %v1396_v46 = vmul.f32 1.442695, %v1332_v24  ;;  %v14895_v17 = vrot.slane %v10925_v39, 3  ;;  %v14896_v52 = vrot.slane %v10822_v22, 3  ;;  %vm14897_vm9 = vcmask 1044480   ;;  %v7931_v2 = vpop.f32.mrb[49].mxu0 }
 0x197   : > { %v2512_v11 = vrot.slane %v14894_v62, 3  ;;  %v1733_v47 = vsel %vm10931_vm5, %v1692_v33, 0.0  ;;  %v1734_v56 = vsel %vm10946_vm0, %v1693_v44, 0.0  ;;  %vm14898_vm13 = vcmp.le.f32.partialorder %v14840_v20, 16.0  ;;  %v14919_v33 = vld [vmem:[#allocation21_spill] sm:$0xff] }
 0x198   : > { %v2160_v32 = vsel %vm14897_vm9, %v14896_v52, %v14895_v17  ;;  %vm10992_vm6 = vmand %vm10956_vm1, %vm14898_vm13  ;;  %v14899_v13 = vmov 0  ;;  %v1614_v62 = vadd.f32 1.0, %v1491_v23  ;;  %9159 = vpow2.f32 %v1394_v55 }
 0x199   : > { %v14900_v13 = vsel %vm10992_vm6, 4294967295, %v14899_v13  ;;  %8002 = vmatmul.mubr.bf16.gmra.mrb[20].mxu1 %v2160_v32  ;;  %v7493_v42 = vpack.c.bf16 %v1734_v56, %v1733_v47  ;;  %vm14902_vm9 = vcmp.ge.f32.partialorder %v14858_v51, 1.0  ;;  %v1615_v20 = vadd.f32 1.0, %v1492_v30  ;;  %v9152_v47 = vpop.eup %9151  ;;  %v14913_v56 = vld [vmem:[#allocation18_spill] sm:$0xff] }
 0x19a   : > { %14901 = vst [vmem:[#allocation8_spill] sm:$0xff] %v14900_v13  ;;  %vm11001_vm0 = vmand %vm10971_vm4, %vm14902_vm9  ;;  %9161 = vpow2.f32 %v1396_v46  ;;  %v14501_v55 = vshrl.u32 %v10925_v39, 16  ;;  %8005 = vmatprep.mubr.msk.bf16.mxu1 %vm14749_vm8, %v14748_v57  ;;  %v1572_v61 = vmul.f32 %v7015_v15, %v10646_v45  ;;  %v11013_v24 = vor.u32 %v2512_v11, %v2509_v48  ;;  %v1242_v46 = vpop.f32.mrb[50].mxu0  ;;  %v9154_v17 = vpop.eup %9153 }
 0x19b   : > { %9163 = vrcp.f32 %v1614_v62  ;;  %v11016_v44 = vadd.f32 %v10738_v25, %v1239_v12  ;;  %7562 = vst [vmem:[#allocation2 + $0x48] sm:$0xff] %v7493_v42   ;;  %v1694_v52 = vmul.f32 %v9152_v47, %v1571_v50  ;;  %vm14905_vm1 = vcmp.le.f32.partialorder %v14866_v7, 16.0  ;;  %v7932_v48 = vpop.f32.mrb[51].mxu0  ;;  %v9156_v32 = vpop.eup %9155 }
 0x19c   : > { %vm14906_vm13 = vcmp.ge.f32.partialorder %v14866_v7, 1.0  ;;  %v7016_v15 = vadd.f32 -1.0, %v1491_v23  ;;  %9165 = vrcp.f32 %v1615_v20  ;;  %v11029_v11 = vadd.f32 %v10738_v25, %v1242_v46  ;;  %v9158_v42 = vpop.eup %9157 }
 0x19d   : > { %vm11024_vm10 = vmand %vm14906_vm13, %vm14905_vm1  ;;  %vm14909_vm4 = vcmp.le.f32.partialorder %v14858_v51, 16.0  ;;  %v14910_v50 = vmov 0  ;;  %v7017_v7 = vadd.f32 -1.0, %v1492_v30  ;;  %vm832_vm1 = vcmp.ge.f32.partialorder %v14913_v56, 1.0 }
 0x19e   : > { %vm11035_vm9 = vmand %vm11001_vm0, %vm14909_vm4  ;;  %v1452_v62 = vadd.f32 1.0, %v9154_v17  ;;  %vm14914_vm13 = vsmask.f32 5376  ;;  %v1333_v12 = vmin.f32 %v11016_v44, 20.0  ;;  %vm14915_vm5 = vcmp.le.f32.partialorder %v14874_v16, 16.0 }
 0x19f   : > { %v14911_v50 = vsel %vm11035_vm9, 4294967295, %v14910_v50  ;;  %v2514_v23 = vsel %vm14914_vm13, %v10907_v35, %v11013_v24  ;;  %vm14916_vm11 = vcmp.ge.f32.partialorder %v14874_v16, 1.0  ;;  %v1453_v30 = vadd.f32 1.0, %v9156_v32 }
 0x1a0   : > { %14912 = vst [vmem:[#allocation17_spill] sm:$0xff] %v14911_v50  ;;  %vm11048_vm12 = vmand %vm14916_vm11, %vm14915_vm5  ;;  %8098 = vmatmul.mubr.bf16.gmra.mrb[100].mxu0 %v2514_v23  ;;  %v1334_v20 = vmin.f32 %v11029_v11, 20.0  ;;  %v2518_v35 = vrot.slane %v14501_v55, 2  ;;  %v14500_v2 = vshll.u32 %v10925_v39, 16  ;;  %v1695_v47 = vmul.f32 %v9158_v42, %v1572_v61  ;;  %v1247_v42 = vpop.f32.mrb[52].mxu0  ;;  %v8955_v55 = vld [vmem:[%s9617_s6 + $0xa8] sm:$0xff]  }
 0x1a1   : > { %vm14920_vm4 = vcmp.ge.f32.partialorder %v14879_v26, 1.0  ;;  %v1493_v46 = vmul.f32 %v1452_v62, %v1452_v62  ;;  %v1398_v17 = vmul.f32 1.442695, %v1333_v12  ;;  %8101 = vmatprep.mubr.msk.bf16.mxu0 %vm14749_vm8, %v14748_v57  ;;  %v14502_v48 = vrot.slane %v11018_v41, 3  ;;  %8176 = vmatpush3.bf16.msra.mxu1 %v8955_v55 }
 0x1a2   : > { %vm11061_vm11 = vmand %vm11024_vm10, %vm14920_vm4  ;;  %v1735_v32 = vsel %vm10992_vm6, %v1694_v52, 0.0  ;;  %v1494_v61 = vmul.f32 %v1453_v30, %v1453_v30  ;;  %v1400_v23 = vmul.f32 1.442695, %v1334_v20  ;;  %v2521_v45 = vrot.slane %v14500_v2, 3  ;;  %v9160_v30 = vpop.eup %9159  ;;  %8177 = vmatprep.subr.bf16.mxu1 %v14748_v57 }
 0x1a3   : > { %v1736_v62 = vsel %vm11035_vm9, %v1695_v47, 0.0  ;;  %vm14923_vm10 = vcmp.ge.f32.partialorder %v14888_v37, 1.0  ;;  %v1616_v52 = vadd.f32 1.0, %v1493_v46  ;;  %9167 = vpow2.f32 %v1398_v17  ;;  %v7935_v17 = vpop.f32.mrb[53].mxu0 }
 0x1a4   : > { %vm11079_vm13 = vmand %vm11048_vm12, %vm14923_vm10  ;;  %v7498_v20 = vpack.c.bf16 %v1736_v62, %v1735_v32  ;;  %vm14926_vm5 = vcmp.le.f32.partialorder %v14879_v26, 16.0  ;;  %v14927_v47 = vmov 0  ;;  %v11093_v51 = vadd.f32 -1.0, %v1493_v46  ;;  %v1250_v62 = vpop.f32.mrb[54].mxu0  ;;  %v9162_v17 = vpop.eup %9161 }
 0x1a5   : > { %vm11089_vm0 = vmand %vm11061_vm11, %vm14926_vm5  ;;  %v1617_v2 = vadd.f32 1.0, %v1494_v61  ;;  %9169 = vpow2.f32 %v1400_v23  ;;  %v1573_v32 = vmul.f32 %v7016_v15, %v10722_v59  ;;  %v11101_v26 = vor.u32 %v2521_v45, %v2518_v35  ;;  %v11108_v23 = vld [vmem:[#allocation2 + $0x44] sm:$0xff]  }
 0x1a6   : > { %v14928_v47 = vsel %vm11089_vm0, 4294967295, %v14927_v47  ;;  %9171 = vrcp.f32 %v1616_v52  ;;  %v14930_v16 = vrot.slane %v10925_v39, 3  ;;  %vm14931_vm5 = vcmask 1044480   ;;  %7563 = vst [vmem:[#allocation2 + $0x50] sm:$0xff] %v7498_v20   ;;  %v7936_v52 = vpop.f32.mrb[55].mxu0  ;;  %v9164_v20 = vpop.eup %9163 }
 0x1a7   : > { %14929 = vst [vmem:[#allocation12_spill] sm:$0xff] %v14928_v47  ;;  %vm14932_vm12 = vcmp.le.f32.partialorder %v14888_v37, 16.0  ;;  %v14933_v59 = vmov 0  ;;  %v1574_v15 = vmul.f32 %v7017_v7, %v10741_v14  ;;  %9173 = vrcp.f32 %v1617_v2  ;;  %v1255_v13 = vpop.f32.mrb[56].mxu0 }
 0x1a8   : > { %v2162_v46 = vsel %vm14931_vm5, %v14930_v16, %v14502_v48  ;;  %vm11114_vm4 = vmand %vm11079_vm13, %vm14932_vm12  ;;  %v1454_v35 = vadd.f32 1.0, %v9160_v30  ;;  %v11120_v45 = vadd.f32 %v10738_v25, %v1247_v42  ;;  %vm14936_vm5 = vcmp.le.f32.partialorder %v10171_v40, 16.0  ;;  %v14940_v16 = vld [vmem:[#allocation23_spill] sm:$0xff]  ;;  %v9166_v30 = vpop.eup %9165 }
 0x1a9   : > { %v14934_v59 = vsel %vm11114_vm4, 4294967295, %v14933_v59  ;;  %8006 = vmatmul.mubr.bf16.gmra.mrb[24].mxu1 %v2162_v46  ;;  %vm14937_vm11 = vcmp.ge.f32.partialorder %v10171_v40, 1.0  ;;  %v7019_v12 = vadd.f32 -1.0, %v1494_v61  ;;  %v1455_v14 = vadd.f32 1.0, %v9162_v17  ;;  %v8958_v40 = vld [vmem:[%s9617_s6 + $0xb0] sm:$0xff]   ;;  %v8961_v42 = vld [vmem:[%s9617_s6 + $0xc0] sm:$0xff]  }
 0x1aa   : > { %14935 = vst [vmem:[#allocation19_spill] sm:$0xff] %v14934_v59  ;;  %vm11126_vm13 = vmand %vm14937_vm11, %vm14936_vm5  ;;  %vm14941_vm10 = vsmask.f32 5376  ;;  %v11135_v2 = vadd.f32 %v10738_v25, %v1250_v62  ;;  %8009 = vmatprep.mubr.msk.bf16.mxu1 %vm14749_vm8, %v14748_v57  ;;  %v1696_v46 = vmul.f32 %v9164_v20, %v1573_v32  ;;  %vm14942_vm11 = vcmp.le.f32.partialorder %v10187_v21, 16.0  ;;  %v14946_v62 = vld [vmem:[#allocation24_spill] sm:$0xff]  ;;  %8266 = vmatpush3.bf16.msra.mxu0 %v8961_v42  ;;  %v8964_v42 = vld [vmem:[%s9617_s6 + $0xb8] sm:$0xff]  }
 0x1ab   : > { %v2523_v7 = vsel %vm14941_vm10, %v11013_v24, %v11101_v26  ;;  %vm14943_vm5 = vcmp.ge.f32.partialorder %v10187_v21, 1.0  ;;  %v11149_v24 = vmul.f32 %v1454_v35, %v1454_v35  ;;  %v1335_v55 = vmin.f32 %v11120_v45, 20.0  ;;  %v8963_v20 = vld [vmem:[%s9617_s6 + $0xc8] sm:$0xff]   ;;  %8267 = vmatprep.subr.bf16.mxu0 %v14748_v57  ;;  %8178 = vmatpush3.bf16.msra.mxu1 %v8958_v40  ;;  %v7939_v59 = vpop.f32.mrb[57].mxu0 }
 0x1ac   : > { %vm11145_vm12 = vmand %vm14943_vm5, %vm14942_vm11  ;;  %8102 = vmatmul.mubr.bf16.gmra.mrb[104].mxu0 %v2523_v7  ;;  %v1697_v32 = vmul.f32 %v9166_v30, %v1574_v15  ;;  %v11155_v52 = vmul.f32 %v1455_v14, %v1455_v14  ;;  %v1336_v21 = vmin.f32 %v11135_v2, 20.0  ;;  %v14949_v30 = vshrl.u32 %v11018_v41, 16  ;;  %8179 = vmatprep.subr.bf16.mxu1 %v14748_v57 }
 0x1ad   : > { %8105 = vmatprep.mubr.msk.bf16.mxu0 %vm14749_vm8, %v14748_v57  ;;  %vm11166_vm11 = vmand %vm11126_vm13, %vm832_vm1  ;;  %v1618_v15 = vadd.f32 1.0, %v11149_v24  ;;  %v1402_v14 = vmul.f32 1.442695, %v1335_v55  ;;  %v11175_v35 = vmul.f32 18.0, %v10538_v5  ;;  %v1737_v37 = vsel %vm11089_vm0, %v1696_v46, 0.0  ;;  %v9168_v9 = vpop.eup %9167  ;;  %v8965_v55 = vld [vmem:[%s9617_s6 + $0xd0] sm:$0xff]  }
 0x1ae   : > { %v2527_v48 = vrot.slane %v14949_v30, 2  ;;  %v1738_v17 = vsel %vm11114_vm4, %v1697_v32, 0.0  ;;  %vm14950_vm1 = vcmp.ge.f32.partialorder %v14919_v33, 1.0  ;;  %v1619_v30 = vadd.f32 1.0, %v11155_v52  ;;  %8268 = vmatpush3.bf16.msra.mxu0 %v8963_v20  ;;  %vm14975_vm0 = vmmov %vm14941_vm10 }
 0x1af   : > { %vm11187_vm13 = vmand %vm11145_vm12, %vm14950_vm1  ;;  %v1404_v50 = vmul.f32 1.442695, %v1336_v21  ;;  %v7503_v47 = vpack.c.bf16 %v1738_v17, %v1737_v37  ;;  %v1575_v46 = vmul.f32 %v11093_v51, %v10820_v63  ;;  %9175 = vrcp.f32 %v1618_v15  ;;  %v1258_v21 = vpop.f32.mrb[58].mxu0  ;;  %v9170_v7 = vpop.eup %9169  ;;  %8269 = vmatprep.subr.bf16.mxu0 %v14748_v57  ;;  %8180 = vmatpush3.bf16.msra.mxu1 %v8964_v42 }
 0x1b0   : > { %v14953_v61 = vshll.u32 %v11018_v41, 16  ;;  %vm14954_vm12 = vcmp.le.f32.partialorder %v14913_v56, 16.0  ;;  %v14955_v40 = vmov 0  ;;  %v1576_v63 = vmul.f32 %v7019_v12, %v10835_v43  ;;  %v7940_v20 = vpop.f32.mrb[59].mxu0  ;;  %8365 = vmatprep.subr.bf16.mxu1 %v14748_v57 }
 0x1b1   : > { %vm11204_vm1 = vmand %vm11166_vm11, %vm14954_vm12  ;;  %9177 = vrcp.f32 %v1619_v30  ;;  %v14958_v51 = vrot.slane %v11108_v23, 3  ;;  %v14959_v59 = vrot.slane %v11018_v41, 3  ;;  %vm14960_vm5 = vcmask 1044480   ;;  %7564 = vst [vmem:[#allocation2 + $0x58] sm:$0xff] %v7503_v47   ;;  %v9172_v47 = vpop.eup %9171  ;;  %v8967_v20 = vld [vmem:[%s9617_s6 + $0xd8] sm:$0xff]  }
 0x1b2   : > { %v2530_v32 = vrot.slane %v14953_v61, 3  ;;  %v14956_v40 = vsel %vm11204_vm1, 4294967295, %v14955_v40  ;;  %v11217_v56 = vadd.f32 %v10738_v25, %v1255_v13  ;;  %vm14961_vm11 = vcmp.le.f32.partialorder %v14919_v33, 16.0  ;;  %v9174_v30 = vpop.eup %9173  ;;  %8270 = vmatpush3.bf16.msra.mxu0 %v8965_v55 }
 0x1b3   : > { %14957 = vst [vmem:[#allocation14_spill] sm:$0xff] %v14956_v40  ;;  %v2164_v17 = vsel %vm14960_vm5, %v14959_v59, %v14958_v51  ;;  %vm11223_vm12 = vmand %vm11187_vm13, %vm14961_vm11  ;;  %v14962_v43 = vmov 0  ;;  %v1456_v12 = vadd.f32 1.0, %v9168_v9  ;;  %9179 = vpow2.f32 %v1402_v14  ;;  %v14969_v9 = vld [vmem:[#allocation25_spill] sm:$0xff]  ;;  %8271 = vmatprep.subr.bf16.mxu0 %v14748_v57 }
 0x1b4   : > { %v14963_v43 = vsel %vm11223_vm12, 4294967295, %v14962_v43  ;;  %v11227_v15 = vor.u32 %v2530_v32, %v2527_v48  ;;  %8010 = vmatmul.mubr.bf16.gmra.mrb[28].mxu1 %v2164_v17  ;;  %v11230_v13 = vadd.f32 %v10738_v25, %v1258_v21  ;;  %vm14965_vm5 = vcmp.le.f32.partialorder %v10204_v54, 16.0  ;;  %v14974_v32 = vld [vmem:[#allocation26_spill] sm:$0xff]  ;;  %v11262_v21 = vld [vmem:[#allocation2 + $0x4c] sm:$0xff]  }
 0x1b5   : > { %14964 = vst [vmem:[#allocation20_spill] sm:$0xff] %v14963_v43  ;;  %vm14966_vm13 = vcmp.ge.f32.partialorder %v10204_v54, 1.0  ;;  %v1457_v48 = vadd.f32 1.0, %v9170_v7  ;;  %9181 = vpow2.f32 %v1404_v50  ;;  %v1337_v14 = vmin.f32 %v11217_v56, 20.0  ;;  %8013 = vmatprep.mubr.msk.bf16.mxu1 %vm14749_vm8, %v14748_v57 }
 0x1b6   : > { %vm11237_vm11 = vmand %vm14966_vm13, %vm14965_vm5  ;;  %v14515_v37 = vshrl.u32 %v11108_v23, 16  ;;  %v1698_v61 = vmul.f32 %v9172_v47, %v1575_v46  ;;  %vm14970_vm5 = vcmp.le.f32.partialorder %v10243_v60, 16.0  ;;  %vm14971_vm13 = vcmp.ge.f32.partialorder %v10243_v60, 1.0  ;;  %8272 = vmatpush3.bf16.msra.mxu0 %v8967_v20 }
 0x1b7   : > { %vm11251_vm4 = vmand %vm14971_vm13, %vm14970_vm5  ;;  %v1497_v50 = vmul.f32 %v1456_v12, %v1456_v12  ;;  %v2532_v51 = vsel %vm14975_vm0, %v11101_v26, %v11227_v15  ;;  %v1338_v42 = vmin.f32 %v11230_v13, 20.0  ;;  %v1699_v46 = vmul.f32 %v9174_v30, %v1576_v63  ;;  %8273 = vmatprep.subr.bf16.mxu0 %v14748_v57 }
 0x1b8   : > { %v7020_v59 = vadd.f32 -1.0, %v11149_v24  ;;  %v1498_v60 = vmul.f32 %v1457_v48, %v1457_v48  ;;  %8106 = vmatmul.mubr.bf16.gmra.mrb[108].mxu0 %v2532_v51  ;;  %v1406_v17 = vmul.f32 1.442695, %v1337_v14  ;;  %vm14976_vm5 = vcmp.ge.f32.partialorder %v14940_v16, 1.0  ;;  %v1263_v48 = vpop.f32.mrb[60].mxu0 }
 0x1b9   : > { %vm11268_vm13 = vmand %vm11237_vm11, %vm14976_vm5  ;;  %v7021_v26 = vadd.f32 -1.0, %v11155_v52  ;;  %v1620_v63 = vadd.f32 1.0, %v1497_v50  ;;  %v1408_v12 = vmul.f32 1.442695, %v1338_v42  ;;  %8109 = vmatprep.mubr.msk.bf16.mxu0 %vm14749_vm8, %v14748_v57  ;;  %v11277_v24 = vfloor.f32 %v10864_v10  ;;  %v8970_v52 = vld [vmem:[%s9617_s6 + $0xf0] sm:$0xff]  }
 0x1ba   : > { %v1739_v47 = vsel %vm11204_vm1, %v1698_v61, 0.0  ;;  %v1740_v33 = vsel %vm11223_vm12, %v1699_v46, 0.0  ;;  %vm14979_vm11 = vcmp.ge.f32.partialorder %v14946_v62, 1.0  ;;  %v1621_v10 = vadd.f32 1.0, %v1498_v60  ;;  %v7943_v61 = vpop.f32.mrb[61].mxu0 }
 0x1bb   : > { %vm11288_vm5 = vmand %vm11251_vm4, %vm14979_vm11  ;;  %9183 = vpow2.f32 %v1406_v17  ;;  %v7508_v14 = vpack.c.bf16 %v1740_v33, %v1739_v47  ;;  %v2536_v55 = vrot.slane %v14515_v37, 2  ;;  %v14514_v30 = vshll.u32 %v11108_v23, 16  ;;  %v1266_v17 = vpop.f32.mrb[62].mxu0 }
 0x1bc   : > { %9185 = vrcp.f32 %v1620_v63  ;;  %vm14982_vm4 = vcmp.le.f32.partialorder %v14940_v16, 16.0  ;;  %v14983_v54 = vmov 0  ;;  %v1577_v51 = vmul.f32 %v7020_v59, %v10922_v53  ;;  %v9176_v63 = vpop.eup %9175  ;;  %v7944_v47 = vpop.f32.mrb[63].mxu0 }
 0x1bd   : > { %vm11301_vm11 = vmand %vm11268_vm13, %vm14982_vm4  ;;  %9187 = vrcp.f32 %v1621_v10  ;;  %v2165_v42 = vrot.slane %v11262_v21, 3  ;;  %v14516_v46 = vcvt.s32.f32 %v10370_v0  ;;  %7565 = vst [vmem:[#allocation2 + $0x60] sm:$0xff] %v7508_v14   ;;  %vm14986_vm0 = vcmp.le.f32.partialorder %v14946_v62, 16.0  ;;  %v9178_v33 = vpop.eup %9177 }
 0x1be   : > { %v14984_v54 = vsel %vm11301_vm11, 4294967295, %v14983_v54  ;;  %vm11312_vm10 = vmand %vm11288_vm5, %vm14986_vm0  ;;  %v14987_v16 = vmov 0  ;;  %v1578_v7 = vmul.f32 %v7021_v26, %v10940_v36  ;;  %9189 = vpow2.f32 %v1408_v12  ;;  %v9180_v10 = vpop.eup %9179 }
 0x1bf   : > { %14985 = vst [vmem:[#allocation22_spill] sm:$0xff] %v14984_v54  ;;  %v14988_v16 = vsel %vm11312_vm10, 4294967295, %v14987_v16  ;;  %v2539_v53 = vrot.slane %v14514_v30, 3  ;;  %v11320_v59 = vadd.f32 %v10738_v25, %v1263_v48  ;;  %v1700_v62 = vmul.f32 %v9176_v63, %v1577_v51  ;;  %v12240_v54 = vld [vmem:[#allocation2 + $0x5c] sm:$0xf] }
 0x1c0   : > { %14989 = vst [vmem:[#allocation15_spill] sm:$0xff] %v14988_v16  ;;  %vm14990_vm13 = vcmp.le.f32.partialorder %v10256_v29, 16.0  ;;  %vm14991_vm0 = vcmp.ge.f32.partialorder %v10256_v29, 1.0  ;;  %v7022_v36 = vadd.f32 -1.0, %v1497_v50  ;;  %v14994_v26 = vrot.slane %v11108_v23, 3  ;;  %v8968_v29 = vld [vmem:[%s9617_s6 + $0xe0] sm:$0xff]  }
 0x1c1   : > { %vm11326_vm5 = vmand %vm14991_vm0, %vm14990_vm13  ;;  %vm14995_vm1 = vcmask 1044480   ;;  %v11338_v20 = vadd.f32 %v10738_v25, %v1266_v17  ;;  %v1701_v48 = vmul.f32 %v9178_v33, %v1578_v7  ;;  %vm14996_vm13 = vcmp.le.f32.partialorder %v10267_v27, 16.0  ;;  %v9182_v17 = vpop.eup %9181  ;;  %v15003_v33 = vld [vmem:[#allocation27_spill] sm:$0xff]  ;;  %8274 = vmatpush3.bf16.msra.mxu0 %v8968_v29  ;;  %v11391_v29 = vld [vmem:[#allocation2 + $0x54] sm:$0xff]   ;;  %15186 = vst [vmem:[#allocation50_spill] sm:$0xff] %v12240_v54 }
 0x1c2   : > { %v2166_v12 = vsel %vm14995_vm1, %v14994_v26, %v2165_v42  ;;  %vm14997_vm0 = vcmp.ge.f32.partialorder %v10267_v27, 1.0  ;;  %v7023_v14 = vadd.f32 -1.0, %v1498_v60  ;;  %v11351_v61 = vor.u32 %v2539_v53, %v2536_v55  ;;  %v8969_v60 = vld [vmem:[%s9617_s6 + $0xe8] sm:$0xff]   ;;  %15009 = vst [vmem:[#allocation16_spill] sm:$0xff] %v11391_v29  ;;  %8275 = vmatprep.subr.bf16.mxu0 %v14748_v57  ;;  %v12238_v16 = vld [vmem:[#allocation2 + $0x58] sm:$0xf] }
 0x1c3   : > { %vm11346_vm4 = vmand %vm14997_vm0, %vm14996_vm13  ;;  %8014 = vmatmul.mubr.bf16.gmra.mrb[32].mxu1 %v2166_v12  ;;  %v1339_v51 = vmin.f32 %v11320_v59, 20.0  ;;  %v1741_v63 = vsel %vm11301_vm11, %v1700_v62, 0.0  ;;  %v1458_v7 = vadd.f32 1.0, %v9180_v10  ;;  %v515_v27 = vadd.f32 0.5, %v14516_v46 }
 0x1c4   : > { %v1340_v47 = vmin.f32 %v11338_v20, 20.0  ;;  %8017 = vmatprep.mubr.msk.bf16.mxu1 %vm14749_vm8, %v14748_v57  ;;  %v1742_v55 = vsel %vm11312_vm10, %v1701_v48, 0.0  ;;  %vm15000_vm13 = vcmp.ge.f32.partialorder %v14969_v9, 1.0  ;;  %v1459_v62 = vadd.f32 1.0, %v9182_v17 }
 0x1c5   : > { %vm11368_vm0 = vmand %vm11326_vm5, %vm15000_vm13  ;;  %vm15004_vm12 = vsmask.f32 5376  ;;  %v1410_v12 = vmul.f32 1.442695, %v1339_v51  ;;  %v7513_v10 = vpack.c.bf16 %v1742_v55, %v1741_v63  ;;  %vm15005_vm10 = vcmp.ge.f32.partialorder %v14974_v32, 1.0  ;;  %v11393_v51 = vpop.f32.mrb[64].mxu0  ;;  %8276 = vmatpush3.bf16.msra.mxu0 %v8969_v60 }
 0x1c6   : > { %v2541_v26 = vsel %vm15004_vm12, %v11227_v15, %v11351_v61  ;;  %vm11380_vm11 = vmand %vm11346_vm4, %vm15005_vm10  ;;  %v1499_v48 = vmul.f32 %v1458_v7, %v1458_v7  ;;  %vm757_vm5 = vcmp.le.f32.partialorder %v10309_v1, 16.0  ;;  %v15008_v17 = vcvt.s32.f32 %v10312_v6  ;;  %v7947_v55 = vpop.f32.mrb[65].mxu0  ;;  %v9184_v6 = vpop.eup %9183  ;;  %8277 = vmatprep.subr.bf16.mxu0 %v14748_v57 }
 0x1c7   : > { %8110 = vmatmul.mubr.bf16.gmra.mrb[112].mxu0 %v2541_v26  ;;  %v1579_v50 = vmul.f32 %v7022_v36, %v11016_v44  ;;  %v1500_v63 = vmul.f32 %v1459_v62, %v1459_v62  ;;  %v637_v7 = vmul.f32 18.0, %v11277_v24  ;;  %9191 = vpow2.f32 %v1410_v12  ;;  %7566 = vst [vmem:[#allocation2 + $0x68] sm:$0xff] %v7513_v10   ;;  %v11411_v12 = vpop.f32.mrb[66].mxu0 }
 0x1c8   : > { %v11389_v15 = vsub.f32 %v15008_v17, %v11175_v35  ;;  %8113 = vmatprep.mubr.msk.bf16.mxu0 %vm14749_vm8, %v14748_v57  ;;  %vm15010_vm10 = vcmp.le.f32.partialorder %v14969_v9, 16.0  ;;  %v15011_v35 = vmov 0  ;;  %v1580_v44 = vmul.f32 %v7023_v14, %v11029_v11  ;;  %v9186_v17 = vpop.eup %9185  ;;  %v7948_v10 = vpop.f32.mrb[67].mxu0 }
 0x1c9   : > { %vm11404_vm12 = vmand %vm11368_vm0, %vm15010_vm10  ;;  %v1622_v36 = vadd.f32 1.0, %v1499_v48  ;;  %v556_v62 = vmul.f32 0.055555556, %v515_v27  ;;  %v14519_v26 = vshrl.u32 %v11262_v21, 16  ;;  %vm15014_vm13 = vcmp.le.f32.partialorder %v14974_v32, 16.0  ;;  %v9188_v55 = vpop.eup %9187  ;;  %8278 = vmatpush3.bf16.msra.mxu0 %v8970_v52 }
 0x1ca   : > { %v15012_v35 = vsel %vm11404_vm12, 4294967295, %v15011_v35  ;;  %vm11417_vm0 = vmand %vm11380_vm11, %vm15014_vm13  ;;  %v15015_v9 = vmov 0  ;;  %v1623_v11 = vadd.f32 1.0, %v1500_v63  ;;  %v1460_v14 = vadd.f32 1.0, %v9184_v6  ;;  %v9190_v37 = vpop.eup %9189  ;;  %8279 = vmatprep.subr.bf16.mxu0 %v14748_v57 }
 0x1cb   : > { %15013 = vst [vmem:[#allocation18_spill] sm:$0xff] %v15012_v35  ;;  %v15016_v9 = vsel %vm11417_vm0, 4294967295, %v15015_v9  ;;  %v1412_v53 = vmul.f32 1.442695, %v1340_v47  ;;  %v14518_v27 = vshll.u32 %v11262_v21, 16  ;;  %v1702_v30 = vmul.f32 %v9186_v17, %v1579_v50 }
 0x1cc   : > { %15017 = vst [vmem:[#allocation21_spill] sm:$0xff] %v15016_v9  ;;  %9193 = vrcp.f32 %v1622_v36  ;;  %v14522_v32 = vrot.slane %v11391_v29, 3  ;;  %v1703_v46 = vmul.f32 %v9188_v55, %v1580_v44  ;;  %v1501_v47 = vmul.f32 %v1460_v14, %v1460_v14  ;;  %v11468_v14 = vpop.f32.mrb[68].mxu0 }
 0x1cd   : > { %9195 = vrcp.f32 %v1623_v11  ;;  %v15018_v60 = vcvt.s32.f32 %v10348_v18  ;;  %v7024_v6 = vadd.f32 -1.0, %v1499_v48  ;;  %v1461_v36 = vadd.f32 1.0, %v9190_v37  ;;  %v8972_v48 = vld [vmem:[%s9617_s6 + $0xf8] sm:$0xff]   ;;  %v7951_v52 = vpop.f32.mrb[69].mxu0  ;;  %v11509_v18 = vld [vmem:[%s9592_s30] ss:$0 sm:$0xff] }
 0x1ce   : > { %v11434_v17 = vfloor.f32 %v556_v62  ;;  %v2545_v10 = vrot.slane %v14519_v26, 2  ;;  %v1743_v44 = vsel %vm11404_vm12, %v1702_v30, 0.0  ;;  %v1744_v11 = vsel %vm11417_vm0, %v1703_v46, 0.0  ;;  %8280 = vmatpush3.bf16.msra.mxu0 %v8972_v48 }
 0x1cf   : > { %v11432_v50 = vsub.f32 %v15018_v60, %v637_v7  ;;  %vm15019_vm11 = vcmp.le.f32.partialorder %v10281_v34, 16.0  ;;  %vm15020_vm13 = vcmp.ge.f32.partialorder %v10281_v34, 1.0  ;;  %v1624_v37 = vadd.f32 1.0, %v1501_v47  ;;  %8465 = vmatprep.subr.bf16.mxu0 %v14748_v57 }
 0x1d0   : > { %vm11446_vm4 = vmand %vm15020_vm13, %vm15019_vm11  ;;  %9197 = vpow2.f32 %v1412_v53  ;;  %v7518_v7 = vpack.c.bf16 %v1744_v11, %v1743_v44  ;;  %vm15023_vm10 = vcmp.ge.f32.partialorder %v10309_v1, 1.0  ;;  %v1502_v34 = vmul.f32 %v1461_v36, %v1461_v36 }
 0x1d1   : > { %vm11456_vm0 = vmand %vm15023_vm10, %vm757_vm5  ;;  %v2548_v46 = vrot.slane %v14518_v27, 3  ;;  %v7025_v1 = vadd.f32 -1.0, %v1500_v63  ;;  %9199 = vrcp.f32 %v1624_v37  ;;  %v11472_v53 = vadd.s32 256, %v9839_v3  ;;  %v9192_v44 = vpop.eup %9191 }
 0x1d2   : > { %vm15026_vm13 = vmmov %vm14995_vm1  ;;  %v11476_v55 = vadd.f32 %v10738_v25, %v11393_v51  ;;  %7567 = vst [vmem:[#allocation2 + $0x70] sm:$0xff] %v7518_v7   ;;  %vm15027_vm5 = vcmp.ge.f32.partialorder %v15003_v33, 1.0  ;;  %v1581_v63 = vmul.f32 %v7024_v6, %v11120_v45  ;;  %v1625_v60 = vadd.f32 1.0, %v1502_v34  ;;  %v11495_v51 = vpop.f32.mrb[70].mxu0 }
 0x1d3   : > { %v2168_v62 = vsel %vm15026_vm13, %v2165_v42, %v14522_v32  ;;  %vm11482_vm10 = vmand %vm11446_vm4, %vm15027_vm5  ;;  %v11488_v36 = vor.u32 %v2548_v46, %v2545_v10  ;;  %v11491_v25 = vadd.s32 264, %v9839_v3  ;;  %vm15030_vm4 = vcmp.ge.f32.partialorder %v10217_v58, 1.0  ;;  %v7952_v7 = vpop.f32.mrb[71].mxu0 }
 0x1d4   : > { %8018 = vmatmul.mubr.bf16.gmra.mrb[36].mxu1 %v2168_v62  ;;  %vm11501_vm5 = vmand %vm11456_vm0, %vm15030_vm4  ;;  %v7026_v6 = vadd.f32 -1.0, %v1501_v47  ;;  %v14521_v10 = vcvt.s32.f32 %v11472_v53  ;;  %v1341_v11 = vmin.f32 %v11476_v55, 20.0  ;;  %v11513_v37 = vadd.f32 %v11509_v18, %v11411_v12  ;;  %v11519_v62 = vld [vmem:[#allocation2 + $0x5c] sm:$0xff]  }
 0x1d5   : > { %8021 = vmatprep.mubr.msk.bf16.mxu1 %vm14749_vm8, %v14748_v57  ;;  %9201 = vrcp.f32 %v1625_v60  ;;  %v1462_v30 = vadd.f32 1.0, %v9192_v44  ;;  %vm15033_vm0 = vsmask.f32 5376  ;;  %v14523_v46 = vshrl.u32 %v11391_v29, 16  ;;  %15034 = vst [vmem:[#allocation23_spill] sm:$0xff] %v11519_v62 }
 0x1d6   : > { %v2550_v47 = vsel %vm15033_vm0, %v11351_v61, %v11488_v36  ;;  %vm15035_vm4 = vcmp.le.f32.partialorder %v15003_v33, 16.0  ;;  %v15036_v12 = vmov 0  ;;  %v516_v48 = vadd.f32 0.5, %v14521_v10  ;;  %v9194_v44 = vpop.eup %9193  ;;  %v11566_v10 = vpop.f32.mrb[72].mxu0 }
 0x1d7   : > { %vm11526_vm13 = vmand %vm11482_vm10, %vm15035_vm4  ;;  %8114 = vmatmul.mubr.bf16.gmra.mrb[116].mxu0 %v2550_v47  ;;  %v1414_v52 = vmul.f32 1.442695, %v1341_v11  ;;  %v14525_v61 = vcvt.s32.f32 %v11491_v25  ;;  %v1342_v60 = vmin.f32 %v11513_v37, 20.0  ;;  %vm15039_vm0 = vcmp.le.f32.partialorder %v10217_v58, 16.0  ;;  %v9196_v27 = vpop.eup %9195 }
 0x1d8   : > { %v15037_v12 = vsel %vm11526_vm13, 4294967295, %v15036_v12  ;;  %vm11538_vm11 = vmand %vm11501_vm5, %vm15039_vm0  ;;  %v15040_v33 = vmov 0  ;;  %v1582_v42 = vmul.f32 %v7025_v1, %v11135_v2  ;;  %v1503_v7 = vmul.f32 %v1462_v30, %v1462_v30  ;;  %8117 = vmatprep.mubr.msk.bf16.mxu0 %vm14749_vm8, %v14748_v57 }
 0x1d9   : > { %15038 = vst [vmem:[#allocation24_spill] sm:$0xff] %v15037_v12  ;;  %v15041_v33 = vsel %vm11538_vm11, 4294967295, %v15040_v33  ;;  %v638_v47 = vmul.f32 18.0, %v11434_v17  ;;  %v14524_v11 = vshll.u32 %v11391_v29, 16  ;;  %v1704_v26 = vmul.f32 %v9194_v44, %v1581_v63 }
 0x1da   : > { %15042 = vst [vmem:[#allocation25_spill] sm:$0xff] %v15041_v33  ;;  %vm15043_vm10 = vcmp.le.f32.partialorder %v10450_v38, 16.0  ;;  %vm15044_vm4 = vcmp.ge.f32.partialorder %v10450_v38, 1.0  ;;  %v1583_v2 = vmul.f32 %v7026_v6, %v11217_v56  ;;  %v557_v1 = vmul.f32 0.055555556, %v516_v48  ;;  %v9198_v32 = vpop.eup %9197  ;;  %v7955_v48 = vpop.f32.mrb[73].mxu0 }
 0x1db   : > { %vm11551_vm5 = vmand %vm15044_vm4, %vm15043_vm10  ;;  %9203 = vpow2.f32 %v1414_v52  ;;  %v1705_v45 = vmul.f32 %v9196_v27, %v1582_v42  ;;  %vm15047_vm0 = vcmp.le.f32.partialorder %v11389_v15, 16.0  ;;  %vm15048_vm1 = vcmp.ge.f32.partialorder %v11389_v15, 1.0  ;;  %v9200_v48 = vpop.eup %9199 }
 0x1dc   : > { %vm11560_vm12 = vmand %vm15048_vm1, %vm15047_vm0  ;;  %v1626_v63 = vadd.f32 1.0, %v1503_v7  ;;  %v517_v38 = vadd.f32 0.5, %v14525_v61  ;;  %v1416_v44 = vmul.f32 1.442695, %v1342_v60  ;;  %v7027_v56 = vadd.f32 -1.0, %v1502_v34 }
 0x1dd   : > { %v2554_v27 = vrot.slane %v14523_v46, 2  ;;  %v2557_v6 = vrot.slane %v14524_v11, 3  ;;  %v1745_v52 = vsel %vm11526_vm13, %v1704_v26, 0.0  ;;  %v1746_v42 = vsel %vm11538_vm11, %v1705_v45, 0.0  ;;  %v11587_v11 = vpop.f32.mrb[74].mxu0 }
 0x1de   : > { %vm15051_vm1 = vcmp.ge.f32.partialorder %v10367_v4, 1.0  ;;  %v1463_v60 = vadd.f32 1.0, %v9198_v32  ;;  %v11585_v46 = vfloor.f32 %v557_v1  ;;  %v7523_v61 = vpack.c.bf16 %v1746_v42, %v1745_v52  ;;  %v7956_v1 = vpop.f32.mrb[75].mxu0 }
 0x1df   : > { %vm11581_vm10 = vmand %vm11551_vm5, %vm15051_vm1  ;;  %vm15054_vm4 = vcmp.ge.f32.partialorder %v10538_v5, 1.0  ;;  %9205 = vrcp.f32 %v1626_v63  ;;  %v15057_v58 = vcvt.s32.f32 %v10370_v0  ;;  %v1706_v45 = vmul.f32 %v9200_v48, %v1583_v2  ;;  %v11638_v42 = vpop.f32.mrb[76].mxu0 }
 0x1e0   : > { %vm11593_vm0 = vmand %vm11560_vm12, %vm15054_vm4  ;;  %v1504_v15 = vmul.f32 %v1463_v60, %v1463_v60  ;;  %v558_v33 = vmul.f32 0.055555556, %v517_v38  ;;  %9207 = vpow2.f32 %v1416_v44  ;;  %7568 = vst [vmem:[#allocation2 + $0x78] sm:$0xff] %v7523_v61   ;;  %vm15058_vm1 = vcmp.le.f32.partialorder %v10367_v4, 16.0  ;;  %v9202_v4 = vpop.eup %9201 }
 0x1e1   : > { %v679_v32 = vsub.f32 %v15057_v58, %v638_v47  ;;  %vm11604_vm12 = vmand %vm11581_vm10, %vm15058_vm1  ;;  %v15059_v30 = vmov 0  ;;  %v1584_v52 = vmul.f32 %v7027_v56, %v11230_v13  ;;  %v11609_v63 = vor.u32 %v2557_v6, %v2554_v27 }
 0x1e2   : > { %v15060_v30 = vsel %vm11604_vm12, 4294967295, %v15059_v30  ;;  %v15062_v0 = vrot.slane %v11519_v62, 3  ;;  %v15063_v47 = vrot.slane %v11391_v29, 3  ;;  %vm15064_vm4 = vcmask 1044480  }
 0x1e3   : > { %15061 = vst [vmem:[#allocation26_spill] sm:$0xff] %v15060_v30  ;;  %v11617_v61 = vadd.s32 272, %v9839_v3  ;;  %vm15065_vm5 = vcmp.le.f32.partialorder %v10538_v5, 16.0  ;;  %v15066_v38 = vmov 0  ;;  %vm719_vm1 = vcmp.ge.f32.partialorder %v11432_v50, 1.0 }
 0x1e4   : > { %v2170_v2 = vsel %vm15064_vm4, %v15063_v47, %v15062_v0  ;;  %vm11623_vm10 = vmand %vm11593_vm0, %vm15065_vm5  ;;  %vm760_vm11 = vcmp.le.f32.partialorder %v11432_v50, 16.0  ;;  %vm924_vm13 = vcmp.le.f32.partialorder %v11277_v24, 16.0  ;;  %v1627_v13 = vadd.f32 1.0, %v1504_v15  ;;  %v11655_v0 = vld [vmem:[#allocation2 + $0x64] sm:$0xff]  }
 0x1e5   : > { %v15067_v38 = vsel %vm11623_vm10, 4294967295, %v15066_v38  ;;  %v639_v44 = vmul.f32 18.0, %v11585_v46  ;;  %8022 = vmatmul.mubr.bf16.gmra.mrb[40].mxu1 %v2170_v2  ;;  %v1707_v56 = vmul.f32 %v9202_v4, %v1584_v52  ;;  %vm720_vm4 = vcmp.ge.f32.partialorder %v679_v32, 1.0  ;;  %v9204_v34 = vpop.eup %9203  ;;  %15071 = vst [vmem:[#allocation36_spill] sm:$0xff] %v11655_v0 }
 0x1e6   : > { %15068 = vst [vmem:[#allocation27_spill] sm:$0xff] %v15067_v38  ;;  %vm761_vm9 = vcmp.le.f32.partialorder %v679_v32, 16.0  ;;  %vm843_vm6 = vcmp.ge.f32.partialorder %v11434_v17, 1.0  ;;  %8025 = vmatprep.mubr.msk.bf16.mxu1 %vm14749_vm8, %v14748_v57  ;;  %v1747_v5 = vsel %vm11604_vm12, %v1706_v45, 0.0  ;;  %v7028_v27 = vadd.f32 -1.0, %v1503_v7  ;;  %v7959_v7 = vpop.f32.mrb[77].mxu0 }
 0x1e7   : > { %9209 = vrcp.f32 %v1627_v13  ;;  %v11636_v6 = vfloor.f32 %v558_v33  ;;  %v1748_v60 = vsel %vm11623_vm10, %v1707_v56, 0.0  ;;  %vm15069_vm0 = vsmask.f32 5376  ;;  %v11657_v47 = vpop.f32.mrb[78].mxu0 }
 0x1e8   : > { %v2559_v48 = vsel %vm15069_vm0, %v11488_v36, %v11609_v63  ;;  %v14531_v26 = vcvt.s32.f32 %v11617_v61  ;;  %v11648_v58 = vadd.f32 %v11509_v18, %v11468_v14  ;;  %v7528_v1 = vpack.c.bf16 %v1748_v60, %v1747_v5  ;;  %vm11663_vm0 = vmand %vm719_vm1, %vm760_vm11  ;;  %v7960_v50 = vpop.f32.mrb[79].mxu0 }
 0x1e9   : > { %v15070_v33 = vcvt.s32.f32 %v11472_v53  ;;  %v1464_v52 = vadd.f32 1.0, %v9204_v34  ;;  %8118 = vmatmul.mubr.bf16.gmra.mrb[120].mxu0 %v2559_v48  ;;  %v11671_v2 = vadd.s32 280, %v9839_v3  ;;  %v11675_v4 = vadd.f32 %v11509_v18, %v11495_v51  ;;  %vm11682_vm11 = vmand %vm720_vm4, %vm761_vm9  ;;  %v9206_v60 = vpop.eup %9205 }
 0x1ea   : > { %v518_v36 = vadd.f32 0.5, %v14531_v26  ;;  %v1343_v53 = vmin.f32 %v11648_v58, 20.0  ;;  %8121 = vmatprep.mubr.msk.bf16.mxu0 %vm14749_vm8, %v14748_v57  ;;  %7569 = vst [vmem:[#allocation2 + $0x80] sm:$0xff] %v7528_v1   ;;  %v1585_v13 = vmul.f32 %v7028_v27, %v11320_v59  ;;  %v7029_v56 = vadd.f32 -1.0, %v1504_v15  ;;  %vm11704_vm4 = vmand %vm11682_vm11, %vm843_vm6 }
 0x1eb   : > { %v11653_v45 = vsub.f32 %v15070_v33, %v639_v44  ;;  %v1505_v5 = vmul.f32 %v1464_v52, %v1464_v52  ;;  %v14532_v34 = vshrl.u32 %v11519_v62, 16  ;;  %v640_v51 = vmul.f32 18.0, %v11636_v6  ;;  %v9208_v33 = vpop.eup %9207  ;;  %v11715_v44 = vpop.f32.mrb[80].mxu0 }
 0x1ec   : > { %v1418_v48 = vmul.f32 1.442695, %v1343_v53  ;;  %v14536_v7 = vcvt.s32.f32 %v11671_v2  ;;  %vm15076_vm1 = vcmp.ge.f32.partialorder %v11277_v24, 1.0  ;;  %v559_v32 = vmul.f32 0.055555556, %v518_v36  ;;  %v7963_v1 = vpop.f32.mrb[81].mxu0 }
 0x1ed   : > { %vm11694_vm9 = vmand %vm11663_vm0, %vm15076_vm1  ;;  %v1628_v15 = vadd.f32 1.0, %v1505_v5  ;;  %v1344_v27 = vmin.f32 %v11675_v4, 20.0  ;;  %vm721_vm5 = vcmp.ge.f32.partialorder %v11653_v45, 1.0  ;;  %v1465_v14 = vadd.f32 1.0, %v9208_v33 }
 0x1ee   : > { %9211 = vpow2.f32 %v1418_v48  ;;  %v2563_v50 = vrot.slane %v14532_v34, 2  ;;  %v1586_v36 = vmul.f32 %v7029_v56, %v11338_v20  ;;  %v519_v26 = vadd.f32 0.5, %v14536_v7  ;;  %vm11721_vm6 = vmand %vm11694_vm9, %vm924_vm13  ;;  %v11807_v7 = vld [vmem:[#allocation2 + $0x6c] sm:$0xff]  }
 0x1ef   : > { %v1420_v52 = vmul.f32 1.442695, %v1344_v27  ;;  %v15081_v33 = vmov 0  ;;  %v1708_v48 = vmul.f32 %v9206_v60, %v1585_v13  ;;  %9213 = vrcp.f32 %v1628_v15  ;;  %v1306_v15 = vpop.f32.mrb[82].mxu0  ;;  %15101 = vst [vmem:[#allocation39_spill] sm:$0xff] %v11807_v7 }
 0x1f0   : > { %v15082_v33 = vsel %vm11721_vm6, 4294967295, %v15081_v33  ;;  %v15084_v20 = vcvt.s32.f32 %v11491_v25  ;;  %v1506_v34 = vmul.f32 %v1465_v14, %v1465_v14  ;;  %vm15085_vm11 = vcmp.le.f32.partialorder %v11434_v17, 16.0  ;;  %v7964_v14 = vpop.f32.mrb[83].mxu0 }
 0x1f1   : > { %15083 = vst [vmem:[#allocation37_spill] sm:$0xff] %v15082_v33  ;;  %v9210_v38 = vpop.eup %9209  ;;  %vm11731_vm1 = vmand %vm11704_vm4, %vm15085_vm11  ;;  %v15086_v24 = vmov 0  ;;  %v11735_v59 = vfloor.f32 %v559_v32  ;;  %9215 = vpow2.f32 %v1420_v52  ;;  %v15089_v13 = vshll.u32 %v11519_v62, 16 }
 0x1f2   : > { %v681_v56 = vsub.f32 %v15084_v20, %v640_v51  ;;  %v15087_v24 = vsel %vm11731_vm1, 4294967295, %v15086_v24  ;;  %v15090_v25 = vrot.slane %v11655_v0, 3  ;;  %v15091_v51 = vrot.slane %v11519_v62, 3 }
 0x1f3   : > { %15088 = vst [vmem:[#allocation38_spill] sm:$0xff] %v15087_v24  ;;  %v2566_v60 = vrot.slane %v15089_v13, 3  ;;  %vm15092_vm13 = vcmask 1044480   ;;  %v1709_v17 = vmul.f32 %v9210_v38, %v1586_v36  ;;  %v1629_v27 = vadd.f32 1.0, %v1506_v34 }
 0x1f4   : > { %v2172_v1 = vsel %vm15092_vm13, %v15091_v51, %v15090_v25  ;;  %v560_v53 = vmul.f32 0.055555556, %v519_v26  ;;  %vm762_vm4 = vcmp.le.f32.partialorder %v11653_v45, 16.0  ;;  %v11749_v52 = vadd.s32 288, %v9839_v3 }
 0x1f5   : > { %8026 = vmatmul.mubr.bf16.gmra.mrb[44].mxu1 %v2172_v1  ;;  %v11746_v32 = vor.u32 %v2566_v60, %v2563_v50  ;;  %v11753_v20 = vadd.f32 %v11509_v18, %v11566_v10  ;;  %v1749_v38 = vsel %vm11721_vm6, %v1708_v48, 0.0  ;;  %v1750_v26 = vsel %vm11731_vm1, %v1709_v17, 0.0  ;;  %vm11773_vm0 = vmand %vm721_vm5, %vm762_vm4 }
 0x1f6   : > { %8029 = vmatprep.mubr.msk.bf16.mxu1 %vm14749_vm8, %v14748_v57  ;;  %9217 = vrcp.f32 %v1629_v27  ;;  %v7533_v50 = vpack.c.bf16 %v1750_v26, %v1749_v38  ;;  %v7030_v36 = vadd.f32 -1.0, %v1505_v5  ;;  %vm763_vm13 = vcmp.le.f32.partialorder %v681_v56, 16.0 }
 0x1f7   : > { %v641_v13 = vmul.f32 18.0, %v11735_v59  ;;  %v11762_v60 = vfloor.f32 %v560_v53  ;;  %vm15093_vm9 = vsmask.f32 5376  ;;  %v14535_v25 = vcvt.s32.f32 %v11749_v52 }
 0x1f8   : > { %v2568_v10 = vsel %vm15093_vm9, %v11609_v63, %v11746_v32  ;;  %v1345_v48 = vmin.f32 %v11753_v20, 20.0  ;;  %7570 = vst [vmem:[#allocation2 + $0x88] sm:$0xff] %v7533_v50   ;;  %vm845_vm11 = vcmp.ge.f32.partialorder %v11636_v6, 1.0  ;;  %v11779_v51 = vadd.s32 296, %v9839_v3  ;;  %v9212_v15 = vpop.eup %9211 }
 0x1f9   : > { %8122 = vmatmul.mubr.bf16.gmra.mrb[124].mxu0 %v2568_v10  ;;  %v11783_v63 = vadd.f32 %v11509_v18, %v11587_v11  ;;  %v14537_v1 = vshrl.u32 %v11655_v0, 16  ;;  %vm15096_vm9 = vcmp.ge.f32.partialorder %v681_v56, 1.0  ;;  %vm927_vm5 = vcmp.le.f32.partialorder %v11636_v6, 16.0  ;;  %v9214_v26 = vpop.eup %9213 }
 0x1fa   : > { %vm11787_vm1 = vmand %vm15096_vm9, %vm763_vm13  ;;  %v520_v17 = vadd.f32 0.5, %v14535_v25  ;;  %v1422_v27 = vmul.f32 1.442695, %v1345_v48  ;;  %8125 = vmatprep.mubr.msk.bf16.mxu0 %vm14749_vm8, %v14748_v57  ;;  %v14538_v11 = vshll.u32 %v11655_v0, 16  ;;  %v1587_v53 = vmul.f32 %v7030_v36, %v11476_v55 }
 0x1fb   : > { %v7031_v14 = vadd.f32 -1.0, %v1506_v34  ;;  %v1466_v38 = vadd.f32 1.0, %v9212_v15  ;;  %v14540_v56 = vcvt.s32.f32 %v11779_v51  ;;  %vm15099_vm4 = vcmp.ge.f32.partialorder %v11585_v46, 1.0  ;;  %v9216_v55 = vpop.eup %9215  ;;  %vm886_vm9 = vmand %vm11787_vm1, %vm845_vm11 }
 0x1fc   : > { %vm885_vm13 = vmand %vm11773_vm0, %vm15099_vm4  ;;  %v15100_v50 = vcvt.s32.f32 %v11617_v61  ;;  %v642_v48 = vmul.f32 18.0, %v11762_v60  ;;  %9219 = vpow2.f32 %v1422_v27  ;;  %v1346_v25 = vmin.f32 %v11783_v63, 20.0 }
 0x1fd   : > { %v1507_v34 = vmul.f32 %v1466_v38, %v1466_v38  ;;  %v561_v36 = vmul.f32 0.055555556, %v520_v17  ;;  %v2572_v5 = vrot.slane %v14537_v1, 2  ;;  %v2575_v61 = vrot.slane %v14538_v11, 3  ;;  %vm11829_vm11 = vmand %vm886_vm9, %vm927_vm5 }
 0x1fe   : > { %v682_v10 = vsub.f32 %v15100_v50, %v641_v13  ;;  %v1467_v13 = vadd.f32 1.0, %v9216_v55  ;;  %v1424_v15 = vmul.f32 1.442695, %v1346_v25  ;;  %vm15102_vm0 = vcmp.le.f32.partialorder %v11585_v46, 16.0 }
 0x1ff   : > { %vm11819_vm4 = vmand %vm885_vm13, %vm15102_vm0  ;;  %v15103_v27 = vmov 0  ;;  %v1710_v50 = vmul.f32 %v9214_v26, %v1587_v53  ;;  %v1588_v45 = vmul.f32 %v7031_v14, %v11513_v37  ;;  %v1630_v17 = vadd.f32 1.0, %v1507_v34 }
 0x200   : > { %v15104_v27 = vsel %vm11819_vm4, 4294967295, %v15103_v27  ;;  %v521_v38 = vadd.f32 0.5, %v14540_v56  ;;  %v9218_v1 = vpop.eup %9217  ;;  %v15106_v25 = vmov 0  ;;  %v15109_v46 = vcvt.s32.f32 %v11671_v2 }
 0x201   : > { %15105 = vst [vmem:[#allocation40_spill] sm:$0xff] %v15104_v27  ;;  %v15107_v25 = vsel %vm11829_vm11, 4294967295, %v15106_v25  ;;  %v1508_v53 = vmul.f32 %v1467_v13, %v1467_v13  ;;  %v2173_v37 = vrot.slane %v11807_v7, 3  ;;  %v1711_v14 = vmul.f32 %v9218_v1, %v1588_v45  ;;  %v11854_v45 = vld [vmem:[#allocation2 + $0x74] sm:$0xff]  }
 0x202   : > { %15108 = vst [vmem:[#allocation41_spill] sm:$0xff] %v15107_v25  ;;  %v683_v55 = vsub.f32 %v15109_v46, %v642_v48  ;;  %9221 = vrcp.f32 %v1630_v17  ;;  %v11836_v26 = vfloor.f32 %v561_v36  ;;  %v11838_v11 = vor.u32 %v2575_v61, %v2572_v5 }
 0x203   : > { %vm764_vm0 = vcmp.le.f32.partialorder %v682_v10, 16.0  ;;  %v1631_v6 = vadd.f32 1.0, %v1508_v53  ;;  %9223 = vpow2.f32 %v1424_v15  ;;  %v1751_v2 = vsel %vm11819_vm4, %v1710_v50, 0.0 }
 0x204   : > { %v1752_v48 = vsel %vm11829_vm11, %v1711_v14, 0.0  ;;  %v562_v1 = vmul.f32 0.055555556, %v521_v38  ;;  %vm724_vm13 = vcmp.ge.f32.partialorder %v683_v55, 1.0  ;;  %vm765_vm6 = vcmp.le.f32.partialorder %v683_v55, 16.0 }
 0x205   : > { %v7538_v36 = vpack.c.bf16 %v1752_v48, %v1751_v2  ;;  %9225 = vrcp.f32 %v1631_v6  ;;  %v7032_v5 = vadd.f32 -1.0, %v1507_v34  ;;  %v643_v61 = vmul.f32 18.0, %v11836_v26  ;;  %vm11885_vm9 = vmand %vm724_vm13, %vm765_vm6 }
 0x206   : > { %vm15110_vm1 = vsmask.f32 5376  ;;  %v15111_v15 = vrot.slane %v11655_v0, 3  ;;  %vm15112_vm5 = vcmask 1044480   ;;  %v9220_v17 = vpop.eup %9219  ;;  %v11857_v38 = vadd.s32 304, %v9839_v3 }
 0x207   : > { %v2577_v13 = vsel %vm15110_vm1, %v11746_v32, %v11838_v11  ;;  %7571 = vst [vmem:[#allocation2 + $0x90] sm:$0xff] %v7538_v36   ;;  %v11861_v34 = vadd.f32 %v11509_v18, %v11638_v42  ;;  %v11864_v46 = vadd.s32 312, %v9839_v3  ;;  %v11868_v32 = vadd.f32 %v11509_v18, %v11657_v47 }
 0x208   : > { %v2174_v50 = vsel %vm15112_vm5, %v15111_v15, %v2173_v37  ;;  %8126 = vmatmul.mubr.bf16.gmra.mrb[128].mxu0 %v2577_v13  ;;  %vm15113_vm1 = vcmp.ge.f32.partialorder %v682_v10, 1.0  ;;  %v7033_v6 = vadd.f32 -1.0, %v1508_v53  ;;  %v1468_v2 = vadd.f32 1.0, %v9220_v17 }
 0x209   : > { %8030 = vmatmul.mubr.bf16.gmra.mrb[48].mxu1 %v2174_v50  ;;  %vm11872_vm5 = vmand %vm15113_vm1, %vm764_vm0  ;;  %v11876_v48 = vfloor.f32 %v562_v1  ;;  %8129 = vmatprep.mubr.msk.bf16.mxu0 %vm14749_vm8, %v14748_v57  ;;  %v14542_v42 = vshrl.u32 %v11807_v7, 16  ;;  %v14544_v10 = vcvt.s32.f32 %v11857_v38  ;;  %v1347_v53 = vmin.f32 %v11861_v34, 20.0 }
 0x20a   : > { %8033 = vmatprep.mubr.msk.bf16.mxu1 %vm14749_vm8, %v14748_v57  ;;  %v1348_v36 = vmin.f32 %v11868_v32, 20.0  ;;  %v1509_v13 = vmul.f32 %v1468_v2, %v1468_v2  ;;  %vm15118_vm6 = vcmp.ge.f32.partialorder %v11735_v59, 1.0  ;;  %v1589_v56 = vmul.f32 %v7032_v5, %v11648_v58 }
 0x20b   : > { %v2581_v15 = vrot.slane %v14542_v42, 2  ;;  %vm11901_vm13 = vmand %vm11872_vm5, %vm15118_vm6  ;;  %v522_v2 = vadd.f32 0.5, %v14544_v10  ;;  %v1426_v1 = vmul.f32 1.442695, %v1347_v53  ;;  %vm15121_vm0 = vcmp.ge.f32.partialorder %v11762_v60, 1.0 }
 0x20c   : > { %v1428_v25 = vmul.f32 1.442695, %v1348_v36  ;;  %v9222_v42 = vpop.eup %9221  ;;  %vm11912_vm1 = vmand %vm11885_vm9, %vm15121_vm0  ;;  %v1632_v14 = vadd.f32 1.0, %v1509_v13  ;;  %v644_v50 = vmul.f32 18.0, %v11876_v48  ;;  %v15124_v27 = vshll.u32 %v11807_v7, 16 }
 0x20d   : > { %v15125_v5 = vrot.slane %v11854_v45, 3  ;;  %vm15126_vm5 = vcmask 1044480   ;;  %v9224_v36 = vpop.eup %9223  ;;  %v1590_v10 = vmul.f32 %v7033_v6, %v11675_v4  ;;  %v563_v24 = vmul.f32 0.055555556, %v522_v2 }
 0x20e   : > { %v2584_v58 = vrot.slane %v15124_v27, 3  ;;  %9227 = vpow2.f32 %v1426_v1  ;;  %v15127_v47 = vcvt.s32.f32 %v11864_v46  ;;  %vm15128_vm9 = vcmp.le.f32.partialorder %v11735_v59, 16.0  ;;  %v3378_v29 = vld [vmem:[#allocation2 + $0x94] sm:$0xf] }
 0x20f   : > { %v2176_v53 = vsel %vm15126_vm5, %v2173_v37, %v15125_v5  ;;  %vm11929_vm6 = vmand %vm11901_vm13, %vm15128_vm9  ;;  %v15129_v30 = vmov 0  ;;  %v1712_v27 = vmul.f32 %v9222_v42, %v1589_v56  ;;  %9229 = vrcp.f32 %v1632_v14  ;;  %v9226_v5 = vpop.eup %9225 }
 0x210   : > { %v523_v33 = vadd.f32 0.5, %v15127_v47  ;;  %v15130_v30 = vsel %vm11929_vm6, 4294967295, %v15129_v30  ;;  %v1469_v12 = vadd.f32 1.0, %v9224_v36  ;;  %v11933_v37 = vor.u32 %v2584_v58, %v2581_v15 }
 0x211   : > { %15131 = vst [vmem:[#allocation42_spill] sm:$0xff] %v15130_v30  ;;  %vm15132_vm0 = vcmp.le.f32.partialorder %v11762_v60, 16.0  ;;  %v15133_v4 = vmov 0  ;;  %v15136_v59 = vcvt.s32.f32 %v11749_v52  ;;  %9231 = vpow2.f32 %v1428_v25  ;;  %8034 = vmatmul.mubr.bf16.gmra.mrb[52].mxu1 %v2176_v53 }
 0x212   : > { %vm11939_vm5 = vmand %vm11912_vm1, %vm15132_vm0  ;;  %v1713_v1 = vmul.f32 %v9226_v5, %v1590_v10  ;;  %v1510_v56 = vmul.f32 %v1469_v12, %v1469_v12  ;;  %vm15137_vm13 = vsmask.f32 5376  ;;  %v11949_v15 = vadd.s32 320, %v9839_v3  ;;  %8037 = vmatprep.mubr.msk.bf16.mxu1 %vm14749_vm8, %v14748_v57 }
 0x213   : > { %v15134_v4 = vsel %vm11939_vm5, 4294967295, %v15133_v4  ;;  %v684_v6 = vsub.f32 %v15136_v59, %v643_v61  ;;  %v2586_v42 = vsel %vm15137_vm13, %v11838_v11, %v11933_v37  ;;  %v15138_v60 = vcvt.s32.f32 %v11779_v51 }
 0x214   : > { %15135 = vst [vmem:[#allocation43_spill] sm:$0xff] %v15134_v4  ;;  %v564_v61 = vmul.f32 0.055555556, %v523_v33  ;;  %8130 = vmatmul.mubr.bf16.gmra.mrb[132].mxu0 %v2586_v42  ;;  %v1753_v12 = vsel %vm11929_vm6, %v1712_v27, 0.0  ;;  %v1754_v25 = vsel %vm11939_vm5, %v1713_v1, 0.0  ;;  %v1633_v3 = vadd.f32 1.0, %v1510_v56 }
 0x215   : > { %v685_v52 = vsub.f32 %v15138_v60, %v644_v50  ;;  %v11961_v11 = vfloor.f32 %v563_v24  ;;  %8133 = vmatprep.mubr.msk.bf16.mxu0 %vm14749_vm8, %v14748_v57  ;;  %v7543_v10 = vpack.c.bf16 %v1754_v25, %v1753_v12  ;;  %vm725_vm0 = vcmp.ge.f32.partialorder %v684_v6, 1.0  ;;  %v11966_v33 = vld [vmem:[#allocation2 + $0x7c] sm:$0xff]   ;;  %v11989_v27 = vld [vmem:[#allocation2 + $0x84] sm:$0xff]  }
 0x216   : > { %v7034_v51 = vadd.f32 -1.0, %v1509_v13  ;;  %vm766_vm1 = vcmp.le.f32.partialorder %v684_v6, 16.0  ;;  %9233 = vrcp.f32 %v1633_v3  ;;  %v483_v50 = vcvt.s32.f32 %v11949_v15 }
 0x217   : > { %v11971_v55 = vadd.f32 %v11509_v18, %v11715_v44  ;;  %7572 = vst [vmem:[#allocation2 + $0x98] sm:$0xff] %v7543_v10   ;;  %vm726_vm9 = vcmp.ge.f32.partialorder %v685_v52, 1.0  ;;  %vm767_vm5 = vcmp.le.f32.partialorder %v685_v52, 16.0  ;;  %v11974_v24 = vfloor.f32 %v564_v61  ;;  %vm11981_vm13 = vmand %vm725_vm0, %vm766_vm1 }
 0x218   : > { %v645_v13 = vmul.f32 18.0, %v11961_v11  ;;  %v14567_v2 = vshrl.u32 %v11854_v45, 16  ;;  %v14551_v14 = vshll.u32 %v11854_v45, 16  ;;  %v9228_v58 = vpop.eup %9227  ;;  %v1591_v44 = vmul.f32 %v7034_v51, %v11753_v20  ;;  %vm11993_vm6 = vmand %vm726_vm9, %vm767_vm5 }
 0x219   : > { %v1349_v17 = vmin.f32 %v11971_v55, 20.0  ;;  %v2177_v53 = vrot.slane %v11966_v33, 3  ;;  %v14553_v36 = vshrl.u32 %v11966_v33, 16  ;;  %v14552_v47 = vshll.u32 %v11966_v33, 16  ;;  %v9230_v5 = vpop.eup %9229 }
 0x21a   : > { %v1470_v6 = vadd.f32 1.0, %v9228_v58  ;;  %v524_v1 = vadd.f32 0.5, %v483_v50  ;;  %v2590_v42 = vrot.slane %v14567_v2, 2  ;;  %v7035_v61 = vadd.f32 -1.0, %v1510_v56 }
 0x21b   : > { %v1430_v20 = vmul.f32 1.442695, %v1349_v17  ;;  %v9232_v60 = vpop.eup %9231  ;;  %v646_v12 = vmul.f32 18.0, %v11974_v24  ;;  %v2593_v25 = vrot.slane %v14551_v14, 3  ;;  %v15143_v52 = vrot.slane %v11854_v45, 3 }
 0x21c   : > { %vm15144_vm5 = vcmask 1044480   ;;  %vm15145_vm1 = vcmp.ge.f32.partialorder %v11836_v26, 1.0  ;;  %v15148_v51 = vcvt.s32.f32 %v11857_v38  ;;  %v1511_v17 = vmul.f32 %v1470_v6, %v1470_v6 }
 0x21d   : > { %v2178_v3 = vsel %vm15144_vm5, %v15143_v52, %v2177_v53  ;;  %vm12011_vm9 = vmand %vm11981_vm13, %vm15145_vm1  ;;  %v1471_v58 = vadd.f32 1.0, %v9232_v60  ;;  %9235 = vpow2.f32 %v1430_v20  ;;  %vm15149_vm0 = vcmp.ge.f32.partialorder %v11876_v48, 1.0 }
 0x21e   : > { %v686_v56 = vsub.f32 %v15148_v51, %v645_v13  ;;  %8038 = vmatmul.mubr.bf16.gmra.mrb[56].mxu1 %v2178_v3  ;;  %vm12021_vm5 = vmand %vm11993_vm6, %vm15149_vm0  ;;  %v2594_v18 = vor.u32 %v2593_v25, %v2590_v42  ;;  %v2599_v14 = vrot.slane %v14553_v36, 2  ;;  %v2602_v38 = vrot.slane %v14552_v47, 3 }
 0x21f   : > { %8041 = vmatprep.mubr.msk.bf16.mxu1 %vm14749_vm8, %v14748_v57  ;;  %v2179_v13 = vrot.slane %v11989_v27, 3  ;;  %v1634_v6 = vadd.f32 1.0, %v1511_v17  ;;  %v1512_v20 = vmul.f32 %v1471_v58, %v1471_v58  ;;  %v565_v60 = vmul.f32 0.055555556, %v524_v1 }
 0x220   : > { %vm15152_vm6 = vcmp.le.f32.partialorder %v11836_v26, 16.0  ;;  %v15153_v59 = vmov 0  ;;  %v1714_v42 = vmul.f32 %v9230_v5, %v1591_v44  ;;  %v1592_v25 = vmul.f32 %v7035_v61, %v11783_v63  ;;  %v9234_v36 = vpop.eup %9233 }
 0x221   : > { %vm12036_vm13 = vmand %vm12011_vm9, %vm15152_vm6  ;;  %v15156_v3 = vcvt.s32.f32 %v11864_v46  ;;  %vm15157_vm1 = vsmask.f32 5376  ;;  %vm15158_vm0 = vcmp.le.f32.partialorder %v11876_v48, 16.0  ;;  %v15159_v26 = vmov 0  ;;  %v12057_v48 = vld [vmem:[#allocation2 + $0x8c] sm:$0xff]  }
 0x222   : > { %v15154_v59 = vsel %vm12036_vm13, 4294967295, %v15153_v59  ;;  %v2595_v47 = vsel %vm15157_vm1, %v11933_v37, %v2594_v18  ;;  %vm12049_vm11 = vmand %vm12021_vm5, %vm15158_vm0  ;;  %vm727_vm9 = vcmp.ge.f32.partialorder %v686_v56, 1.0  ;;  %9237 = vrcp.f32 %v1634_v6 }
 0x223   : > { %15155 = vst [vmem:[#allocation44_spill] sm:$0xff] %v15154_v59  ;;  %v687_v51 = vsub.f32 %v15156_v3, %v646_v12  ;;  %v15160_v26 = vsel %vm12049_vm11, 4294967295, %v15159_v26  ;;  %v1635_v44 = vadd.f32 1.0, %v1512_v20  ;;  %8134 = vmatmul.mubr.bf16.gmra.mrb[136].mxu0 %v2595_v47  ;;  %v1715_v63 = vmul.f32 %v9234_v36, %v1592_v25  ;;  %v12088_v25 = vld [vmem:[#allocation2 + $0x94] sm:$0xff]  }
 0x224   : > { %15161 = vst [vmem:[#allocation45_spill] sm:$0xff] %v15160_v26  ;;  %8137 = vmatprep.mubr.msk.bf16.mxu0 %vm14749_vm8, %v14748_v57  ;;  %v2603_v46 = vor.u32 %v2602_v38, %v2599_v14  ;;  %vm15162_vm6 = vcmask 1044480   ;;  %v14566_v5 = vshrl.u32 %v11989_v27, 16  ;;  %vm768_vm1 = vcmp.le.f32.partialorder %v686_v56, 16.0  ;;  %v3345_v26 = vld [vmem:[#allocation2 + $0x10] sm:$0xf] }
 0x225   : > { %v2180_v37 = vsel %vm15162_vm6, %v2177_v53, %v2179_v13  ;;  %9239 = vrcp.f32 %v1635_v44  ;;  %v12059_v1 = vfloor.f32 %v565_v60  ;;  %v14565_v61 = vshll.u32 %v11989_v27, 16  ;;  %vm809_vm4 = vmand %vm727_vm9, %vm768_vm1 }
 0x226   : > { %v1755_v47 = vsel %vm12036_vm13, %v1714_v42, 0.0  ;;  %v1756_v36 = vsel %vm12049_vm11, %v1715_v63, 0.0  ;;  %vm728_vm5 = vcmp.ge.f32.partialorder %v687_v51, 1.0  ;;  %vm769_vm0 = vcmp.le.f32.partialorder %v687_v51, 16.0  ;;  %8042 = vmatmul.mubr.bf16.gmra.mrb[60].mxu1 %v2180_v37 }
 0x227   : > { %v7548_v14 = vpack.c.bf16 %v1756_v36, %v1755_v47  ;;  %v7036_v53 = vadd.f32 -1.0, %v1511_v17  ;;  %vm15163_vm10 = vsmask.f32 5376  ;;  %v2608_v10 = vrot.slane %v14566_v5, 2  ;;  %8045 = vmatprep.mubr.msk.bf16.mxu1 %vm14749_vm8, %v14748_v57  ;;  %v9236_v38 = vpop.eup %9235  ;;  %vm810_vm6 = vmand %vm728_vm5, %vm769_vm0  ;;  %v12205_v5 = vld [vmem:[#allocation2 + $0x44] sm:$0xf] }
 0x228   : > { %v2604_v12 = vsel %vm15163_vm10, %v2594_v18, %v2603_v46  ;;  %v2611_v58 = vrot.slane %v14565_v61, 3  ;;  %v2181_v52 = vrot.slane %v12057_v48, 3  ;;  %vm851_vm11 = vcmp.ge.f32.partialorder %v11974_v24, 1.0 }
 0x229   : > { %7573 = vst [vmem:[#allocation2 + $0xa0] sm:$0xff] %v7548_v14   ;;  %v647_v56 = vmul.f32 18.0, %v12059_v1  ;;  %v7037_v17 = vadd.f32 -1.0, %v1512_v20  ;;  %v1472_v18 = vadd.f32 1.0, %v9236_v38  ;;  %vm15164_vm10 = vcmp.ge.f32.partialorder %v11961_v11, 1.0  ;;  %vm892_vm5 = vmand %vm810_vm6, %vm851_vm11 }
 0x22a   : > { %vm12080_vm9 = vmand %vm809_vm4, %vm15164_vm10  ;;  %vm932_vm1 = vcmp.le.f32.partialorder %v11961_v11, 16.0  ;;  %v1593_v60 = vmul.f32 %v7036_v53, %v11861_v34  ;;  %vm933_vm13 = vcmp.le.f32.partialorder %v11974_v24, 16.0  ;;  %v14562_v42 = vshrl.u32 %v12057_v48, 16  ;;  %v12117_v24 = vld [vmem:[#allocation2 + $0x18] sm:$0xf] }
 0x22b   : > { %8138 = vmatmul.mubr.bf16.gmra.mrb[140].mxu0 %v2604_v12  ;;  %v1513_v20 = vmul.f32 %v1472_v18, %v1472_v18  ;;  %v2612_v3 = vor.u32 %v2611_v58, %v2608_v10  ;;  %vm15167_vm4 = vcmask 1044480   ;;  %v14561_v44 = vshll.u32 %v12057_v48, 16  ;;  %vm12098_vm0 = vmand %vm12080_vm9, %vm932_vm1  ;;  %v12119_v10 = vld [vmem:[#allocation2 + $0x1c] sm:$0xf]  ;;  %v12127_v18 = vld [vmem:[#allocation2 + $0x20] sm:$0xf] }
 0x22c   : > { %8141 = vmatprep.mubr.msk.bf16.mxu0 %vm14749_vm8, %v14748_v57  ;;  %v2182_v51 = vsel %vm15167_vm4, %v2179_v13, %v2181_v52  ;;  %v9238_v11 = vpop.eup %9237  ;;  %v688_v34 = vsub.f32 %v483_v50, %v647_v56  ;;  %v15168_v63 = vmov 0  ;;  %v1594_v47 = vmul.f32 %v7037_v17, %v11868_v32  ;;  %vm12105_vm11 = vmand %vm892_vm5, %vm933_vm13 }
 0x22d   : > { %v15169_v63 = vsel %vm12098_vm0, 4294967295, %v15168_v63  ;;  %v1716_v37 = vmul.f32 %v9238_v11, %v1593_v60  ;;  %v1636_v36 = vadd.f32 1.0, %v1513_v20  ;;  %v15171_v13 = vmov 0  ;;  %vm15175_vm5 = vmmov %vm15167_vm4 }
 0x22e   : > { %15170 = vst [vmem:[#allocation46_spill] sm:$0xff] %v15169_v63  ;;  %v15172_v13 = vsel %vm12105_vm11, 4294967295, %v15171_v13  ;;  %8046 = vmatmul.mubr.bf16.gmra.mrb[64].mxu1 %v2182_v51  ;;  %v2617_v15 = vrot.slane %v14562_v42, 2  ;;  %v2183_v50 = vrot.slane %v12088_v25, 3  ;;  %vm15174_vm6 = vsmask.f32 5376 }
 0x22f   : > { %v9240_v14 = vpop.eup %9239  ;;  %15173 = vst [vmem:[#allocation47_spill] sm:$0xff] %v15172_v13  ;;  %9241 = vrcp.f32 %v1636_v36  ;;  %v2613_v12 = vsel %vm15174_vm6, %v2603_v46, %v2612_v3  ;;  %v2620_v32 = vrot.slane %v14561_v44, 3  ;;  %8049 = vmatprep.mubr.msk.bf16.mxu1 %vm14749_vm8, %v14748_v57  ;;  %vm729_vm13 = vcmp.ge.f32.partialorder %v688_v34, 1.0  ;;  %v12222_v63 = vld [vmem:[#allocation2 + $0x54] sm:$0xf] }
 0x230   : > { %v1717_v53 = vmul.f32 %v9240_v14, %v1594_v47  ;;  %vm770_vm10 = vcmp.le.f32.partialorder %v688_v34, 16.0  ;;  %v1757_v58 = vsel %vm12098_vm0, %v1716_v37, 0.0  ;;  %vm852_vm9 = vcmp.ge.f32.partialorder %v12059_v1, 1.0  ;;  %v12133_v11 = vld [vmem:[#allocation2 + $0x9c] sm:$0xff]   ;;  %v12143_v47 = vld [vmem:[#allocation2 + $0x28] sm:$0xf] }
 0x231   : > { %v7038_v46 = vadd.f32 -1.0, %v1513_v20  ;;  %v14560_v17 = vshrl.u32 %v12088_v25, 16  ;;  %vm811_vm1 = vmand %vm729_vm13, %vm770_vm10  ;;  %v2621_v6 = vor.u32 %v2620_v32, %v2617_v15  ;;  %v2184_v60 = vsel %vm15175_vm5, %v2181_v52, %v2183_v50  ;;  %v12139_v20 = vld [vmem:[#allocation2 + $0x24] sm:$0xf] }
 0x232   : > { %v1758_v38 = vsel %vm12105_vm11, %v1717_v53, 0.0  ;;  %v14559_v51 = vshll.u32 %v12088_v25, 16  ;;  %v12137_v34 = vcombine.low %v12117_v24, %v12119_v10  ;;  %vm893_vm4 = vmand %vm811_vm1, %vm852_vm9  ;;  %vm934_vm6 = vcmp.le.f32.partialorder %v12059_v1, 16.0  ;;  %v12157_v1 = vld [vmem:[#allocation2 + $0x2c] sm:$0xf] }
 0x233   : > { %v7553_v56 = vpack.c.bf16 %v1758_v38, %v1757_v58  ;;  %8142 = vmatmul.mubr.bf16.gmra.mrb[144].mxu0 %v2613_v12  ;;  %v1595_v37 = vmul.f32 %v7038_v46, %v11971_v55  ;;  %v12147_v52 = vcombine.low %v12127_v18, %v12139_v20  ;;  %vm15176_vm13 = vsmask.f32 5376  ;;  %vm12159_vm10 = vmand %vm893_vm4, %vm934_vm6  ;;  %v12165_v38 = vld [vmem:[#allocation2 + $0x30] sm:$0xf] }
 0x234   : > { %8145 = vmatprep.mubr.msk.bf16.mxu0 %vm14749_vm8, %v14748_v57  ;;  %v2622_v36 = vsel %vm15176_vm13, %v2612_v3, %v2621_v6  ;;  %v2626_v14 = vrot.slane %v14560_v17, 2  ;;  %v2629_v15 = vrot.slane %v14559_v51, 3  ;;  %v2185_v55 = vrot.slane %v12133_v11, 3  ;;  %vm15180_vm9 = vmmov %vm15175_vm5  ;;  %v12174_v51 = vld [vmem:[#allocation2 + $0xa4] sm:$0xf] }
 0x235   : > { %7574 = vst [vmem:[#allocation2 + $0xa8] sm:$0xff] %v7553_v56   ;;  %v15177_v12 = vmov 0  ;;  %v14564_v3 = vshrl.u32 %v12133_v11, 16  ;;  %v14563_v58 = vshll.u32 %v12133_v11, 16  ;;  %v12169_v56 = vcombine.low %v12143_v47, %v12157_v1  ;;  %vm15181_vm1 = vmmov %vm15176_vm13 }
 0x236   : > { %8050 = vmatmul.mubr.bf16.gmra.mrb[68].mxu1 %v2184_v60  ;;  %v15178_v12 = vsel %vm12159_vm10, 4294967295, %v15177_v12  ;;  %v2630_v46 = vor.u32 %v2629_v15, %v2626_v14  ;;  %v2186_v60 = vsel %vm15180_vm9, %v2183_v50, %v2185_v55  ;;  %vm15182_vm4 = vmmov %vm15181_vm1  ;;  %v2945_v13 = vshll.u32 %v9931_v8, 16 }
 0x237   : > { %8053 = vmatprep.mubr.msk.bf16.mxu1 %vm14749_vm8, %v14748_v57  ;;  %15179 = vst [vmem:[#allocation48_spill] sm:$0xff] %v15178_v12  ;;  %v2635_v42 = vrot.slane %v14564_v3, 2  ;;  %v2638_v14 = vrot.slane %v14563_v58, 3  ;;  %v12199_v3 = vld [vmem:[#allocation2 + $0x40] sm:$0xf]  ;;  %v2942_v12 = vshrl.u32 %v9931_v8, 16  ;;  %vm15187_vm6 = vmmov %vm15181_vm1 }
 0x238   : > { %v2631_v50 = vsel %vm15181_vm1, %v2621_v6, %v2630_v46  ;;  %v2947_v4 = vrot.slane %v2945_v13, 4  ;;  %v15184_v30 = vshrl.u32 %v10435_v19, 16  ;;  %vm2940_vm13 = vsmask.f32 4352 }
 0x239   : > { %v9242_v53 = vpop.eup %9241  ;;  %v2944_v59 = vrot.slane %v2942_v12, 3  ;;  %v15191_v40 = vshrl.u32 %v10528_v31, 16  ;;  %v15192_v49 = vshll.u32 %v10528_v31, 16  ;;  %v7178_v31 = vcombine.low %v12139_v20, %v12143_v47 }
 0x23a   : > { %v1718_v32 = vmul.f32 %v9242_v53, %v1595_v37  ;;  %v2949_v9 = vrot.slane %v15184_v30, 3  ;;  %v7177_v30 = vcombine.low %v12119_v10, %v12127_v18  ;;  %v8971_v10 = vld [vmem:[%s9617_s6 + $0x100] sm:$0xff]   ;;  %v15199_v20 = vshrl.u32 %v10648_v28, 16 }
 0x23b   : > { %8146 = vmatmul.mubr.bf16.gmra.mrb[148].mxu0 %v2622_v36  ;;  %v12176_v36 = vld [vmem:[#allocation2 + $0x34] sm:$0xf]  ;;  %v2954_v7 = vrot.slane %v15192_v49, 4  ;;  %v12274_v49 = vld [vmem:[#allocation2 + $0x70] sm:$0xf] }
 0x23c   : > { %8149 = vmatprep.mubr.msk.bf16.mxu0 %vm14749_vm8, %v14748_v57  ;;  %v2007_v37 = vld [vmem:[#allocation2 + $0xa8] sm:$0x1]  ;;  %v1759_v53 = vsel %vm12159_vm10, %v1718_v32, 0.0  ;;  %v12190_v32 = vcombine.low %v12165_v38, %v12176_v36  ;;  %15196 = vst [vmem:[#allocation57_spill] sm:$0xff] %v12274_v49  ;;  %v2957_v47 = vrot.slane %v15199_v20, 3 }
 0x23d   : > { %v7116_v17 = vcombine.low %v12174_v51, %v2007_v37  ;;  %v7454_v44 = vpack.c.bf16 %v1759_v53, %v1759_v53  ;;  %v12192_v37 = vld [vmem:[#allocation2 + $0x38] sm:$0xf]  ;;  %v2639_v53 = vor.u32 %v2638_v14, %v2635_v42  ;;  %vm4375_vm9 = vsmask.f32 7424 }
 0x23e   : > { %8054 = vmatmul.mubr.bf16.gmra.mrb[72].mxu1 %v2186_v60  ;;  %v12194_v60 = vld [vmem:[#allocation2 + $0x3c] sm:$0xf]  ;;  %vm5885_vm1 = vsmask.f32 6400 }
 0x23f   : > { %1965 = vst [vmem:[#allocation2 + $0xb0] sm:$0x3] %v7454_v44  ;;  %8057 = vmatprep.mubr.msk.bf16.mxu1 %vm14749_vm8, %v14748_v57  ;;  %v2187_v15 = vrot.slane %v7116_v17, 3  ;;  %v2642_v6 = vshrl.u32 %v7116_v17, 16  ;;  %v2645_v58 = vshll.u32 %v7116_v17, 16  ;;  %v12203_v61 = vcombine.low %v12192_v37, %v12194_v60 }
 0x240   : > { %v2640_v42 = vsel %vm15182_vm4, %v2630_v46, %v2639_v53  ;;  %v12214_v17 = vld [vmem:[#allocation2 + $0x48] sm:$0xf] }
 0x241   : > { %v2188_v44 = vsel %vm15175_vm5, %v2185_v55, %v2187_v15  ;;  %v2644_v14 = vrot.slane %v2642_v6, 2  ;;  %v2647_v2 = vrot.slane %v2645_v58, 3  ;;  %v12216_v55 = vld [vmem:[#allocation2 + $0x4c] sm:$0xf]  ;;  %vm5512_vm5 = vcmask 1046528  }
 0x242   : > { %v12226_v46 = vcombine.low %v12214_v17, %v12216_v55  ;;  %v3344_v6 = vld [vmem:[#allocation2 + $0xc] sm:$0x8] }
 0x243   : > { %8150 = vmatmul.mubr.bf16.gmra.mrb[152].mxu0 %v2631_v50  ;;  %v12209_v50 = vcombine.low %v12199_v3, %v12205_v5  ;;  %v2648_v58 = vor.u32 %v2647_v2, %v2644_v14  ;;  %v3346_v2 = vld [vmem:[#allocation2 + $0x14] sm:$0xf]  ;;  %v7175_v14 = vcombine.low %v3344_v6, %v3345_v26  ;;  %v2948_v26 = vor.u32 %v2947_v4, %v2944_v59  ;;  %v12267_v59 = vld [vmem:[#allocation2 + $0x68] sm:$0xf] }
 0x244   : > { %8153 = vmatprep.mubr.msk.bf16.mxu0 %vm14749_vm8, %v14748_v57  ;;  %v7176_v12 = vcombine.low %v3346_v2, %v12117_v24  ;;  %v2953_v24 = vrot.slane %v15191_v40, 3  ;;  %15194 = vst [vmem:[#allocation55_spill] sm:$0xff] %v12267_v59 }
 0x245   : > { %v2649_v13 = vsel %vm15187_vm6, %v2639_v53, %v2648_v58  ;;  %v3509_v53 = vshrl.u32 %v7175_v14, 16  ;;  %v3512_v43 = vshll.u32 %v7175_v14, 16  ;;  %v12269_v14 = vld [vmem:[#allocation2 + $0x6c] sm:$0xf] }
 0x246   : > { %8058 = vmatmul.mubr.bf16.gmra.mrb[76].mxu1 %v2188_v44  ;;  %v12220_v44 = vld [vmem:[#allocation2 + $0x50] sm:$0xf]  ;;  %v3517_v18 = vshrl.u32 %v7176_v12, 16  ;;  %v3520_v2 = vshll.u32 %v7176_v12, 16  ;;  %15195 = vst [vmem:[#allocation56_spill] sm:$0xff] %v12269_v14 }
 0x247   : > { %8061 = vmatprep.mubr.msk.bf16.mxu1 %vm14749_vm8, %v14748_v57  ;;  %v12232_v8 = vcombine.low %v12220_v44, %v12222_v63  ;;  %v3514_v0 = vrot.slane %v3512_v43, 4  ;;  %v12276_v12 = vld [vmem:[#allocation2 + $0x74] sm:$0xf] }
 0x248   : > { %15197 = vst [vmem:[#allocation58_spill] sm:$0xff] %v12276_v12  ;;  %v3519_v62 = vrot.slane %v3517_v18, 3  ;;  %v12292_v18 = vcombine.low %v12274_v49, %v12276_v12  ;;  %v15204_v12 = vshrl.u32 %v11854_v45, 16 }
 0x249   : > { %15183 = vst [vmem:[#allocation49_spill] sm:$0xff] %v12232_v8 }
 0x24a   : > { %15201 = vst [vmem:[#allocation60_spill] sm:$0xff] %v12292_v18 }
 0x24b   : > { %8154 = vmatmul.mubr.bf16.gmra.mrb[156].mxu0 %v2640_v42  ;;  %v15185_v42 = vshll.u32 %v10435_v19, 16  ;;  %v12248_v19 = vld [vmem:[#allocation2 + $0x60] sm:$0xf] }
 0x24c   : > { %8157 = vmatprep.mubr.msk.bf16.mxu0 %vm14749_vm8, %v14748_v57  ;;  %15188 = vst [vmem:[#allocation51_spill] sm:$0xff] %v12248_v19 }
 0x24d   : > { %v2950_v35 = vrot.slane %v15185_v42, 4  ;;  %v12252_v42 = vcombine.low %v12238_v16, %v12240_v54  ;;  %v8979_v54 = vld [vmem:[%s9617_s6 + $0x108] sm:$0xff]  }
 0x24e   : > { %8062 = vmatmul.mubr.bf16.gmra.mrb[80].mxu1 %v2187_v15  ;;  %v12254_v15 = vld [vmem:[#allocation2 + $0x64] sm:$0xf] }
 0x24f   : > { %8181 = vmatprep.mubr.msk.bf16.mxu1 %vm14749_vm8, %v14748_v57  ;;  %15189 = vst [vmem:[#allocation52_spill] sm:$0xff] %v12252_v42  ;;  %15190 = vst [vmem:[#allocation53_spill] sm:$0xff] %v12254_v15  ;;  %v2951_v6 = vor.u32 %v2950_v35, %v2949_v9  ;;  %v12265_v4 = vcombine.low %v12248_v19, %v12254_v15  ;;  %v3526_v35 = vshrl.u32 %v7177_v30, 16  ;;  %v3529_v9 = vshll.u32 %v7177_v30, 16  ;;  %v15207_v19 = vld [vmem:[#allocation9_spill] sm:$0xff] }
 0x250   : > { %v3522_v15 = vrot.slane %v3520_v2, 4  ;;  %v2955_v30 = vor.u32 %v2954_v7, %v2953_v24  ;;  %v3535_v7 = vshrl.u32 %v7178_v31, 16  ;;  %v3538_v24 = vshll.u32 %v7178_v31, 16 }
 0x251   : > { %15193 = vst [vmem:[#allocation54_spill] sm:$0xff] %v12265_v4  ;;  %v2952_v40 = vsel %vm2940_vm13, %v2948_v26, %v2951_v6  ;;  %v12283_v26 = vcombine.low %v12267_v59, %v12269_v14  ;;  %v3528_v43 = vrot.slane %v3526_v35, 3  ;;  %v7179_v2 = vcombine.low %v12157_v1, %v12165_v38  ;;  %v12296_v35 = vld [vmem:[#allocation2 + $0x78] sm:$0xf]  ;;  %v12309_v59 = vld [vmem:[#allocation2 + $0x80] sm:$0xf] }
 0x252   : > { %15202 = vst [vmem:[#allocation61_spill] sm:$0xff] %v12296_v35  ;;  %v3523_v20 = vor.u32 %v3522_v15, %v3519_v62  ;;  %v3001_v14 = vrot.slane %v15204_v12, 3  ;;  %v15205_v1 = vshll.u32 %v11854_v45, 16  ;;  %15206 = vst [vmem:[#allocation63_spill] sm:$0xff] %v12309_v59  ;;  %v3537_v45 = vrot.slane %v3535_v7, 3 }
 0x253   : > { %8158 = vmatmul.mubr.bf16.gmra.mrb[160].mxu0 %v2649_v13  ;;  %v3511_v13 = vrot.slane %v3509_v53, 3  ;;  %15198 = vst [vmem:[#allocation59_spill] sm:$0xff] %v12283_v26  ;;  %v3531_v53 = vrot.slane %v3529_v9, 4  ;;  %v12298_v9 = vld [vmem:[#allocation2 + $0x7c] sm:$0xf] }
 0x254   : > { %8161 = vmatprep.mubr.msk.bf16.mxu0 %vm14749_vm8, %v14748_v57  ;;  %15203 = vst [vmem:[#allocation62_spill] sm:$0xff] %v12298_v9  ;;  %v3002_v38 = vrot.slane %v15205_v1, 4  ;;  %v7180_v1 = vcombine.low %v12176_v36, %v12192_v37 }
 0x255   : > { %v3532_v31 = vor.u32 %v3531_v53, %v3528_v43  ;;  %v12321_v43 = vld [vmem:[#allocation2 + $0x84] sm:$0xf]  ;;  %v3540_v53 = vrot.slane %v3538_v24, 4 }
 0x256   : > { %8182 = vmatmul.mubr.bf16.vlgmr.msra.gmra.mrb[84].mxu1 %v2952_v40  ;;  %v15200_v40 = vshll.u32 %v10648_v28, 16  ;;  %v3515_v28 = vor.u32 %v3514_v0, %v3511_v13  ;;  %v15208_v0 = vshrl.u32 %v15207_v19, 16  ;;  %v12317_v13 = vcombine.low %v12296_v35, %v12298_v9  ;;  %15212 = vst [vmem:[#allocation64_spill] sm:$0xff] %v12321_v43 }
 0x257   : > { %8366 = vmatpush3.bf16.msra.mxu1 %v8971_v10  ;;  %8185 = vmatprep.mubr.msk.bf16.mxu1 %vm14749_vm8, %v14748_v57  ;;  %v12339_v24 = vcombine.low %v12309_v59, %v12321_v43  ;;  %v15217_v35 = vshrl.u32 %v11989_v27, 16  ;;  %v15218_v59 = vshll.u32 %v11989_v27, 16 }
 0x258   : > { %v2958_v10 = vrot.slane %v15200_v40, 4  ;;  %8367 = vmatprep.subr.bf16.mxu1 %v14748_v57  ;;  %v8984_v40 = vld [vmem:[%s9617_s6 + $0x110] sm:$0xff]   ;;  %v2961_v62 = vrot.slane %v15208_v0, 3  ;;  %15210 = vst [vmem:[#allocation9_spill] sm:$0xff] %v12317_v13  ;;  %v8991_v0 = vld [vmem:[%s9617_s6 + $0x118] sm:$0xff]   ;;  %v3524_v9 = vsel %vm2940_vm13, %v3515_v28, %v3523_v20 }
 0x259   : > { %15216 = vst [vmem:[#allocation67_spill] sm:$0xff] %v12339_v24  ;;  %v3376_v28 = vld [vmem:[#allocation2 + $0x8c] sm:$0xf]  ;;  %v3009_v43 = vrot.slane %v15217_v35, 3  ;;  %v7181_v35 = vcombine.low %v12194_v60, %v12199_v3  ;;  %v15224_v60 = vshll.u32 %v12057_v48, 16 }
 0x25a   : > { %v2959_v49 = vor.u32 %v2958_v10, %v2957_v47  ;;  %v3544_v47 = vshrl.u32 %v7179_v2, 16  ;;  %v12323_v10 = vor.u32 %v3002_v38, %v3001_v14  ;;  %v12335_v14 = vld [vmem:[#allocation2 + $0x88] sm:$0xf]  ;;  %v12345_v38 = vor.u32 %v3540_v53, %v3537_v45 }
 0x25b   : > { %8162 = vmatmul.mubr.bf16.gmra.mrb[164].mxu0 %v2648_v58  ;;  %8368 = vmatpush3.bf16.msra.mxu1 %v8979_v54  ;;  %v2956_v58 = vsel %vm2940_vm13, %v2951_v6, %v2955_v30  ;;  %v15209_v54 = vshll.u32 %v15207_v19, 16  ;;  %v15211_v6 = vshrl.u32 %v11966_v33, 16  ;;  %v3547_v19 = vshll.u32 %v7179_v2, 16  ;;  %15215 = vst [vmem:[#allocation66_spill] sm:$0xff] %v12335_v14 }
 0x25c   : > { %8281 = vmatprep.mubr.msk.bf16.mxu0 %vm14749_vm8, %v14748_v57  ;;  %8369 = vmatprep.subr.bf16.mxu1 %v14748_v57  ;;  %15213 = vst [vmem:[#allocation65_spill] sm:$0xff] %v12323_v10  ;;  %v3533_v2 = vsel %vm2940_vm13, %v3523_v20, %v3532_v31  ;;  %v2960_v36 = vsel %vm2940_vm13, %v2955_v30, %v2959_v49  ;;  %v3010_v20 = vrot.slane %v15218_v59, 4 }
 0x25d   : > { %v2962_v15 = vrot.slane %v15209_v54, 4  ;;  %v3005_v12 = vrot.slane %v15211_v6, 3  ;;  %v15214_v54 = vshll.u32 %v11966_v33, 16  ;;  %v2292_v33 = vpop.f32.mrb[0].mxu1  ;;  %v3549_v30 = vrot.slane %v3547_v19, 4 }
 0x25e   : > { %8186 = vmatmul.mubr.bf16.gmra.mrb[88].mxu1 %v2956_v58  ;;  %v3377_v58 = vld [vmem:[#allocation2 + $0x90] sm:$0xf]  ;;  %v7983_v7 = vpop.f32.mrb[1].mxu1  ;;  %v3011_v27 = vor.u32 %v3010_v20, %v3009_v43  ;;  %v12362_v59 = vcombine.low %v12335_v14, %v3376_v28  ;;  %v12376_v43 = vsel %vm2940_vm13, %v3532_v31, %v12345_v38  ;;  %v15225_v28 = vshrl.u32 %v10925_v39, 16  ;;  %v9003_v31 = vld [vmem:[%s9617_s6 + $0x128] sm:$0xff]  }
 0x25f   : > { %8189 = vmatprep.mubr.msk.bf16.mxu1 %vm14749_vm8, %v14748_v57  ;;  %8370 = vmatpush3.bf16.msra.mxu1 %v8984_v40  ;;  %v3006_v6 = vrot.slane %v15214_v54, 4  ;;  %v12343_v37 = vor.u32 %v2962_v15, %v2961_v62  ;;  %v3546_v54 = vrot.slane %v3544_v47, 3  ;;  %v3553_v62 = vshrl.u32 %v7180_v1, 16 }
 0x260   : > { %8371 = vmatprep.subr.bf16.mxu1 %v14748_v57  ;;  %v3556_v15 = vshll.u32 %v7180_v1, 16  ;;  %15220 = vst [vmem:[#allocation69_spill] sm:$0xff] %v12362_v59  ;;  %v15221_v47 = vshrl.u32 %v12057_v48, 16  ;;  %v15223_v7 = vshll.u32 %v10822_v22, 16  ;;  %v2969_v20 = vrot.slane %v15225_v28, 3 }
 0x261   : > { %v3007_v40 = vor.u32 %v3006_v6, %v3005_v12  ;;  %v2295_v12 = vpop.f32.mrb[2].mxu1  ;;  %v2964_v1 = vsel %vm2940_vm13, %v2959_v49, %v12343_v37  ;;  %v3379_v49 = vld [vmem:[#allocation2 + $0x98] sm:$0xf]  ;;  %v3562_v28 = vshrl.u32 %v7181_v35, 16  ;;  %v3565_v14 = vshll.u32 %v7181_v35, 16 }
 0x262   : > { %v7984_v53 = vpop.f32.mrb[3].mxu1  ;;  %v3013_v19 = vrot.slane %v15221_v47, 3  ;;  %v2966_v3 = vrot.slane %v15223_v7, 4  ;;  %v3558_v48 = vrot.slane %v3556_v15, 4  ;;  %v3381_v35 = vld [vmem:[#allocation2 + $0xa0] sm:$0xf] }
 0x263   : > { %8282 = vmatmul.mubr.bf16.vlgmr.msra.gmra.mrb[168].mxu0 %v3524_v9  ;;  %8372 = vmatpush3.bf16.msra.mxu1 %v8991_v0  ;;  %v8998_v9 = vld [vmem:[%s9617_s6 + $0x120] sm:$0xff]   ;;  %v12356_v45 = vsel %vm2940_vm13, %v12323_v10, %v3007_v40  ;;  %v15222_v0 = vshrl.u32 %v10822_v22, 16  ;;  %v3014_v53 = vrot.slane %v15224_v60, 4  ;;  %v12381_v47 = vsel %vm2940_vm13, %v3007_v40, %v3011_v27  ;;  %v3380_v60 = vld [vmem:[#allocation2 + $0x9c] sm:$0xf] }
 0x264   : > { %8285 = vmatprep.mubr.msk.bf16.mxu0 %vm14749_vm8, %v14748_v57  ;;  %15219 = vst [vmem:[#allocation68_spill] sm:$0xff] %v12356_v45  ;;  %8373 = vmatprep.subr.bf16.mxu1 %v14748_v57  ;;  %15226 = vst [vmem:[#allocation70_spill] sm:$0xff] %v12381_v47  ;;  %v12383_v45 = vcombine.low %v3377_v58, %v3378_v29  ;;  %v3555_v22 = vrot.slane %v3553_v62, 3  ;;  %v3550_v10 = vor.u32 %v3549_v30, %v3546_v54  ;;  %v2753_v47 = vpop.f32.mrb[84].mxu0 }
 0x265   : > { %v2965_v6 = vrot.slane %v15222_v0, 3  ;;  %v3015_v7 = vor.u32 %v3014_v53, %v3013_v19  ;;  %v15229_v29 = vshrl.u32 %v12088_v25, 16  ;;  %v15230_v62 = vshrl.u32 %v11018_v41, 16  ;;  %v8083_v53 = vpop.f32.mrb[85].mxu0 }
 0x266   : > { %8190 = vmatmul.mubr.bf16.gmra.mrb[92].mxu1 %v2960_v36  ;;  %15227 = vst [vmem:[#allocation71_spill] sm:$0xff] %v12383_v45  ;;  %v15228_v36 = vshll.u32 %v10925_v39, 16  ;;  %v12395_v39 = vpop.f32.mrb[4].mxu1  ;;  %v15232_v54 = vshll.u32 %v12088_v25, 16  ;;  %v12402_v19 = vadd.f32 %v2753_v47, %v2292_v33  ;;  %v2756_v47 = vpop.f32.mrb[86].mxu0 }
 0x267   : > { %8193 = vmatprep.mubr.msk.bf16.mxu1 %vm14749_vm8, %v14748_v57  ;;  %8374 = vmatpush3.bf16.msra.mxu1 %v8998_v9  ;;  %v3017_v40 = vrot.slane %v15229_v29, 3  ;;  %v2967_v58 = vor.u32 %v2966_v3, %v2965_v6  ;;  %v2973_v15 = vrot.slane %v15230_v62, 3  ;;  %v12398_v9 = vsel %vm2940_vm13, %v3011_v27, %v3015_v7  ;;  %v9015_v27 = vld [vmem:[%s9617_s6 + $0x140] sm:$0xff]  }
 0x268   : > { %v2970_v0 = vrot.slane %v15228_v36, 4  ;;  %8375 = vmatprep.subr.bf16.mxu1 %v14748_v57  ;;  %15231 = vst [vmem:[#allocation72_spill] sm:$0xff] %v12398_v9  ;;  %v3018_v30 = vrot.slane %v15232_v54, 4  ;;  %15233 = vst [vmem:[#allocation73_spill] sm:$0xff] %v12402_v19  ;;  %v15234_v6 = vshll.u32 %v11018_v41, 16  ;;  %v7987_v36 = vpop.f32.mrb[5].mxu1  ;;  %v7182_v29 = vcombine.low %v12205_v5, %v12214_v17  ;;  %8466 = vmatpush3.bf16.msra.mxu0 %v9015_v27 }
 0x269   : > { %v12408_v62 = vcombine.low %v3379_v49, %v3380_v60  ;;  %v3382_v9 = vld [vmem:[#allocation2 + $0xa4] sm:$0xf]  ;;  %v12416_v41 = vpop.f32.mrb[6].mxu1  ;;  %v9010_v54 = vld [vmem:[%s9617_s6 + $0x130] sm:$0xff]   ;;  %v2919_v5 = vld [vmem:[#allocation2 + $0xa8] sm:$0x3]  ;;  %v12419_v60 = vadd.f32 %v2756_v47, %v2295_v12  ;;  %8467 = vmatprep.subr.bf16.mxu0 %v14748_v57 }
 0x26a   : > { %v2974_v3 = vrot.slane %v15234_v6, 4  ;;  %v2971_v33 = vor.u32 %v2970_v0, %v2969_v20  ;;  %v3019_v53 = vor.u32 %v3018_v30, %v3017_v40  ;;  %v3564_v17 = vrot.slane %v3562_v28, 3  ;;  %v8084_v6 = vpop.f32.mrb[87].mxu0  ;;  %v7988_v36 = vpop.f32.mrb[7].mxu1  ;;  %v9016_v20 = vld [vmem:[%s9617_s6 + $0x148] sm:$0xff]  }
 0x26b   : > { %8286 = vmatmul.mubr.bf16.gmra.mrb[172].mxu0 %v3533_v2  ;;  %15235 = vst [vmem:[#allocation74_spill] sm:$0xff] %v12408_v62  ;;  %v12414_v2 = vor.u32 %v3558_v48, %v3555_v22  ;;  %8376 = vmatpush3.bf16.msra.mxu1 %v9003_v31  ;;  %v3567_v49 = vrot.slane %v3565_v14, 4  ;;  %15236 = vst [vmem:[#allocation75_spill] sm:$0xff] %v12419_v60  ;;  %v15237_v22 = vshrl.u32 %v12133_v11, 16  ;;  %v15238_v12 = vshll.u32 %v12133_v11, 16  ;;  %v9017_v36 = vld [vmem:[%s9617_s6 + $0x138] sm:$0xff]  }
 0x26c   : > { %8289 = vmatprep.mubr.msk.bf16.mxu0 %vm14749_vm8, %v14748_v57  ;;  %8377 = vmatprep.subr.bf16.mxu1 %v14748_v57  ;;  %v12427_v0 = vsel %vm2940_vm13, %v12345_v38, %v3550_v10  ;;  %v12431_v14 = vsel %vm2940_vm13, %v3015_v7, %v3019_v53  ;;  %v12436_v40 = vor.u32 %v2974_v3, %v2973_v15  ;;  %v3571_v30 = vshrl.u32 %v7182_v29, 16 }
 0x26d   : > { %v3021_v48 = vrot.slane %v15237_v22, 3  ;;  %v3022_v28 = vrot.slane %v15238_v12, 4  ;;  %v12438_v27 = vcombine.low %v3381_v35, %v3382_v9  ;;  %v7150_v38 = vcombine.low %v12174_v51, %v2919_v5  ;;  %8468 = vmatpush3.bf16.msra.mxu0 %v9016_v20  ;;  %v3384_v35 = vld [vmem:[#allocation2 + $0xac] sm:$0xf]  ;;  %v9020_v12 = vld [vmem:[%s9617_s6 + $0x150] sm:$0xff]  }
 0x26e   : > { %8194 = vmatmul.mubr.bf16.gmra.mrb[96].mxu1 %v2964_v1  ;;  %v2968_v7 = vsel %vm2940_vm13, %v12343_v37, %v2967_v58  ;;  %v3574_v11 = vshll.u32 %v7182_v29, 16  ;;  %v12449_v1 = vsel %vm2940_vm13, %v3550_v10, %v12414_v2  ;;  %v12452_v15 = vsel %vm2940_vm13, %v2967_v58, %v2971_v33  ;;  %v3383_v37 = vld [vmem:[#allocation2 + $0xa8] sm:$0xf]  ;;  %v12462_v10 = vpop.f32.mrb[8].mxu1  ;;  %8469 = vmatprep.subr.bf16.mxu0 %v14748_v57 }
 0x26f   : > { %15239 = vst [vmem:[#allocation76_spill] sm:$0xff] %v12438_v27  ;;  %8197 = vmatprep.mubr.msk.bf16.mxu1 %vm14749_vm8, %v14748_v57  ;;  %8378 = vmatpush3.bf16.msra.mxu1 %v9010_v54  ;;  %v3023_v6 = vor.u32 %v3022_v28, %v3021_v48  ;;  %v12454_v51 = vor.u32 %v3567_v49, %v3564_v17  ;;  %v3026_v9 = vshrl.u32 %v7150_v38, 16  ;;  %v15240_v29 = vshrl.u32 %v11108_v23, 16  ;;  %v7991_v20 = vpop.f32.mrb[9].mxu1 }
 0x270   : > { %8379 = vmatprep.subr.bf16.mxu1 %v14748_v57  ;;  %v3029_v5 = vshll.u32 %v7150_v38, 16  ;;  %v12471_v17 = vsel %vm2940_vm13, %v2971_v33, %v12436_v40  ;;  %v12473_v49 = vrot.slane %v3571_v30, 3  ;;  %v15241_v22 = vshll.u32 %v11108_v23, 16  ;;  %v2761_v38 = vpop.f32.mrb[88].mxu0  ;;  %v12488_v33 = vpop.f32.mrb[10].mxu1 }
 0x271   : > { %v12460_v54 = vrot.slane %v15240_v29, 3  ;;  %v12465_v58 = vsel %vm2940_vm13, %v3019_v53, %v3023_v6  ;;  %v3028_v28 = vrot.slane %v3026_v9, 3  ;;  %v12482_v53 = vrot.slane %v3574_v11, 4  ;;  %v8087_v11 = vpop.f32.mrb[89].mxu0  ;;  %v7992_v20 = vpop.f32.mrb[11].mxu1  ;;  %8470 = vmatpush3.bf16.msra.mxu0 %v9020_v12 }
 0x272   : > { %v12477_v48 = vrot.slane %v15241_v22, 4  ;;  %v3031_v30 = vrot.slane %v3029_v5, 4  ;;  %v12490_v23 = vcombine.low %v3383_v37, %v3384_v35  ;;  %v12495_v9 = vsel %vm2940_vm13, %v12414_v2, %v12454_v51  ;;  %8471 = vmatprep.subr.bf16.mxu0 %v14748_v57  ;;  %v12530_v12 = vpop.f32.mrb[12].mxu1 }
 0x273   : > { %8290 = vmatmul.mubr.bf16.gmra.mrb[176].mxu0 %v12376_v43  ;;  %v12486_v43 = vcombine.low %v12216_v55, %v12220_v44  ;;  %8380 = vmatpush3.bf16.msra.mxu1 %v9017_v36  ;;  %v12498_v29 = vadd.f32 %v2761_v38, %v12395_v39  ;;  %v4384_v55 = vshll.u32 %v12137_v34, 16  ;;  %v2764_v44 = vpop.f32.mrb[90].mxu0  ;;  %v4416_v38 = vshll.u32 %v12203_v61, 16  ;;  %v7995_v37 = vpop.f32.mrb[13].mxu1 }
 0x274   : > { %8293 = vmatprep.mubr.msk.bf16.mxu0 %vm14749_vm8, %v14748_v57  ;;  %15242 = vst [vmem:[#allocation77_spill] sm:$0xff] %v12490_v23  ;;  %8565 = vmatprep.subr.bf16.mxu1 %v14748_v57  ;;  %v12506_v35 = vor.u32 %v3031_v30, %v3028_v28  ;;  %v12510_v39 = vadd.f32 %v2764_v44, %v12416_v41  ;;  %v8088_v5 = vpop.f32.mrb[91].mxu0  ;;  %v4392_v41 = vshll.u32 %v12147_v52, 16  ;;  %v9022_v44 = vld [vmem:[%s9617_s6 + $0x158] sm:$0xff]   ;;  %v4424_v2 = vshll.u32 %v12209_v50, 16  ;;  %v12538_v31 = vpop.f32.mrb[14].mxu1 }
 0x275   : > { %15243 = vst [vmem:[#allocation78_spill] sm:$0xff] %v12498_v29  ;;  %v12514_v11 = vrot.slane %v4384_v55, 1  ;;  %v4400_v5 = vshll.u32 %v12169_v56, 16  ;;  %v4408_v55 = vshll.u32 %v12190_v32, 16  ;;  %v4418_v22 = vrot.slane %v4416_v38, 1  ;;  %v2769_v47 = vpop.f32.mrb[92].mxu0  ;;  %8472 = vmatpush3.bf16.msra.mxu0 %v9022_v44 }
 0x276   : > { %8198 = vmatmul.mubr.bf16.gmra.mrb[100].mxu1 %v2968_v7  ;;  %15244 = vst [vmem:[#allocation79_spill] sm:$0xff] %v12510_v39  ;;  %v12521_v28 = vsel %vm2940_vm13, %v3023_v6, %v12506_v35  ;;  %v4388_v7 = vshrl.u32 %v12137_v34, 16  ;;  %v4394_v20 = vrot.slane %v4392_v41, 1  ;;  %v4432_v3 = vshll.u32 %v12226_v46, 16  ;;  %v7996_v39 = vpop.f32.mrb[15].mxu1  ;;  %8473 = vmatprep.subr.bf16.mxu0 %v14748_v57 }
 0x277   : > { %8201 = vmatprep.mubr.msk.bf16.mxu1 %vm14749_vm8, %v14748_v57  ;;  %v4402_v30 = vrot.slane %v4400_v5, 1  ;;  %v4410_v36 = vrot.slane %v4408_v55, 1  ;;  %v4426_v5 = vrot.slane %v4424_v2, 1  ;;  %v12548_v38 = vadd.f32 %v2769_v47, %v12462_v10  ;;  %v8091_v55 = vpop.f32.mrb[93].mxu0 }
 0x278   : > { %v4390_v6 = vor.u32 %v4388_v7, %v12514_v11  ;;  %v9025_v7 = vld [vmem:[%s9617_s6 + $0x160] sm:$0xff]   ;;  %v15248_v29 = vshrl.u32 %v12169_v56, 16  ;;  %v15249_v44 = vshrl.u32 %v12190_v32, 16  ;;  %v15251_v47 = vshrl.u32 %v12209_v50, 16 }
 0x279   : > { %15247 = vst [vmem:[#allocation81_spill] sm:$0xff] %v12548_v38  ;;  %v4434_v2 = vrot.slane %v4432_v3, 1  ;;  %v4440_v39 = vshll.u32 %v12232_v8, 16  ;;  %8474 = vmatpush3.bf16.msra.mxu0 %v9025_v7  ;;  %v4480_v7 = vshll.u32 %v12317_v13, 16 }
 0x27a   : > { %v12543_v41 = vsel %vm4375_vm9, %v4390_v6, %v4394_v20  ;;  %v4406_v60 = vor.u32 %v15248_v29, %v4402_v30  ;;  %v4414_v25 = vor.u32 %v15249_v44, %v4410_v36  ;;  %v15250_v6 = vshrl.u32 %v12203_v61, 16  ;;  %8475 = vmatprep.subr.bf16.mxu0 %v14748_v57 }
 0x27b   : > { %8294 = vmatmul.mubr.bf16.gmra.mrb[180].mxu0 %v12427_v0  ;;  %15245 = vst [vmem:[#allocation80_spill] sm:$0xff] %v12543_v41  ;;  %v15246_v0 = vshrl.u32 %v12147_v52, 16  ;;  %v2772_v41 = vpop.f32.mrb[94].mxu0  ;;  %v4430_v10 = vor.u32 %v15251_v47, %v4426_v5  ;;  %v4482_v38 = vrot.slane %v4480_v7, 1  ;;  %v15260_v7 = vshrl.u32 %v12283_v26, 16 }
 0x27c   : > { %8297 = vmatprep.mubr.msk.bf16.mxu0 %vm14749_vm8, %v14748_v57  ;;  %v4422_v19 = vor.u32 %v15250_v6, %v4418_v22  ;;  %v12565_v29 = vadd.f32 %v2772_v41, %v12488_v33  ;;  %v12568_v55 = vsel %vm4375_vm9, %v4406_v60, %v4410_v36  ;;  %v12571_v44 = vsel %vm4375_vm9, %v4414_v25, %v4418_v22  ;;  %v9026_v25 = vld [vmem:[%s9617_s6 + $0x168] sm:$0xff]  }
 0x27d   : > { %v4398_v37 = vor.u32 %v15246_v0, %v4394_v20  ;;  %v8092_v0 = vpop.f32.mrb[95].mxu0  ;;  %v12579_v3 = vsel %vm4375_vm9, %v4430_v10, %v4434_v2  ;;  %v4442_v41 = vrot.slane %v4440_v39, 1  ;;  %v4448_v60 = vshll.u32 %v12252_v42, 16  ;;  %8476 = vmatpush3.bf16.msra.mxu0 %v9026_v25 }
 0x27e   : > { %8202 = vmatmul.mubr.bf16.gmra.mrb[104].mxu1 %v12452_v15  ;;  %15252 = vst [vmem:[#allocation82_spill] sm:$0xff] %v12565_v29  ;;  %15253 = vst [vmem:[#allocation83_spill] sm:$0xff] %v12579_v3  ;;  %v15254_v15 = vshrl.u32 %v12226_v46, 16  ;;  %v4456_v22 = vshll.u32 %v12265_v4, 16  ;;  %v4472_v36 = vshll.u32 %v12292_v18, 16  ;;  %v15256_v6 = vshrl.u32 %v12232_v8, 16  ;;  %8477 = vmatprep.subr.bf16.mxu0 %v14748_v57 }
 0x27f   : > { %v12558_v20 = vsel %vm4375_vm9, %v4398_v37, %v4402_v30  ;;  %v12574_v30 = vsel %vm4375_vm9, %v4422_v19, %v4426_v5  ;;  %8205 = vmatprep.mubr.msk.bf16.mxu1 %vm14749_vm8, %v14748_v57  ;;  %v4464_v19 = vshll.u32 %v12283_v26, 16  ;;  %v12590_v37 = vpop.f32.mrb[16].mxu1  ;;  %v4450_v10 = vrot.slane %v4448_v60, 1 }
 0x280   : > { %v4438_v33 = vor.u32 %v15254_v15, %v4434_v2  ;;  %v4446_v47 = vor.u32 %v15256_v6, %v4442_v41  ;;  %v4488_v2 = vshll.u32 %v12339_v24, 16  ;;  %v7999_v39 = vpop.f32.mrb[17].mxu1  ;;  %v4458_v0 = vrot.slane %v4456_v22, 1 }
 0x281   : > { %v4466_v15 = vrot.slane %v4464_v19, 1  ;;  %v4474_v29 = vrot.slane %v4472_v36, 1  ;;  %v12601_v3 = vpop.f32.mrb[18].mxu1  ;;  %v15259_v19 = vshrl.u32 %v12265_v4, 16  ;;  %v15261_v25 = vshrl.u32 %v12292_v18, 16 }
 0x282   : > { %v12593_v5 = vsel %vm4375_vm9, %v4438_v33, %v4442_v41  ;;  %v9027_v33 = vld [vmem:[%s9617_s6 + $0x170] sm:$0xff]   ;;  %v15258_v41 = vshrl.u32 %v12252_v42, 16  ;;  %v4490_v6 = vrot.slane %v4488_v2, 1  ;;  %v8000_v22 = vpop.f32.mrb[19].mxu1  ;;  %v2777_v42 = vpop.f32.mrb[96].mxu0  ;;  %v15264_v2 = vshrl.u32 %v12339_v24, 16 }
 0x283   : > { %15255 = vst [vmem:[#allocation84_spill] sm:$0xff] %v12593_v5  ;;  %8298 = vmatmul.mubr.bf16.gmra.mrb[184].mxu0 %v12449_v1  ;;  %v12605_v5 = vsel %vm4375_vm9, %v4446_v47, %v4450_v10  ;;  %v4496_v1 = vshll.u32 %v12362_v59, 16  ;;  %v4462_v36 = vor.u32 %v15259_v19, %v4458_v0  ;;  %v4470_v39 = vor.u32 %v15260_v7, %v4466_v15  ;;  %v12625_v19 = vld [vmem:[#allocation2 + $0x20] sm:$0xff]  }
 0x284   : > { %8301 = vmatprep.mubr.msk.bf16.mxu0 %vm14749_vm8, %v14748_v57  ;;  %15257 = vst [vmem:[#allocation85_spill] sm:$0xff] %v12605_v5  ;;  %v4454_v60 = vor.u32 %v15258_v41, %v4450_v10  ;;  %v4478_v8 = vor.u32 %v15261_v25, %v4474_v29  ;;  %v15262_v47 = vshrl.u32 %v12317_v13, 16  ;;  %v4494_v41 = vor.u32 %v15264_v2, %v4490_v6  ;;  %v8095_v25 = vpop.f32.mrb[97].mxu0  ;;  %v2332_v2 = vpop.f32.mrb[20].mxu1 }
 0x285   : > { %v4498_v22 = vrot.slane %v4496_v1, 1  ;;  %v4504_v4 = vshll.u32 %v12383_v45, 16  ;;  %15265 = vst [vmem:[#allocation87_spill] sm:$0xff] %v12625_v19  ;;  %v12629_v7 = vadd.f32 %v2777_v42, %v12530_v12  ;;  %v2780_v1 = vpop.f32.mrb[98].mxu0  ;;  %8478 = vmatpush3.bf16.msra.mxu0 %v9027_v33  ;;  %v15272_v12 = vshrl.u32 %v12362_v59, 16 }
 0x286   : > { %v4486_v5 = vor.u32 %v15262_v47, %v4482_v38  ;;  %v12620_v10 = vsel %vm4375_vm9, %v4454_v60, %v4458_v0  ;;  %8206 = vmatmul.mubr.bf16.gmra.mrb[108].mxu1 %v12471_v17  ;;  %v12632_v47 = vsel %vm4375_vm9, %v4462_v36, %v4466_v15  ;;  %v12635_v0 = vsel %vm4375_vm9, %v4470_v39, %v4474_v29  ;;  %v9030_v39 = vld [vmem:[%s9617_s6 + $0x178] sm:$0xff]  }
 0x287   : > { %15263 = vst [vmem:[#allocation86_spill] sm:$0xff] %v12620_v10  ;;  %15266 = vst [vmem:[#allocation88_spill] sm:$0xff] %v12629_v7  ;;  %v12638_v60 = vsel %vm4375_vm9, %v4478_v8, %v4482_v38  ;;  %8209 = vmatprep.mubr.msk.bf16.mxu1 %vm14749_vm8, %v14748_v57  ;;  %v12646_v42 = vsel %vm4375_vm9, %v4494_v41, %v4498_v22  ;;  %v4502_v15 = vor.u32 %v15272_v12, %v4498_v22  ;;  %v8096_v8 = vpop.f32.mrb[99].mxu0  ;;  %v8003_v22 = vpop.f32.mrb[21].mxu1 }
 0x288   : > { %15267 = vst [vmem:[#allocation89_spill] sm:$0xff] %v12632_v47  ;;  %15268 = vst [vmem:[#allocation90_spill] sm:$0xff] %v12635_v0  ;;  %v12643_v17 = vsel %vm4375_vm9, %v4486_v5, %v4490_v6  ;;  %v4506_v36 = vrot.slane %v4504_v4, 1  ;;  %v12651_v29 = vadd.f32 %v2780_v1, %v12538_v31  ;;  %v4508_v38 = vshrl.u32 %v12383_v45, 16  ;;  %8479 = vmatprep.subr.bf16.mxu0 %v14748_v57  ;;  %v2335_v31 = vpop.f32.mrb[22].mxu1  ;;  %v15295_v45 = vld [vmem:[#allocation61_spill] sm:$0xff] }
 0x289   : > { %15269 = vst [vmem:[#allocation91_spill] sm:$0xff] %v12638_v60  ;;  %15270 = vst [vmem:[#allocation92_spill] sm:$0xff] %v12643_v17  ;;  %v4512_v33 = vshll.u32 %v12408_v62, 16  ;;  %v4520_v5 = vshll.u32 %v12438_v27, 16  ;;  %v2979_v6 = vor.u32 %v12477_v48, %v12460_v54  ;;  %v4516_v41 = vshrl.u32 %v12408_v62, 16  ;;  %8480 = vmatpush3.bf16.msra.mxu0 %v9030_v39 }
 0x28a   : > { %15271 = vst [vmem:[#allocation93_spill] sm:$0xff] %v12646_v42  ;;  %15273 = vst [vmem:[#allocation94_spill] sm:$0xff] %v12651_v29  ;;  %v12662_v4 = vsel %vm4375_vm9, %v4502_v15, %v4506_v36  ;;  %v4510_v25 = vor.u32 %v4508_v38, %v4506_v36  ;;  %v14609_v8 = vshll.u32 %v12625_v19, 16  ;;  %v3577_v54 = vor.u32 %v12482_v53, %v12473_v49  ;;  %v8004_v36 = vpop.f32.mrb[23].mxu1 }
 0x28b   : > { %15274 = vst [vmem:[#allocation95_spill] sm:$0xff] %v12662_v4  ;;  %8302 = vmatmul.mubr.bf16.gmra.mrb[188].mxu0 %v12495_v9  ;;  %v4514_v1 = vrot.slane %v4512_v33, 1  ;;  %v4522_v12 = vrot.slane %v4520_v5, 1  ;;  %v3580_v48 = vshrl.u32 %v12486_v43, 16  ;;  %v15275_v15 = vshrl.u32 %v11262_v21, 16  ;;  %8665 = vmatprep.subr.bf16.mxu0 %v14748_v57  ;;  %v2785_v36 = vpop.f32.mrb[100].mxu0 }
 0x28c   : > { %8305 = vmatprep.mubr.msk.bf16.mxu0 %vm14749_vm8, %v14748_v57  ;;  %v3583_v9 = vshll.u32 %v12486_v43, 16  ;;  %v15277_v5 = vshrl.u32 %v12625_v19, 16  ;;  %v2980_v49 = vsel %vm2940_vm13, %v12436_v40, %v2979_v6  ;;  %v15278_v53 = vshll.u32 %v11262_v21, 16  ;;  %v8099_v21 = vpop.f32.mrb[101].mxu0 }
 0x28d   : > { %v2981_v62 = vrot.slane %v15275_v15, 3  ;;  %v12676_v38 = vsel %vm4375_vm9, %v4510_v25, %v4514_v1  ;;  %v4518_v33 = vor.u32 %v4516_v41, %v4514_v1  ;;  %v4524_v39 = vshrl.u32 %v12438_v27, 16 }
 0x28e   : > { %15276 = vst [vmem:[#allocation96_spill] sm:$0xff] %v12676_v38  ;;  %v5894_v22 = vrot.slane %v15277_v5, 1  ;;  %v2982_v15 = vrot.slane %v15278_v53, 4  ;;  %v4528_v43 = vshll.u32 %v12490_v23, 16  ;;  %8210 = vmatmul.mubr.bf16.gmra.mrb[112].mxu1 %v2980_v49  ;;  %v5895_v41 = vrot.slane %v14609_v8, 2 }
 0x28f   : > { %v12688_v25 = vsel %vm4375_vm9, %v4518_v33, %v4522_v12  ;;  %8213 = vmatprep.mubr.msk.bf16.mxu1 %vm14749_vm8, %v14748_v57  ;;  %v12695_v40 = vadd.f32 %v2785_v36, %v12590_v37  ;;  %v4526_v1 = vor.u32 %v4524_v39, %v4522_v12  ;;  %v3582_v53 = vrot.slane %v3580_v48, 3  ;;  %v2788_v33 = vpop.f32.mrb[102].mxu0  ;;  %v15288_v36 = vld [vmem:[#allocation50_spill] sm:$0xff] }
 0x290   : > { %15279 = vst [vmem:[#allocation97_spill] sm:$0xff] %v12688_v25  ;;  %v12697_v5 = vrot.slane %v4528_v43, 1  ;;  %v3585_v23 = vrot.slane %v3583_v9, 4  ;;  %v7184_v49 = vcombine.low %v12222_v63, %v12238_v16  ;;  %v12701_v25 = vor.u32 %v5895_v41, %v5894_v22  ;;  %v8100_v37 = vpop.f32.mrb[103].mxu0  ;;  %v2340_v9 = vpop.f32.mrb[24].mxu1  ;;  %v15287_v43 = vld [vmem:[#allocation51_spill] sm:$0xff] }
 0x291   : > { %15280 = vst [vmem:[#allocation98_spill] sm:$0xff] %v12695_v40  ;;  %v3578_v8 = vsel %vm2940_vm13, %v12454_v51, %v3577_v54  ;;  %v2983_v19 = vor.u32 %v2982_v15, %v2981_v62  ;;  %v12706_v27 = vadd.f32 %v2788_v33, %v12601_v3  ;;  %v15284_v62 = vld [vmem:[#allocation16_spill] sm:$0xff]  ;;  %v7185_v41 = vcombine.low %v15288_v36, %v15287_v43  ;;  %v2793_v21 = vpop.f32.mrb[104].mxu0  ;;  %v15292_v36 = vld [vmem:[#allocation57_spill] sm:$0xff] }
 0x292   : > { %15281 = vst [vmem:[#allocation99_spill] sm:$0xff] %v12697_v5  ;;  %v12710_v12 = vsel %vm4375_vm9, %v4526_v1, %v12697_v5  ;;  %v12714_v16 = vor.u32 %v3585_v23, %v3582_v53  ;;  %v3589_v63 = vshrl.u32 %v7184_v49, 16  ;;  %v3592_v48 = vshll.u32 %v7184_v49, 16  ;;  %v15289_v23 = vld [vmem:[#allocation55_spill] sm:$0xff]  ;;  %v15290_v53 = vld [vmem:[#allocation53_spill] sm:$0xff]  ;;  %v8103_v33 = vpop.f32.mrb[105].mxu0 }
 0x293   : > { %15282 = vst [vmem:[#allocation100_spill] sm:$0xff] %v12706_v27  ;;  %15283 = vst [vmem:[#allocation101_spill] sm:$0xff] %v12710_v12  ;;  %8306 = vmatmul.mubr.bf16.gmra.mrb[192].mxu0 %v3578_v8  ;;  %v2984_v51 = vsel %vm2940_vm13, %v2979_v6, %v2983_v19  ;;  %v15285_v22 = vshrl.u32 %v15284_v62, 16  ;;  %v15286_v15 = vshll.u32 %v15284_v62, 16  ;;  %v8007_v8 = vpop.f32.mrb[25].mxu1  ;;  %v7186_v49 = vcombine.low %v15290_v53, %v15289_v23  ;;  %v2796_v43 = vpop.f32.mrb[106].mxu0 }
 0x294   : > { %8309 = vmatprep.mubr.msk.bf16.mxu0 %vm14749_vm8, %v14748_v57  ;;  %v2343_v1 = vpop.f32.mrb[26].mxu1  ;;  %v12727_v6 = vadd.f32 %v2793_v21, %v2332_v2  ;;  %v3587_v62 = vsel %vm2940_vm13, %v3577_v54, %v12714_v16  ;;  %v3598_v12 = vshrl.u32 %v7185_v41, 16  ;;  %v12733_v38 = vadd.f32 %v2796_v43, %v2335_v31  ;;  %v8104_v4 = vpop.f32.mrb[107].mxu0  ;;  %v15296_v23 = vld [vmem:[#allocation58_spill] sm:$0xff]  ;;  %v15297_v54 = vld [vmem:[#allocation23_spill] sm:$0xff] }
 0x295   : > { %v2985_v3 = vrot.slane %v15285_v22, 3  ;;  %v2986_v39 = vrot.slane %v15286_v15, 4  ;;  %v8008_v37 = vpop.f32.mrb[27].mxu1  ;;  %v3591_v22 = vrot.slane %v3589_v63, 3  ;;  %v3594_v15 = vrot.slane %v3592_v48, 4 }
 0x296   : > { %8214 = vmatmul.mubr.bf16.gmra.mrb[116].mxu1 %v2984_v51  ;;  %15291 = vst [vmem:[#allocation16_spill] sm:$0xff] %v12727_v6  ;;  %v15293_v51 = vld [vmem:[#allocation56_spill] sm:$0xff]  ;;  %15294 = vst [vmem:[#allocation51_spill] sm:$0xff] %v12733_v38  ;;  %v7188_v2 = vcombine.low %v15296_v23, %v15295_v45  ;;  %v3601_v21 = vshll.u32 %v7185_v41, 16  ;;  %v4854_v53 = vld [vmem:[#allocation2 + $0x1c] sm:$0xf] }
 0x297   : > { %8217 = vmatprep.mubr.msk.bf16.mxu1 %vm14749_vm8, %v14748_v57  ;;  %v7187_v8 = vcombine.low %v15293_v51, %v15292_v36  ;;  %v2987_v5 = vor.u32 %v2986_v39, %v2985_v3  ;;  %v15298_v63 = vshrl.u32 %v15297_v54, 16  ;;  %v3607_v33 = vshrl.u32 %v7186_v49, 16  ;;  %v5491_v36 = vld [vmem:[#allocation2 + $0x18] sm:$0xe]  ;;  %v12743_v51 = vpop.f32.mrb[28].mxu1 }
 0x298   : > { %v3610_v37 = vshll.u32 %v7186_v49, 16  ;;  %v3595_v3 = vor.u32 %v3594_v15, %v3591_v22  ;;  %v15299_v31 = vshll.u32 %v15297_v54, 16  ;;  %v3600_v41 = vrot.slane %v3598_v12, 3 }
 0x299   : > { %v2989_v48 = vrot.slane %v15298_v63, 3  ;;  %v3616_v4 = vshrl.u32 %v7187_v8, 16  ;;  %v3619_v43 = vshll.u32 %v7187_v8, 16  ;;  %v2988_v45 = vsel %vm2940_vm13, %v2983_v19, %v2987_v5  ;;  %v15300_v63 = vld [vmem:[#allocation36_spill] sm:$0xff]  ;;  %v2801_v8 = vpop.f32.mrb[108].mxu0 }
 0x29a   : > { %v2990_v39 = vrot.slane %v15299_v31, 4  ;;  %v3625_v23 = vshrl.u32 %v7188_v2, 16  ;;  %v3628_v42 = vshll.u32 %v7188_v2, 16  ;;  %v3603_v59 = vrot.slane %v3601_v21, 4  ;;  %v8107_v13 = vpop.f32.mrb[109].mxu0 }
 0x29b   : > { %8310 = vmatmul.mubr.bf16.gmra.mrb[196].mxu0 %v3587_v62  ;;  %v8011_v62 = vpop.f32.mrb[29].mxu1  ;;  %v15301_v17 = vshrl.u32 %v15300_v63, 16  ;;  %v15302_v22 = vshll.u32 %v15300_v63, 16  ;;  %v12752_v31 = vcombine.low %v5491_v36, %v4854_v53  ;;  %v3609_v19 = vrot.slane %v3607_v33, 3  ;;  %v15308_v53 = vld [vmem:[#allocation63_spill] sm:$0xff]  ;;  %v15309_v36 = vld [vmem:[#allocation62_spill] sm:$0xff] }
 0x29c   : > { %8313 = vmatprep.mubr.msk.bf16.mxu0 %vm14749_vm8, %v14748_v57  ;;  %v12750_v54 = vpop.f32.mrb[30].mxu1  ;;  %v3612_v12 = vrot.slane %v3610_v37, 4  ;;  %v15304_v62 = vld [vmem:[#allocation39_spill] sm:$0xff]  ;;  %v3618_v60 = vrot.slane %v3616_v4, 3  ;;  %v3621_v63 = vrot.slane %v3619_v43, 4  ;;  %v7189_v0 = vcombine.low %v15309_v36, %v15308_v53  ;;  %v2804_v18 = vpop.f32.mrb[110].mxu0 }
 0x29d   : > { %v2993_v49 = vrot.slane %v15301_v17, 3  ;;  %v2994_v15 = vrot.slane %v15302_v22, 4  ;;  %15303 = vst [vmem:[#allocation50_spill] sm:$0xff] %v12752_v31  ;;  %v15305_v2 = vshrl.u32 %v15304_v62, 16  ;;  %v15306_v21 = vshll.u32 %v15304_v62, 16  ;;  %v8012_v17 = vpop.f32.mrb[31].mxu1 }
 0x29e   : > { %8218 = vmatmul.mubr.bf16.gmra.mrb[120].mxu1 %v2988_v45  ;;  %v12760_v22 = vadd.f32 %v2801_v8, %v2340_v9  ;;  %v3596_v33 = vsel %vm2940_vm13, %v12714_v16, %v3595_v3  ;;  %v2991_v37 = vor.u32 %v2990_v39, %v2989_v48  ;;  %v3627_v47 = vrot.slane %v3625_v23, 3  ;;  %v8108_v62 = vpop.f32.mrb[111].mxu0  ;;  %v12779_v53 = vld [vmem:[#allocation2 + $0x28] sm:$0xff]   ;;  %v12781_v36 = vpop.f32.mrb[32].mxu1 }
 0x29f   : > { %8221 = vmatprep.mubr.msk.bf16.mxu1 %vm14749_vm8, %v14748_v57  ;;  %v2997_v45 = vrot.slane %v15305_v2, 3  ;;  %v2998_v24 = vrot.slane %v15306_v21, 4  ;;  %v3630_v26 = vrot.slane %v3628_v42, 4  ;;  %v12766_v2 = vadd.f32 %v2804_v18, %v2343_v1  ;;  %v15311_v18 = vld [vmem:[#allocation66_spill] sm:$0xff]  ;;  %v15312_v1 = vld [vmem:[#allocation64_spill] sm:$0xff]  ;;  %15313 = vst [vmem:[#allocation57_spill] sm:$0xff] %v12779_v53 }
 0x2a0   : > { %15307 = vst [vmem:[#allocation55_spill] sm:$0xff] %v12760_v22  ;;  %v5887_v4 = vshrl.u32 %v12752_v31, 16  ;;  %v5890_v9 = vshll.u32 %v12752_v31, 16  ;;  %v3604_v13 = vor.u32 %v3603_v59, %v3600_v41  ;;  %v3613_v43 = vor.u32 %v3612_v12, %v3609_v19  ;;  %v12818_v62 = vld [vmem:[#allocation2 + $0x50] sm:$0xff]   ;;  %v12856_v31 = vld [vmem:[#allocation2 + $0x80] sm:$0xff]  }
 0x2a1   : > { %15310 = vst [vmem:[#allocation53_spill] sm:$0xff] %v12766_v2  ;;  %v2995_v8 = vor.u32 %v2994_v15, %v2993_v49  ;;  %v2999_v21 = vor.u32 %v2998_v24, %v2997_v45  ;;  %v3622_v16 = vor.u32 %v3621_v63, %v3618_v60  ;;  %v3634_v48 = vshrl.u32 %v7189_v0, 16  ;;  %v12787_v24 = vld [vmem:[#allocation2 + $0x30] sm:$0xff]   ;;  %v12799_v49 = vld [vmem:[#allocation2 + $0x38] sm:$0xff]   ;;  %v12801_v15 = vld [vmem:[#allocation2 + $0x40] sm:$0xff]  }
 0x2a2   : > { %v3637_v39 = vshll.u32 %v7189_v0, 16  ;;  %v2992_v42 = vsel %vm2940_vm13, %v2987_v5, %v2991_v37  ;;  %v12773_v23 = vor.u32 %v3630_v26, %v3627_v47  ;;  %v12777_v17 = vcombine.low %v15312_v1, %v15311_v18  ;;  %15314 = vst [vmem:[#allocation56_spill] sm:$0xff] %v12787_v24  ;;  %v8015_v5 = vpop.f32.mrb[33].mxu1  ;;  %15315 = vst [vmem:[#allocation61_spill] sm:$0xff] %v12799_v49 }
 0x2a3   : > { %8314 = vmatmul.mubr.bf16.gmra.mrb[200].mxu0 %v3596_v33  ;;  %v12783_v59 = vrot.slane %v5887_v4, 1  ;;  %v12785_v41 = vrot.slane %v5890_v9, 2  ;;  %v3605_v0 = vsel %vm2940_vm13, %v3595_v3, %v3604_v13  ;;  %v12791_v26 = vsel %vm2940_vm13, %v3604_v13, %v3613_v43  ;;  %15316 = vst [vmem:[#allocation58_spill] sm:$0xff] %v12801_v15  ;;  %v15317_v3 = vld [vmem:[#allocation65_spill] sm:$0xff]  ;;  %v12814_v33 = vpop.f32.mrb[34].mxu1  ;;  %v2809_v9 = vpop.f32.mrb[112].mxu0 }
 0x2a4   : > { %8317 = vmatprep.mubr.msk.bf16.mxu0 %vm14749_vm8, %v14748_v57  ;;  %v2996_v47 = vsel %vm2940_vm13, %v2991_v37, %v2995_v8  ;;  %v12797_v60 = vsel %vm2940_vm13, %v2995_v8, %v2999_v21  ;;  %v12804_v19 = vsel %vm2940_vm13, %v3613_v43, %v3622_v16  ;;  %v12808_v12 = vsel %vm2940_vm13, %v2999_v21, %v15317_v3  ;;  %v12816_v37 = vld [vmem:[#allocation2 + $0x48] sm:$0xff]   ;;  %v8016_v13 = vpop.f32.mrb[35].mxu1  ;;  %v12836_v5 = vld [vmem:[#allocation2 + $0x60] sm:$0xff]  }
 0x2a5   : > { %v12810_v45 = vrot.slane %v3634_v48, 3  ;;  %v12812_v63 = vrot.slane %v3637_v39, 4  ;;  %v12822_v4 = vsel %vm2940_vm13, %v3622_v16, %v12773_v23  ;;  %v12827_v48 = vld [vmem:[#allocation2 + $0x58] sm:$0xff]   ;;  %v12830_v39 = vadd.f32 %v2809_v9, %v12743_v51  ;;  %v12838_v3 = vld [vmem:[#allocation2 + $0x68] sm:$0xff]   ;;  %v12840_v13 = vld [vmem:[#allocation2 + $0x70] sm:$0xff]  }
 0x2a6   : > { %8222 = vmatmul.mubr.bf16.gmra.mrb[124].mxu1 %v2992_v42  ;;  %v8111_v42 = vpop.f32.mrb[113].mxu0  ;;  %v5893_v18 = vor.u32 %v12785_v41, %v12783_v59  ;;  %v12858_v51 = vld [vmem:[#allocation2 + $0x88] sm:$0xff]   ;;  %v12872_v9 = vld [vmem:[#allocation2 + $0xa0] sm:$0xff]   ;;  %v12882_v16 = vld [vmem:[#allocation2 + $0xb0] sm:$0xff]   ;;  %v15330_v59 = vshll.u32 %v12787_v24, 16  ;;  %v15332_v27 = vshll.u32 %v12799_v49, 16 }
 0x2a7   : > { %8225 = vmatprep.mubr.msk.bf16.mxu1 %vm14749_vm8, %v14748_v57  ;;  %15318 = vst [vmem:[#allocation23_spill] sm:$0xff] %v12830_v39  ;;  %v12848_v42 = vld [vmem:[#allocation2 + $0x78] sm:$0xff]   ;;  %15320 = vst [vmem:[#allocation39_spill] sm:$0xff] %v12858_v51  ;;  %v12874_v41 = vld [vmem:[#allocation2 + $0xa8] sm:$0xff]   ;;  %v12893_v21 = vpop.f32.mrb[36].mxu1  ;;  %v15333_v40 = vshrl.u32 %v12801_v15, 16 }
 0x2a8   : > { %15323 = vst [vmem:[#allocation66_spill] sm:$0xff] %v12872_v9  ;;  %15324 = vst [vmem:[#allocation64_spill] sm:$0xff] %v12874_v41  ;;  %v8019_v22 = vpop.f32.mrb[37].mxu1  ;;  %v15334_v39 = vshll.u32 %v12801_v15, 16 }
 0x2a9   : > { %15325 = vst [vmem:[#allocation65_spill] sm:$0xff] %v12882_v16  ;;  %v12908_v2 = vpop.f32.mrb[38].mxu1  ;;  %v15329_v22 = vshrl.u32 %v12787_v24, 16  ;;  %v5910_v29 = vrot.slane %v15333_v40, 1  ;;  %v15336_v24 = vshll.u32 %v12816_v37, 16 }
 0x2aa   : > { %v8020_v10 = vpop.f32.mrb[39].mxu1 }
 0x2ab   : > { %8318 = vmatmul.mubr.bf16.gmra.mrb[204].mxu0 %v3605_v0  ;;  %v2812_v0 = vpop.f32.mrb[114].mxu0  ;;  %v5902_v6 = vrot.slane %v15329_v22, 1 }
 0x2ac   : > { %8321 = vmatprep.mubr.msk.bf16.mxu0 %vm14749_vm8, %v14748_v57  ;;  %v12851_v8 = vadd.f32 %v2812_v0, %v12750_v54  ;;  %v8112_v43 = vpop.f32.mrb[115].mxu0  ;;  %v12864_v0 = vld [vmem:[#allocation2 + $0x90] sm:$0xff]   ;;  %v5903_v54 = vrot.slane %v15330_v59, 2  ;;  %v15335_v59 = vshrl.u32 %v12816_v37, 16 }
 0x2ad   : > { %15321 = vst [vmem:[#allocation63_spill] sm:$0xff] %v12864_v0  ;;  %v12866_v43 = vld [vmem:[#allocation2 + $0x98] sm:$0xff]  }
 0x2ae   : > { %15319 = vst [vmem:[#allocation36_spill] sm:$0xff] %v12851_v8  ;;  %15322 = vst [vmem:[#allocation62_spill] sm:$0xff] %v12866_v43  ;;  %8226 = vmatmul.mubr.bf16.gmra.mrb[128].mxu1 %v2996_v47  ;;  %v15327_v47 = vshrl.u32 %v12779_v53, 16  ;;  %v15328_v8 = vshll.u32 %v12779_v53, 16  ;;  %v5911_v53 = vrot.slane %v15334_v39, 2  ;;  %v5904_v7 = vor.u32 %v5903_v54, %v5902_v6 }
 0x2af   : > { %8229 = vmatprep.mubr.msk.bf16.mxu1 %vm14749_vm8, %v14748_v57  ;;  %v5914_v10 = vrot.slane %v15335_v59, 1  ;;  %v15340_v54 = vshll.u32 %v12818_v62, 16 }
 0x2b0   : > { %v5898_v1 = vrot.slane %v15327_v47, 1  ;;  %v5899_v38 = vrot.slane %v15328_v8, 2  ;;  %v5907_v47 = vrot.slane %v15332_v27, 2  ;;  %v2817_v8 = vpop.f32.mrb[116].mxu0  ;;  %v5912_v39 = vor.u32 %v5911_v53, %v5910_v29 }
 0x2b1   : > { %v12933_v27 = vadd.f32 %v2817_v8, %v12781_v36  ;;  %v8115_v40 = vpop.f32.mrb[117].mxu0  ;;  %v5919_v59 = vrot.slane %v15340_v54, 2 }
 0x2b2   : > { %v5900_v22 = vor.u32 %v5899_v38, %v5898_v1  ;;  %v2820_v38 = vpop.f32.mrb[118].mxu0 }
 0x2b3   : > { %8322 = vmatmul.mubr.bf16.gmra.mrb[208].mxu0 %v12791_v26  ;;  %v12904_v26 = vsel %vm5885_vm1, %v5893_v18, %v12701_v25  ;;  %v15331_v18 = vshrl.u32 %v12799_v49, 16  ;;  %v12947_v36 = vadd.f32 %v2820_v38, %v12814_v33 }
 0x2b4   : > { %8325 = vmatprep.mubr.msk.bf16.mxu0 %vm14749_vm8, %v14748_v57  ;;  %15326 = vst [vmem:[#allocation102_spill] sm:$0xff] %v12904_v26  ;;  %v12939_v6 = vsel %vm5885_vm1, %v12701_v25, %v5900_v22  ;;  %v12942_v1 = vsel %vm5885_vm1, %v5900_v22, %v5904_v7  ;;  %v15343_v25 = vshrl.u32 %v12827_v48, 16 }
 0x2b5   : > { %v5906_v26 = vrot.slane %v15331_v18, 1  ;;  %v5915_v18 = vrot.slane %v15336_v24, 2  ;;  %15338 = vst [vmem:[#allocation103_spill] sm:$0xff] %v12939_v6  ;;  %15339 = vst [vmem:[#allocation104_spill] sm:$0xff] %v12942_v1 }
 0x2b6   : > { %8230 = vmatmul.mubr.bf16.gmra.mrb[132].mxu1 %v12797_v60  ;;  %v15337_v60 = vshrl.u32 %v12818_v62, 16 }
 0x2b7   : > { %8233 = vmatprep.mubr.msk.bf16.mxu1 %vm14749_vm8, %v14748_v57  ;;  %v5908_v15 = vor.u32 %v5907_v47, %v5906_v26  ;;  %v5916_v24 = vor.u32 %v5915_v18, %v5914_v10  ;;  %v8116_v26 = vpop.f32.mrb[119].mxu0  ;;  %v5922_v47 = vrot.slane %v15343_v25, 1  ;;  %v15345_v10 = vshll.u32 %v12827_v48, 16 }
 0x2b8   : > { %v5918_v49 = vrot.slane %v15337_v60, 1  ;;  %v15346_v18 = vshrl.u32 %v12836_v5, 16  ;;  %v15348_v60 = vshrl.u32 %v12838_v3, 16  ;;  %v15352_v25 = vshll.u32 %v12840_v13, 16 }
 0x2b9   : > { %v12950_v29 = vsel %vm5885_vm1, %v5904_v7, %v5908_v15  ;;  %v12953_v53 = vsel %vm5885_vm1, %v5908_v15, %v5912_v39  ;;  %v12959_v8 = vsel %vm5885_vm1, %v5912_v39, %v5916_v24  ;;  %v5923_v33 = vrot.slane %v15345_v10, 2 }
 0x2ba   : > { %15341 = vst [vmem:[#allocation105_spill] sm:$0xff] %v12950_v29  ;;  %15342 = vst [vmem:[#allocation106_spill] sm:$0xff] %v12953_v53  ;;  %v5920_v22 = vor.u32 %v5919_v59, %v5918_v49  ;;  %v5926_v40 = vrot.slane %v15346_v18, 1  ;;  %v15347_v7 = vshll.u32 %v12836_v5, 16  ;;  %v5930_v38 = vrot.slane %v15348_v60, 1 }
 0x2bb   : > { %8326 = vmatmul.mubr.bf16.gmra.mrb[212].mxu0 %v12804_v19  ;;  %15344 = vst [vmem:[#allocation107_spill] sm:$0xff] %v12959_v8  ;;  %v15349_v19 = vshll.u32 %v12838_v3, 16  ;;  %v15350_v49 = vshrl.u32 %v12840_v13, 16  ;;  %v5924_v26 = vor.u32 %v5923_v33, %v5922_v47  ;;  %v5935_v10 = vrot.slane %v15352_v25, 2 }
 0x2bc   : > { %8329 = vmatprep.mubr.msk.bf16.mxu0 %vm14749_vm8, %v14748_v57  ;;  %v5927_v15 = vrot.slane %v15347_v7, 2  ;;  %v12976_v59 = vsel %vm5885_vm1, %v5916_v24, %v5920_v22  ;;  %v15353_v18 = vshrl.u32 %v12848_v42, 16  ;;  %v15354_v60 = vshll.u32 %v12848_v42, 16 }
 0x2bd   : > { %v5931_v39 = vrot.slane %v15349_v19, 2  ;;  %v5934_v54 = vrot.slane %v15350_v49, 1  ;;  %15351 = vst [vmem:[#allocation108_spill] sm:$0xff] %v12976_v59  ;;  %v15355_v19 = vshrl.u32 %v12856_v31, 16  ;;  %v12988_v24 = vsel %vm5885_vm1, %v5920_v22, %v5924_v26 }
 0x2be   : > { %v5938_v8 = vrot.slane %v15353_v18, 1  ;;  %v5928_v7 = vor.u32 %v5927_v15, %v5926_v40  ;;  %v5939_v29 = vrot.slane %v15354_v60, 2  ;;  %8234 = vmatmul.mubr.bf16.gmra.mrb[136].mxu1 %v12808_v12  ;;  %15356 = vst [vmem:[#allocation109_spill] sm:$0xff] %v12988_v24  ;;  %v15357_v33 = vshll.u32 %v12856_v31, 16  ;;  %v12996_v40 = vpop.f32.mrb[40].mxu1 }
 0x2bf   : > { %v5932_v53 = vor.u32 %v5931_v39, %v5930_v38  ;;  %v5942_v1 = vrot.slane %v15355_v19, 1  ;;  %v5936_v47 = vor.u32 %v5935_v10, %v5934_v54  ;;  %v15358_v25 = vshrl.u32 %v12858_v51, 16  ;;  %8237 = vmatprep.mubr.msk.bf16.mxu1 %vm14749_vm8, %v14748_v57  ;;  %v8023_v54 = vpop.f32.mrb[41].mxu1 }
 0x2c0   : > { %v5943_v49 = vrot.slane %v15357_v33, 2  ;;  %v12999_v15 = vsel %vm5885_vm1, %v5924_v26, %v5928_v7  ;;  %v5940_v22 = vor.u32 %v5939_v29, %v5938_v8  ;;  %v15361_v38 = vshll.u32 %v12858_v51, 16  ;;  %v13013_v26 = vpop.f32.mrb[42].mxu1 }
 0x2c1   : > { %v5946_v18 = vrot.slane %v15358_v25, 1  ;;  %15359 = vst [vmem:[#allocation110_spill] sm:$0xff] %v12999_v15  ;;  %v13002_v12 = vsel %vm5885_vm1, %v5928_v7, %v5932_v53  ;;  %v13007_v10 = vsel %vm5885_vm1, %v5932_v53, %v5936_v47  ;;  %v15363_v19 = vshrl.u32 %v12864_v0, 16 }
 0x2c2   : > { %15360 = vst [vmem:[#allocation111_spill] sm:$0xff] %v13002_v12  ;;  %v5947_v39 = vrot.slane %v15361_v38, 2  ;;  %15362 = vst [vmem:[#allocation112_spill] sm:$0xff] %v13007_v10  ;;  %v5944_v60 = vor.u32 %v5943_v49, %v5942_v1  ;;  %v15364_v25 = vshll.u32 %v12864_v0, 16  ;;  %v13016_v7 = vsel %vm5885_vm1, %v5936_v47, %v5940_v22  ;;  %v8024_v1 = vpop.f32.mrb[43].mxu1 }
 0x2c3   : > { %v5950_v33 = vrot.slane %v15363_v19, 1  ;;  %15365 = vst [vmem:[#allocation113_spill] sm:$0xff] %v13016_v7  ;;  %v15366_v8 = vshrl.u32 %v12866_v43, 16  ;;  %v15367_v54 = vshll.u32 %v12866_v43, 16  ;;  %8330 = vmatmul.mubr.bf16.gmra.mrb[216].mxu0 %v12822_v4  ;;  %v15370_v47 = vshll.u32 %v12872_v9, 16 }
 0x2c4   : > { %v5951_v24 = vrot.slane %v15364_v25, 2  ;;  %v5948_v29 = vor.u32 %v5947_v39, %v5946_v18  ;;  %v13024_v49 = vsel %vm5885_vm1, %v5940_v22, %v5944_v60  ;;  %v15369_v25 = vshrl.u32 %v12872_v9, 16  ;;  %8333 = vmatprep.mubr.msk.bf16.mxu0 %vm14749_vm8, %v14748_v57  ;;  %v2825_v18 = vpop.f32.mrb[120].mxu0 }
 0x2c5   : > { %v5954_v38 = vrot.slane %v15366_v8, 1  ;;  %v5955_v53 = vrot.slane %v15367_v54, 2  ;;  %15368 = vst [vmem:[#allocation114_spill] sm:$0xff] %v13024_v49  ;;  %v5959_v7 = vrot.slane %v15370_v47, 2  ;;  %v15372_v4 = vshrl.u32 %v12874_v41, 16  ;;  %v8119_v1 = vpop.f32.mrb[121].mxu0 }
 0x2c6   : > { %v5952_v19 = vor.u32 %v5951_v24, %v5950_v33  ;;  %v5958_v10 = vrot.slane %v15369_v25, 1  ;;  %v13033_v39 = vsel %vm5885_vm1, %v5944_v60, %v5948_v29  ;;  %v15373_v22 = vshll.u32 %v12874_v41, 16  ;;  %v9409_v1 = vld [vmem:[#allocation2 + $0x8c] sm:$0xf] }
 0x2c7   : > { %15371 = vst [vmem:[#allocation115_spill] sm:$0xff] %v13033_v39  ;;  %v5956_v8 = vor.u32 %v5955_v53, %v5954_v38  ;;  %v5962_v54 = vrot.slane %v15372_v4, 1  ;;  %v13040_v33 = vadd.f32 %v2825_v18, %v12893_v21  ;;  %v15375_v49 = vshrl.u32 %v12882_v16, 16  ;;  %v2828_v38 = vpop.f32.mrb[122].mxu0  ;;  %v15378_v18 = vld [vmem:[#allocation68_spill] sm:$0xff] }
 0x2c8   : > { %v5963_v24 = vrot.slane %v15373_v22, 2  ;;  %v13043_v25 = vsel %vm5885_vm1, %v5948_v29, %v5952_v19  ;;  %v5960_v47 = vor.u32 %v5959_v7, %v5958_v10  ;;  %v3640_v60 = vor.u32 %v12812_v63, %v12810_v45  ;;  %8238 = vmatmul.mubr.bf16.gmra.mrb[140].mxu1 %v15378_v18  ;;  %v8120_v10 = vpop.f32.mrb[123].mxu0 }
 0x2c9   : > { %15374 = vst [vmem:[#allocation116_spill] sm:$0xff] %v13043_v25  ;;  %v5966_v12 = vrot.slane %v15375_v49, 1  ;;  %v13050_v53 = vsel %vm5885_vm1, %v5952_v19, %v5956_v8  ;;  %v15377_v22 = vshll.u32 %v12882_v16, 16  ;;  %v13056_v29 = vadd.f32 %v2828_v38, %v12908_v2  ;;  %8241 = vmatprep.mubr.msk.bf16.mxu1 %vm14749_vm8, %v14748_v57 }
 0x2ca   : > { %15376 = vst [vmem:[#allocation117_spill] sm:$0xff] %v13050_v53  ;;  %v5964_v4 = vor.u32 %v5963_v24, %v5962_v54  ;;  %v13059_v7 = vsel %vm5885_vm1, %v5956_v8, %v5960_v47  ;;  %v15382_v49 = vshrl.u32 %v12777_v17, 16  ;;  %v3641_v54 = vsel %vm2940_vm13, %v12773_v23, %v3640_v60  ;;  %v9410_v8 = vld [vmem:[#allocation2 + $0x90] sm:$0xf]  ;;  %v15385_v23 = vld [vmem:[#allocation70_spill] sm:$0xff] }
 0x2cb   : > { %v5967_v21 = vrot.slane %v15377_v22, 2  ;;  %15379 = vst [vmem:[#allocation68_spill] sm:$0xff] %v13059_v7  ;;  %v15383_v2 = vshll.u32 %v12777_v17, 16  ;;  %v7191_v38 = vcombine.low %v9409_v1, %v9410_v8  ;;  %8334 = vmatmul.mubr.bf16.gmra.mrb[220].mxu0 %v3641_v54  ;;  %v9411_v8 = vld [vmem:[#allocation2 + $0x94] sm:$0xf] }
 0x2cc   : > { %v13064_v45 = vsel %vm5885_vm1, %v5960_v47, %v5964_v4  ;;  %v3645_v19 = vrot.slane %v15382_v49, 3  ;;  %8337 = vmatprep.mubr.msk.bf16.mxu0 %vm14749_vm8, %v14748_v57  ;;  %v2833_v54 = vpop.f32.mrb[124].mxu0 }
 0x2cd   : > { %15380 = vst [vmem:[#allocation118_spill] sm:$0xff] %v13064_v45  ;;  %v13066_v63 = vor.u32 %v5967_v21, %v5966_v12  ;;  %v3648_v24 = vrot.slane %v15383_v2, 4  ;;  %v2380_v12 = vpop.f32.mrb[44].mxu1  ;;  %v3652_v21 = vshrl.u32 %v7191_v38, 16  ;;  %v3655_v18 = vshll.u32 %v7191_v38, 16 }
 0x2ce   : > { %v8027_v10 = vpop.f32.mrb[45].mxu1 }
 0x2cf   : > { %15381 = vst [vmem:[#allocation119_spill] sm:$0xff] %v13066_v63  ;;  %v13076_v22 = vsel %vm5885_vm1, %v5964_v4, %v13066_v63  ;;  %v3649_v47 = vor.u32 %v3648_v24, %v3645_v19  ;;  %v2383_v17 = vpop.f32.mrb[46].mxu1  ;;  %v3654_v4 = vrot.slane %v3652_v21, 3  ;;  %v3657_v1 = vrot.slane %v3655_v18, 4  ;;  %v9412_v63 = vld [vmem:[#allocation2 + $0x98] sm:$0xf] }
 0x2d0   : > { %15384 = vst [vmem:[#allocation120_spill] sm:$0xff] %v13076_v22  ;;  %8242 = vmatmul.mubr.bf16.gmra.mrb[144].mxu1 %v15385_v23  ;;  %v8028_v49 = vpop.f32.mrb[47].mxu1  ;;  %v7192_v22 = vcombine.low %v9411_v8, %v9412_v63  ;;  %v13085_v19 = vadd.f32 %v2833_v54, %v12996_v40  ;;  %v8123_v24 = vpop.f32.mrb[125].mxu0  ;;  %v9413_v63 = vld [vmem:[#allocation2 + $0x9c] sm:$0xf] }
 0x2d1   : > { %8245 = vmatprep.mubr.msk.bf16.mxu1 %vm14749_vm8, %v14748_v57  ;;  %v3650_v2 = vsel %vm2940_vm13, %v3640_v60, %v3649_v47  ;;  %v2836_v38 = vpop.f32.mrb[126].mxu0  ;;  %v3658_v60 = vor.u32 %v3657_v1, %v3654_v4  ;;  %v15386_v49 = vld [vmem:[#allocation72_spill] sm:$0xff]  ;;  %v9414_v40 = vld [vmem:[#allocation2 + $0xa0] sm:$0xf] }
 0x2d2   : > { %v13090_v10 = vadd.f32 %v2836_v38, %v13013_v26  ;;  %v8124_v23 = vpop.f32.mrb[127].mxu0  ;;  %v3661_v21 = vshrl.u32 %v7192_v22, 16  ;;  %v3664_v18 = vshll.u32 %v7192_v22, 16 }
 0x2d3   : > { %8338 = vmatmul.mubr.bf16.gmra.mrb[224].mxu0 %v3650_v2  ;;  %v7193_v2 = vcombine.low %v9413_v63, %v9414_v40  ;;  %v3659_v54 = vsel %vm2940_vm13, %v3649_v47, %v3658_v60 }
 0x2d4   : > { %8341 = vmatprep.mubr.msk.bf16.mxu0 %vm14749_vm8, %v14748_v57  ;;  %v3663_v8 = vrot.slane %v3661_v21, 3  ;;  %v3666_v24 = vrot.slane %v3664_v18, 4 }
 0x2d5   : > { %v3670_v26 = vshrl.u32 %v7193_v2, 16  ;;  %v3673_v1 = vshll.u32 %v7193_v2, 16 }
 0x2d6   : > { %v3667_v4 = vor.u32 %v3666_v24, %v3663_v8  ;;  %v9415_v24 = vld [vmem:[#allocation2 + $0xa4] sm:$0xf] }
 0x2d7   : > { %v3672_v21 = vrot.slane %v3670_v26, 3  ;;  %v3675_v2 = vrot.slane %v3673_v1, 4 }
 0x2d8   : > { %8246 = vmatmul.mubr.bf16.gmra.mrb[148].mxu1 %v15386_v49  ;;  %v3668_v63 = vsel %vm2940_vm13, %v3658_v60, %v3667_v4 }
 0x2d9   : > { %8249 = vmatprep.mubr.msk.bf16.mxu1 %vm14749_vm8, %v14748_v57 }
 0x2db   : > { %8342 = vmatmul.mubr.bf16.gmra.mrb[228].mxu0 %v3659_v54  ;;  %v2841_v22 = vpop.f32.mrb[128].mxu0 }
 0x2dc   : > { %8345 = vmatprep.mubr.msk.bf16.mxu0 %vm14749_vm8, %v14748_v57  ;;  %v2388_v38 = vpop.f32.mrb[48].mxu1  ;;  %v13099_v23 = vadd.f32 %v2841_v22, %v2380_v12  ;;  %v8127_v49 = vpop.f32.mrb[129].mxu0 }
 0x2dd   : > { %v8031_v45 = vpop.f32.mrb[49].mxu1  ;;  %v2844_v47 = vpop.f32.mrb[130].mxu0  ;;  %v13108_v49 = vld [vmem:[#allocation2 + $0xb0] sm:$0x3] }
 0x2de   : > { %v2391_v18 = vpop.f32.mrb[50].mxu1  ;;  %v13104_v40 = vadd.f32 %v2844_v47, %v2383_v17  ;;  %v8128_v54 = vpop.f32.mrb[131].mxu0  ;;  %v3676_v45 = vor.u32 %v3675_v2, %v3672_v21  ;;  %v9417_v47 = vld [vmem:[#allocation2 + $0xac] sm:$0xf] }
 0x2df   : > { %v8032_v8 = vpop.f32.mrb[51].mxu1 }
 0x2e0   : > { %8250 = vmatmul.mubr.bf16.gmra.mrb[152].mxu1 %v12431_v14  ;;  %v9416_v14 = vld [vmem:[#allocation2 + $0xa8] sm:$0xf]  ;;  %v3677_v54 = vsel %vm2940_vm13, %v3667_v4, %v3676_v45 }
 0x2e1   : > { %8253 = vmatprep.mubr.msk.bf16.mxu1 %vm14749_vm8, %v14748_v57  ;;  %v7194_v7 = vcombine.low %v9415_v24, %v9416_v14 }
 0x2e3   : > { %8346 = vmatmul.mubr.bf16.gmra.mrb[232].mxu0 %v3668_v63  ;;  %v3679_v12 = vshrl.u32 %v7194_v7, 16  ;;  %v3682_v22 = vshll.u32 %v7194_v7, 16  ;;  %v7195_v63 = vcombine.low %v9417_v47, %v13108_v49 }
 0x2e4   : > { %8349 = vmatprep.mubr.msk.bf16.mxu0 %vm14749_vm8, %v14748_v57  ;;  %v2396_v60 = vpop.f32.mrb[52].mxu1 }
 0x2e5   : > { %v8035_v17 = vpop.f32.mrb[53].mxu1  ;;  %v3681_v7 = vrot.slane %v3679_v12, 3  ;;  %v3684_v2 = vrot.slane %v3682_v22, 4  ;;  %v3688_v25 = vshrl.u32 %v7195_v63, 16  ;;  %v3691_v39 = vshll.u32 %v7195_v63, 16 }
 0x2e6   : > { %v2399_v1 = vpop.f32.mrb[54].mxu1 }
 0x2e7   : > { %v2849_v26 = vpop.f32.mrb[132].mxu0  ;;  %v8036_v24 = vpop.f32.mrb[55].mxu1  ;;  %v3685_v53 = vor.u32 %v3684_v2, %v3681_v7  ;;  %v3690_v12 = vrot.slane %v3688_v25, 3  ;;  %v3693_v22 = vrot.slane %v3691_v39, 4 }
 0x2e8   : > { %8254 = vmatmul.mubr.bf16.gmra.mrb[156].mxu1 %v12465_v58  ;;  %v13115_v8 = vadd.f32 %v2849_v26, %v2388_v38  ;;  %v8131_v21 = vpop.f32.mrb[133].mxu0 }
 0x2e9   : > { %8257 = vmatprep.mubr.msk.bf16.mxu1 %vm14749_vm8, %v14748_v57  ;;  %v2852_v58 = vpop.f32.mrb[134].mxu0  ;;  %v3686_v4 = vsel %vm2940_vm13, %v3676_v45, %v3685_v53  ;;  %v3694_v21 = vor.u32 %v3693_v22, %v3690_v12 }
 0x2ea   : > { %v13117_v14 = vadd.f32 %v2852_v58, %v2391_v18  ;;  %v8132_v17 = vpop.f32.mrb[135].mxu0  ;;  %v9418_v58 = vld [vmem:[#allocation2 + $0x10] sm:$0xf] }
 0x2eb   : > { %8350 = vmatmul.mubr.bf16.gmra.mrb[236].mxu0 %v3677_v54  ;;  %v3695_v45 = vsel %vm2940_vm13, %v3685_v53, %v3694_v21  ;;  %v9419_v17 = vld [vmem:[#allocation2 + $0x14] sm:$0xf] }
 0x2ec   : > { %8353 = vmatprep.mubr.msk.bf16.mxu0 %vm14749_vm8, %v14748_v57 }
 0x2f0   : > { %8258 = vmatmul.mubr.bf16.gmra.mrb[160].mxu1 %v12521_v28 }
 0x2f1   : > { %8261 = vmatprep.mubr.msk.bf16.mxu1 %vm14749_vm8, %v14748_v57  ;;  %v2404_v38 = vpop.f32.mrb[56].mxu1 }
 0x2f2   : > { %v8039_v18 = vpop.f32.mrb[57].mxu1 }
 0x2f3   : > { %8354 = vmatmul.mubr.bf16.gmra.mrb[240].mxu0 %v3686_v4  ;;  %v2407_v26 = vpop.f32.mrb[58].mxu1  ;;  %v9029_v4 = vld [vmem:[%s9617_s6 + $0x180] sm:$0xff]  }
 0x2f4   : > { %8357 = vmatprep.mubr.msk.bf16.mxu0 %vm14749_vm8, %v14748_v57  ;;  %v8040_v47 = vpop.f32.mrb[59].mxu1 }
 0x2f6   : > { %v2857_v54 = vpop.f32.mrb[136].mxu0 }
 0x2f7   : > { %v13127_v63 = vadd.f32 %v2857_v54, %v2396_v60  ;;  %v8135_v28 = vpop.f32.mrb[137].mxu0  ;;  %v9031_v54 = vld [vmem:[%s9617_s6 + $0x188] sm:$0xff]  }
 0x2f8   : > { %8262 = vmatmul.mubr.bf16.gmra.mrb[164].mxu1 %v12506_v35  ;;  %v2860_v7 = vpop.f32.mrb[138].mxu0  ;;  %v7220_v35 = vcombine.low %v9418_v58, %v9419_v17  ;;  %v9032_v58 = vld [vmem:[%s9617_s6 + $0x190] sm:$0xff]  }
 0x2f9   : > { %8381 = vmatprep.mubr.msk.bf16.mxu1 %vm14749_vm8, %v14748_v57  ;;  %v13132_v39 = vadd.f32 %v2860_v7, %v2399_v1  ;;  %v8136_v25 = vpop.f32.mrb[139].mxu0  ;;  %v2412_v2 = vpop.f32.mrb[60].mxu1 }
 0x2fa   : > { %v8043_v24 = vpop.f32.mrb[61].mxu1  ;;  %v4379_v47 = vshll.u32 %v7220_v35, 16 }
 0x2fb   : > { %8358 = vmatmul.mubr.bf16.gmra.mrb[244].mxu0 %v3695_v45  ;;  %v2415_v60 = vpop.f32.mrb[62].mxu1 }
 0x2fc   : > { %8361 = vmatprep.mubr.msk.bf16.mxu0 %vm14749_vm8, %v14748_v57  ;;  %v8044_v12 = vpop.f32.mrb[63].mxu1 }
 0x2fe   : > { %v2865_v22 = vpop.f32.mrb[140].mxu0 }
 0x2ff   : > { %v13138_v18 = vadd.f32 %v2865_v22, %v2404_v38  ;;  %v8139_v1 = vpop.f32.mrb[141].mxu0  ;;  %v4381_v38 = vrot.slane %v4379_v47, 1 }
 0x300   : > { %8382 = vmatmul.mubr.bf16.vlgmr.msra.gmra.mrb[168].mxu1 %v7220_v35  ;;  %v2868_v53 = vpop.f32.mrb[142].mxu0 }
 0x301   : > { %8566 = vmatpush3.bf16.msra.mxu1 %v9029_v4  ;;  %8385 = vmatprep.mubr.msk.bf16.mxu1 %vm14749_vm8, %v14748_v57  ;;  %v13143_v28 = vadd.f32 %v2868_v53, %v2407_v26  ;;  %v8140_v7 = vpop.f32.mrb[143].mxu0  ;;  %v2420_v25 = vpop.f32.mrb[64].mxu1  ;;  %v4377_v26 = vshrl.u32 %v7220_v35, 16  ;;  %v9033_v53 = vld [vmem:[%s9617_s6 + $0x198] sm:$0xff]  }
 0x302   : > { %8567 = vmatprep.subr.bf16.mxu1 %v14748_v57  ;;  %v8047_v45 = vpop.f32.mrb[65].mxu1 }
 0x303   : > { %8362 = vmatmul.mubr.bf16.gmra.mrb[248].mxu0 %v3694_v21  ;;  %v2423_v24 = vpop.f32.mrb[66].mxu1  ;;  %v4382_v1 = vor.u32 %v4381_v38, %v4377_v26  ;;  %v9034_v45 = vld [vmem:[%s9617_s6 + $0x1a0] sm:$0xff]  }
 0x304   : > { %8481 = vmatprep.mubr.msk.bf16.mxu0 %vm14749_vm8, %v14748_v57  ;;  %v8048_v17 = vpop.f32.mrb[67].mxu1 }
 0x305   : > { %8568 = vmatpush3.bf16.msra.mxu1 %v9031_v54 }
 0x306   : > { %8569 = vmatprep.subr.bf16.mxu1 %v14748_v57  ;;  %v2873_v4 = vpop.f32.mrb[144].mxu0 }
 0x307   : > { %v13150_v12 = vadd.f32 %v2873_v4, %v2412_v2  ;;  %v8143_v22 = vpop.f32.mrb[145].mxu0  ;;  %v4387_v2 = vsel %vm4375_vm9, %v4382_v1, %v12514_v11  ;;  %v9035_v4 = vld [vmem:[%s9617_s6 + $0x1a8] sm:$0xff]  }
 0x308   : > { %8386 = vmatmul.mubr.bf16.gmra.mrb[172].mxu1 %v12137_v34  ;;  %v2876_v21 = vpop.f32.mrb[146].mxu0  ;;  %v15387_v1 = vld [vmem:[#allocation80_spill] sm:$0xff] }
 0x309   : > { %8389 = vmatprep.mubr.msk.bf16.mxu1 %vm14749_vm8, %v14748_v57  ;;  %8570 = vmatpush3.bf16.msra.mxu1 %v9032_v58  ;;  %v13156_v47 = vadd.f32 %v2876_v21, %v2415_v60  ;;  %v8144_v54 = vpop.f32.mrb[147].mxu0  ;;  %v2428_v35 = vpop.f32.mrb[68].mxu1 }
 0x30a   : > { %8571 = vmatprep.subr.bf16.mxu1 %v14748_v57  ;;  %v8051_v34 = vpop.f32.mrb[69].mxu1  ;;  %v9036_v54 = vld [vmem:[%s9617_s6 + $0x1b0] sm:$0xff]  }
 0x30b   : > { %8482 = vmatmul.mubr.bf16.vlgmr.msra.gmra.mrb[252].mxu0 %v4387_v2  ;;  %v2431_v7 = vpop.f32.mrb[70].mxu1 }
 0x30c   : > { %8485 = vmatprep.mubr.msk.bf16.mxu0 %vm14749_vm8, %v14748_v57  ;;  %v8052_v38 = vpop.f32.mrb[71].mxu1 }
 0x30d   : > { %8572 = vmatpush3.bf16.msra.mxu1 %v9033_v53  ;;  %v9037_v53 = vld [vmem:[%s9617_s6 + $0x1c0] sm:$0xff]  }
 0x30e   : > { %8573 = vmatprep.subr.bf16.mxu1 %v14748_v57  ;;  %v2881_v60 = vpop.f32.mrb[148].mxu0  ;;  %8666 = vmatpush3.bf16.msra.mxu0 %v9037_v53 }
 0x30f   : > { %v13165_v58 = vadd.f32 %v2881_v60, %v2420_v25  ;;  %v8147_v17 = vpop.f32.mrb[149].mxu0  ;;  %8667 = vmatprep.subr.bf16.mxu0 %v14748_v57 }
 0x310   : > { %8390 = vmatmul.mubr.bf16.gmra.mrb[176].mxu1 %v12147_v52  ;;  %v2884_v11 = vpop.f32.mrb[150].mxu0 }
 0x311   : > { %8393 = vmatprep.mubr.msk.bf16.mxu1 %vm14749_vm8, %v14748_v57  ;;  %8574 = vmatpush3.bf16.msra.mxu1 %v9034_v45  ;;  %v13171_v26 = vadd.f32 %v2884_v11, %v2423_v24  ;;  %v8148_v22 = vpop.f32.mrb[151].mxu0  ;;  %v2436_v21 = vpop.f32.mrb[72].mxu1  ;;  %v9038_v11 = vld [vmem:[%s9617_s6 + $0x1c8] sm:$0xff]  }
 0x312   : > { %8575 = vmatprep.subr.bf16.mxu1 %v14748_v57  ;;  %v8055_v25 = vpop.f32.mrb[73].mxu1  ;;  %8668 = vmatpush3.bf16.msra.mxu0 %v9038_v11 }
 0x313   : > { %8486 = vmatmul.mubr.bf16.gmra.mrb[0].mxu0 %v15387_v1  ;;  %v2439_v52 = vpop.f32.mrb[74].mxu1  ;;  %v9040_v1 = vld [vmem:[%s9617_s6 + $0x1d0] sm:$0xff]   ;;  %8669 = vmatprep.subr.bf16.mxu0 %v14748_v57 }
 0x314   : > { %8489 = vmatprep.mubr.msk.bf16.mxu0 %vm14749_vm8, %v14748_v57  ;;  %v8056_v2 = vpop.f32.mrb[75].mxu1 }
 0x315   : > { %8576 = vmatpush3.bf16.msra.mxu1 %v9035_v4  ;;  %v9039_v4 = vld [vmem:[%s9617_s6 + $0x1b8] sm:$0xff]  }
 0x316   : > { %8577 = vmatprep.subr.bf16.mxu1 %v14748_v57  ;;  %v2889_v24 = vpop.f32.mrb[152].mxu0  ;;  %8670 = vmatpush3.bf16.msra.mxu0 %v9040_v1 }
 0x317   : > { %v13181_v34 = vadd.f32 %v2889_v24, %v2428_v35  ;;  %v8151_v45 = vpop.f32.mrb[153].mxu0  ;;  %8671 = vmatprep.subr.bf16.mxu0 %v14748_v57 }
 0x318   : > { %8394 = vmatmul.mubr.bf16.gmra.mrb[180].mxu1 %v12169_v56  ;;  %v2892_v38 = vpop.f32.mrb[154].mxu0  ;;  %v9041_v45 = vld [vmem:[%s9617_s6 + $0x1d8] sm:$0xff]  }
 0x319   : > { %8397 = vmatprep.mubr.msk.bf16.mxu1 %vm14749_vm8, %v14748_v57  ;;  %8578 = vmatpush3.bf16.msra.mxu1 %v9036_v54  ;;  %v13186_v60 = vadd.f32 %v2892_v38, %v2431_v7  ;;  %v8152_v17 = vpop.f32.mrb[155].mxu0  ;;  %v2444_v22 = vpop.f32.mrb[76].mxu1 }
 0x31a   : > { %8579 = vmatprep.subr.bf16.mxu1 %v14748_v57  ;;  %v8059_v35 = vpop.f32.mrb[77].mxu1  ;;  %8672 = vmatpush3.bf16.msra.mxu0 %v9041_v45  ;;  %v9043_v17 = vld [vmem:[%s9617_s6 + $0x1e0] sm:$0xff]   ;;  %v9046_v45 = vld [vmem:[%s9617_s6 + $0x1f0] sm:$0xff]  }
 0x31b   : > { %8490 = vmatmul.mubr.bf16.gmra.mrb[4].mxu0 %v12558_v20  ;;  %v2447_v56 = vpop.f32.mrb[78].mxu1  ;;  %8673 = vmatprep.subr.bf16.mxu0 %v14748_v57 }
 0x31c   : > { %8493 = vmatprep.mubr.msk.bf16.mxu0 %vm14749_vm8, %v14748_v57  ;;  %v8060_v25 = vpop.f32.mrb[79].mxu1 }
 0x31d   : > { %8580 = vmatpush3.bf16.msra.mxu1 %v9039_v4 }
 0x31e   : > { %v2897_v7 = vpop.f32.mrb[156].mxu0  ;;  %8765 = vmatprep.subr.bf16.mxu1 %v14748_v57  ;;  %8674 = vmatpush3.bf16.msra.mxu0 %v9043_v17 }
 0x31f   : > { %v13197_v53 = vadd.f32 %v2897_v7, %v2436_v21  ;;  %v8155_v54 = vpop.f32.mrb[157].mxu0  ;;  %8675 = vmatprep.subr.bf16.mxu0 %v14748_v57  ;;  %v9045_v7 = vld [vmem:[%s9617_s6 + $0x1e8] sm:$0xff]  }
 0x320   : > { %8398 = vmatmul.mubr.bf16.gmra.mrb[184].mxu1 %v12190_v32  ;;  %v2900_v20 = vpop.f32.mrb[158].mxu0 }
 0x321   : > { %8401 = vmatprep.mubr.msk.bf16.mxu1 %vm14749_vm8, %v14748_v57  ;;  %v13202_v2 = vadd.f32 %v2900_v20, %v2439_v52  ;;  %v8156_v24 = vpop.f32.mrb[159].mxu0  ;;  %v2452_v38 = vpop.f32.mrb[80].mxu1  ;;  %v15388_v20 = vld [vmem:[#allocation73_spill] sm:$0xff] }
 0x322   : > { %v8063_v21 = vpop.f32.mrb[81].mxu1  ;;  %8676 = vmatpush3.bf16.msra.mxu0 %v9045_v7 }
 0x323   : > { %8494 = vmatmul.mubr.bf16.gmra.mrb[8].mxu0 %v12568_v55  ;;  %v2455_v32 = vpop.f32.mrb[82].mxu1  ;;  %8677 = vmatprep.subr.bf16.mxu0 %v14748_v57 }
 0x324   : > { %8497 = vmatprep.mubr.msk.bf16.mxu0 %vm14749_vm8, %v14748_v57  ;;  %v8064_v11 = vpop.f32.mrb[83].mxu1 }
 0x326   : > { %v2905_v52 = vpop.f32.mrb[160].mxu0  ;;  %8678 = vmatpush3.bf16.msra.mxu0 %v9046_v45 }
 0x327   : > { %v13211_v4 = vadd.f32 %v2905_v52, %v2444_v22  ;;  %v8159_v35 = vpop.f32.mrb[161].mxu0  ;;  %8679 = vmatprep.subr.bf16.mxu0 %v14748_v57 }
 0x328   : > { %8402 = vmatmul.mubr.bf16.gmra.mrb[188].mxu1 %v12203_v61  ;;  %v2908_v1 = vpop.f32.mrb[162].mxu0 }
 0x329   : > { %8405 = vmatprep.mubr.msk.bf16.mxu1 %vm14749_vm8, %v14748_v57  ;;  %v13216_v55 = vadd.f32 %v2908_v1, %v2447_v56  ;;  %v8160_v25 = vpop.f32.mrb[163].mxu0  ;;  %v3137_v54 = vpop.f32.mrb[84].mxu1  ;;  %v15389_v56 = vld [vmem:[#allocation75_spill] sm:$0xff]  ;;  %v9051_v1 = vld [vmem:[%s9617_s6 + $0x1f8] sm:$0xff]  }
 0x32a   : > { %v8183_v22 = vpop.f32.mrb[85].mxu1  ;;  %v3303_v24 = vadd.f32 %v3137_v54, %v15388_v20  ;;  %v15390_v54 = vld [vmem:[#allocation78_spill] sm:$0xff]  ;;  %8680 = vmatpush3.bf16.msra.mxu0 %v9051_v1  ;;  %v15391_v20 = vld [vmem:[#allocation79_spill] sm:$0xff] }
 0x32b   : > { %8498 = vmatmul.mubr.bf16.gmra.mrb[12].mxu0 %v12571_v44  ;;  %v3140_v61 = vpop.f32.mrb[86].mxu1 }
 0x32c   : > { %8501 = vmatprep.mubr.msk.bf16.mxu0 %vm14749_vm8, %v14748_v57  ;;  %v8184_v21 = vpop.f32.mrb[87].mxu1  ;;  %v3304_v32 = vadd.f32 %v3140_v61, %v15389_v56 }
 0x32e   : > { %v2913_v17 = vpop.f32.mrb[164].mxu0 }
 0x32f   : > { %v13227_v11 = vadd.f32 %v2913_v17, %v2452_v38  ;;  %v8163_v52 = vpop.f32.mrb[165].mxu0 }
 0x330   : > { %8406 = vmatmul.mubr.bf16.gmra.mrb[192].mxu1 %v12209_v50  ;;  %v2916_v44 = vpop.f32.mrb[166].mxu0 }
 0x331   : > { %8409 = vmatprep.mubr.msk.bf16.mxu1 %vm14749_vm8, %v14748_v57  ;;  %v8164_v35 = vpop.f32.mrb[167].mxu0  ;;  %v3145_v25 = vpop.f32.mrb[88].mxu1 }
 0x332   : > { %v8187_v7 = vpop.f32.mrb[89].mxu1  ;;  %v3305_v22 = vadd.f32 %v3145_v25, %v15390_v54  ;;  %v15392_v35 = vld [vmem:[#allocation83_spill] sm:$0xff]  ;;  %v15393_v25 = vld [vmem:[#allocation81_spill] sm:$0xff] }
 0x333   : > { %8502 = vmatmul.mubr.bf16.gmra.mrb[16].mxu0 %v12574_v30  ;;  %v3148_v38 = vpop.f32.mrb[90].mxu1 }
 0x334   : > { %8505 = vmatprep.mubr.msk.bf16.mxu0 %vm14749_vm8, %v14748_v57  ;;  %v8188_v50 = vpop.f32.mrb[91].mxu1  ;;  %v3306_v61 = vadd.f32 %v3148_v38, %v15391_v20  ;;  %v15394_v38 = vld [vmem:[#allocation82_spill] sm:$0xff] }
 0x336   : > { %v3799_v21 = vpop.f32.mrb[168].mxu0 }
 0x337   : > { %v13239_v45 = vadd.f32 %v3799_v21, %v3303_v24  ;;  %v8283_v56 = vpop.f32.mrb[169].mxu0 }
 0x338   : > { %8410 = vmatmul.mubr.bf16.gmra.mrb[196].mxu1 %v12226_v46  ;;  %v3802_v17 = vpop.f32.mrb[170].mxu0 }
 0x339   : > { %8413 = vmatprep.mubr.msk.bf16.mxu1 %vm14749_vm8, %v14748_v57  ;;  %v13244_v30 = vadd.f32 %v3802_v17, %v3304_v32  ;;  %v8284_v52 = vpop.f32.mrb[171].mxu0  ;;  %v3153_v44 = vpop.f32.mrb[92].mxu1  ;;  %v15395_v32 = vld [vmem:[#allocation49_spill] sm:$0xff] }
 0x33a   : > { %v8191_v1 = vpop.f32.mrb[93].mxu1  ;;  %v3307_v7 = vadd.f32 %v3153_v44, %v15393_v25  ;;  %v15397_v25 = vld [vmem:[#allocation88_spill] sm:$0xff] }
 0x33b   : > { %8506 = vmatmul.mubr.bf16.gmra.mrb[20].mxu0 %v15392_v35  ;;  %v3156_v24 = vpop.f32.mrb[94].mxu1  ;;  %v15396_v35 = vld [vmem:[#allocation84_spill] sm:$0xff] }
 0x33c   : > { %8509 = vmatprep.mubr.msk.bf16.mxu0 %vm14749_vm8, %v14748_v57  ;;  %v8192_v54 = vpop.f32.mrb[95].mxu1  ;;  %v3308_v46 = vadd.f32 %v3156_v24, %v15394_v38  ;;  %v15398_v38 = vld [vmem:[#allocation94_spill] sm:$0xff] }
 0x33e   : > { %v3807_v50 = vpop.f32.mrb[172].mxu0 }
 0x33f   : > { %v13251_v20 = vadd.f32 %v3807_v50, %v3305_v22  ;;  %v8287_v21 = vpop.f32.mrb[173].mxu0 }
 0x340   : > { %8414 = vmatmul.mubr.bf16.gmra.mrb[200].mxu1 %v15395_v32  ;;  %v3810_v56 = vpop.f32.mrb[174].mxu0 }
 0x341   : > { %8417 = vmatprep.mubr.msk.bf16.mxu1 %vm14749_vm8, %v14748_v57  ;;  %v13256_v17 = vadd.f32 %v3810_v56, %v3306_v61  ;;  %v8288_v52 = vpop.f32.mrb[175].mxu0  ;;  %v3161_v44 = vpop.f32.mrb[96].mxu1  ;;  %v15399_v61 = vld [vmem:[#allocation52_spill] sm:$0xff] }
 0x342   : > { %v8195_v1 = vpop.f32.mrb[97].mxu1  ;;  %v3309_v54 = vadd.f32 %v3161_v44, %v15397_v25 }
 0x343   : > { %8510 = vmatmul.mubr.bf16.gmra.mrb[24].mxu0 %v15396_v35  ;;  %v3164_v22 = vpop.f32.mrb[98].mxu1  ;;  %v15400_v1 = vld [vmem:[#allocation85_spill] sm:$0xff] }
 0x344   : > { %8513 = vmatprep.mubr.msk.bf16.mxu0 %vm14749_vm8, %v14748_v57  ;;  %v8196_v24 = vpop.f32.mrb[99].mxu1  ;;  %v3310_v50 = vadd.f32 %v3164_v22, %v15398_v38  ;;  %v15402_v22 = vld [vmem:[#allocation100_spill] sm:$0xff] }
 0x345   : > { %v15401_v24 = vld [vmem:[#allocation98_spill] sm:$0xff] }
 0x346   : > { %v3815_v21 = vpop.f32.mrb[176].mxu0 }
 0x347   : > { %v13263_v32 = vadd.f32 %v3815_v21, %v3307_v7  ;;  %v8291_v15 = vpop.f32.mrb[177].mxu0 }
 0x348   : > { %8418 = vmatmul.mubr.bf16.gmra.mrb[204].mxu1 %v15399_v61  ;;  %v3818_v56 = vpop.f32.mrb[178].mxu0 }
 0x349   : > { %8421 = vmatprep.mubr.msk.bf16.mxu1 %vm14749_vm8, %v14748_v57  ;;  %v13268_v52 = vadd.f32 %v3818_v56, %v3308_v46  ;;  %v8292_v44 = vpop.f32.mrb[179].mxu0  ;;  %v3169_v35 = vpop.f32.mrb[100].mxu1  ;;  %v15403_v46 = vld [vmem:[#allocation54_spill] sm:$0xff] }
 0x34a   : > { %v8199_v25 = vpop.f32.mrb[101].mxu1  ;;  %v3311_v59 = vadd.f32 %v3169_v35, %v15401_v24 }
 0x34b   : > { %8514 = vmatmul.mubr.bf16.gmra.mrb[28].mxu0 %v15400_v1  ;;  %v3172_v7 = vpop.f32.mrb[102].mxu1  ;;  %v15404_v25 = vld [vmem:[#allocation86_spill] sm:$0xff] }
 0x34c   : > { %8517 = vmatprep.mubr.msk.bf16.mxu0 %vm14749_vm8, %v14748_v57  ;;  %v8200_v15 = vpop.f32.mrb[103].mxu1  ;;  %v3312_v38 = vadd.f32 %v3172_v7, %v15402_v22  ;;  %v15406_v7 = vld [vmem:[#allocation51_spill] sm:$0xff] }
 0x34d   : > { %v15405_v15 = vld [vmem:[#allocation16_spill] sm:$0xff] }
 0x34e   : > { %v3823_v21 = vpop.f32.mrb[180].mxu0 }
 0x34f   : > { %v13275_v61 = vadd.f32 %v3823_v21, %v3309_v54  ;;  %v8295_v6 = vpop.f32.mrb[181].mxu0 }
 0x350   : > { %8422 = vmatmul.mubr.bf16.gmra.mrb[208].mxu1 %v15403_v46  ;;  %v3826_v56 = vpop.f32.mrb[182].mxu0 }
 0x351   : > { %8425 = vmatprep.mubr.msk.bf16.mxu1 %vm14749_vm8, %v14748_v57  ;;  %v13280_v44 = vadd.f32 %v3826_v56, %v3310_v50  ;;  %v8296_v35 = vpop.f32.mrb[183].mxu0  ;;  %v3177_v1 = vpop.f32.mrb[104].mxu1  ;;  %v15407_v50 = vld [vmem:[#allocation59_spill] sm:$0xff] }
 0x352   : > { %v8203_v24 = vpop.f32.mrb[105].mxu1  ;;  %v3313_v16 = vadd.f32 %v3177_v1, %v15405_v15 }
 0x353   : > { %8518 = vmatmul.mubr.bf16.gmra.mrb[32].mxu0 %v15404_v25  ;;  %v3180_v54 = vpop.f32.mrb[106].mxu1  ;;  %v15408_v24 = vld [vmem:[#allocation89_spill] sm:$0xff] }
 0x354   : > { %8521 = vmatprep.mubr.msk.bf16.mxu0 %vm14749_vm8, %v14748_v57  ;;  %v8204_v6 = vpop.f32.mrb[107].mxu1  ;;  %v3314_v22 = vadd.f32 %v3180_v54, %v15406_v7  ;;  %v15410_v54 = vld [vmem:[#allocation53_spill] sm:$0xff] }
 0x355   : > { %v15409_v6 = vld [vmem:[#allocation55_spill] sm:$0xff] }
 0x356   : > { %v3831_v21 = vpop.f32.mrb[184].mxu0 }
 0x357   : > { %v13287_v46 = vadd.f32 %v3831_v21, %v3311_v59  ;;  %v8299_v41 = vpop.f32.mrb[185].mxu0 }
 0x358   : > { %8426 = vmatmul.mubr.bf16.gmra.mrb[212].mxu1 %v15407_v50  ;;  %v3834_v56 = vpop.f32.mrb[186].mxu0 }
 0x359   : > { %8429 = vmatprep.mubr.msk.bf16.mxu1 %vm14749_vm8, %v14748_v57  ;;  %v13292_v35 = vadd.f32 %v3834_v56, %v3312_v38  ;;  %v8300_v1 = vpop.f32.mrb[187].mxu0  ;;  %v3185_v25 = vpop.f32.mrb[108].mxu1  ;;  %v15411_v38 = vld [vmem:[#allocation60_spill] sm:$0xff] }
 0x35a   : > { %v8207_v15 = vpop.f32.mrb[109].mxu1  ;;  %v3315_v9 = vadd.f32 %v3185_v25, %v15409_v6 }
 0x35b   : > { %8522 = vmatmul.mubr.bf16.gmra.mrb[36].mxu0 %v15408_v24  ;;  %v3188_v59 = vpop.f32.mrb[110].mxu1  ;;  %v15412_v15 = vld [vmem:[#allocation90_spill] sm:$0xff] }
 0x35c   : > { %8525 = vmatprep.mubr.msk.bf16.mxu0 %vm14749_vm8, %v14748_v57  ;;  %v8208_v41 = vpop.f32.mrb[111].mxu1  ;;  %v3316_v7 = vadd.f32 %v3188_v59, %v15410_v54  ;;  %v15414_v59 = vld [vmem:[#allocation36_spill] sm:$0xff] }
 0x35d   : > { %v15413_v41 = vld [vmem:[#allocation23_spill] sm:$0xff] }
 0x35e   : > { %v3839_v21 = vpop.f32.mrb[188].mxu0 }
 0x35f   : > { %v13299_v50 = vadd.f32 %v3839_v21, %v3313_v16  ;;  %v8303_v43 = vpop.f32.mrb[189].mxu0 }
 0x360   : > { %8430 = vmatmul.mubr.bf16.gmra.mrb[216].mxu1 %v15411_v38  ;;  %v3842_v56 = vpop.f32.mrb[190].mxu0 }
 0x361   : > { %8433 = vmatprep.mubr.msk.bf16.mxu1 %vm14749_vm8, %v14748_v57  ;;  %v13304_v1 = vadd.f32 %v3842_v56, %v3314_v22  ;;  %v8304_v25 = vpop.f32.mrb[191].mxu0  ;;  %v3193_v24 = vpop.f32.mrb[112].mxu1  ;;  %v15415_v22 = vld [vmem:[#allocation9_spill] sm:$0xff] }
 0x362   : > { %v8211_v6 = vpop.f32.mrb[113].mxu1  ;;  %v3317_v0 = vadd.f32 %v3193_v24, %v15413_v41 }
 0x363   : > { %8526 = vmatmul.mubr.bf16.gmra.mrb[40].mxu0 %v15412_v15  ;;  %v3196_v16 = vpop.f32.mrb[114].mxu1  ;;  %v15416_v6 = vld [vmem:[#allocation91_spill] sm:$0xff] }
 0x364   : > { %8529 = vmatprep.mubr.msk.bf16.mxu0 %vm14749_vm8, %v14748_v57  ;;  %v8212_v43 = vpop.f32.mrb[115].mxu1  ;;  %v3318_v54 = vadd.f32 %v3196_v16, %v15414_v59 }
 0x366   : > { %v3847_v21 = vpop.f32.mrb[192].mxu0 }
 0x367   : > { %v13311_v38 = vadd.f32 %v3847_v21, %v3315_v9  ;;  %v8307_v51 = vpop.f32.mrb[193].mxu0 }
 0x368   : > { %8434 = vmatmul.mubr.bf16.gmra.mrb[220].mxu1 %v15415_v22  ;;  %v3850_v56 = vpop.f32.mrb[194].mxu0 }
 0x369   : > { %8437 = vmatprep.mubr.msk.bf16.mxu1 %vm14749_vm8, %v14748_v57  ;;  %v13316_v25 = vadd.f32 %v3850_v56, %v3316_v7  ;;  %v8308_v24 = vpop.f32.mrb[195].mxu0  ;;  %v3201_v15 = vpop.f32.mrb[116].mxu1  ;;  %v15417_v7 = vld [vmem:[#allocation67_spill] sm:$0xff] }
 0x36a   : > { %v8215_v41 = vpop.f32.mrb[117].mxu1  ;;  %v3319_v43 = vadd.f32 %v3201_v15, %v12933_v27 }
 0x36b   : > { %8530 = vmatmul.mubr.bf16.gmra.mrb[44].mxu0 %v15416_v6  ;;  %v3204_v9 = vpop.f32.mrb[118].mxu1  ;;  %v15418_v6 = vld [vmem:[#allocation92_spill] sm:$0xff] }
 0x36c   : > { %8533 = vmatprep.mubr.msk.bf16.mxu0 %vm14749_vm8, %v14748_v57  ;;  %v8216_v51 = vpop.f32.mrb[119].mxu1  ;;  %v3320_v16 = vadd.f32 %v3204_v9, %v12947_v36 }
 0x36e   : > { %v3855_v59 = vpop.f32.mrb[196].mxu0 }
 0x36f   : > { %v13323_v21 = vadd.f32 %v3855_v59, %v3317_v0  ;;  %v8311_v22 = vpop.f32.mrb[197].mxu0 }
 0x370   : > { %8438 = vmatmul.mubr.bf16.gmra.mrb[224].mxu1 %v15417_v7  ;;  %v3858_v56 = vpop.f32.mrb[198].mxu0 }
 0x371   : > { %8441 = vmatprep.mubr.msk.bf16.mxu1 %vm14749_vm8, %v14748_v57  ;;  %v13328_v24 = vadd.f32 %v3858_v56, %v3318_v54  ;;  %v8312_v27 = vpop.f32.mrb[199].mxu0  ;;  %v3209_v15 = vpop.f32.mrb[120].mxu1  ;;  %v15419_v54 = vld [vmem:[#allocation69_spill] sm:$0xff] }
 0x372   : > { %v8219_v41 = vpop.f32.mrb[121].mxu1  ;;  %v3321_v51 = vadd.f32 %v3209_v15, %v13040_v33 }
 0x373   : > { %8534 = vmatmul.mubr.bf16.gmra.mrb[48].mxu0 %v15418_v6  ;;  %v3212_v0 = vpop.f32.mrb[122].mxu1  ;;  %v15420_v6 = vld [vmem:[#allocation93_spill] sm:$0xff] }
 0x374   : > { %8537 = vmatprep.mubr.msk.bf16.mxu0 %vm14749_vm8, %v14748_v57  ;;  %v8220_v36 = vpop.f32.mrb[123].mxu1  ;;  %v3322_v9 = vadd.f32 %v3212_v0, %v13056_v29 }
 0x376   : > { %v3863_v59 = vpop.f32.mrb[200].mxu0 }
 0x377   : > { %v13335_v22 = vadd.f32 %v3863_v59, %v3319_v43  ;;  %v8315_v7 = vpop.f32.mrb[201].mxu0 }
 0x378   : > { %8442 = vmatmul.mubr.bf16.gmra.mrb[228].mxu1 %v15419_v54  ;;  %v3866_v56 = vpop.f32.mrb[202].mxu0 }
 0x379   : > { %8445 = vmatprep.mubr.msk.bf16.mxu1 %vm14749_vm8, %v14748_v57  ;;  %v13340_v27 = vadd.f32 %v3866_v56, %v3320_v16  ;;  %v8316_v33 = vpop.f32.mrb[203].mxu0  ;;  %v3217_v15 = vpop.f32.mrb[124].mxu1  ;;  %v15421_v16 = vld [vmem:[#allocation71_spill] sm:$0xff] }
 0x37a   : > { %v8223_v41 = vpop.f32.mrb[125].mxu1  ;;  %v3323_v36 = vadd.f32 %v3217_v15, %v13085_v19 }
 0x37b   : > { %8538 = vmatmul.mubr.bf16.gmra.mrb[52].mxu0 %v15420_v6  ;;  %v3220_v29 = vpop.f32.mrb[126].mxu1  ;;  %v15422_v6 = vld [vmem:[#allocation95_spill] sm:$0xff] }
 0x37c   : > { %8541 = vmatprep.mubr.msk.bf16.mxu0 %vm14749_vm8, %v14748_v57  ;;  %v8224_v43 = vpop.f32.mrb[127].mxu1  ;;  %v3324_v0 = vadd.f32 %v3220_v29, %v13090_v10 }
 0x37e   : > { %v3871_v59 = vpop.f32.mrb[204].mxu0 }
 0x37f   : > { %v13347_v7 = vadd.f32 %v3871_v59, %v3321_v51  ;;  %v8319_v54 = vpop.f32.mrb[205].mxu0 }
 0x380   : > { %8446 = vmatmul.mubr.bf16.gmra.mrb[232].mxu1 %v15421_v16  ;;  %v3874_v56 = vpop.f32.mrb[206].mxu0 }
 0x381   : > { %8449 = vmatprep.mubr.msk.bf16.mxu1 %vm14749_vm8, %v14748_v57  ;;  %v13352_v33 = vadd.f32 %v3874_v56, %v3322_v9  ;;  %v8320_v19 = vpop.f32.mrb[207].mxu0  ;;  %v3225_v15 = vpop.f32.mrb[128].mxu1  ;;  %v15423_v9 = vld [vmem:[#allocation74_spill] sm:$0xff] }
 0x382   : > { %v8227_v41 = vpop.f32.mrb[129].mxu1  ;;  %v3325_v43 = vadd.f32 %v3225_v15, %v13099_v23 }
 0x383   : > { %8542 = vmatmul.mubr.bf16.gmra.mrb[56].mxu0 %v15422_v6  ;;  %v3228_v10 = vpop.f32.mrb[130].mxu1  ;;  %v15425_v6 = vld [vmem:[#allocation96_spill] sm:$0xff] }
 0x384   : > { %8545 = vmatprep.mubr.msk.bf16.mxu0 %vm14749_vm8, %v14748_v57  ;;  %v8228_v51 = vpop.f32.mrb[131].mxu1  ;;  %v3326_v29 = vadd.f32 %v3228_v10, %v13104_v40 }
 0x386   : > { %v3879_v59 = vpop.f32.mrb[208].mxu0 }
 0x387   : > { %v13359_v54 = vadd.f32 %v3879_v59, %v3323_v36  ;;  %v8323_v16 = vpop.f32.mrb[209].mxu0 }
 0x388   : > { %8450 = vmatmul.mubr.bf16.gmra.mrb[236].mxu1 %v15423_v9  ;;  %v3882_v56 = vpop.f32.mrb[210].mxu0 }
 0x389   : > { %8453 = vmatprep.mubr.msk.bf16.mxu1 %vm14749_vm8, %v14748_v57  ;;  %v13364_v19 = vadd.f32 %v3882_v56, %v3324_v0  ;;  %v8324_v23 = vpop.f32.mrb[211].mxu0  ;;  %v3233_v15 = vpop.f32.mrb[132].mxu1  ;;  %v15427_v0 = vld [vmem:[#allocation76_spill] sm:$0xff] }
 0x38a   : > { %v8231_v41 = vpop.f32.mrb[133].mxu1  ;;  %v3327_v51 = vadd.f32 %v3233_v15, %v13115_v8 }
 0x38b   : > { %15424 = vst [vmem:[#allocation70_spill] sm:$0xff] %v13364_v19  ;;  %8546 = vmatmul.mubr.bf16.gmra.mrb[60].mxu0 %v15425_v6  ;;  %v3236_v40 = vpop.f32.mrb[134].mxu1  ;;  %v15429_v6 = vld [vmem:[#allocation97_spill] sm:$0xff]  ;;  %v7240_v19 = vcombine.low %v13108_v49, %v13108_v49 }
 0x38c   : > { %8549 = vmatprep.mubr.msk.bf16.mxu0 %vm14749_vm8, %v14748_v57  ;;  %v8232_v36 = vpop.f32.mrb[135].mxu1  ;;  %v3328_v10 = vadd.f32 %v3236_v40, %v13117_v14 }
 0x38e   : > { %v3887_v59 = vpop.f32.mrb[212].mxu0 }
 0x38f   : > { %v13371_v16 = vadd.f32 %v3887_v59, %v3325_v43  ;;  %v8327_v9 = vpop.f32.mrb[213].mxu0  ;;  %v4853_v59 = vld [vmem:[#allocation2 + $0x18] sm:$0xf] }
 0x390   : > { %8454 = vmatmul.mubr.bf16.gmra.mrb[240].mxu1 %v15427_v0  ;;  %v3890_v56 = vpop.f32.mrb[214].mxu0  ;;  %v9042_v0 = vld [vmem:[#allocation2 + $0xb0] ss:$0 sps:$4 sm:$0x77]  }
 0x391   : > { %15426 = vst [vmem:[#allocation72_spill] sm:$0xff] %v13371_v16  ;;  %8457 = vmatprep.mubr.msk.bf16.mxu1 %vm14749_vm8, %v14748_v57  ;;  %v13376_v23 = vadd.f32 %v3890_v56, %v3326_v29  ;;  %v8328_v8 = vpop.f32.mrb[215].mxu0  ;;  %v3241_v15 = vpop.f32.mrb[136].mxu1  ;;  %v15431_v56 = vld [vmem:[#allocation77_spill] sm:$0xff] }
 0x392   : > { %v8235_v41 = vpop.f32.mrb[137].mxu1  ;;  %v3329_v36 = vadd.f32 %v3241_v15, %v13127_v63  ;;  %v9420_v63 = vld [vmem:[#allocation2 + $0x1c] sm:$0xf] }
 0x393   : > { %15428 = vst [vmem:[#allocation80_spill] sm:$0xff] %v13376_v23  ;;  %8550 = vmatmul.mubr.bf16.gmra.mrb[64].mxu0 %v15429_v6  ;;  %v3244_v14 = vpop.f32.mrb[138].mxu1  ;;  %v7290_v15 = vcombine.low %v4853_v59, %v9420_v63  ;;  %v4536_v23 = vshll.u32 %v9042_v0, 16  ;;  %v4532_v59 = vshrl.u32 %v15431_v56, 16 }
 0x394   : > { %8553 = vmatprep.mubr.msk.bf16.mxu0 %vm14749_vm8, %v14748_v57  ;;  %v8236_v43 = vpop.f32.mrb[139].mxu1  ;;  %v3330_v40 = vadd.f32 %v3244_v14, %v13132_v39  ;;  %v15433_v39 = vld [vmem:[#allocation101_spill] sm:$0xff] }
 0x395   : > { %v4538_v63 = vrot.slane %v4536_v23, 1  ;;  %v15436_v23 = vld [vmem:[#allocation87_spill] sm:$0xff] }
 0x396   : > { %v3895_v9 = vpop.f32.mrb[216].mxu0 }
 0x397   : > { %v13383_v16 = vadd.f32 %v3895_v9, %v3327_v51  ;;  %v8331_v29 = vpop.f32.mrb[217].mxu0 }
 0x398   : > { %8458 = vmatmul.mubr.bf16.gmra.mrb[244].mxu1 %v15431_v56  ;;  %v3898_v8 = vpop.f32.mrb[218].mxu0  ;;  %v5017_v29 = vshll.u32 %v7290_v15, 16 }
 0x399   : > { %15430 = vst [vmem:[#allocation73_spill] sm:$0xff] %v13383_v16  ;;  %8461 = vmatprep.mubr.msk.bf16.mxu1 %vm14749_vm8, %v14748_v57  ;;  %v13388_v6 = vadd.f32 %v3898_v8, %v3328_v10  ;;  %v8332_v41 = vpop.f32.mrb[219].mxu0 }
 0x39b   : > { %15432 = vst [vmem:[#allocation75_spill] sm:$0xff] %v13388_v6  ;;  %v3249_v43 = vpop.f32.mrb[140].mxu1  ;;  %8554 = vmatmul.mubr.bf16.gmra.mrb[68].mxu0 %v15433_v39 }
 0x39c   : > { %v8239_v14 = vpop.f32.mrb[141].mxu1  ;;  %v3331_v51 = vadd.f32 %v3249_v43, %v13138_v18  ;;  %8557 = vmatprep.mubr.msk.bf16.mxu0 %vm14749_vm8, %v14748_v57  ;;  %v15434_v43 = vld [vmem:[#allocation99_spill] sm:$0xff] }
 0x39d   : > { %v3252_v9 = vpop.f32.mrb[142].mxu1  ;;  %v4534_v14 = vor.u32 %v4532_v59, %v15434_v43 }
 0x39e   : > { %v8240_v16 = vpop.f32.mrb[143].mxu1  ;;  %v3332_v10 = vadd.f32 %v3252_v9, %v13143_v28  ;;  %v3903_v8 = vpop.f32.mrb[220].mxu0  ;;  %v5015_v9 = vshrl.u32 %v7290_v15, 16 }
 0x39f   : > { %v13398_v41 = vadd.f32 %v3903_v8, %v3329_v36  ;;  %v8335_v39 = vpop.f32.mrb[221].mxu0  ;;  %v5019_v16 = vrot.slane %v5017_v29, 1  ;;  %v4539_v28 = vsel %vm4375_vm9, %v4534_v14, %v4538_v63  ;;  %v15437_v36 = vshll.u32 %v15436_v23, 16 }
 0x3a0   : > { %8462 = vmatmul.mubr.bf16.gmra.mrb[248].mxu1 %v7240_v19  ;;  %v3906_v18 = vpop.f32.mrb[222].mxu0 }
 0x3a1   : > { %8581 = vmatprep.mubr.msk.bf16.mxu1 %vm14749_vm8, %v14748_v57  ;;  %v13403_v6 = vadd.f32 %v3906_v18, %v3330_v40  ;;  %v8336_v49 = vpop.f32.mrb[223].mxu0  ;;  %v5024_v8 = vrot.slane %v15437_v36, 1  ;;  %v5020_v29 = vor.u32 %v5019_v16, %v5015_v9  ;;  %v9050_v40 = vld [vmem:[%s9617_s6 + $0x200] sm:$0xff]   ;;  %v4540_v18 = vshrl.u32 %v9042_v0, 16  ;;  %v15438_v9 = vld [vmem:[#allocation57_spill] sm:$0xff] }
 0x3a3   : > { %15435 = vst [vmem:[#allocation78_spill] sm:$0xff] %v13403_v6  ;;  %v3257_v56 = vpop.f32.mrb[144].mxu1  ;;  %8558 = vmatmul.mubr.bf16.gmra.mrb[72].mxu0 %v4539_v28  ;;  %v5025_v15 = vsel %vm4375_vm9, %v5020_v29, %v5024_v8  ;;  %v4542_v16 = vor.u32 %v4540_v18, %v4538_v63 }
 0x3a4   : > { %v8243_v19 = vpop.f32.mrb[145].mxu1  ;;  %v3333_v39 = vadd.f32 %v3257_v56, %v13150_v12  ;;  %8561 = vmatprep.mubr.msk.bf16.mxu0 %vm14749_vm8, %v14748_v57  ;;  %v9054_v12 = vld [vmem:[%s9617_s6 + $0x208] sm:$0xff]  }
 0x3a5   : > { %v3260_v59 = vpop.f32.mrb[146].mxu1  ;;  %v15439_v19 = vshll.u32 %v15438_v9, 16 }
 0x3a6   : > { %v8244_v43 = vpop.f32.mrb[147].mxu1  ;;  %v3334_v14 = vadd.f32 %v3260_v59, %v13156_v47  ;;  %v3911_v49 = vpop.f32.mrb[224].mxu0 }
 0x3a7   : > { %v13414_v6 = vadd.f32 %v3911_v49, %v3331_v51  ;;  %v8339_v28 = vpop.f32.mrb[225].mxu0  ;;  %v5032_v51 = vrot.slane %v15439_v19, 1 }
 0x3a8   : > { %8582 = vmatmul.mubr.bf16.vlgmr.msra.gmra.mrb[252].mxu1 %v5025_v15  ;;  %v3914_v36 = vpop.f32.mrb[226].mxu0  ;;  %v9421_v28 = vld [vmem:[#allocation2 + $0x20] sm:$0xff]  }
 0x3a9   : > { %8766 = vmatpush3.bf16.msra.mxu1 %v9050_v40  ;;  %8585 = vmatprep.mubr.msk.bf16.mxu1 %vm14749_vm8, %v14748_v57  ;;  %v13419_v56 = vadd.f32 %v3914_v36, %v3332_v10  ;;  %v8340_v0 = vpop.f32.mrb[227].mxu0  ;;  %v15440_v40 = vshrl.u32 %v15436_v23, 16  ;;  %v9058_v10 = vld [vmem:[%s9617_s6 + $0x210] sm:$0xff]   ;;  %v5514_v36 = vrot.slane %v9421_v28, 1 }
 0x3aa   : > { %8767 = vmatprep.subr.bf16.mxu1 %v14748_v57 }
 0x3ab   : > { %v3265_v47 = vpop.f32.mrb[148].mxu1  ;;  %8562 = vmatmul.mubr.bf16.gmra.mrb[76].mxu0 %v4542_v16  ;;  %v5028_v43 = vor.u32 %v15440_v40, %v5024_v8  ;;  %v15441_v8 = vld [vmem:[#allocation50_spill] sm:$0xff]  ;;  %v15442_v40 = vld [vmem:[#allocation56_spill] sm:$0xff] }
 0x3ac   : > { %v8247_v59 = vpop.f32.mrb[149].mxu1  ;;  %v3335_v29 = vadd.f32 %v3265_v47, %v13165_v58  ;;  %8681 = vmatprep.mubr.msk.bf16.mxu0 %vm14749_vm8, %v14748_v57  ;;  %v5513_v0 = vrot.slane %v15441_v8, 1 }
 0x3ad   : > { %v3268_v63 = vpop.f32.mrb[150].mxu1  ;;  %8768 = vmatpush3.bf16.msra.mxu1 %v9054_v12  ;;  %v5033_v58 = vsel %vm4375_vm9, %v5028_v43, %v5032_v51  ;;  %v15443_v43 = vshll.u32 %v15442_v40, 16 }
 0x3ae   : > { %v8248_v18 = vpop.f32.mrb[151].mxu1  ;;  %v3336_v49 = vadd.f32 %v3268_v63, %v13171_v26  ;;  %8769 = vmatprep.subr.bf16.mxu1 %v14748_v57  ;;  %v3919_v15 = vpop.f32.mrb[228].mxu0  ;;  %v9061_v26 = vld [vmem:[%s9617_s6 + $0x218] sm:$0xff]  }
 0x3af   : > { %v13433_v16 = vadd.f32 %v3919_v15, %v3333_v39  ;;  %v8343_v23 = vpop.f32.mrb[229].mxu0  ;;  %v5515_v39 = vsel %vm5512_vm5, %v5513_v0, %v5514_v36  ;;  %v5040_v63 = vrot.slane %v15443_v43, 1 }
 0x3b0   : > { %8586 = vmatmul.mubr.bf16.gmra.mrb[0].mxu1 %v5033_v58  ;;  %v3922_v12 = vpop.f32.mrb[230].mxu0  ;;  %v9065_v58 = vld [vmem:[%s9617_s6 + $0x220] sm:$0xff]  }
 0x3b1   : > { %8589 = vmatprep.mubr.msk.bf16.mxu1 %vm14749_vm8, %v14748_v57  ;;  %8770 = vmatpush3.bf16.msra.mxu1 %v9058_v10  ;;  %v13439_v47 = vadd.f32 %v3922_v12, %v3334_v14  ;;  %v8344_v19 = vpop.f32.mrb[231].mxu0  ;;  %v15444_v14 = vshrl.u32 %v15438_v9, 16  ;;  %v9422_v12 = vld [vmem:[#allocation2 + $0x28] sm:$0xff]  }
 0x3b2   : > { %8771 = vmatprep.subr.bf16.mxu1 %v14748_v57  ;;  %v5516_v19 = vrot.slane %v9422_v12, 1  ;;  %v9069_v9 = vld [vmem:[%s9617_s6 + $0x228] sm:$0xff]   ;;  %v9072_v12 = vld [vmem:[%s9617_s6 + $0x230] sm:$0xff]  }
 0x3b3   : > { %v3273_v59 = vpop.f32.mrb[152].mxu1  ;;  %8682 = vmatmul.mubr.bf16.vlgmr.msra.gmra.mrb[80].mxu0 %v5515_v39  ;;  %v5036_v28 = vor.u32 %v15444_v14, %v5032_v51 }
 0x3b4   : > { %v8251_v18 = vpop.f32.mrb[153].mxu1  ;;  %v3337_v15 = vadd.f32 %v3273_v59, %v13181_v34  ;;  %8685 = vmatprep.mubr.msk.bf16.mxu0 %vm14749_vm8, %v14748_v57 }
 0x3b5   : > { %v3276_v10 = vpop.f32.mrb[154].mxu1  ;;  %8772 = vmatpush3.bf16.msra.mxu1 %v9061_v26  ;;  %v5041_v34 = vsel %vm4375_vm9, %v5036_v28, %v5040_v63  ;;  %v5517_v26 = vsel %vm5512_vm5, %v5514_v36, %v5516_v19 }
 0x3b6   : > { %v8252_v23 = vpop.f32.mrb[155].mxu1  ;;  %v3338_v8 = vadd.f32 %v3276_v10, %v13186_v60  ;;  %8773 = vmatprep.subr.bf16.mxu1 %v14748_v57  ;;  %v3927_v0 = vpop.f32.mrb[232].mxu0  ;;  %v15445_v10 = vld [vmem:[#allocation61_spill] sm:$0xff] }
 0x3b7   : > { %v13454_v39 = vadd.f32 %v3927_v0, %v3335_v29  ;;  %v8347_v59 = vpop.f32.mrb[233].mxu0  ;;  %v15446_v29 = vshll.u32 %v15445_v10, 16 }
 0x3b8   : > { %8590 = vmatmul.mubr.bf16.gmra.mrb[4].mxu1 %v5041_v34  ;;  %v3930_v43 = vpop.f32.mrb[234].mxu0 }
 0x3b9   : > { %8593 = vmatprep.mubr.msk.bf16.mxu1 %vm14749_vm8, %v14748_v57  ;;  %8774 = vmatpush3.bf16.msra.mxu1 %v9065_v58  ;;  %v13459_v51 = vadd.f32 %v3930_v43, %v3336_v49  ;;  %v8348_v60 = vpop.f32.mrb[235].mxu0  ;;  %v5048_v14 = vrot.slane %v15446_v29, 1  ;;  %v15447_v49 = vshrl.u32 %v15442_v40, 16  ;;  %v9423_v43 = vld [vmem:[#allocation2 + $0x30] sm:$0xff]  }
 0x3ba   : > { %8775 = vmatprep.subr.bf16.mxu1 %v14748_v57  ;;  %v5518_v60 = vrot.slane %v9423_v43, 1 }
 0x3bb   : > { %v3281_v18 = vpop.f32.mrb[156].mxu1  ;;  %8686 = vmatmul.mubr.bf16.gmra.mrb[84].mxu0 %v5517_v26  ;;  %v5044_v0 = vor.u32 %v15447_v49, %v5040_v63 }
 0x3bc   : > { %v8255_v28 = vpop.f32.mrb[157].mxu1  ;;  %v3339_v23 = vadd.f32 %v3281_v18, %v13197_v53  ;;  %8689 = vmatprep.mubr.msk.bf16.mxu0 %vm14749_vm8, %v14748_v57 }
 0x3bd   : > { %v3284_v58 = vpop.f32.mrb[158].mxu1  ;;  %8776 = vmatpush3.bf16.msra.mxu1 %v9069_v9  ;;  %v5049_v53 = vsel %vm4375_vm9, %v5044_v0, %v5048_v14  ;;  %v5519_v9 = vsel %vm5512_vm5, %v5516_v19, %v5518_v60 }
 0x3be   : > { %v8256_v34 = vpop.f32.mrb[159].mxu1  ;;  %v3340_v36 = vadd.f32 %v3284_v58, %v13202_v2  ;;  %8777 = vmatprep.subr.bf16.mxu1 %v14748_v57  ;;  %v3935_v59 = vpop.f32.mrb[236].mxu0  ;;  %v9076_v2 = vld [vmem:[%s9617_s6 + $0x238] sm:$0xff]  }
 0x3bf   : > { %v13474_v26 = vadd.f32 %v3935_v59, %v3337_v15  ;;  %v8351_v18 = vpop.f32.mrb[237].mxu0  ;;  %v15448_v58 = vld [vmem:[#allocation58_spill] sm:$0xff] }
 0x3c0   : > { %8594 = vmatmul.mubr.bf16.gmra.mrb[8].mxu1 %v5049_v53  ;;  %v3938_v29 = vpop.f32.mrb[238].mxu0  ;;  %v15449_v49 = vshll.u32 %v15448_v58, 16  ;;  %v9424_v18 = vld [vmem:[#allocation2 + $0x38] sm:$0xff]  }
 0x3c1   : > { %8597 = vmatprep.mubr.msk.bf16.mxu1 %vm14749_vm8, %v14748_v57  ;;  %8778 = vmatpush3.bf16.msra.mxu1 %v9072_v12  ;;  %v13478_v40 = vadd.f32 %v3938_v29, %v3338_v8  ;;  %v8352_v63 = vpop.f32.mrb[239].mxu0  ;;  %v15450_v8 = vshrl.u32 %v15445_v10, 16  ;;  %v5520_v29 = vrot.slane %v9424_v18, 1  ;;  %v9425_v18 = vld [vmem:[#allocation2 + $0x40] sm:$0xff]  }
 0x3c2   : > { %8779 = vmatprep.subr.bf16.mxu1 %v14748_v57  ;;  %v5056_v15 = vrot.slane %v15449_v49, 1 }
 0x3c3   : > { %v3289_v28 = vpop.f32.mrb[160].mxu1  ;;  %8690 = vmatmul.mubr.bf16.gmra.mrb[88].mxu0 %v5519_v9  ;;  %v5052_v59 = vor.u32 %v15450_v8, %v5048_v14  ;;  %v5521_v14 = vsel %vm5512_vm5, %v5518_v60, %v5520_v29 }
 0x3c4   : > { %v8259_v0 = vpop.f32.mrb[161].mxu1  ;;  %v3341_v34 = vadd.f32 %v3289_v28, %v13211_v4  ;;  %8693 = vmatprep.mubr.msk.bf16.mxu0 %vm14749_vm8, %v14748_v57 }
 0x3c5   : > { %v3292_v12 = vpop.f32.mrb[162].mxu1  ;;  %8780 = vmatpush3.bf16.msra.mxu1 %v9076_v2  ;;  %v5057_v63 = vsel %vm4375_vm9, %v5052_v59, %v5056_v15  ;;  %v15452_v59 = vshrl.u32 %v15448_v58, 16 }
 0x3c6   : > { %v8260_v43 = vpop.f32.mrb[163].mxu1  ;;  %v3342_v53 = vadd.f32 %v3292_v12, %v13216_v55  ;;  %v3943_v19 = vpop.f32.mrb[240].mxu0  ;;  %v15451_v55 = vshll.u32 %v12816_v37, 16 }
 0x3c7   : > { %v13492_v9 = vadd.f32 %v3943_v19, %v3339_v23  ;;  %v8355_v49 = vpop.f32.mrb[241].mxu0  ;;  %v5060_v43 = vor.u32 %v15452_v59, %v5056_v15  ;;  %v15454_v59 = vshrl.u32 %v12816_v37, 16 }
 0x3c8   : > { %8598 = vmatmul.mubr.bf16.gmra.mrb[12].mxu1 %v5057_v63  ;;  %v3946_v4 = vpop.f32.mrb[242].mxu0  ;;  %v5064_v0 = vrot.slane %v15451_v55, 1  ;;  %v5522_v63 = vrot.slane %v9425_v18, 1 }
 0x3c9   : > { %8601 = vmatprep.mubr.msk.bf16.mxu1 %vm14749_vm8, %v14748_v57  ;;  %v13496_v28 = vadd.f32 %v3946_v4, %v3340_v36  ;;  %v8356_v10 = vpop.f32.mrb[243].mxu0 }
 0x3ca   : > { %v5065_v60 = vsel %vm4375_vm9, %v5060_v43, %v5064_v0  ;;  %v5523_v58 = vsel %vm5512_vm5, %v5520_v29, %v5522_v63  ;;  %v5068_v43 = vor.u32 %v15454_v59, %v5064_v0  ;;  %v9426_v29 = vld [vmem:[#allocation2 + $0x48] sm:$0xff]  }
 0x3cb   : > { %v3297_v2 = vpop.f32.mrb[164].mxu1  ;;  %8694 = vmatmul.mubr.bf16.gmra.mrb[92].mxu0 %v5521_v14  ;;  %v5524_v18 = vrot.slane %v9426_v29, 1 }
 0x3cc   : > { %v3343_v12 = vadd.f32 %v3297_v2, %v13227_v11  ;;  %v8263_v23 = vpop.f32.mrb[165].mxu1  ;;  %8697 = vmatprep.mubr.msk.bf16.mxu0 %vm14749_vm8, %v14748_v57  ;;  %v15453_v2 = vshll.u32 %v12818_v62, 16 }
 0x3cd   : > { %v3300_v8 = vpop.f32.mrb[166].mxu1  ;;  %v5525_v37 = vsel %vm5512_vm5, %v5522_v63, %v5524_v18  ;;  %v9427_v63 = vld [vmem:[#allocation2 + $0x50] sm:$0xff]  }
 0x3ce   : > { %v8264_v36 = vpop.f32.mrb[167].mxu1  ;;  %v3951_v19 = vpop.f32.mrb[244].mxu0  ;;  %v5072_v55 = vrot.slane %v15453_v2, 1 }
 0x3cf   : > { %v13507_v49 = vadd.f32 %v3951_v19, %v3341_v34  ;;  %v8359_v4 = vpop.f32.mrb[245].mxu0 }
 0x3d0   : > { %8602 = vmatmul.mubr.bf16.gmra.mrb[16].mxu1 %v5065_v60  ;;  %v3954_v10 = vpop.f32.mrb[246].mxu0  ;;  %v5073_v60 = vsel %vm4375_vm9, %v5068_v43, %v5072_v55 }
 0x3d1   : > { %8605 = vmatprep.mubr.msk.bf16.mxu1 %vm14749_vm8, %v14748_v57  ;;  %v13511_v11 = vadd.f32 %v3954_v10, %v3342_v53  ;;  %v8360_v14 = vpop.f32.mrb[247].mxu0 }
 0x3d3   : > { %v4147_v15 = vpop.f32.mrb[168].mxu1  ;;  %8698 = vmatmul.mubr.bf16.gmra.mrb[96].mxu0 %v5523_v58 }
 0x3d4   : > { %v4313_v23 = vadd.f32 %v4147_v15, %v13239_v45  ;;  %v8383_v34 = vpop.f32.mrb[169].mxu1  ;;  %8701 = vmatprep.mubr.msk.bf16.mxu0 %vm14749_vm8, %v14748_v57 }
 0x3d5   : > { %v4150_v8 = vpop.f32.mrb[170].mxu1  ;;  %v15456_v34 = vshrl.u32 %v12818_v62, 16 }
 0x3d6   : > { %v4314_v53 = vadd.f32 %v4150_v8, %v13244_v30  ;;  %v8384_v36 = vpop.f32.mrb[171].mxu1  ;;  %v3959_v19 = vpop.f32.mrb[248].mxu0  ;;  %v15455_v30 = vshll.u32 %v12827_v48, 16 }
 0x3d7   : > { %v13523_v4 = vadd.f32 %v3959_v19, %v3343_v12  ;;  %v8363_v10 = vpop.f32.mrb[249].mxu0  ;;  %v5076_v8 = vor.u32 %v15456_v34, %v5072_v55  ;;  %v5526_v19 = vrot.slane %v9427_v63, 1 }
 0x3d8   : > { %8606 = vmatmul.mubr.bf16.gmra.mrb[20].mxu1 %v5073_v60  ;;  %v3962_v45 = vpop.f32.mrb[250].mxu0  ;;  %v5080_v58 = vrot.slane %v15455_v30, 1 }
 0x3d9   : > { %8609 = vmatprep.mubr.msk.bf16.mxu1 %vm14749_vm8, %v14748_v57  ;;  %v8364_v14 = vpop.f32.mrb[251].mxu0  ;;  %v5527_v55 = vsel %vm5512_vm5, %v5524_v18, %v5526_v19  ;;  %v9428_v18 = vld [vmem:[#allocation2 + $0x58] sm:$0xff]  }
 0x3da   : > { %v5081_v29 = vsel %vm4375_vm9, %v5076_v8, %v5080_v58  ;;  %v15457_v14 = vshll.u32 %v12836_v5, 16 }
 0x3db   : > { %v4155_v0 = vpop.f32.mrb[172].mxu1  ;;  %8702 = vmatmul.mubr.bf16.gmra.mrb[100].mxu0 %v5525_v37 }
 0x3dc   : > { %v4315_v15 = vadd.f32 %v4155_v0, %v13251_v20  ;;  %v8387_v2 = vpop.f32.mrb[173].mxu1  ;;  %8705 = vmatprep.mubr.msk.bf16.mxu0 %vm14749_vm8, %v14748_v57  ;;  %v5088_v37 = vrot.slane %v15457_v14, 1  ;;  %v15460_v14 = vshrl.u32 %v12836_v5, 16 }
 0x3dd   : > { %v4158_v12 = vpop.f32.mrb[174].mxu1  ;;  %v15458_v2 = vshrl.u32 %v12827_v48, 16 }
 0x3de   : > { %v4316_v59 = vadd.f32 %v4158_v12, %v13256_v17  ;;  %v8388_v43 = vpop.f32.mrb[175].mxu1  ;;  %v4646_v36 = vpop.f32.mrb[252].mxu0 }
 0x3df   : > { %v13537_v60 = vadd.f32 %v4646_v36, %v4313_v23  ;;  %v8483_v10 = vpop.f32.mrb[253].mxu0  ;;  %v5084_v12 = vor.u32 %v15458_v2, %v5080_v58  ;;  %v5528_v43 = vrot.slane %v9428_v18, 1 }
 0x3e0   : > { %8610 = vmatmul.mubr.bf16.gmra.mrb[24].mxu1 %v5081_v29  ;;  %v4649_v20 = vpop.f32.mrb[254].mxu0 }
 0x3e1   : > { %8613 = vmatprep.mubr.msk.bf16.mxu1 %vm14749_vm8, %v14748_v57  ;;  %v13541_v45 = vadd.f32 %v4649_v20, %v4314_v53  ;;  %v8484_v62 = vpop.f32.mrb[255].mxu0  ;;  %v5089_v36 = vsel %vm4375_vm9, %v5084_v12, %v5088_v37  ;;  %v5529_v58 = vsel %vm5512_vm5, %v5526_v19, %v5528_v43  ;;  %v15459_v20 = vshll.u32 %v12838_v3, 16  ;;  %v9429_v19 = vld [vmem:[#allocation2 + $0x60] sm:$0xff]  }
 0x3e2   : > { %v5530_v12 = vrot.slane %v9429_v19, 1 }
 0x3e3   : > { %v4163_v17 = vpop.f32.mrb[176].mxu1  ;;  %8706 = vmatmul.mubr.bf16.gmra.mrb[104].mxu0 %v5527_v55  ;;  %v5096_v62 = vrot.slane %v15459_v20, 1 }
 0x3e4   : > { %v4317_v0 = vadd.f32 %v4163_v17, %v13263_v32  ;;  %v8391_v23 = vpop.f32.mrb[177].mxu1  ;;  %8709 = vmatprep.mubr.msk.bf16.mxu0 %vm14749_vm8, %v14748_v57 }
 0x3e5   : > { %v4166_v30 = vpop.f32.mrb[178].mxu1  ;;  %v5092_v23 = vor.u32 %v15460_v14, %v5088_v37  ;;  %v5531_v37 = vsel %vm5512_vm5, %v5528_v43, %v5530_v12  ;;  %v9430_v43 = vld [vmem:[#allocation2 + $0x68] sm:$0xff]  }
 0x3e6   : > { %v4318_v53 = vadd.f32 %v4166_v30, %v13268_v52  ;;  %v8392_v34 = vpop.f32.mrb[179].mxu1  ;;  %v4654_v8 = vpop.f32.mrb[0].mxu0  ;;  %v5532_v14 = vrot.slane %v9430_v43, 1  ;;  %v15465_v43 = vshll.u32 %v12856_v31, 16 }
 0x3e7   : > { %v13553_v63 = vadd.f32 %v4654_v8, %v4315_v15  ;;  %v8487_v29 = vpop.f32.mrb[1].mxu0  ;;  %v5097_v34 = vsel %vm4375_vm9, %v5092_v23, %v5096_v62 }
 0x3e8   : > { %8614 = vmatmul.mubr.bf16.gmra.mrb[28].mxu1 %v5089_v36  ;;  %v4657_v32 = vpop.f32.mrb[2].mxu0  ;;  %v15461_v29 = vshll.u32 %v12840_v13, 16 }
 0x3e9   : > { %8617 = vmatprep.mubr.msk.bf16.mxu1 %vm14749_vm8, %v14748_v57  ;;  %v13557_v10 = vadd.f32 %v4657_v32, %v4316_v59  ;;  %v8488_v48 = vpop.f32.mrb[3].mxu0 }
 0x3ea   : > { %v5104_v32 = vrot.slane %v15461_v29, 1 }
 0x3eb   : > { %v4171_v52 = vpop.f32.mrb[180].mxu1  ;;  %8710 = vmatmul.mubr.bf16.gmra.mrb[108].mxu0 %v5529_v58 }
 0x3ec   : > { %v4319_v55 = vadd.f32 %v4171_v52, %v13275_v61  ;;  %v8395_v15 = vpop.f32.mrb[181].mxu1  ;;  %8713 = vmatprep.mubr.msk.bf16.mxu0 %vm14749_vm8, %v14748_v57  ;;  %v15462_v52 = vshrl.u32 %v12838_v3, 16 }
 0x3ed   : > { %v4174_v17 = vpop.f32.mrb[182].mxu1 }
 0x3ee   : > { %v4320_v59 = vadd.f32 %v4174_v17, %v13280_v44  ;;  %v8396_v30 = vpop.f32.mrb[183].mxu1  ;;  %v4662_v2 = vpop.f32.mrb[4].mxu0  ;;  %v5100_v20 = vor.u32 %v15462_v52, %v5096_v62  ;;  %v5533_v62 = vsel %vm5512_vm5, %v5530_v12, %v5532_v14  ;;  %v9431_v12 = vld [vmem:[#allocation2 + $0x70] sm:$0xff]  }
 0x3ef   : > { %v13569_v8 = vadd.f32 %v4662_v2, %v4317_v0  ;;  %v8491_v18 = vpop.f32.mrb[5].mxu0 }
 0x3f0   : > { %8618 = vmatmul.mubr.bf16.gmra.mrb[32].mxu1 %v5097_v34  ;;  %v4665_v61 = vpop.f32.mrb[6].mxu0  ;;  %v5105_v23 = vsel %vm4375_vm9, %v5100_v20, %v5104_v32  ;;  %v15463_v34 = vshll.u32 %v12848_v42, 16 }
 0x3f1   : > { %8621 = vmatprep.mubr.msk.bf16.mxu1 %vm14749_vm8, %v14748_v57  ;;  %v13573_v36 = vadd.f32 %v4665_v61, %v4318_v53  ;;  %v8492_v5 = vpop.f32.mrb[7].mxu0 }
 0x3f2   : > { %v5112_v18 = vrot.slane %v15463_v34, 1 }
 0x3f3   : > { %v4179_v44 = vpop.f32.mrb[184].mxu1  ;;  %8714 = vmatmul.mubr.bf16.gmra.mrb[112].mxu0 %v5531_v37  ;;  %v15464_v37 = vshrl.u32 %v12840_v13, 16 }
 0x3f4   : > { %v4321_v48 = vadd.f32 %v4179_v44, %v13287_v46  ;;  %v8399_v0 = vpop.f32.mrb[185].mxu1  ;;  %8717 = vmatprep.mubr.msk.bf16.mxu0 %vm14749_vm8, %v14748_v57 }
 0x3f5   : > { %v4182_v58 = vpop.f32.mrb[186].mxu1  ;;  %v5108_v44 = vor.u32 %v15464_v37, %v5104_v32 }
 0x3f6   : > { %v4322_v53 = vadd.f32 %v4182_v58, %v13292_v35  ;;  %v8400_v15 = vpop.f32.mrb[187].mxu1  ;;  %v4670_v17 = vpop.f32.mrb[8].mxu0  ;;  %v5534_v58 = vrot.slane %v9431_v12, 1 }
 0x3f7   : > { %v13585_v30 = vadd.f32 %v4670_v17, %v4319_v55  ;;  %v8495_v2 = vpop.f32.mrb[9].mxu0  ;;  %v5113_v52 = vsel %vm4375_vm9, %v5108_v44, %v5112_v18 }
 0x3f8   : > { %8622 = vmatmul.mubr.bf16.gmra.mrb[36].mxu1 %v5105_v23  ;;  %v4673_v46 = vpop.f32.mrb[10].mxu0  ;;  %v5535_v32 = vsel %vm5512_vm5, %v5532_v14, %v5534_v58  ;;  %v5120_v23 = vrot.slane %v15465_v43, 1  ;;  %v9432_v14 = vld [vmem:[#allocation2 + $0x78] sm:$0xff]  }
 0x3f9   : > { %8625 = vmatprep.mubr.msk.bf16.mxu1 %vm14749_vm8, %v14748_v57  ;;  %v13589_v19 = vadd.f32 %v4673_v46, %v4320_v59  ;;  %v8496_v3 = vpop.f32.mrb[11].mxu0 }
 0x3fa   : > { %v15466_v3 = vshrl.u32 %v12848_v42, 16 }
 0x3fb   : > { %v4187_v35 = vpop.f32.mrb[188].mxu1  ;;  %8718 = vmatmul.mubr.bf16.gmra.mrb[116].mxu0 %v5533_v62 }
 0x3fc   : > { %v4323_v61 = vadd.f32 %v4187_v35, %v13299_v50  ;;  %v8403_v55 = vpop.f32.mrb[189].mxu1  ;;  %8721 = vmatprep.mubr.msk.bf16.mxu0 %vm14749_vm8, %v14748_v57  ;;  %v5116_v62 = vor.u32 %v15466_v3, %v5112_v18 }
 0x3fd   : > { %v4190_v5 = vpop.f32.mrb[190].mxu1  ;;  %v5536_v55 = vrot.slane %v9432_v14, 1 }
 0x3fe   : > { %v4324_v59 = vadd.f32 %v4190_v5, %v13304_v1  ;;  %v8404_v29 = vpop.f32.mrb[191].mxu1  ;;  %v4678_v0 = vpop.f32.mrb[12].mxu0  ;;  %v5121_v5 = vsel %vm4375_vm9, %v5116_v62, %v5120_v23 }
 0x3ff   : > { %v13601_v20 = vadd.f32 %v4678_v0, %v4321_v48  ;;  %v8499_v15 = vpop.f32.mrb[13].mxu0  ;;  %v5537_v18 = vsel %vm5512_vm5, %v5534_v58, %v5536_v55  ;;  %v15467_v0 = vld [vmem:[#allocation39_spill] sm:$0xff] }
 0x400   : > { %8626 = vmatmul.mubr.bf16.gmra.mrb[40].mxu1 %v5113_v52  ;;  %v4681_v50 = vpop.f32.mrb[14].mxu0  ;;  %v15468_v12 = vshll.u32 %v15467_v0, 16  ;;  %v9433_v58 = vld [vmem:[#allocation2 + $0x80] sm:$0xff]  }
 0x401   : > { %8629 = vmatprep.mubr.msk.bf16.mxu1 %vm14749_vm8, %v14748_v57  ;;  %v13605_v17 = vadd.f32 %v4681_v50, %v4322_v53  ;;  %v8500_v13 = vpop.f32.mrb[15].mxu0 }
 0x402   : > { %v5128_v52 = vrot.slane %v15468_v12, 1  ;;  %v15469_v13 = vshrl.u32 %v12856_v31, 16 }
 0x403   : > { %v4195_v1 = vpop.f32.mrb[192].mxu1  ;;  %8722 = vmatmul.mubr.bf16.gmra.mrb[120].mxu0 %v5535_v32 }
 0x404   : > { %v4325_v2 = vadd.f32 %v4195_v1, %v13311_v38  ;;  %v8407_v48 = vpop.f32.mrb[193].mxu1  ;;  %8725 = vmatprep.mubr.msk.bf16.mxu0 %vm14749_vm8, %v14748_v57  ;;  %v5124_v32 = vor.u32 %v15469_v13, %v5120_v23 }
 0x405   : > { %v4198_v46 = vpop.f32.mrb[194].mxu1  ;;  %v5538_v48 = vrot.slane %v9433_v58, 1 }
 0x406   : > { %v4326_v53 = vadd.f32 %v4198_v46, %v13316_v25  ;;  %v8408_v35 = vpop.f32.mrb[195].mxu1  ;;  %v4686_v34 = vpop.f32.mrb[16].mxu0  ;;  %v5129_v46 = vsel %vm4375_vm9, %v5124_v32, %v5128_v52 }
 0x407   : > { %v13617_v37 = vadd.f32 %v4686_v34, %v4323_v61  ;;  %v8503_v44 = vpop.f32.mrb[17].mxu0  ;;  %v5539_v23 = vsel %vm5512_vm5, %v5536_v55, %v5538_v48  ;;  %v15470_v34 = vld [vmem:[#allocation63_spill] sm:$0xff] }
 0x408   : > { %8630 = vmatmul.mubr.bf16.gmra.mrb[44].mxu1 %v5121_v5  ;;  %v4689_v38 = vpop.f32.mrb[18].mxu0  ;;  %v15471_v14 = vshll.u32 %v15470_v34, 16  ;;  %v9434_v55 = vld [vmem:[#allocation2 + $0x88] sm:$0xff]  }
 0x409   : > { %8633 = vmatprep.mubr.msk.bf16.mxu1 %vm14749_vm8, %v14748_v57  ;;  %v13621_v29 = vadd.f32 %v4689_v38, %v4324_v59  ;;  %v8504_v42 = vpop.f32.mrb[19].mxu0 }
 0x40a   : > { %v5136_v5 = vrot.slane %v15471_v14, 1  ;;  %v15472_v42 = vshrl.u32 %v15467_v0, 16 }
 0x40b   : > { %v4203_v25 = vpop.f32.mrb[196].mxu1  ;;  %8726 = vmatmul.mubr.bf16.gmra.mrb[124].mxu0 %v5537_v18 }
 0x40c   : > { %v4327_v15 = vadd.f32 %v4203_v25, %v13323_v21  ;;  %v8411_v61 = vpop.f32.mrb[197].mxu1  ;;  %8729 = vmatprep.mubr.msk.bf16.mxu0 %vm14749_vm8, %v14748_v57  ;;  %v5132_v18 = vor.u32 %v15472_v42, %v5128_v52 }
 0x40d   : > { %v4206_v50 = vpop.f32.mrb[198].mxu1  ;;  %v5540_v61 = vrot.slane %v9434_v55, 1 }
 0x40e   : > { %v4328_v59 = vadd.f32 %v4206_v50, %v13328_v24  ;;  %v8412_v1 = vpop.f32.mrb[199].mxu1  ;;  %v4694_v43 = vpop.f32.mrb[20].mxu0  ;;  %v5137_v50 = vsel %vm4375_vm9, %v5132_v18, %v5136_v5 }
 0x40f   : > { %v13633_v3 = vadd.f32 %v4694_v43, %v4325_v2  ;;  %v8507_v62 = vpop.f32.mrb[21].mxu0  ;;  %v5541_v52 = vsel %vm5512_vm5, %v5538_v48, %v5540_v61  ;;  %v15473_v43 = vld [vmem:[#allocation62_spill] sm:$0xff]  ;;  %v9435_v48 = vld [vmem:[#allocation2 + $0x90] sm:$0xff]  }
 0x410   : > { %8634 = vmatmul.mubr.bf16.gmra.mrb[48].mxu1 %v5129_v46  ;;  %v4697_v21 = vpop.f32.mrb[22].mxu0  ;;  %v15474_v58 = vshll.u32 %v15473_v43, 16 }
 0x411   : > { %8637 = vmatprep.mubr.msk.bf16.mxu1 %vm14749_vm8, %v14748_v57  ;;  %v13637_v35 = vadd.f32 %v4697_v21, %v4326_v53  ;;  %v8508_v31 = vpop.f32.mrb[23].mxu0 }
 0x412   : > { %v5144_v46 = vrot.slane %v15474_v58, 1  ;;  %v15475_v31 = vshrl.u32 %v15470_v34, 16 }
 0x413   : > { %v4211_v24 = vpop.f32.mrb[200].mxu1  ;;  %8730 = vmatmul.mubr.bf16.gmra.mrb[128].mxu0 %v5539_v23 }
 0x414   : > { %v4329_v44 = vadd.f32 %v4211_v24, %v13335_v22  ;;  %v8415_v2 = vpop.f32.mrb[201].mxu1  ;;  %8733 = vmatprep.mubr.msk.bf16.mxu0 %vm14749_vm8, %v14748_v57  ;;  %v5140_v23 = vor.u32 %v15475_v31, %v5136_v5 }
 0x415   : > { %v4214_v38 = vpop.f32.mrb[202].mxu1  ;;  %v5542_v2 = vrot.slane %v9435_v48, 1 }
 0x416   : > { %v4330_v53 = vadd.f32 %v4214_v38, %v13340_v27  ;;  %v8416_v25 = vpop.f32.mrb[203].mxu1  ;;  %v4702_v12 = vpop.f32.mrb[24].mxu0  ;;  %v5145_v38 = vsel %vm4375_vm9, %v5140_v23, %v5144_v46 }
 0x417   : > { %v13649_v13 = vadd.f32 %v4702_v12, %v4327_v15  ;;  %v8511_v32 = vpop.f32.mrb[25].mxu0  ;;  %v5543_v5 = vsel %vm5512_vm5, %v5540_v61, %v5542_v2  ;;  %v15476_v12 = vld [vmem:[#allocation66_spill] sm:$0xff] }
 0x418   : > { %8638 = vmatmul.mubr.bf16.gmra.mrb[52].mxu1 %v5137_v50  ;;  %v4705_v22 = vpop.f32.mrb[26].mxu0  ;;  %v15477_v55 = vshll.u32 %v15476_v12, 16  ;;  %v9436_v61 = vld [vmem:[#allocation2 + $0x98] sm:$0xff]  }
 0x419   : > { %8641 = vmatprep.mubr.msk.bf16.mxu1 %vm14749_vm8, %v14748_v57  ;;  %v13653_v1 = vadd.f32 %v4705_v22, %v4328_v59  ;;  %v8512_v0 = vpop.f32.mrb[27].mxu0 }
 0x41a   : > { %v5152_v50 = vrot.slane %v15477_v55, 1  ;;  %v15478_v0 = vshrl.u32 %v15473_v43, 16  ;;  %v15483_v55 = vshrl.u32 %v15476_v12, 16 }
 0x41b   : > { %v4219_v27 = vpop.f32.mrb[204].mxu1  ;;  %8734 = vmatmul.mubr.bf16.gmra.mrb[132].mxu0 %v5541_v52 }
 0x41c   : > { %v4331_v62 = vadd.f32 %v4219_v27, %v13347_v7  ;;  %v8419_v15 = vpop.f32.mrb[205].mxu1  ;;  %8737 = vmatprep.mubr.msk.bf16.mxu0 %vm14749_vm8, %v14748_v57  ;;  %v5148_v52 = vor.u32 %v15478_v0, %v5144_v46 }
 0x41d   : > { %v4222_v21 = vpop.f32.mrb[206].mxu1 }
 0x41e   : > { %v4332_v59 = vadd.f32 %v4222_v21, %v13352_v33  ;;  %v8420_v24 = vpop.f32.mrb[207].mxu1  ;;  %v4710_v14 = vpop.f32.mrb[28].mxu0  ;;  %v5544_v21 = vrot.slane %v9436_v61, 1  ;;  %v5153_v31 = vsel %vm4375_vm9, %v5148_v52, %v5152_v50 }
 0x41f   : > { %v13665_v42 = vadd.f32 %v4710_v14, %v4329_v44  ;;  %v8515_v18 = vpop.f32.mrb[29].mxu0 }
 0x420   : > { %8642 = vmatmul.mubr.bf16.gmra.mrb[56].mxu1 %v5145_v38  ;;  %v4713_v7 = vpop.f32.mrb[30].mxu0  ;;  %v5545_v46 = vsel %vm5512_vm5, %v5542_v2, %v5544_v21  ;;  %v15480_v38 = vld [vmem:[#allocation64_spill] sm:$0xff]  ;;  %v9437_v2 = vld [vmem:[#allocation2 + $0xa0] sm:$0xff]  }
 0x421   : > { %8645 = vmatprep.mubr.msk.bf16.mxu1 %vm14749_vm8, %v14748_v57  ;;  %v13669_v25 = vadd.f32 %v4713_v7, %v4330_v53  ;;  %v8516_v34 = vpop.f32.mrb[31].mxu0  ;;  %v15479_v53 = vld [vmem:[#allocation70_spill] sm:$0xff]  ;;  %v15481_v18 = vshll.u32 %v15480_v38, 16 }
 0x422   : > { %v15482_v34 = vld [vmem:[#allocation72_spill] sm:$0xff] }
 0x423   : > { %v4227_v33 = vpop.f32.mrb[208].mxu1  ;;  %8738 = vmatmul.mubr.bf16.gmra.mrb[136].mxu0 %v5543_v5  ;;  %v5160_v7 = vrot.slane %v15481_v18, 1  ;;  %v13706_v18 = vld [vmem:[#allocation2 + $0xb8] ss:$0 sps:$4 sm:$0x77]  }
 0x424   : > { %v4333_v32 = vadd.f32 %v4227_v33, %v13359_v54  ;;  %v8423_v44 = vpop.f32.mrb[209].mxu1  ;;  %8741 = vmatprep.mubr.msk.bf16.mxu0 %vm14749_vm8, %v14748_v57 }
 0x425   : > { %v4230_v22 = vpop.f32.mrb[210].mxu1  ;;  %v5156_v44 = vor.u32 %v15483_v55, %v5152_v50 }
 0x426   : > { %v4334_v27 = vadd.f32 %v4230_v22, %v15479_v53  ;;  %v8424_v58 = vpop.f32.mrb[211].mxu1  ;;  %v4718_v15 = vpop.f32.mrb[32].mxu0  ;;  %v5546_v53 = vrot.slane %v9437_v2, 1 }
 0x427   : > { %v13681_v23 = vadd.f32 %v4718_v15, %v4331_v62  ;;  %v8519_v24 = vpop.f32.mrb[33].mxu0  ;;  %v5161_v58 = vsel %vm4375_vm9, %v5156_v44, %v5160_v7  ;;  %v15489_v44 = vld [vmem:[#allocation75_spill] sm:$0xff] }
 0x428   : > { %8646 = vmatmul.mubr.bf16.gmra.mrb[60].mxu1 %v5153_v31  ;;  %v4721_v54 = vpop.f32.mrb[34].mxu0  ;;  %v5547_v50 = vsel %vm5512_vm5, %v5544_v21, %v5546_v53 }
 0x429   : > { %8649 = vmatprep.mubr.msk.bf16.mxu1 %vm14749_vm8, %v14748_v57  ;;  %v13685_v14 = vadd.f32 %v4721_v54, %v4332_v59  ;;  %v8520_v43 = vpop.f32.mrb[35].mxu0  ;;  %v15484_v59 = vld [vmem:[#allocation80_spill] sm:$0xff] }
 0x42a   : > { %v15485_v43 = vld [vmem:[#allocation65_spill] sm:$0xff] }
 0x42b   : > { %v4235_v48 = vpop.f32.mrb[212].mxu1  ;;  %8742 = vmatmul.mubr.bf16.gmra.mrb[140].mxu0 %v5545_v46  ;;  %v15486_v46 = vshll.u32 %v15485_v43, 16 }
 0x42c   : > { %v4335_v5 = vadd.f32 %v4235_v48, %v15482_v34  ;;  %v8427_v62 = vpop.f32.mrb[213].mxu1  ;;  %8745 = vmatprep.mubr.msk.bf16.mxu0 %vm14749_vm8, %v14748_v57 }
 0x42d   : > { %v4238_v33 = vpop.f32.mrb[214].mxu1  ;;  %v5168_v48 = vrot.slane %v15486_v46, 1 }
 0x42e   : > { %v4336_v22 = vadd.f32 %v4238_v33, %v15484_v59  ;;  %v8428_v0 = vpop.f32.mrb[215].mxu1  ;;  %v4726_v52 = vpop.f32.mrb[36].mxu0 }
 0x42f   : > { %v13697_v15 = vadd.f32 %v4726_v52, %v4333_v32  ;;  %v8523_v61 = vpop.f32.mrb[37].mxu0  ;;  %v15487_v32 = vld [vmem:[#allocation73_spill] sm:$0xff]  ;;  %v9438_v52 = vld [vmem:[#allocation2 + $0xa8] sm:$0xff]  }
 0x430   : > { %8650 = vmatmul.mubr.bf16.gmra.mrb[64].mxu1 %v5161_v58  ;;  %v4729_v31 = vpop.f32.mrb[38].mxu0  ;;  %v5548_v2 = vrot.slane %v9438_v52, 1  ;;  %v5174_v61 = vshll.u32 %v13706_v18, 16  ;;  %v9439_v52 = vld [vmem:[#allocation2 + $0xb0] sm:$0xff]  }
 0x431   : > { %8653 = vmatprep.mubr.msk.bf16.mxu1 %vm14749_vm8, %v14748_v57  ;;  %v13701_v24 = vadd.f32 %v4729_v31, %v4334_v27  ;;  %v8524_v12 = vpop.f32.mrb[39].mxu0  ;;  %v15488_v27 = vshrl.u32 %v15480_v38, 16 }
 0x433   : > { %v4243_v54 = vpop.f32.mrb[216].mxu1  ;;  %8746 = vmatmul.mubr.bf16.gmra.mrb[144].mxu0 %v5547_v50  ;;  %v5164_v55 = vor.u32 %v15488_v27, %v5160_v7 }
 0x434   : > { %v4337_v34 = vadd.f32 %v4243_v54, %v15487_v32  ;;  %v8431_v62 = vpop.f32.mrb[217].mxu1  ;;  %8749 = vmatprep.mubr.msk.bf16.mxu0 %vm14749_vm8, %v14748_v57  ;;  %v5549_v54 = vsel %vm5512_vm5, %v5546_v53, %v5548_v2  ;;  %v15490_v32 = vshrl.u32 %v15485_v43, 16 }
 0x435   : > { %v4246_v33 = vpop.f32.mrb[218].mxu1  ;;  %v5169_v58 = vsel %vm4375_vm9, %v5164_v55, %v5168_v48 }
 0x436   : > { %v4338_v59 = vadd.f32 %v4246_v33, %v15489_v44  ;;  %v8432_v21 = vpop.f32.mrb[219].mxu1  ;;  %v4734_v0 = vpop.f32.mrb[40].mxu0  ;;  %v5172_v62 = vor.u32 %v15490_v32, %v5168_v48  ;;  %v5176_v33 = vrot.slane %v5174_v61, 1  ;;  %v15491_v44 = vld [vmem:[#allocation78_spill] sm:$0xff]  ;;  %v5178_v48 = vshrl.u32 %v13706_v18, 16 }
 0x437   : > { %v13716_v31 = vadd.f32 %v4734_v0, %v4335_v5  ;;  %v8527_v12 = vpop.f32.mrb[41].mxu0 }
 0x438   : > { %8654 = vmatmul.mubr.bf16.gmra.mrb[68].mxu1 %v5169_v58  ;;  %v4737_v50 = vpop.f32.mrb[42].mxu0  ;;  %v5550_v58 = vrot.slane %v9439_v52, 1  ;;  %v5177_v53 = vsel %vm4375_vm9, %v5172_v62, %v5176_v33 }
 0x439   : > { %8657 = vmatprep.mubr.msk.bf16.mxu1 %vm14749_vm8, %v14748_v57  ;;  %v13720_v38 = vadd.f32 %v4737_v50, %v4336_v22  ;;  %v8528_v7 = vpop.f32.mrb[43].mxu0 }
 0x43a   : > { %v5551_v7 = vsel %vm5512_vm5, %v5548_v2, %v5550_v58 }
 0x43b   : > { %v4251_v46 = vpop.f32.mrb[220].mxu1  ;;  %8750 = vmatmul.mubr.bf16.gmra.mrb[148].mxu0 %v5549_v54 }
 0x43c   : > { %v4339_v5 = vadd.f32 %v4251_v46, %v13398_v41  ;;  %v8435_v27 = vpop.f32.mrb[221].mxu1  ;;  %8753 = vmatprep.mubr.msk.bf16.mxu0 %vm14749_vm8, %v14748_v57  ;;  %v5180_v46 = vor.u32 %v5178_v48, %v5176_v33 }
 0x43d   : > { %v4254_v55 = vpop.f32.mrb[222].mxu1 }
 0x43e   : > { %v4340_v21 = vadd.f32 %v4254_v55, %v15491_v44  ;;  %v8436_v22 = vpop.f32.mrb[223].mxu1  ;;  %v4742_v0 = vpop.f32.mrb[44].mxu0 }
 0x43f   : > { %v13730_v12 = vadd.f32 %v4742_v0, %v4337_v34  ;;  %v8531_v43 = vpop.f32.mrb[45].mxu0 }
 0x440   : > { %8658 = vmatmul.mubr.bf16.gmra.mrb[72].mxu1 %v5177_v53  ;;  %v4745_v41 = vpop.f32.mrb[46].mxu0 }
 0x441   : > { %8661 = vmatprep.mubr.msk.bf16.mxu1 %vm14749_vm8, %v14748_v57  ;;  %v13735_v61 = vadd.f32 %v4745_v41, %v4338_v59  ;;  %v8532_v50 = vpop.f32.mrb[47].mxu0  ;;  %v5552_v59 = vrot.slane %v13706_v18, 1 }
 0x443   : > { %v4259_v54 = vpop.f32.mrb[224].mxu1  ;;  %8754 = vmatmul.mubr.bf16.gmra.mrb[152].mxu0 %v5551_v7  ;;  %v5553_v52 = vsel %vm5512_vm5, %v5550_v58, %v5552_v59  ;;  %v15492_v7 = vld [vmem:[#allocation102_spill] sm:$0xff] }
 0x444   : > { %v4341_v32 = vadd.f32 %v4259_v54, %v13414_v6  ;;  %v8439_v34 = vpop.f32.mrb[225].mxu1  ;;  %8757 = vmatprep.mubr.msk.bf16.mxu0 %vm14749_vm8, %v14748_v57 }
 0x445   : > { %v4262_v62 = vpop.f32.mrb[226].mxu1 }
 0x446   : > { %v4342_v27 = vadd.f32 %v4262_v62, %v13419_v56  ;;  %v8440_v55 = vpop.f32.mrb[227].mxu1  ;;  %v4750_v44 = vpop.f32.mrb[48].mxu0 }
 0x447   : > { %v13743_v22 = vadd.f32 %v4750_v44, %v4339_v5  ;;  %v8535_v0 = vpop.f32.mrb[49].mxu0 }
 0x448   : > { %8662 = vmatmul.mubr.bf16.gmra.mrb[76].mxu1 %v5180_v46  ;;  %v4753_v2 = vpop.f32.mrb[50].mxu0 }
 0x449   : > { %8781 = vmatprep.mubr.msk.bf16.mxu1 %vm14749_vm8, %v14748_v57  ;;  %v13747_v6 = vadd.f32 %v4753_v2, %v4340_v21  ;;  %v8536_v33 = vpop.f32.mrb[51].mxu0 }
 0x44a   : > { %v15493_v33 = vld [vmem:[#allocation103_spill] sm:$0xff] }
 0x44b   : > { %v4267_v53 = vpop.f32.mrb[228].mxu1  ;;  %8758 = vmatmul.mubr.bf16.gmra.mrb[156].mxu0 %v5553_v52 }
 0x44c   : > { %v4343_v56 = vadd.f32 %v4267_v53, %v13433_v16  ;;  %v8443_v43 = vpop.f32.mrb[229].mxu1  ;;  %8761 = vmatprep.mubr.msk.bf16.mxu0 %vm14749_vm8, %v14748_v57 }
 0x44d   : > { %v4270_v18 = vpop.f32.mrb[230].mxu1 }
 0x44e   : > { %v4344_v5 = vadd.f32 %v4270_v18, %v13439_v47  ;;  %v8444_v48 = vpop.f32.mrb[231].mxu1  ;;  %v4758_v41 = vpop.f32.mrb[52].mxu0 }
 0x44f   : > { %v13754_v50 = vadd.f32 %v4758_v41, %v4341_v32  ;;  %v8539_v21 = vpop.f32.mrb[53].mxu0 }
 0x450   : > { %8782 = vmatmul.mubr.bf16.vlgmr.msra.gmra.mrb[80].mxu1 %v15492_v7  ;;  %v4761_v54 = vpop.f32.mrb[54].mxu0  ;;  %v15494_v7 = vld [vmem:[#allocation104_spill] sm:$0xff] }
 0x451   : > { %8785 = vmatprep.mubr.msk.bf16.mxu1 %vm14749_vm8, %v14748_v57  ;;  %v13759_v58 = vadd.f32 %v4761_v54, %v4342_v27  ;;  %v8540_v16 = vpop.f32.mrb[55].mxu0 }
 0x453   : > { %v4275_v46 = vpop.f32.mrb[232].mxu1  ;;  %8762 = vmatmul.mubr.bf16.gmra.mrb[160].mxu0 %v5552_v59 }
 0x454   : > { %v4345_v34 = vadd.f32 %v4275_v46, %v13454_v39  ;;  %v8447_v62 = vpop.f32.mrb[233].mxu1 }
 0x455   : > { %v4278_v47 = vpop.f32.mrb[234].mxu1 }
 0x456   : > { %v4346_v55 = vadd.f32 %v4278_v47, %v13459_v51  ;;  %v8448_v32 = vpop.f32.mrb[235].mxu1  ;;  %v4766_v44 = vpop.f32.mrb[56].mxu0 }
 0x457   : > { %v13763_v0 = vadd.f32 %v4766_v44, %v4343_v56  ;;  %v8543_v2 = vpop.f32.mrb[57].mxu0 }
 0x458   : > { %8786 = vmatmul.mubr.bf16.gmra.mrb[84].mxu1 %v15493_v33  ;;  %v4769_v52 = vpop.f32.mrb[58].mxu0  ;;  %v15495_v33 = vld [vmem:[#allocation105_spill] sm:$0xff] }
 0x459   : > { %8789 = vmatprep.mubr.msk.bf16.mxu1 %vm14749_vm8, %v14748_v57  ;;  %v13768_v27 = vadd.f32 %v4769_v52, %v4344_v5  ;;  %v8544_v59 = vpop.f32.mrb[59].mxu0 }
 0x45b   : > { %v4283_v53 = vpop.f32.mrb[236].mxu1 }
 0x45c   : > { %v4347_v39 = vadd.f32 %v4283_v53, %v13474_v26  ;;  %v8451_v43 = vpop.f32.mrb[237].mxu1 }
 0x45d   : > { %v4286_v18 = vpop.f32.mrb[238].mxu1 }
 0x45e   : > { %v4348_v51 = vadd.f32 %v4286_v18, %v13478_v40  ;;  %v8452_v48 = vpop.f32.mrb[239].mxu1  ;;  %v4774_v56 = vpop.f32.mrb[60].mxu0 }
 0x45f   : > { %v13772_v41 = vadd.f32 %v4774_v56, %v4345_v34  ;;  %v8547_v21 = vpop.f32.mrb[61].mxu0 }
 0x460   : > { %8790 = vmatmul.mubr.bf16.gmra.mrb[88].mxu1 %v15494_v7  ;;  %v4777_v54 = vpop.f32.mrb[62].mxu0  ;;  %v15496_v7 = vld [vmem:[#allocation106_spill] sm:$0xff] }
 0x461   : > { %8793 = vmatprep.mubr.msk.bf16.mxu1 %vm14749_vm8, %v14748_v57  ;;  %v13777_v5 = vadd.f32 %v4777_v54, %v4346_v55  ;;  %v8548_v16 = vpop.f32.mrb[63].mxu0 }
 0x463   : > { %v4291_v46 = vpop.f32.mrb[240].mxu1 }
 0x464   : > { %v4349_v26 = vadd.f32 %v4291_v46, %v13492_v9  ;;  %v8455_v62 = vpop.f32.mrb[241].mxu1 }
 0x465   : > { %v4294_v47 = vpop.f32.mrb[242].mxu1 }
 0x466   : > { %v4350_v40 = vadd.f32 %v4294_v47, %v13496_v28  ;;  %v8456_v32 = vpop.f32.mrb[243].mxu1  ;;  %v4782_v34 = vpop.f32.mrb[64].mxu0 }
 0x467   : > { %v13781_v44 = vadd.f32 %v4782_v34, %v4347_v39  ;;  %v8551_v2 = vpop.f32.mrb[65].mxu0 }
 0x468   : > { %8794 = vmatmul.mubr.bf16.gmra.mrb[92].mxu1 %v15495_v33  ;;  %v4785_v52 = vpop.f32.mrb[66].mxu0  ;;  %v15497_v2 = vld [vmem:[#allocation107_spill] sm:$0xff] }
 0x469   : > { %8797 = vmatprep.mubr.msk.bf16.mxu1 %vm14749_vm8, %v14748_v57  ;;  %v13786_v55 = vadd.f32 %v4785_v52, %v4348_v51  ;;  %v8552_v59 = vpop.f32.mrb[67].mxu0 }
 0x46b   : > { %v4299_v53 = vpop.f32.mrb[244].mxu1 }
 0x46c   : > { %v4351_v9 = vadd.f32 %v4299_v53, %v13507_v49  ;;  %v8459_v43 = vpop.f32.mrb[245].mxu1 }
 0x46d   : > { %v4302_v18 = vpop.f32.mrb[246].mxu1 }
 0x46e   : > { %v4352_v28 = vadd.f32 %v4302_v18, %v13511_v11  ;;  %v8460_v48 = vpop.f32.mrb[247].mxu1  ;;  %v4790_v39 = vpop.f32.mrb[68].mxu0 }
 0x46f   : > { %v13790_v56 = vadd.f32 %v4790_v39, %v4349_v26  ;;  %v8555_v21 = vpop.f32.mrb[69].mxu0 }
 0x470   : > { %8798 = vmatmul.mubr.bf16.gmra.mrb[96].mxu1 %v15496_v7  ;;  %v4793_v54 = vpop.f32.mrb[70].mxu0  ;;  %v15498_v7 = vld [vmem:[#allocation108_spill] sm:$0xff] }
 0x471   : > { %8801 = vmatprep.mubr.msk.bf16.mxu1 %vm14749_vm8, %v14748_v57  ;;  %v13795_v51 = vadd.f32 %v4793_v54, %v4350_v40  ;;  %v8556_v16 = vpop.f32.mrb[71].mxu0 }
 0x473   : > { %v4307_v46 = vpop.f32.mrb[248].mxu1 }
 0x474   : > { %v4353_v49 = vadd.f32 %v4307_v46, %v13523_v4  ;;  %v8463_v62 = vpop.f32.mrb[249].mxu1 }
 0x475   : > { %v4310_v47 = vpop.f32.mrb[250].mxu1 }
 0x476   : > { %v8464_v11 = vpop.f32.mrb[251].mxu1  ;;  %v4798_v32 = vpop.f32.mrb[72].mxu0 }
 0x477   : > { %v13798_v34 = vadd.f32 %v4798_v32, %v4351_v9  ;;  %v8559_v26 = vpop.f32.mrb[73].mxu0 }
 0x478   : > { %8802 = vmatmul.mubr.bf16.gmra.mrb[100].mxu1 %v15497_v2  ;;  %v4801_v33 = vpop.f32.mrb[74].mxu0  ;;  %v15499_v26 = vld [vmem:[#allocation109_spill] sm:$0xff] }
 0x479   : > { %8805 = vmatprep.mubr.msk.bf16.mxu1 %vm14749_vm8, %v14748_v57  ;;  %v13803_v52 = vadd.f32 %v4801_v33, %v4352_v28  ;;  %v8560_v40 = vpop.f32.mrb[75].mxu0 }
 0x47b   : > { %v5284_v59 = vpop.f32.mrb[252].mxu1 }
 0x47c   : > { %v5450_v53 = vadd.f32 %v5284_v59, %v13537_v60  ;;  %v8583_v4 = vpop.f32.mrb[253].mxu1 }
 0x47d   : > { %v5287_v43 = vpop.f32.mrb[254].mxu1 }
 0x47e   : > { %v5451_v18 = vadd.f32 %v5287_v43, %v13541_v45  ;;  %v8584_v48 = vpop.f32.mrb[255].mxu1  ;;  %v4806_v9 = vpop.f32.mrb[76].mxu0 }
 0x47f   : > { %v13807_v39 = vadd.f32 %v4806_v9, %v4353_v49  ;;  %v8563_v21 = vpop.f32.mrb[77].mxu0 }
 0x480   : > { %8806 = vmatmul.mubr.bf16.gmra.mrb[104].mxu1 %v15498_v7  ;;  %v4809_v54 = vpop.f32.mrb[78].mxu0  ;;  %v15500_v7 = vld [vmem:[#allocation110_spill] sm:$0xff] }
 0x481   : > { %8809 = vmatprep.mubr.msk.bf16.mxu1 %vm14749_vm8, %v14748_v57  ;;  %v8564_v28 = vpop.f32.mrb[79].mxu0 }
 0x483   : > { %v5292_v16 = vpop.f32.mrb[0].mxu1 }
 0x484   : > { %v5452_v46 = vadd.f32 %v5292_v16, %v13553_v63  ;;  %v8587_v60 = vpop.f32.mrb[1].mxu1 }
 0x485   : > { %v5295_v62 = vpop.f32.mrb[2].mxu1 }
 0x486   : > { %v5453_v47 = vadd.f32 %v5295_v62, %v13557_v10  ;;  %v8588_v45 = vpop.f32.mrb[3].mxu1  ;;  %v5657_v11 = vpop.f32.mrb[80].mxu0 }
 0x487   : > { %v13814_v32 = vadd.f32 %v5657_v11, %v5450_v53  ;;  %v8683_v49 = vpop.f32.mrb[81].mxu0 }
 0x488   : > { %8810 = vmatmul.mubr.bf16.gmra.mrb[108].mxu1 %v15499_v26  ;;  %v5660_v2 = vpop.f32.mrb[82].mxu0  ;;  %v15501_v26 = vld [vmem:[#allocation111_spill] sm:$0xff] }
 0x489   : > { %8813 = vmatprep.mubr.msk.bf16.mxu1 %vm14749_vm8, %v14748_v57  ;;  %v13819_v33 = vadd.f32 %v5660_v2, %v5451_v18  ;;  %v8684_v40 = vpop.f32.mrb[83].mxu0 }
 0x48b   : > { %v5300_v59 = vpop.f32.mrb[4].mxu1 }
 0x48c   : > { %v5454_v63 = vadd.f32 %v5300_v59, %v13569_v8  ;;  %v8591_v4 = vpop.f32.mrb[5].mxu1 }
 0x48d   : > { %v5303_v43 = vpop.f32.mrb[6].mxu1 }
 0x48e   : > { %v5455_v10 = vadd.f32 %v5303_v43, %v13573_v36  ;;  %v8592_v48 = vpop.f32.mrb[7].mxu1  ;;  %v5665_v53 = vpop.f32.mrb[84].mxu0 }
 0x48f   : > { %v13823_v9 = vadd.f32 %v5665_v53, %v5452_v46  ;;  %v8687_v21 = vpop.f32.mrb[85].mxu0 }
 0x490   : > { %8814 = vmatmul.mubr.bf16.gmra.mrb[112].mxu1 %v15500_v7  ;;  %v5668_v54 = vpop.f32.mrb[86].mxu0  ;;  %v15502_v7 = vld [vmem:[#allocation112_spill] sm:$0xff] }
 0x491   : > { %8817 = vmatprep.mubr.msk.bf16.mxu1 %vm14749_vm8, %v14748_v57  ;;  %v13828_v18 = vadd.f32 %v5668_v54, %v5453_v47  ;;  %v8688_v28 = vpop.f32.mrb[87].mxu0 }
 0x493   : > { %v5308_v16 = vpop.f32.mrb[8].mxu1 }
 0x494   : > { %v5456_v8 = vadd.f32 %v5308_v16, %v13585_v30  ;;  %v8595_v60 = vpop.f32.mrb[9].mxu1 }
 0x495   : > { %v5311_v62 = vpop.f32.mrb[10].mxu1 }
 0x496   : > { %v5457_v36 = vadd.f32 %v5311_v62, %v13589_v19  ;;  %v8596_v45 = vpop.f32.mrb[11].mxu1  ;;  %v5673_v46 = vpop.f32.mrb[88].mxu0 }
 0x497   : > { %v13832_v11 = vadd.f32 %v5673_v46, %v5454_v63  ;;  %v8691_v49 = vpop.f32.mrb[89].mxu0 }
 0x498   : > { %8818 = vmatmul.mubr.bf16.gmra.mrb[116].mxu1 %v15501_v26  ;;  %v5676_v2 = vpop.f32.mrb[90].mxu0  ;;  %v15503_v26 = vld [vmem:[#allocation113_spill] sm:$0xff] }
 0x499   : > { %8821 = vmatprep.mubr.msk.bf16.mxu1 %vm14749_vm8, %v14748_v57  ;;  %v13837_v47 = vadd.f32 %v5676_v2, %v5455_v10  ;;  %v8692_v40 = vpop.f32.mrb[91].mxu0 }
 0x49b   : > { %v5316_v59 = vpop.f32.mrb[12].mxu1 }
 0x49c   : > { %v5458_v30 = vadd.f32 %v5316_v59, %v13601_v20  ;;  %v8599_v4 = vpop.f32.mrb[13].mxu1 }
 0x49d   : > { %v5319_v43 = vpop.f32.mrb[14].mxu1 }
 0x49e   : > { %v5459_v19 = vadd.f32 %v5319_v43, %v13605_v17  ;;  %v8600_v48 = vpop.f32.mrb[15].mxu1  ;;  %v5681_v63 = vpop.f32.mrb[92].mxu0 }
 0x49f   : > { %v13841_v53 = vadd.f32 %v5681_v63, %v5456_v8  ;;  %v8695_v21 = vpop.f32.mrb[93].mxu0 }
 0x4a0   : > { %8822 = vmatmul.mubr.bf16.gmra.mrb[120].mxu1 %v15502_v7  ;;  %v5684_v54 = vpop.f32.mrb[94].mxu0  ;;  %v15504_v7 = vld [vmem:[#allocation114_spill] sm:$0xff] }
 0x4a1   : > { %8825 = vmatprep.mubr.msk.bf16.mxu1 %vm14749_vm8, %v14748_v57  ;;  %v13846_v10 = vadd.f32 %v5684_v54, %v5457_v36  ;;  %v8696_v28 = vpop.f32.mrb[95].mxu0 }
 0x4a3   : > { %v5324_v16 = vpop.f32.mrb[16].mxu1 }
 0x4a4   : > { %v5460_v20 = vadd.f32 %v5324_v16, %v13617_v37  ;;  %v8603_v60 = vpop.f32.mrb[17].mxu1 }
 0x4a5   : > { %v5327_v62 = vpop.f32.mrb[18].mxu1 }
 0x4a6   : > { %v5461_v17 = vadd.f32 %v5327_v62, %v13621_v29  ;;  %v8604_v45 = vpop.f32.mrb[19].mxu1  ;;  %v5689_v8 = vpop.f32.mrb[96].mxu0 }
 0x4a7   : > { %v13850_v46 = vadd.f32 %v5689_v8, %v5458_v30  ;;  %v8699_v49 = vpop.f32.mrb[97].mxu0 }
 0x4a8   : > { %8826 = vmatmul.mubr.bf16.gmra.mrb[124].mxu1 %v15503_v26  ;;  %v5692_v2 = vpop.f32.mrb[98].mxu0  ;;  %v15505_v26 = vld [vmem:[#allocation115_spill] sm:$0xff] }
 0x4a9   : > { %8829 = vmatprep.mubr.msk.bf16.mxu1 %vm14749_vm8, %v14748_v57  ;;  %v13855_v36 = vadd.f32 %v5692_v2, %v5459_v19  ;;  %v8700_v40 = vpop.f32.mrb[99].mxu0 }
 0x4ab   : > { %v5332_v59 = vpop.f32.mrb[20].mxu1 }
 0x4ac   : > { %v5462_v37 = vadd.f32 %v5332_v59, %v13633_v3  ;;  %v8607_v4 = vpop.f32.mrb[21].mxu1 }
 0x4ad   : > { %v5335_v43 = vpop.f32.mrb[22].mxu1 }
 0x4ae   : > { %v5463_v29 = vadd.f32 %v5335_v43, %v13637_v35  ;;  %v8608_v48 = vpop.f32.mrb[23].mxu1  ;;  %v5697_v30 = vpop.f32.mrb[100].mxu0 }
 0x4af   : > { %v13859_v63 = vadd.f32 %v5697_v30, %v5460_v20  ;;  %v8703_v21 = vpop.f32.mrb[101].mxu0 }
 0x4b0   : > { %8830 = vmatmul.mubr.bf16.gmra.mrb[128].mxu1 %v15504_v7  ;;  %v5700_v54 = vpop.f32.mrb[102].mxu0  ;;  %v15506_v7 = vld [vmem:[#allocation116_spill] sm:$0xff] }
 0x4b1   : > { %8833 = vmatprep.mubr.msk.bf16.mxu1 %vm14749_vm8, %v14748_v57  ;;  %v13864_v19 = vadd.f32 %v5700_v54, %v5461_v17  ;;  %v8704_v28 = vpop.f32.mrb[103].mxu0 }
 0x4b3   : > { %v5340_v16 = vpop.f32.mrb[24].mxu1 }
 0x4b4   : > { %v5464_v3 = vadd.f32 %v5340_v16, %v13649_v13  ;;  %v8611_v60 = vpop.f32.mrb[25].mxu1 }
 0x4b5   : > { %v5343_v62 = vpop.f32.mrb[26].mxu1 }
 0x4b6   : > { %v5465_v35 = vadd.f32 %v5343_v62, %v13653_v1  ;;  %v8612_v45 = vpop.f32.mrb[27].mxu1  ;;  %v5705_v20 = vpop.f32.mrb[104].mxu0 }
 0x4b7   : > { %v13868_v8 = vadd.f32 %v5705_v20, %v5462_v37  ;;  %v8707_v49 = vpop.f32.mrb[105].mxu0 }
 0x4b8   : > { %8834 = vmatmul.mubr.bf16.gmra.mrb[132].mxu1 %v15505_v26  ;;  %v5708_v2 = vpop.f32.mrb[106].mxu0  ;;  %v15507_v26 = vld [vmem:[#allocation117_spill] sm:$0xff] }
 0x4b9   : > { %8837 = vmatprep.mubr.msk.bf16.mxu1 %vm14749_vm8, %v14748_v57  ;;  %v13873_v17 = vadd.f32 %v5708_v2, %v5463_v29  ;;  %v8708_v40 = vpop.f32.mrb[107].mxu0 }
 0x4bb   : > { %v5348_v59 = vpop.f32.mrb[28].mxu1 }
 0x4bc   : > { %v5466_v13 = vadd.f32 %v5348_v59, %v13665_v42  ;;  %v8615_v4 = vpop.f32.mrb[29].mxu1 }
 0x4bd   : > { %v5351_v43 = vpop.f32.mrb[30].mxu1 }
 0x4be   : > { %v5467_v1 = vadd.f32 %v5351_v43, %v13669_v25  ;;  %v8616_v48 = vpop.f32.mrb[31].mxu1  ;;  %v5713_v37 = vpop.f32.mrb[108].mxu0 }
 0x4bf   : > { %v13877_v30 = vadd.f32 %v5713_v37, %v5464_v3  ;;  %v8711_v21 = vpop.f32.mrb[109].mxu0 }
 0x4c0   : > { %8838 = vmatmul.mubr.bf16.gmra.mrb[136].mxu1 %v15506_v7  ;;  %v5716_v54 = vpop.f32.mrb[110].mxu0  ;;  %v15508_v7 = vld [vmem:[#allocation68_spill] sm:$0xff] }
 0x4c1   : > { %8841 = vmatprep.mubr.msk.bf16.mxu1 %vm14749_vm8, %v14748_v57  ;;  %v13882_v29 = vadd.f32 %v5716_v54, %v5465_v35  ;;  %v8712_v28 = vpop.f32.mrb[111].mxu0 }
 0x4c3   : > { %v5356_v16 = vpop.f32.mrb[32].mxu1 }
 0x4c4   : > { %v5468_v42 = vadd.f32 %v5356_v16, %v13681_v23  ;;  %v8619_v60 = vpop.f32.mrb[33].mxu1 }
 0x4c5   : > { %v5359_v62 = vpop.f32.mrb[34].mxu1 }
 0x4c6   : > { %v5469_v25 = vadd.f32 %v5359_v62, %v13685_v14  ;;  %v8620_v45 = vpop.f32.mrb[35].mxu1  ;;  %v5721_v3 = vpop.f32.mrb[112].mxu0 }
 0x4c7   : > { %v13886_v20 = vadd.f32 %v5721_v3, %v5466_v13  ;;  %v8715_v49 = vpop.f32.mrb[113].mxu0  ;;  %v9078_v3 = vld [vmem:[#allocation2 + $0xb8] ss:$0 sps:$4 sm:$0xff]  }
 0x4c8   : > { %8842 = vmatmul.mubr.bf16.gmra.mrb[140].mxu1 %v15507_v26  ;;  %v5724_v2 = vpop.f32.mrb[114].mxu0 }
 0x4c9   : > { %8845 = vmatprep.mubr.msk.bf16.mxu1 %vm14749_vm8, %v14748_v57  ;;  %v13891_v35 = vadd.f32 %v5724_v2, %v5467_v1  ;;  %v8716_v40 = vpop.f32.mrb[115].mxu0  ;;  %v15509_v2 = vld [vmem:[#allocation118_spill] sm:$0xff] }
 0x4cb   : > { %v5364_v59 = vpop.f32.mrb[36].mxu1 }
 0x4cc   : > { %v5470_v23 = vadd.f32 %v5364_v59, %v13697_v15  ;;  %v8623_v4 = vpop.f32.mrb[37].mxu1 }
 0x4cd   : > { %v5367_v43 = vpop.f32.mrb[38].mxu1  ;;  %v5971_v4 = vshrl.u32 %v9078_v3, 16 }
 0x4ce   : > { %v5471_v14 = vadd.f32 %v5367_v43, %v13701_v24  ;;  %v8624_v48 = vpop.f32.mrb[39].mxu1  ;;  %v5729_v13 = vpop.f32.mrb[116].mxu0  ;;  %v5974_v43 = vshll.u32 %v9078_v3, 16 }
 0x4cf   : > { %v13895_v37 = vadd.f32 %v5729_v13, %v5468_v42  ;;  %v8719_v21 = vpop.f32.mrb[117].mxu0 }
 0x4d0   : > { %8846 = vmatmul.mubr.bf16.gmra.mrb[144].mxu1 %v15508_v7  ;;  %v5732_v54 = vpop.f32.mrb[118].mxu0 }
 0x4d1   : > { %8849 = vmatprep.mubr.msk.bf16.mxu1 %vm14749_vm8, %v14748_v57  ;;  %v13900_v1 = vadd.f32 %v5732_v54, %v5469_v25  ;;  %v8720_v28 = vpop.f32.mrb[119].mxu0  ;;  %v5973_v54 = vrot.slane %v5971_v4, 1 }
 0x4d2   : > { %v5976_v28 = vrot.slane %v5974_v43, 2 }
 0x4d3   : > { %v5372_v16 = vpop.f32.mrb[40].mxu1 }
 0x4d4   : > { %v5472_v15 = vadd.f32 %v5372_v16, %v13716_v31  ;;  %v8627_v60 = vpop.f32.mrb[41].mxu1  ;;  %v5977_v3 = vor.u32 %v5976_v28, %v5973_v54 }
 0x4d5   : > { %v5375_v62 = vpop.f32.mrb[42].mxu1 }
 0x4d6   : > { %v5473_v24 = vadd.f32 %v5375_v62, %v13720_v38  ;;  %v8628_v45 = vpop.f32.mrb[43].mxu1  ;;  %v5737_v42 = vpop.f32.mrb[120].mxu0  ;;  %v15510_v62 = vld [vmem:[#allocation120_spill] sm:$0xff] }
 0x4d7   : > { %v13904_v49 = vadd.f32 %v5737_v42, %v5470_v23  ;;  %v8723_v26 = vpop.f32.mrb[121].mxu0 }
 0x4d8   : > { %8850 = vmatmul.mubr.bf16.gmra.mrb[148].mxu1 %v15509_v2  ;;  %v5740_v40 = vpop.f32.mrb[122].mxu0 }
 0x4d9   : > { %8853 = vmatprep.mubr.msk.bf16.mxu1 %vm14749_vm8, %v14748_v57  ;;  %v13909_v25 = vadd.f32 %v5740_v40, %v5471_v14  ;;  %v8724_v59 = vpop.f32.mrb[123].mxu0 }
 0x4db   : > { %v5380_v31 = vpop.f32.mrb[44].mxu1 }
 0x4dc   : > { %v5474_v38 = vadd.f32 %v5380_v31, %v13730_v12  ;;  %v8631_v48 = vpop.f32.mrb[45].mxu1  ;;  %v15511_v31 = vld [vmem:[#allocation119_spill] sm:$0xff] }
 0x4dd   : > { %v5383_v13 = vpop.f32.mrb[46].mxu1  ;;  %v5978_v4 = vsel %vm5885_vm1, %v15511_v31, %v5977_v3 }
 0x4de   : > { %v5475_v23 = vadd.f32 %v5383_v13, %v13735_v61  ;;  %v8632_v21 = vpop.f32.mrb[47].mxu1  ;;  %v5745_v7 = vpop.f32.mrb[124].mxu0 }
 0x4df   : > { %v13913_v16 = vadd.f32 %v5745_v7, %v5472_v15  ;;  %v8727_v60 = vpop.f32.mrb[125].mxu0 }
 0x4e0   : > { %8854 = vmatmul.mubr.bf16.gmra.mrb[152].mxu1 %v15510_v62  ;;  %v5748_v14 = vpop.f32.mrb[126].mxu0 }
 0x4e1   : > { %8857 = vmatprep.mubr.msk.bf16.mxu1 %vm14749_vm8, %v14748_v57  ;;  %v13918_v45 = vadd.f32 %v5748_v14, %v5473_v24  ;;  %v8728_v12 = vpop.f32.mrb[127].mxu0 }
 0x4e3   : > { %v5388_v42 = vpop.f32.mrb[48].mxu1 }
 0x4e4   : > { %v5476_v61 = vadd.f32 %v5388_v42, %v13743_v22  ;;  %v8635_v26 = vpop.f32.mrb[49].mxu1 }
 0x4e5   : > { %v5391_v2 = vpop.f32.mrb[50].mxu1 }
 0x4e6   : > { %v5477_v40 = vadd.f32 %v5391_v2, %v13747_v6  ;;  %v8636_v15 = vpop.f32.mrb[51].mxu1  ;;  %v5753_v59 = vpop.f32.mrb[128].mxu0 }
 0x4e7   : > { %v13924_v43 = vadd.f32 %v5753_v59, %v5474_v38  ;;  %v8731_v48 = vpop.f32.mrb[129].mxu0 }
 0x4e8   : > { %8858 = vmatmul.mubr.bf16.gmra.mrb[156].mxu1 %v5978_v4  ;;  %v5756_v24 = vpop.f32.mrb[130].mxu0 }
 0x4e9   : > { %8861 = vmatprep.mubr.msk.bf16.mxu1 %vm14749_vm8, %v14748_v57  ;;  %v13928_v13 = vadd.f32 %v5756_v24, %v5475_v23  ;;  %v8732_v22 = vpop.f32.mrb[131].mxu0 }
 0x4eb   : > { %v5396_v21 = vpop.f32.mrb[52].mxu1 }
 0x4ec   : > { %v5478_v7 = vadd.f32 %v5396_v21, %v13754_v50  ;;  %v8639_v6 = vpop.f32.mrb[53].mxu1 }
 0x4ed   : > { %v5399_v54 = vpop.f32.mrb[54].mxu1 }
 0x4ee   : > { %v5479_v28 = vadd.f32 %v5399_v54, %v13759_v58  ;;  %v8640_v60 = vpop.f32.mrb[55].mxu1  ;;  %v5761_v62 = vpop.f32.mrb[132].mxu0 }
 0x4ef   : > { %v13932_v38 = vadd.f32 %v5761_v62, %v5476_v61  ;;  %v8735_v14 = vpop.f32.mrb[133].mxu0 }
 0x4f0   : > { %8862 = vmatmul.mubr.bf16.gmra.mrb[160].mxu1 %v5977_v3  ;;  %v5764_v12 = vpop.f32.mrb[134].mxu0 }
 0x4f1   : > { %v13934_v42 = vadd.f32 %v5764_v12, %v5477_v40  ;;  %v8736_v57 = vpop.f32.mrb[135].mxu0 }
 0x4f3   : > { %v5404_v23 = vpop.f32.mrb[56].mxu1 }
 0x4f4   : > { %v5480_v26 = vadd.f32 %v5404_v23, %v13763_v0  ;;  %v8643_v2 = vpop.f32.mrb[57].mxu1 }
 0x4f5   : > { %v5407_v15 = vpop.f32.mrb[58].mxu1 }
 0x4f6   : > { %v5481_v50 = vadd.f32 %v5407_v15, %v13768_v27  ;;  %v8644_v59 = vpop.f32.mrb[59].mxu1  ;;  %v5769_v31 = vpop.f32.mrb[136].mxu0 }
 0x4f7   : > { %v13938_v58 = vadd.f32 %v5769_v31, %v5478_v7  ;;  %v8739_v4 = vpop.f32.mrb[137].mxu0 }
 0x4f8   : > { %v5772_v61 = vpop.f32.mrb[138].mxu0 }
 0x4f9   : > { %v13940_v48 = vadd.f32 %v5772_v61, %v5479_v28  ;;  %v8740_v3 = vpop.f32.mrb[139].mxu0 }
 0x4fb   : > { %v5412_v24 = vpop.f32.mrb[60].mxu1 }
 0x4fc   : > { %v5482_v40 = vadd.f32 %v5412_v24, %v13772_v41  ;;  %v8647_v22 = vpop.f32.mrb[61].mxu1 }
 0x4fd   : > { %v5415_v21 = vpop.f32.mrb[62].mxu1 }
 0x4fe   : > { %v5483_v0 = vadd.f32 %v5415_v21, %v13777_v5  ;;  %v8648_v6 = vpop.f32.mrb[63].mxu1  ;;  %v5777_v54 = vpop.f32.mrb[140].mxu0 }
 0x4ff   : > { %v13944_v60 = vadd.f32 %v5777_v54, %v5480_v26  ;;  %v8743_v27 = vpop.f32.mrb[141].mxu0 }
 0x500   : > { %v5780_v62 = vpop.f32.mrb[142].mxu0 }
 0x501   : > { %v13946_v7 = vadd.f32 %v5780_v62, %v5481_v50  ;;  %v8744_v14 = vpop.f32.mrb[143].mxu0 }
 0x503   : > { %v5420_v12 = vpop.f32.mrb[64].mxu1 }
 0x504   : > { %v5484_v28 = vadd.f32 %v5420_v12, %v13781_v44  ;;  %v8651_v57 = vpop.f32.mrb[65].mxu1 }
 0x505   : > { %v5423_v23 = vpop.f32.mrb[66].mxu1 }
 0x506   : > { %v5485_v41 = vadd.f32 %v5423_v23, %v13786_v55  ;;  %v8652_v2 = vpop.f32.mrb[67].mxu1  ;;  %v5785_v15 = vpop.f32.mrb[144].mxu0 }
 0x507   : > { %v13950_v59 = vadd.f32 %v5785_v15, %v5482_v40  ;;  %v8747_v5 = vpop.f32.mrb[145].mxu0 }
 0x508   : > { %v5788_v31 = vpop.f32.mrb[146].mxu0 }
 0x509   : > { %v13952_v26 = vadd.f32 %v5788_v31, %v5483_v0  ;;  %v8748_v4 = vpop.f32.mrb[147].mxu0 }
 0x50b   : > { %v5428_v61 = vpop.f32.mrb[68].mxu1 }
 0x50c   : > { %v5486_v50 = vadd.f32 %v5428_v61, %v13790_v56  ;;  %v8655_v3 = vpop.f32.mrb[69].mxu1 }
 0x50d   : > { %v5431_v24 = vpop.f32.mrb[70].mxu1 }
 0x50e   : > { %v5487_v44 = vadd.f32 %v5431_v24, %v13795_v51  ;;  %v8656_v22 = vpop.f32.mrb[71].mxu1  ;;  %v5793_v21 = vpop.f32.mrb[148].mxu0 }
 0x50f   : > { %v13956_v6 = vadd.f32 %v5793_v21, %v5484_v28  ;;  %v8751_v55 = vpop.f32.mrb[149].mxu0 }
 0x510   : > { %v5796_v54 = vpop.f32.mrb[150].mxu0 }
 0x511   : > { %v13958_v40 = vadd.f32 %v5796_v54, %v5485_v41  ;;  %v8752_v27 = vpop.f32.mrb[151].mxu0  ;;  %v13972_v54 = vld [vmem:[%s9607_s15] ss:$0 sm:$0xff] }
 0x513   : > { %v5436_v62 = vpop.f32.mrb[72].mxu1 }
 0x514   : > { %v5488_v0 = vadd.f32 %v5436_v62, %v13798_v34  ;;  %v8659_v14 = vpop.f32.mrb[73].mxu1 }
 0x515   : > { %v5439_v12 = vpop.f32.mrb[74].mxu1 }
 0x516   : > { %v5489_v56 = vadd.f32 %v5439_v12, %v13803_v52  ;;  %v8660_v57 = vpop.f32.mrb[75].mxu1  ;;  %v5801_v23 = vpop.f32.mrb[152].mxu0 }
 0x517   : > { %v13962_v2 = vadd.f32 %v5801_v23, %v5486_v50  ;;  %v8755_v51 = vpop.f32.mrb[153].mxu0 }
 0x518   : > { %v5804_v28 = vpop.f32.mrb[154].mxu0 }
 0x519   : > { %v13964_v15 = vadd.f32 %v5804_v28, %v5487_v44  ;;  %v8756_v5 = vpop.f32.mrb[155].mxu0 }
 0x51b   : > { %v5444_v41 = vpop.f32.mrb[76].mxu1 }
 0x51c   : > { %v5490_v31 = vadd.f32 %v5444_v41, %v13807_v39  ;;  %v8663_v4 = vpop.f32.mrb[77].mxu1 }
 0x51d   : > { %v5447_v61 = vpop.f32.mrb[78].mxu1 }
 0x51e   : > { %v8664_v34 = vpop.f32.mrb[79].mxu1  ;;  %v5809_v3 = vpop.f32.mrb[156].mxu0 }
 0x51f   : > { %v13967_v24 = vadd.f32 %v5809_v3, %v5488_v0  ;;  %v8759_v52 = vpop.f32.mrb[157].mxu0 }
 0x520   : > { %v5812_v22 = vpop.f32.mrb[158].mxu0 }
 0x521   : > { %v13969_v21 = vadd.f32 %v5812_v22, %v5489_v56  ;;  %v8760_v50 = vpop.f32.mrb[159].mxu0 }
 0x523   : > { %v6082_v55 = vpop.f32.mrb[80].mxu1 }
 0x524   : > { %v6248_v44 = vadd.f32 %v6082_v55, %v13814_v32  ;;  %v8783_v27 = vpop.f32.mrb[81].mxu1 }
 0x525   : > { %v6085_v62 = vpop.f32.mrb[82].mxu1 }
 0x526   : > { %v13976_v39 = vadd.f32 %v13972_v54, %v6248_v44  ;;  %v6249_v14 = vadd.f32 %v6085_v62, %v13819_v33  ;;  %v8784_v12 = vpop.f32.mrb[83].mxu1  ;;  %v5817_v0 = vpop.f32.mrb[160].mxu0 }
 0x527   : > { %v13979_v57 = vadd.f32 %v5817_v0, %v5490_v31  ;;  %v8763_v51 = vpop.f32.mrb[161].mxu0 }
 0x528   : > { %v6337_v56 = vmin.f32 %v13976_v39, 20.0  ;;  %v13983_v23 = vadd.f32 %v13972_v54, %v6249_v14  ;;  %v5820_v28 = vpop.f32.mrb[162].mxu0 }
 0x529   : > { %v8764_v41 = vpop.f32.mrb[163].mxu0 }
 0x52a   : > { %v6378_v5 = vmul.f32 1.442695, %v6337_v56  ;;  %v6338_v32 = vmin.f32 %v13983_v23, 20.0 }
 0x52b   : > { %v6090_v4 = vpop.f32.mrb[84].mxu1 }
 0x52c   : > { %9243 = vpow2.f32 %v6378_v5  ;;  %v6380_v61 = vmul.f32 1.442695, %v6338_v32  ;;  %v6250_v33 = vadd.f32 %v6090_v4, %v13823_v9  ;;  %v8787_v34 = vpop.f32.mrb[85].mxu1 }
 0x52d   : > { %v6093_v3 = vpop.f32.mrb[86].mxu1 }
 0x52e   : > { %9245 = vpow2.f32 %v6380_v61  ;;  %v13988_v31 = vadd.f32 %v13972_v54, %v6250_v33  ;;  %v6251_v52 = vadd.f32 %v6093_v3, %v13828_v18  ;;  %v8788_v22 = vpop.f32.mrb[87].mxu1 }
 0x530   : > { %v6339_v50 = vmin.f32 %v13988_v31, 20.0  ;;  %v13993_v55 = vadd.f32 %v13972_v54, %v6251_v52 }
 0x532   : > { %v6382_v44 = vmul.f32 1.442695, %v6339_v50  ;;  %v6340_v27 = vmin.f32 %v13993_v55, 20.0 }
 0x533   : > { %v6098_v62 = vpop.f32.mrb[88].mxu1 }
 0x534   : > { %9247 = vpow2.f32 %v6382_v44  ;;  %v6384_v9 = vmul.f32 1.442695, %v6340_v27  ;;  %v6252_v14 = vadd.f32 %v6098_v62, %v13832_v11  ;;  %v8791_v12 = vpop.f32.mrb[89].mxu1 }
 0x535   : > { %v6101_v0 = vpop.f32.mrb[90].mxu1 }
 0x536   : > { %v9244_v56 = vpop.eup %9243  ;;  %9249 = vpow2.f32 %v6384_v9  ;;  %v13998_v18 = vadd.f32 %v13972_v54, %v6252_v14  ;;  %v6253_v51 = vadd.f32 %v6101_v0, %v13837_v47  ;;  %v8792_v28 = vpop.f32.mrb[91].mxu1 }
 0x537   : > { %v6460_v5 = vadd.f32 1.0, %v9244_v56 }
 0x538   : > { %v9246_v32 = vpop.eup %9245  ;;  %v6341_v41 = vmin.f32 %v13998_v18, 20.0  ;;  %v14003_v4 = vadd.f32 %v13972_v54, %v6253_v51 }
 0x539   : > { %v6501_v61 = vmul.f32 %v6460_v5, %v6460_v5  ;;  %v6461_v33 = vadd.f32 1.0, %v9246_v32 }
 0x53a   : > { %v6386_v11 = vmul.f32 1.442695, %v6341_v41  ;;  %v6342_v34 = vmin.f32 %v14003_v4, 20.0 }
 0x53b   : > { %v6624_v3 = vadd.f32 1.0, %v6501_v61  ;;  %v6502_v52 = vmul.f32 %v6461_v33, %v6461_v33  ;;  %v6106_v22 = vpop.f32.mrb[92].mxu1  ;;  %v7370_v41 = vadd.f32 -1.0, %v6501_v61 }
 0x53c   : > { %9251 = vpow2.f32 %v6386_v11  ;;  %v6388_v50 = vmul.f32 1.442695, %v6342_v34  ;;  %v6254_v47 = vadd.f32 %v6106_v22, %v13841_v53  ;;  %v8795_v44 = vpop.f32.mrb[93].mxu1 }
 0x53d   : > { %9253 = vrcp.f32 %v6624_v3  ;;  %v6625_v27 = vadd.f32 1.0, %v6502_v52  ;;  %v6109_v62 = vpop.f32.mrb[94].mxu1 }
 0x53e   : > { %v9248_v9 = vpop.eup %9247  ;;  %9255 = vpow2.f32 %v6388_v50  ;;  %v14008_v14 = vadd.f32 %v13972_v54, %v6254_v47  ;;  %v6255_v12 = vadd.f32 %v6109_v62, %v13846_v10  ;;  %v8796_v0 = vpop.f32.mrb[95].mxu1  ;;  %v7371_v50 = vadd.f32 -1.0, %v6502_v52 }
 0x53f   : > { %9257 = vrcp.f32 %v6625_v27  ;;  %v6462_v56 = vadd.f32 1.0, %v9248_v9 }
 0x540   : > { %v9250_v51 = vpop.eup %9249  ;;  %v6343_v28 = vmin.f32 %v14008_v14, 20.0  ;;  %v14013_v5 = vadd.f32 %v13972_v54, %v6255_v12  ;;  %v6583_v12 = vmul.f32 %v7370_v41, %v13976_v39 }
 0x541   : > { %v6503_v53 = vmul.f32 %v6462_v56, %v6462_v56  ;;  %v6463_v32 = vadd.f32 1.0, %v9250_v51 }
 0x542   : > { %v6390_v33 = vmul.f32 1.442695, %v6343_v28  ;;  %v6344_v11 = vmin.f32 %v14013_v5, 20.0 }
 0x543   : > { %v6626_v34 = vadd.f32 1.0, %v6503_v53  ;;  %v6504_v3 = vmul.f32 %v6463_v32, %v6463_v32  ;;  %v6114_v22 = vpop.f32.mrb[96].mxu1  ;;  %v6584_v32 = vmul.f32 %v7371_v50, %v13983_v23 }
 0x544   : > { %9259 = vpow2.f32 %v6390_v33  ;;  %v6392_v10 = vmul.f32 1.442695, %v6344_v11  ;;  %v6256_v47 = vadd.f32 %v6114_v22, %v13850_v46  ;;  %v8799_v44 = vpop.f32.mrb[97].mxu1  ;;  %v7372_v11 = vadd.f32 -1.0, %v6503_v53 }
 0x545   : > { %9261 = vrcp.f32 %v6626_v34  ;;  %v6627_v27 = vadd.f32 1.0, %v6504_v3  ;;  %v6117_v62 = vpop.f32.mrb[98].mxu1 }
 0x546   : > { %v9252_v9 = vpop.eup %9251  ;;  %9263 = vpow2.f32 %v6392_v10  ;;  %v14019_v61 = vadd.f32 %v13972_v54, %v6256_v47  ;;  %v6257_v0 = vadd.f32 %v6117_v62, %v13855_v36  ;;  %v8800_v56 = vpop.f32.mrb[99].mxu1  ;;  %v9440_v36 = vld [vmem:[%s9612_s19] sm:$0xff]  ;;  %v7373_v62 = vadd.f32 -1.0, %v6504_v3 }
 0x547   : > { %v9254_v52 = vpop.eup %9253  ;;  %9265 = vrcp.f32 %v6627_v27  ;;  %v6464_v51 = vadd.f32 1.0, %v9252_v9 }
 0x548   : > { %v9256_v28 = vpop.eup %9255  ;;  %v6706_v46 = vmul.f32 %v9254_v52, %v6583_v12  ;;  %v6345_v33 = vmin.f32 %v14019_v61, 20.0  ;;  %v14025_v39 = vadd.f32 %v13972_v54, %v6257_v0  ;;  %v9441_v0 = vld [vmem:[%s9612_s19 + $0x8] sm:$0xff] }
 0x549   : > { %v9258_v41 = vpop.eup %9257  ;;  %v6505_v34 = vmul.f32 %v6464_v51, %v6464_v51  ;;  %v6465_v22 = vadd.f32 1.0, %v9256_v28  ;;  %v6585_v28 = vmul.f32 %v7372_v11, %v13988_v31  ;;  %v6586_v11 = vmul.f32 %v7373_v62, %v13993_v55 }
 0x54a   : > { %v6747_v10 = vadd.f32 %v9440_v36, %v6706_v46  ;;  %v6707_v47 = vmul.f32 %v9258_v41, %v6584_v32  ;;  %v6394_v44 = vmul.f32 1.442695, %v6345_v33  ;;  %v6346_v27 = vmin.f32 %v14025_v39, 20.0 }
 0x54b   : > { %v6628_v9 = vadd.f32 1.0, %v6505_v34  ;;  %v6506_v23 = vmul.f32 %v6465_v22, %v6465_v22  ;;  %v6122_v50 = vpop.f32.mrb[100].mxu1 }
 0x54c   : > { %v6788_v56 = vsel %vm10273_vm15, %v6747_v10, 0.0  ;;  %v6748_v52 = vadd.f32 %v9441_v0, %v6707_v47  ;;  %9267 = vpow2.f32 %v6394_v44  ;;  %v6396_v53 = vmul.f32 1.442695, %v6346_v27  ;;  %v8803_v51 = vpop.f32.mrb[101].mxu1  ;;  %v9442_v0 = vld [vmem:[%s9612_s19 + $0x10] sm:$0xff] }
 0x54d   : > { %6829 = vst [vmem:[%s9612_s19] sm:$0xff] %v6788_v56  ;;  %9269 = vrcp.f32 %v6628_v9  ;;  %v6629_v46 = vadd.f32 1.0, %v6506_v23  ;;  %v6125_v32 = vpop.f32.mrb[102].mxu1  ;;  %v6258_v22 = vadd.f32 %v6122_v50, %v13859_v63  ;;  %v7374_v50 = vadd.f32 -1.0, %v6505_v34 }
 0x54e   : > { %v9260_v33 = vpop.eup %9259  ;;  %v6789_v41 = vsel %vm10289_vm7, %v6748_v52, 0.0  ;;  %9271 = vpow2.f32 %v6396_v53  ;;  %v6259_v36 = vadd.f32 %v6125_v32, %v13864_v19  ;;  %v8804_v10 = vpop.f32.mrb[103].mxu1  ;;  %v7375_v55 = vadd.f32 -1.0, %v6506_v23 }
 0x54f   : > { %v9262_v47 = vpop.eup %9261  ;;  %6830 = vst [vmem:[%s9612_s19 + $0x8] sm:$0xff] %v6789_v41  ;;  %9273 = vrcp.f32 %v6629_v46  ;;  %v6466_v44 = vadd.f32 1.0, %v9260_v33  ;;  %v14041_v9 = vadd.f32 %v13972_v54, %v6258_v22  ;;  %v9443_v41 = vld [vmem:[%s9612_s19 + $0x18] sm:$0xff] }
 0x550   : > { %v9264_v27 = vpop.eup %9263  ;;  %v6708_v31 = vmul.f32 %v9262_v47, %v6585_v28  ;;  %v14044_v12 = vadd.f32 %v13972_v54, %v6259_v36  ;;  %v6587_v47 = vmul.f32 %v7374_v50, %v13998_v18 }
 0x551   : > { %v9266_v63 = vpop.eup %9265  ;;  %v6507_v56 = vmul.f32 %v6466_v44, %v6466_v44  ;;  %v6467_v19 = vadd.f32 1.0, %v9264_v27  ;;  %v6347_v51 = vmin.f32 %v14041_v9, 20.0 }
 0x552   : > { %v6749_v52 = vadd.f32 %v9442_v0, %v6708_v31  ;;  %v6709_v53 = vmul.f32 %v9266_v63, %v6586_v11  ;;  %v6348_v28 = vmin.f32 %v14044_v12, 20.0 }
 0x553   : > { %v6630_v62 = vadd.f32 1.0, %v6507_v56  ;;  %v6508_v46 = vmul.f32 %v6467_v19, %v6467_v19  ;;  %v6130_v32 = vpop.f32.mrb[104].mxu1  ;;  %v6398_v34 = vmul.f32 1.442695, %v6347_v51 }
 0x554   : > { %v6790_v3 = vsel %vm10360_vm2, %v6749_v52, 0.0  ;;  %v6750_v22 = vadd.f32 %v9443_v41, %v6709_v53  ;;  %v6400_v36 = vmul.f32 1.442695, %v6348_v28  ;;  %v8807_v10 = vpop.f32.mrb[105].mxu1  ;;  %v6260_v63 = vadd.f32 %v6130_v32, %v13868_v8 }
 0x555   : > { %6831 = vst [vmem:[%s9612_s19 + $0x10] sm:$0xff] %v6790_v3  ;;  %9275 = vrcp.f32 %v6630_v62  ;;  %v6631_v44 = vadd.f32 1.0, %v6508_v46  ;;  %v6133_v27 = vpop.f32.mrb[106].mxu1  ;;  %v6588_v53 = vmul.f32 %v7375_v55, %v14003_v4  ;;  %v9444_v3 = vld [vmem:[%s9612_s19 + $0x20] sm:$0xff] }
 0x556   : > { %v9268_v31 = vpop.eup %9267  ;;  %v6791_v11 = vsel %vm10376_vm3, %v6750_v22, 0.0  ;;  %9277 = vpow2.f32 %v6398_v34  ;;  %v6261_v19 = vadd.f32 %v6133_v27, %v13873_v17  ;;  %v8808_v0 = vpop.f32.mrb[107].mxu1  ;;  %v14061_v28 = vadd.f32 %v13972_v54, %v6260_v63 }
 0x557   : > { %v9270_v52 = vpop.eup %9269  ;;  %6832 = vst [vmem:[%s9612_s19 + $0x18] sm:$0xff] %v6791_v11  ;;  %9279 = vrcp.f32 %v6631_v44  ;;  %v6468_v18 = vadd.f32 1.0, %v9268_v31  ;;  %v7376_v17 = vadd.f32 -1.0, %v6507_v56  ;;  %v7377_v34 = vadd.f32 -1.0, %v6508_v46  ;;  %v9445_v31 = vld [vmem:[%s9612_s19 + $0x28] sm:$0xff] }
 0x558   : > { %v9272_v50 = vpop.eup %9271  ;;  %v6710_v51 = vmul.f32 %v9270_v52, %v6587_v47  ;;  %9281 = vpow2.f32 %v6400_v36  ;;  %v14064_v62 = vadd.f32 %v13972_v54, %v6261_v19  ;;  %v6349_v55 = vmin.f32 %v14061_v28, 20.0 }
 0x559   : > { %v9274_v8 = vpop.eup %9273  ;;  %v6509_v32 = vmul.f32 %v6468_v18, %v6468_v18  ;;  %v6469_v33 = vadd.f32 1.0, %v9272_v50  ;;  %v6589_v19 = vmul.f32 %v7376_v17, %v14008_v14 }
 0x55a   : > { %v6751_v41 = vadd.f32 %v9444_v3, %v6710_v51  ;;  %v6711_v4 = vmul.f32 %v9274_v8, %v6588_v53  ;;  %v6350_v22 = vmin.f32 %v14064_v62, 20.0  ;;  %v6402_v23 = vmul.f32 1.442695, %v6349_v55  ;;  %v15517_v53 = vld [vmem:[#allocation33_spill] sm:$0xff] }
 0x55b   : > { %v6632_v36 = vadd.f32 1.0, %v6509_v32  ;;  %v6510_v10 = vmul.f32 %v6469_v33, %v6469_v33  ;;  %v6138_v47 = vpop.f32.mrb[108].mxu1  ;;  %vm15518_vm15 = vnez %v15517_v53  ;;  %v6590_v33 = vmul.f32 %v7377_v34, %v14013_v5 }
 0x55c   : > { %v6792_v27 = vsel %vm10441_vm14, %v6751_v41, 0.0  ;;  %v6752_v56 = vadd.f32 %v9445_v31, %v6711_v4  ;;  %v6404_v11 = vmul.f32 1.442695, %v6350_v22  ;;  %v8811_v63 = vpop.f32.mrb[109].mxu1  ;;  %v6262_v18 = vadd.f32 %v6138_v47, %v13877_v30  ;;  %v9446_v22 = vld [vmem:[%s9612_s19 + $0x30] sm:$0xff] }
 0x55d   : > { %6833 = vst [vmem:[%s9612_s19 + $0x20] sm:$0xff] %v6792_v27  ;;  %9283 = vrcp.f32 %v6632_v36  ;;  %v6633_v0 = vadd.f32 1.0, %v6510_v10  ;;  %v6141_v52 = vpop.f32.mrb[110].mxu1  ;;  %v7378_v4 = vadd.f32 -1.0, %v6509_v32  ;;  %v7379_v44 = vadd.f32 -1.0, %v6510_v10  ;;  %v9447_v63 = vld [vmem:[%s9612_s19 + $0x38] sm:$0xff] }
 0x55e   : > { %v6793_v46 = vsel %vm15518_vm15, %v6752_v56, 0.0  ;;  %9285 = vpow2.f32 %v6402_v23  ;;  %v6263_v50 = vadd.f32 %v6141_v52, %v13882_v29  ;;  %v8812_v51 = vpop.f32.mrb[111].mxu1  ;;  %v14081_v17 = vadd.f32 %v13972_v54, %v6262_v18  ;;  %v15519_v23 = vld [vmem:[#allocation34_spill] sm:$0xff] }
 0x55f   : > { %v9276_v8 = vpop.eup %9275  ;;  %6834 = vst [vmem:[%s9612_s19 + $0x28] sm:$0xff] %v6793_v46  ;;  %9287 = vrcp.f32 %v6633_v0  ;;  %vm15520_vm7 = vnez %v15519_v23  ;;  %v15521_v51 = vld [vmem:[#allocation35_spill] sm:$0xff] }
 0x560   : > { %v9278_v3 = vpop.eup %9277  ;;  %v6712_v14 = vmul.f32 %v9276_v8, %v6589_v19  ;;  %9289 = vpow2.f32 %v6404_v11  ;;  %v14084_v41 = vadd.f32 %v13972_v54, %v6263_v50  ;;  %v6351_v5 = vmin.f32 %v14081_v17, 20.0 }
 0x561   : > { %v9280_v30 = vpop.eup %9279  ;;  %v6470_v55 = vadd.f32 1.0, %v9278_v3  ;;  %vm15522_vm2 = vnez %v15521_v51  ;;  %v6591_v8 = vmul.f32 %v7378_v4, %v14019_v61 }
 0x562   : > { %v9282_v29 = vpop.eup %9281  ;;  %v6753_v36 = vadd.f32 %v9446_v22, %v6712_v14  ;;  %v6713_v47 = vmul.f32 %v9280_v30, %v6590_v33  ;;  %v6352_v34 = vmin.f32 %v14084_v41, 20.0  ;;  %v6406_v19 = vmul.f32 1.442695, %v6351_v5 }
 0x563   : > { %v6511_v27 = vmul.f32 %v6470_v55, %v6470_v55  ;;  %v6471_v31 = vadd.f32 1.0, %v9282_v29  ;;  %v6146_v56 = vpop.f32.mrb[112].mxu1  ;;  %v6592_v30 = vmul.f32 %v7379_v44, %v14025_v39 }
 0x564   : > { %v6794_v11 = vsel %vm15520_vm7, %v6753_v36, 0.0  ;;  %v6754_v32 = vadd.f32 %v9447_v63, %v6713_v47  ;;  %v6408_v0 = vmul.f32 1.442695, %v6352_v34  ;;  %v8815_v52 = vpop.f32.mrb[113].mxu1  ;;  %v6264_v18 = vadd.f32 %v6146_v56, %v13886_v20  ;;  %v9448_v47 = vld [vmem:[%s9612_s19 + $0x40] sm:$0xff]  ;;  %v15523_v63 = vld [vmem:[#allocation4_spill] sm:$0xff] }
 0x565   : > { %6835 = vst [vmem:[%s9612_s19 + $0x30] sm:$0xff] %v6794_v11  ;;  %v6634_v53 = vadd.f32 1.0, %v6511_v27  ;;  %v6512_v46 = vmul.f32 %v6471_v31, %v6471_v31  ;;  %v6149_v50 = vpop.f32.mrb[114].mxu1  ;;  %9291 = vpow2.f32 %v6406_v19  ;;  %v7380_v31 = vadd.f32 -1.0, %v6511_v27  ;;  %v9449_v19 = vld [vmem:[%s9612_s19 + $0x48] sm:$0xff] }
 0x566   : > { %v6795_v10 = vsel %vm15522_vm2, %v6754_v32, 0.0  ;;  %v6265_v33 = vadd.f32 %v6149_v50, %v13891_v35  ;;  %v8816_v3 = vpop.f32.mrb[115].mxu1  ;;  %v14101_v20 = vadd.f32 %v13972_v54, %v6264_v18  ;;  %vm15524_vm3 = vnez %v15523_v63 }
 0x567   : > { %v9284_v14 = vpop.eup %9283  ;;  %6836 = vst [vmem:[%s9612_s19 + $0x38] sm:$0xff] %v6795_v10  ;;  %9293 = vrcp.f32 %v6634_v53  ;;  %v6635_v55 = vadd.f32 1.0, %v6512_v46  ;;  %v7381_v3 = vadd.f32 -1.0, %v6512_v46 }
 0x568   : > { %v9286_v29 = vpop.eup %9285  ;;  %v6714_v22 = vmul.f32 %v9284_v14, %v6591_v8  ;;  %9295 = vpow2.f32 %v6408_v0  ;;  %v14104_v61 = vadd.f32 %v13972_v54, %v6265_v33  ;;  %v6353_v34 = vmin.f32 %v14101_v20, 20.0  ;;  %v15525_v33 = vld [vmem:[#allocation3_spill] sm:$0xff] }
 0x569   : > { %v9288_v4 = vpop.eup %9287  ;;  %9297 = vrcp.f32 %v6635_v55  ;;  %v6472_v35 = vadd.f32 1.0, %v9286_v29  ;;  %vm15526_vm14 = vnez %v15525_v33  ;;  %v9451_v33 = vld [vmem:[%s9612_s19 + $0x58] sm:$0xff] }
 0x56a   : > { %v9290_v36 = vpop.eup %9289  ;;  %v6755_v5 = vadd.f32 %v9448_v47, %v6714_v22  ;;  %v6715_v39 = vmul.f32 %v9288_v4, %v6592_v30  ;;  %v6354_v44 = vmin.f32 %v14104_v61, 20.0  ;;  %v6410_v52 = vmul.f32 1.442695, %v6353_v34 }
 0x56b   : > { %v6513_v56 = vmul.f32 %v6472_v35, %v6472_v35  ;;  %v6473_v23 = vadd.f32 1.0, %v9290_v36  ;;  %v6154_v11 = vpop.f32.mrb[116].mxu1  ;;  %v6593_v22 = vmul.f32 %v7380_v31, %v14041_v9  ;;  %v6594_v47 = vmul.f32 %v7381_v3, %v14044_v12 }
 0x56c   : > { %v6796_v32 = vsel %vm15524_vm3, %v6755_v5, 0.0  ;;  %v6756_v0 = vadd.f32 %v9449_v19, %v6715_v39  ;;  %v6412_v53 = vmul.f32 1.442695, %v6354_v44  ;;  %v8819_v18 = vpop.f32.mrb[117].mxu1  ;;  %v6266_v10 = vadd.f32 %v6154_v11, %v13895_v37  ;;  %v9450_v11 = vld [vmem:[%s9612_s19 + $0x50] sm:$0xff] }
 0x56d   : > { %6837 = vst [vmem:[%s9612_s19 + $0x40] sm:$0xff] %v6796_v32  ;;  %v6636_v50 = vadd.f32 1.0, %v6513_v56  ;;  %v6514_v51 = vmul.f32 %v6473_v23, %v6473_v23  ;;  %v6157_v8 = vpop.f32.mrb[118].mxu1  ;;  %9299 = vpow2.f32 %v6410_v52  ;;  %v7382_v34 = vadd.f32 -1.0, %v6513_v56 }
 0x56e   : > { %v6797_v27 = vsel %vm15526_vm14, %v6756_v0, 0.0  ;;  %v6267_v14 = vadd.f32 %v6157_v8, %v13900_v1  ;;  %v8820_v30 = vpop.f32.mrb[119].mxu1  ;;  %v14120_v4 = vadd.f32 %v13972_v54, %v6266_v10  ;;  %v15527_v8 = vld [vmem:[#allocation10_spill] sm:$0xff] }
 0x56f   : > { %6838 = vst [vmem:[%s9612_s19 + $0x48] sm:$0xff] %v6797_v27  ;;  %9301 = vrcp.f32 %v6636_v50  ;;  %v6637_v55 = vadd.f32 1.0, %v6514_v51  ;;  %v9292_v29 = vpop.eup %9291  ;;  %vm15528_vm8 = vnez %v15527_v8  ;;  %v6595_v30 = vmul.f32 %v7382_v34, %v14061_v28  ;;  %v15531_v8 = vld [vmem:[#allocation6_spill] sm:$0xff] }
 0x570   : > { %9303 = vpow2.f32 %v6412_v53  ;;  %v14123_v37 = vadd.f32 %v13972_v54, %v6267_v14  ;;  %v6474_v46 = vadd.f32 1.0, %v9292_v29  ;;  %v6355_v5 = vmin.f32 %v14120_v4, 20.0  ;;  %v15529_v29 = vld [vmem:[#allocation5_spill] sm:$0xff] }
 0x571   : > { %v9294_v35 = vpop.eup %9293  ;;  %9305 = vrcp.f32 %v6637_v55  ;;  %v7383_v53 = vadd.f32 -1.0, %v6514_v51  ;;  %vm15530_vm4 = vnez %v15529_v29  ;;  %vm15532_vm6 = vnez %v15531_v8 }
 0x572   : > { %v9296_v36 = vpop.eup %9295  ;;  %v6716_v1 = vmul.f32 %v9294_v35, %v6593_v22  ;;  %v6356_v39 = vmin.f32 %v14123_v37, 20.0  ;;  %v6515_v44 = vmul.f32 %v6474_v46, %v6474_v46  ;;  %v6414_v19 = vmul.f32 1.442695, %v6355_v5 }
 0x573   : > { %v9298_v9 = vpop.eup %9297  ;;  %v6475_v31 = vadd.f32 1.0, %v9296_v36  ;;  %v6162_v23 = vpop.f32.mrb[120].mxu1 }
 0x574   : > { %v6757_v63 = vadd.f32 %v9450_v11, %v6716_v1  ;;  %v6717_v32 = vmul.f32 %v9298_v9, %v6594_v47  ;;  %v6416_v0 = vmul.f32 1.442695, %v6356_v39  ;;  %v8823_v52 = vpop.f32.mrb[121].mxu1  ;;  %v6638_v18 = vadd.f32 1.0, %v6515_v44  ;;  %v9452_v11 = vld [vmem:[%s9612_s19 + $0x60] sm:$0xff] }
 0x575   : > { %v6516_v12 = vmul.f32 %v6475_v31, %v6475_v31  ;;  %v6268_v50 = vadd.f32 %v6162_v23, %v13904_v49  ;;  %v6165_v10 = vpop.f32.mrb[122].mxu1  ;;  %9307 = vpow2.f32 %v6414_v19  ;;  %v6596_v1 = vmul.f32 %v7383_v53, %v14064_v62 }
 0x576   : > { %v6798_v56 = vsel %vm15528_vm8, %v6757_v63, 0.0  ;;  %v6758_v27 = vadd.f32 %v9451_v33, %v6717_v32  ;;  %v6269_v3 = vadd.f32 %v6165_v10, %v13909_v25  ;;  %v8824_v14 = vpop.f32.mrb[123].mxu1  ;;  %9309 = vrcp.f32 %v6638_v18 }
 0x577   : > { %6839 = vst [vmem:[%s9612_s19 + $0x50] sm:$0xff] %v6798_v56  ;;  %v6639_v51 = vadd.f32 1.0, %v6516_v12  ;;  %v9300_v55 = vpop.eup %9299  ;;  %9311 = vpow2.f32 %v6416_v0  ;;  %v14139_v22 = vadd.f32 %v13972_v54, %v6268_v50  ;;  %v7384_v9 = vadd.f32 -1.0, %v6515_v44  ;;  %v9453_v56 = vld [vmem:[%s9612_s19 + $0x68] sm:$0xff] }
 0x578   : > { %v6799_v49 = vsel %vm15530_vm4, %v6758_v27, 0.0  ;;  %v14142_v35 = vadd.f32 %v13972_v54, %v6269_v3  ;;  %v6476_v25 = vadd.f32 1.0, %v9300_v55  ;;  %v7385_v18 = vadd.f32 -1.0, %v6516_v12 }
 0x579   : > { %v9302_v46 = vpop.eup %9301  ;;  %6840 = vst [vmem:[%s9612_s19 + $0x58] sm:$0xff] %v6799_v49  ;;  %9313 = vrcp.f32 %v6639_v51  ;;  %v6357_v47 = vmin.f32 %v14139_v22, 20.0  ;;  %v6597_v14 = vmul.f32 %v7384_v9, %v14081_v17  ;;  %v15533_v51 = vld [vmem:[#allocation11_spill] sm:$0xff] }
 0x57a   : > { %v9304_v36 = vpop.eup %9303  ;;  %v6718_v28 = vmul.f32 %v9302_v46, %v6595_v30  ;;  %v6358_v5 = vmin.f32 %v14142_v35, 20.0  ;;  %v6517_v34 = vmul.f32 %v6476_v25, %v6476_v25  ;;  %vm15534_vm13 = vnez %v15533_v51 }
 0x57b   : > { %v9306_v39 = vpop.eup %9305  ;;  %v6477_v31 = vadd.f32 1.0, %v9304_v36  ;;  %v6170_v23 = vpop.f32.mrb[124].mxu1  ;;  %v6418_v19 = vmul.f32 1.442695, %v6357_v47  ;;  %v6598_v25 = vmul.f32 %v7385_v18, %v14084_v41 }
 0x57c   : > { %v6759_v63 = vadd.f32 %v9452_v11, %v6718_v28  ;;  %v6719_v32 = vmul.f32 %v9306_v39, %v6596_v1  ;;  %v6420_v0 = vmul.f32 1.442695, %v6358_v5  ;;  %v8827_v52 = vpop.f32.mrb[125].mxu1  ;;  %v6640_v50 = vadd.f32 1.0, %v6517_v34 }
 0x57d   : > { %v6518_v62 = vmul.f32 %v6477_v31, %v6477_v31  ;;  %v6270_v53 = vadd.f32 %v6170_v23, %v13913_v16  ;;  %v6173_v10 = vpop.f32.mrb[126].mxu1  ;;  %9315 = vpow2.f32 %v6418_v19  ;;  %v7386_v47 = vadd.f32 -1.0, %v6517_v34  ;;  %v9454_v31 = vld [vmem:[%s9612_s19 + $0x70] sm:$0xff] }
 0x57e   : > { %v6800_v44 = vsel %vm15532_vm6, %v6759_v63, 0.0  ;;  %v6760_v33 = vadd.f32 %v9453_v56, %v6719_v32  ;;  %v6271_v27 = vadd.f32 %v6173_v10, %v13918_v45  ;;  %v8828_v3 = vpop.f32.mrb[127].mxu1  ;;  %9317 = vrcp.f32 %v6640_v50  ;;  %v9455_v10 = vld [vmem:[%s9612_s19 + $0x78] sm:$0xff] }
 0x57f   : > { %6841 = vst [vmem:[%s9612_s19 + $0x60] sm:$0xff] %v6800_v44  ;;  %v6641_v12 = vadd.f32 1.0, %v6518_v62  ;;  %v9308_v30 = vpop.eup %9307  ;;  %9319 = vpow2.f32 %v6420_v0  ;;  %v14159_v55 = vadd.f32 %v13972_v54, %v6270_v53  ;;  %v7387_v0 = vadd.f32 -1.0, %v6518_v62  ;;  %v15535_v53 = vld [vmem:[#allocation13_spill] sm:$0xff]  ;;  %v15537_v3 = vld [vmem:[#allocation7_spill] sm:$0xff] }
 0x580   : > { %v6801_v16 = vsel %vm15534_vm13, %v6760_v33, 0.0  ;;  %v14162_v29 = vadd.f32 %v13972_v54, %v6271_v27  ;;  %v9310_v49 = vpop.eup %9309  ;;  %v6478_v45 = vadd.f32 1.0, %v9308_v30  ;;  %vm15536_vm9 = vnez %v15535_v53 }
 0x581   : > { %6842 = vst [vmem:[%s9612_s19 + $0x68] sm:$0xff] %v6801_v16  ;;  %9321 = vrcp.f32 %v6641_v12  ;;  %v9312_v46 = vpop.eup %9311  ;;  %v6720_v17 = vmul.f32 %v9310_v49, %v6597_v14  ;;  %v6359_v36 = vmin.f32 %v14159_v55, 20.0  ;;  %v6599_v33 = vmul.f32 %v7386_v47, %v14101_v20 }
 0x582   : > { %v6360_v28 = vmin.f32 %v14162_v29, 20.0  ;;  %v6519_v5 = vmul.f32 %v6478_v45, %v6478_v45  ;;  %v6479_v39 = vadd.f32 1.0, %v9312_v46  ;;  %vm15538_vm1 = vnez %v15537_v3 }
 0x583   : > { %v9314_v1 = vpop.eup %9313  ;;  %v6178_v9 = vpop.f32.mrb[128].mxu1  ;;  %v6761_v23 = vadd.f32 %v9454_v31, %v6720_v17  ;;  %v6422_v63 = vmul.f32 1.442695, %v6359_v36  ;;  %v6600_v16 = vmul.f32 %v7387_v0, %v14104_v61  ;;  %v15539_v0 = vld [vmem:[#allocation8_spill] sm:$0xff] }
 0x584   : > { %v6721_v11 = vmul.f32 %v9314_v1, %v6598_v25  ;;  %v6424_v32 = vmul.f32 1.442695, %v6360_v28  ;;  %v8831_v19 = vpop.f32.mrb[129].mxu1  ;;  %v6642_v52 = vadd.f32 1.0, %v6519_v5  ;;  %v6520_v41 = vmul.f32 %v6479_v39, %v6479_v39  ;;  %v9456_v1 = vld [vmem:[%s9612_s19 + $0x80] sm:$0xff] }
 0x585   : > { %v6272_v18 = vadd.f32 %v6178_v9, %v13924_v43  ;;  %v6181_v50 = vpop.f32.mrb[130].mxu1  ;;  %v6802_v34 = vsel %vm15536_vm9, %v6761_v23, 0.0  ;;  %9323 = vpow2.f32 %v6422_v63  ;;  %v7388_v17 = vadd.f32 -1.0, %v6519_v5 }
 0x586   : > { %v6762_v8 = vadd.f32 %v9455_v10, %v6721_v11  ;;  %v6273_v44 = vadd.f32 %v6181_v50, %v13928_v13  ;;  %v8832_v56 = vpop.f32.mrb[131].mxu1  ;;  %6843 = vst [vmem:[%s9612_s19 + $0x70] sm:$0xff] %v6802_v34  ;;  %9325 = vrcp.f32 %v6642_v52  ;;  %v6643_v62 = vadd.f32 1.0, %v6520_v41  ;;  %v9457_v52 = vld [vmem:[%s9612_s19 + $0x88] sm:$0xff] }
 0x587   : > { %v9316_v27 = vpop.eup %9315  ;;  %9327 = vpow2.f32 %v6424_v32  ;;  %v14179_v14 = vadd.f32 %v13972_v54, %v6272_v18  ;;  %v7389_v11 = vadd.f32 -1.0, %v6520_v41  ;;  %vm15540_vm5 = vnez %v15539_v0 }
 0x588   : > { %v6803_v43 = vsel %vm15538_vm1, %v6762_v8, 0.0  ;;  %v14182_v12 = vadd.f32 %v13972_v54, %v6273_v44  ;;  %v9318_v30 = vpop.eup %9317  ;;  %9329 = vrcp.f32 %v6643_v62  ;;  %v6480_v13 = vadd.f32 1.0, %v9316_v27  ;;  %v15541_v8 = vld [vmem:[#allocation17_spill] sm:$0xff] }
 0x589   : > { %6844 = vst [vmem:[%s9612_s19 + $0x78] sm:$0xff] %v6803_v43  ;;  %v9320_v51 = vpop.eup %9319  ;;  %v6722_v20 = vmul.f32 %v9318_v30, %v6599_v33  ;;  %v6361_v49 = vmin.f32 %v14179_v14, 20.0  ;;  %v6601_v34 = vmul.f32 %v7388_v17, %v14120_v4  ;;  %vm15542_vm15 = vnez %v15541_v8 }
 0x58a   : > { %v6362_v45 = vmin.f32 %v14182_v12, 20.0  ;;  %v6521_v25 = vmul.f32 %v6480_v13, %v6480_v13  ;;  %v6481_v36 = vadd.f32 1.0, %v9320_v51  ;;  %v6602_v27 = vmul.f32 %v7389_v11, %v14123_v37 }
 0x58b   : > { %v9322_v46 = vpop.eup %9321  ;;  %v6186_v28 = vpop.f32.mrb[132].mxu1  ;;  %v6763_v47 = vadd.f32 %v9456_v1, %v6722_v20  ;;  %v6426_v9 = vmul.f32 1.442695, %v6361_v49  ;;  %v9458_v49 = vld [vmem:[%s9612_s19 + $0x90] sm:$0xff] }
 0x58c   : > { %v6723_v39 = vmul.f32 %v9322_v46, %v6600_v16  ;;  %v6428_v31 = vmul.f32 1.442695, %v6362_v45  ;;  %v8835_v23 = vpop.f32.mrb[133].mxu1  ;;  %v6644_v63 = vadd.f32 1.0, %v6521_v25  ;;  %v6522_v61 = vmul.f32 %v6481_v36, %v6481_v36 }
 0x58d   : > { %v6274_v32 = vadd.f32 %v6186_v28, %v13932_v38  ;;  %v6189_v19 = vpop.f32.mrb[134].mxu1  ;;  %v6804_v5 = vsel %vm15540_vm5, %v6763_v47, 0.0  ;;  %9331 = vpow2.f32 %v6426_v9  ;;  %v7390_v13 = vadd.f32 -1.0, %v6521_v25  ;;  %v9459_v23 = vld [vmem:[%s9612_s19 + $0x98] sm:$0xff] }
 0x58e   : > { %v6764_v18 = vadd.f32 %v9457_v52, %v6723_v39  ;;  %v6275_v50 = vadd.f32 %v6189_v19, %v13934_v42  ;;  %v8836_v53 = vpop.f32.mrb[135].mxu1  ;;  %6845 = vst [vmem:[%s9612_s19 + $0x80] sm:$0xff] %v6804_v5  ;;  %9333 = vrcp.f32 %v6644_v63  ;;  %v6645_v41 = vadd.f32 1.0, %v6522_v61  ;;  %v15545_v5 = vld [vmem:[#allocation19_spill] sm:$0xff] }
 0x58f   : > { %v9324_v10 = vpop.eup %9323  ;;  %9335 = vpow2.f32 %v6428_v31  ;;  %v14199_v44 = vadd.f32 %v13972_v54, %v6274_v32  ;;  %v7391_v1 = vadd.f32 -1.0, %v6522_v61  ;;  %v15543_v31 = vld [vmem:[#allocation12_spill] sm:$0xff]  ;;  %v6603_v19 = vmul.f32 %v7390_v13, %v14139_v22 }
 0x590   : > { %v6805_v38 = vsel %vm15542_vm15, %v6764_v18, 0.0  ;;  %v14202_v56 = vadd.f32 %v13972_v54, %v6275_v50  ;;  %v9326_v33 = vpop.eup %9325  ;;  %9337 = vrcp.f32 %v6645_v41  ;;  %v6482_v42 = vadd.f32 1.0, %v9324_v10 }
 0x591   : > { %6846 = vst [vmem:[%s9612_s19 + $0x88] sm:$0xff] %v6805_v38  ;;  %v9328_v62 = vpop.eup %9327  ;;  %v6724_v4 = vmul.f32 %v9326_v33, %v6601_v34  ;;  %v6363_v3 = vmin.f32 %v14199_v44, 20.0  ;;  %vm15544_vm7 = vnez %v15543_v31  ;;  %vm15546_vm2 = vnez %v15545_v5 }
 0x592   : > { %v6364_v43 = vmin.f32 %v14202_v56, 20.0  ;;  %v9330_v30 = vpop.eup %9329  ;;  %v6523_v51 = vmul.f32 %v6482_v42, %v6482_v42  ;;  %v6483_v20 = vadd.f32 1.0, %v9328_v62  ;;  %v6604_v34 = vmul.f32 %v7391_v1, %v14142_v35 }
 0x593   : > { %v6194_v16 = vpop.f32.mrb[136].mxu1  ;;  %v6765_v45 = vadd.f32 %v9458_v49, %v6724_v4  ;;  %v6725_v46 = vmul.f32 %v9330_v30, %v6602_v27  ;;  %v6430_v17 = vmul.f32 1.442695, %v6363_v3  ;;  %v9460_v4 = vld [vmem:[%s9612_s19 + $0xa0] sm:$0xff] }
 0x594   : > { %v6432_v36 = vmul.f32 1.442695, %v6364_v43  ;;  %v8839_v28 = vpop.f32.mrb[137].mxu1  ;;  %v6646_v47 = vadd.f32 1.0, %v6523_v51  ;;  %v6524_v37 = vmul.f32 %v6483_v20, %v6483_v20  ;;  %v6276_v39 = vadd.f32 %v6194_v16, %v13938_v58 }
 0x595   : > { %v6197_v9 = vpop.f32.mrb[138].mxu1  ;;  %v6806_v25 = vsel %vm15544_vm7, %v6765_v45, 0.0  ;;  %v6766_v11 = vadd.f32 %v9459_v23, %v6725_v46  ;;  %9339 = vpow2.f32 %v6430_v17  ;;  %v7392_v38 = vadd.f32 -1.0, %v6523_v51  ;;  %v15547_v46 = vld [vmem:[#allocation14_spill] sm:$0xff]  ;;  %v9461_v17 = vld [vmem:[%s9612_s19 + $0xa8] sm:$0xff] }
 0x596   : > { %v6277_v63 = vadd.f32 %v6197_v9, %v13940_v48  ;;  %v8840_v32 = vpop.f32.mrb[139].mxu1  ;;  %6847 = vst [vmem:[%s9612_s19 + $0x90] sm:$0xff] %v6806_v25  ;;  %9341 = vrcp.f32 %v6646_v47  ;;  %v6647_v61 = vadd.f32 1.0, %v6524_v37  ;;  %v14219_v52 = vadd.f32 %v13972_v54, %v6276_v39  ;;  %v15549_v9 = vld [vmem:[#allocation20_spill] sm:$0xff] }
 0x597   : > { %v9332_v0 = vpop.eup %9331  ;;  %v6807_v58 = vsel %vm15546_vm2, %v6766_v11, 0.0  ;;  %9343 = vpow2.f32 %v6432_v36  ;;  %v7393_v20 = vadd.f32 -1.0, %v6524_v37  ;;  %vm15548_vm3 = vnez %v15547_v46 }
 0x598   : > { %v14222_v18 = vadd.f32 %v13972_v54, %v6277_v63  ;;  %v9334_v50 = vpop.eup %9333  ;;  %6848 = vst [vmem:[%s9612_s19 + $0x98] sm:$0xff] %v6807_v58  ;;  %9345 = vrcp.f32 %v6647_v61  ;;  %v6484_v48 = vadd.f32 1.0, %v9332_v0  ;;  %v6365_v41 = vmin.f32 %v14219_v52, 20.0 }
 0x599   : > { %v9336_v53 = vpop.eup %9335  ;;  %v6726_v22 = vmul.f32 %v9334_v50, %v6603_v19  ;;  %v6605_v47 = vmul.f32 %v7392_v38, %v14159_v55  ;;  %vm15550_vm14 = vnez %v15549_v9  ;;  %v6606_v63 = vmul.f32 %v7393_v20, %v14162_v29 }
 0x59a   : > { %v6366_v10 = vmin.f32 %v14222_v18, 20.0  ;;  %v9338_v8 = vpop.eup %9337  ;;  %v6525_v33 = vmul.f32 %v6484_v48, %v6484_v48  ;;  %v6485_v42 = vadd.f32 1.0, %v9336_v53  ;;  %v6434_v43 = vmul.f32 1.442695, %v6365_v41 }
 0x59b   : > { %v6202_v62 = vpop.f32.mrb[140].mxu1  ;;  %v6767_v27 = vadd.f32 %v9460_v4, %v6726_v22  ;;  %v6727_v3 = vmul.f32 %v9338_v8, %v6604_v34  ;;  %v9463_v4 = vld [vmem:[%s9612_s19 + $0xb8] sm:$0xff] }
 0x59c   : > { %v6436_v30 = vmul.f32 1.442695, %v6366_v10  ;;  %v8843_v13 = vpop.f32.mrb[141].mxu1  ;;  %v6648_v16 = vadd.f32 1.0, %v6525_v33  ;;  %v6526_v35 = vmul.f32 %v6485_v42, %v6485_v42  ;;  %v6278_v49 = vadd.f32 %v6202_v62, %v13944_v60  ;;  %v15551_v62 = vld [vmem:[#allocation22_spill] sm:$0xff] }
 0x59d   : > { %v6205_v45 = vpop.f32.mrb[142].mxu1  ;;  %v6808_v51 = vsel %vm15548_vm3, %v6767_v27, 0.0  ;;  %v6768_v36 = vadd.f32 %v9461_v17, %v6727_v3  ;;  %9347 = vpow2.f32 %v6434_v43  ;;  %v7394_v0 = vadd.f32 -1.0, %v6525_v33 }
 0x59e   : > { %v6279_v28 = vadd.f32 %v6205_v45, %v13946_v7  ;;  %v8844_v1 = vpop.f32.mrb[143].mxu1  ;;  %6849 = vst [vmem:[%s9612_s19 + $0xa0] sm:$0xff] %v6808_v51  ;;  %9349 = vrcp.f32 %v6648_v16  ;;  %v6649_v37 = vadd.f32 1.0, %v6526_v35  ;;  %v14239_v31 = vadd.f32 %v13972_v54, %v6278_v49  ;;  %v15553_v16 = vld [vmem:[#allocation15_spill] sm:$0xff] }
 0x59f   : > { %v9340_v39 = vpop.eup %9339  ;;  %v6809_v60 = vsel %vm15550_vm14, %v6768_v36, 0.0  ;;  %9351 = vpow2.f32 %v6436_v30  ;;  %v7395_v10 = vadd.f32 -1.0, %v6526_v35  ;;  %vm15552_vm8 = vnez %v15551_v62  ;;  %v14259_v35 = vld [vmem:[%s9607_s15] ss:$0 sm:$0xff] }
 0x5a0   : > { %v14242_v25 = vadd.f32 %v13972_v54, %v6279_v28  ;;  %v9342_v23 = vpop.eup %9341  ;;  %6850 = vst [vmem:[%s9612_s19 + $0xa8] sm:$0xff] %v6809_v60  ;;  %9353 = vrcp.f32 %v6649_v37  ;;  %v6486_v7 = vadd.f32 1.0, %v9340_v39  ;;  %v6367_v32 = vmin.f32 %v14239_v31, 20.0  ;;  %v9462_v54 = vld [vmem:[%s9612_s19 + $0xb0] sm:$0xff]  ;;  %v9465_v60 = vld [vmem:[%s9612_s19 + $0xc0] sm:$0xff] }
 0x5a1   : > { %v9344_v11 = vpop.eup %9343  ;;  %v6728_v55 = vmul.f32 %v9342_v23, %v6605_v47  ;;  %v6607_v30 = vmul.f32 %v7394_v0, %v14179_v14  ;;  %vm15554_vm4 = vnez %v15553_v16  ;;  %v6608_v17 = vmul.f32 %v7395_v10, %v14182_v12  ;;  %v15557_v10 = vld [vmem:[#allocation21_spill] sm:$0xff] }
 0x5a2   : > { %v6368_v19 = vmin.f32 %v14242_v25, 20.0  ;;  %v9346_v61 = vpop.eup %9345  ;;  %v6527_v5 = vmul.f32 %v6486_v7, %v6486_v7  ;;  %v6487_v58 = vadd.f32 1.0, %v9344_v11  ;;  %v6438_v22 = vmul.f32 1.442695, %v6367_v32 }
 0x5a3   : > { %v6210_v50 = vpop.f32.mrb[144].mxu1  ;;  %v6769_v48 = vadd.f32 %v9462_v54, %v6728_v55  ;;  %v6729_v53 = vmul.f32 %v9346_v61, %v6606_v63  ;;  %vm15558_vm13 = vnez %v15557_v10 }
 0x5a4   : > { %v6440_v34 = vmul.f32 1.442695, %v6368_v19  ;;  %v8847_v41 = vpop.f32.mrb[145].mxu1  ;;  %v6650_v8 = vadd.f32 1.0, %v6527_v5  ;;  %v6528_v29 = vmul.f32 %v6487_v58, %v6487_v58  ;;  %v6280_v38 = vadd.f32 %v6210_v50, %v13950_v59  ;;  %v15555_v58 = vld [vmem:[#allocation18_spill] sm:$0xff]  ;;  %v9466_v50 = vld [vmem:[%s9612_s19 + $0xc8] sm:$0xff] }
 0x5a5   : > { %v6213_v42 = vpop.f32.mrb[146].mxu1  ;;  %v6810_v33 = vsel %vm15552_vm8, %v6769_v48, 0.0  ;;  %v6770_v27 = vadd.f32 %v9463_v4, %v6729_v53  ;;  %9355 = vpow2.f32 %v6438_v22  ;;  %v7396_v47 = vadd.f32 -1.0, %v6527_v5 }
 0x5a6   : > { %v6281_v3 = vadd.f32 %v6213_v42, %v13952_v26  ;;  %v8848_v43 = vpop.f32.mrb[147].mxu1  ;;  %6851 = vst [vmem:[%s9612_s19 + $0xb0] sm:$0xff] %v6810_v33  ;;  %9357 = vrcp.f32 %v6650_v8  ;;  %v6651_v13 = vadd.f32 1.0, %v6528_v29  ;;  %v14262_v49 = vadd.f32 %v14259_v35, %v6280_v38 }
 0x5a7   : > { %v9348_v20 = vpop.eup %9347  ;;  %v6811_v59 = vsel %vm15554_vm4, %v6770_v27, 0.0  ;;  %9359 = vpow2.f32 %v6440_v34  ;;  %v7397_v32 = vadd.f32 -1.0, %v6528_v29  ;;  %vm15556_vm6 = vnez %v15555_v58 }
 0x5a8   : > { %v14265_v45 = vadd.f32 %v14259_v35, %v6281_v3  ;;  %v9350_v26 = vpop.eup %9349  ;;  %6852 = vst [vmem:[%s9612_s19 + $0xb8] sm:$0xff] %v6811_v59  ;;  %9361 = vrcp.f32 %v6651_v13  ;;  %v6488_v14 = vadd.f32 1.0, %v9348_v20  ;;  %v6369_v36 = vmin.f32 %v14262_v49, 20.0  ;;  %v9467_v20 = vld [vmem:[%s9612_s19 + $0xd0] sm:$0xff] }
 0x5a9   : > { %v9352_v46 = vpop.eup %9351  ;;  %v6730_v51 = vmul.f32 %v9350_v26, %v6607_v30  ;;  %v6609_v22 = vmul.f32 %v7396_v47, %v14199_v44  ;;  %v6610_v62 = vmul.f32 %v7397_v32, %v14202_v56 }
 0x5aa   : > { %v6370_v28 = vmin.f32 %v14265_v45, 20.0  ;;  %v9354_v1 = vpop.eup %9353  ;;  %v6529_v37 = vmul.f32 %v6488_v14, %v6488_v14  ;;  %v6489_v39 = vadd.f32 1.0, %v9352_v46  ;;  %v6442_v11 = vmul.f32 1.442695, %v6369_v36 }
 0x5ab   : > { %v6218_v9 = vpop.f32.mrb[148].mxu1  ;;  %v6771_v23 = vadd.f32 %v9465_v60, %v6730_v51  ;;  %v6731_v7 = vmul.f32 %v9354_v1, %v6608_v17  ;;  %v15559_v1 = vld [vmem:[#allocation24_spill] sm:$0xff] }
 0x5ac   : > { %v6444_v55 = vmul.f32 1.442695, %v6370_v28  ;;  %v8851_v63 = vpop.f32.mrb[149].mxu1  ;;  %v6652_v19 = vadd.f32 1.0, %v6529_v37  ;;  %v6530_v12 = vmul.f32 %v6489_v39, %v6489_v39  ;;  %v6282_v61 = vadd.f32 %v6218_v9, %v13956_v6 }
 0x5ad   : > { %v6221_v0 = vpop.f32.mrb[150].mxu1  ;;  %v6812_v5 = vsel %vm15556_vm6, %v6771_v23, 0.0  ;;  %v6772_v54 = vadd.f32 %v9466_v50, %v6731_v7  ;;  %9363 = vpow2.f32 %v6442_v11  ;;  %v7398_v3 = vadd.f32 -1.0, %v6529_v37  ;;  %v9468_v37 = vld [vmem:[%s9612_s19 + $0xd8] sm:$0xff] }
 0x5ae   : > { %v6283_v48 = vadd.f32 %v6221_v0, %v13958_v40  ;;  %v8852_v53 = vpop.f32.mrb[151].mxu1  ;;  %6853 = vst [vmem:[%s9612_s19 + $0xc0] sm:$0xff] %v6812_v5  ;;  %9365 = vrcp.f32 %v6652_v19  ;;  %v6653_v34 = vadd.f32 1.0, %v6530_v12  ;;  %v14282_v8 = vadd.f32 %v14259_v35, %v6282_v61 }
 0x5af   : > { %v9356_v41 = vpop.eup %9355  ;;  %v6813_v6 = vsel %vm15558_vm13, %v6772_v54, 0.0  ;;  %9367 = vpow2.f32 %v6444_v55  ;;  %v7399_v51 = vadd.f32 -1.0, %v6530_v12  ;;  %vm15560_vm9 = vnez %v15559_v1  ;;  %v15561_v55 = vld [vmem:[#allocation25_spill] sm:$0xff] }
 0x5b0   : > { %v14285_v29 = vadd.f32 %v14259_v35, %v6283_v48  ;;  %v9358_v38 = vpop.eup %9357  ;;  %6854 = vst [vmem:[%s9612_s19 + $0xc8] sm:$0xff] %v6813_v6  ;;  %9369 = vrcp.f32 %v6653_v34  ;;  %v6490_v40 = vadd.f32 1.0, %v9356_v41  ;;  %v6371_v33 = vmin.f32 %v14282_v8, 20.0 }
 0x5b1   : > { %v9360_v42 = vpop.eup %9359  ;;  %v6732_v44 = vmul.f32 %v9358_v38, %v6609_v22  ;;  %v6611_v23 = vmul.f32 %v7398_v3, %v14219_v52  ;;  %vm15562_vm1 = vnez %v15561_v55  ;;  %v6612_v61 = vmul.f32 %v7399_v51, %v14222_v18  ;;  %v9469_v22 = vld [vmem:[%s9612_s19 + $0xe0] sm:$0xff] }
 0x5b2   : > { %v6372_v4 = vmin.f32 %v14285_v29, 20.0  ;;  %v9362_v27 = vpop.eup %9361  ;;  %v6531_v43 = vmul.f32 %v6490_v40, %v6490_v40  ;;  %v6491_v30 = vadd.f32 1.0, %v9360_v42  ;;  %v6446_v26 = vmul.f32 1.442695, %v6371_v33 }
 0x5b3   : > { %v6226_v13 = vpop.f32.mrb[152].mxu1  ;;  %v6773_v16 = vadd.f32 %v9467_v20, %v6732_v44  ;;  %v6733_v59 = vmul.f32 %v9362_v27, %v6610_v62  ;;  %v9470_v27 = vld [vmem:[%s9612_s19 + $0xe8] sm:$0xff] }
 0x5b4   : > { %v6448_v14 = vmul.f32 1.442695, %v6372_v4  ;;  %v8855_v46 = vpop.f32.mrb[153].mxu1  ;;  %v6654_v17 = vadd.f32 1.0, %v6531_v43  ;;  %v6532_v56 = vmul.f32 %v6491_v30, %v6491_v30  ;;  %v6284_v36 = vadd.f32 %v6226_v13, %v13962_v2 }
 0x5b5   : > { %v6229_v28 = vpop.f32.mrb[154].mxu1  ;;  %v6814_v47 = vsel %vm15560_vm9, %v6773_v16, 0.0  ;;  %v6774_v39 = vadd.f32 %v9468_v37, %v6733_v59  ;;  %9371 = vpow2.f32 %v6446_v26  ;;  %v7400_v50 = vadd.f32 -1.0, %v6531_v43  ;;  %v15564_v59 = vld [vmem:[#allocation27_spill] sm:$0xff] }
 0x5b6   : > { %v6285_v9 = vadd.f32 %v6229_v28, %v13964_v15  ;;  %v8856_v60 = vpop.f32.mrb[155].mxu1  ;;  %6855 = vst [vmem:[%s9612_s19 + $0xd0] sm:$0xff] %v6814_v47  ;;  %9373 = vrcp.f32 %v6654_v17  ;;  %v6655_v7 = vadd.f32 1.0, %v6532_v56  ;;  %v14302_v63 = vadd.f32 %v14259_v35, %v6284_v36 }
 0x5b7   : > { %v9364_v11 = vpop.eup %9363  ;;  %v6815_v2 = vsel %vm15562_vm1, %v6774_v39, 0.0  ;;  %9375 = vpow2.f32 %v6448_v14  ;;  %v7401_v40 = vadd.f32 -1.0, %v6532_v56  ;;  %v6613_v13 = vmul.f32 %v7400_v50, %v14239_v31 }
 0x5b8   : > { %v14305_v32 = vadd.f32 %v14259_v35, %v6285_v9  ;;  %v9366_v19 = vpop.eup %9365  ;;  %6856 = vst [vmem:[%s9612_s19 + $0xd8] sm:$0xff] %v6815_v2  ;;  %9377 = vrcp.f32 %v6655_v7  ;;  %v6492_v15 = vadd.f32 1.0, %v9364_v11  ;;  %v6373_v0 = vmin.f32 %v14302_v63, 20.0  ;;  %v9471_v9 = vld [vmem:[%s9612_s19 + $0xf0] sm:$0xff] }
 0x5b9   : > { %v9368_v12 = vpop.eup %9367  ;;  %v6734_v52 = vmul.f32 %v9366_v19, %v6611_v23  ;;  %vm15565_vm5 = vnez %v15564_v59  ;;  %v6614_v17 = vmul.f32 %v7401_v40, %v14242_v25 }
 0x5ba   : > { %v6374_v58 = vmin.f32 %v14305_v32, 20.0  ;;  %v9370_v5 = vpop.eup %9369  ;;  %v6533_v54 = vmul.f32 %v6492_v15, %v6492_v15  ;;  %v6493_v48 = vadd.f32 1.0, %v9368_v12  ;;  %v6450_v10 = vmul.f32 1.442695, %v6373_v0  ;;  %v15566_v12 = vld [vmem:[#allocation37_spill] sm:$0xff] }
 0x5bb   : > { %v6234_v53 = vpop.f32.mrb[156].mxu1  ;;  %v6775_v34 = vadd.f32 %v9469_v22, %v6734_v52  ;;  %v6735_v41 = vmul.f32 %v9370_v5, %v6612_v61  ;;  %v9472_v61 = vld [vmem:[%s9612_s19 + $0xf8] sm:$0xff] }
 0x5bc   : > { %v6452_v6 = vmul.f32 1.442695, %v6374_v58  ;;  %v8859_v38 = vpop.f32.mrb[157].mxu1  ;;  %v6656_v42 = vadd.f32 1.0, %v6533_v54  ;;  %v6534_v18 = vmul.f32 %v6493_v48, %v6493_v48  ;;  %v6286_v44 = vadd.f32 %v6234_v53, %v13967_v24  ;;  %v15568_v48 = vld [vmem:[#allocation38_spill] sm:$0xff] }
 0x5bd   : > { %v6237_v62 = vpop.f32.mrb[158].mxu1  ;;  %v6816_v4 = vsel %vm11604_vm12, %v6775_v34, 0.0  ;;  %v6776_v3 = vadd.f32 %v9470_v27, %v6735_v41  ;;  %9379 = vpow2.f32 %v6450_v10  ;;  %v7402_v1 = vadd.f32 -1.0, %v6533_v54 }
 0x5be   : > { %v6287_v43 = vadd.f32 %v6237_v62, %v13969_v21  ;;  %v8860_v30 = vpop.f32.mrb[159].mxu1  ;;  %6857 = vst [vmem:[%s9612_s19 + $0xe0] sm:$0xff] %v6816_v4  ;;  %9381 = vrcp.f32 %v6656_v42  ;;  %v6657_v20 = vadd.f32 1.0, %v6534_v18  ;;  %v14322_v26 = vadd.f32 %v14259_v35, %v6286_v44 }
 0x5bf   : > { %v9372_v16 = vpop.eup %9371  ;;  %v6817_v24 = vsel %vm15565_vm5, %v6776_v3, 0.0  ;;  %9383 = vpow2.f32 %v6452_v6  ;;  %vm15567_vm12 = vnez %v15566_v12  ;;  %v7403_v58 = vadd.f32 -1.0, %v6534_v18 }
 0x5c0   : > { %v14325_v14 = vadd.f32 %v14259_v35, %v6287_v43  ;;  %v9374_v46 = vpop.eup %9373  ;;  %6858 = vst [vmem:[%s9612_s19 + $0xe8] sm:$0xff] %v6817_v24  ;;  %9385 = vrcp.f32 %v6657_v20  ;;  %v6494_v21 = vadd.f32 1.0, %v9372_v16  ;;  %v6375_v56 = vmin.f32 %v14322_v26, 20.0  ;;  %v15570_v43 = vld [vmem:[#allocation40_spill] sm:$0xff]  ;;  %v15572_v24 = vld [vmem:[#allocation41_spill] sm:$0xff] }
 0x5c1   : > { %v9376_v51 = vpop.eup %9375  ;;  %v6736_v31 = vmul.f32 %v9374_v46, %v6613_v13  ;;  %vm15569_vm15 = vnez %v15568_v48  ;;  %v6616_v38 = vmul.f32 %v7403_v58, %v14265_v45  ;;  %vm15571_vm7 = vnez %v15570_v43  ;;  %v9474_v13 = vld [vmem:[%s9612_s19 + $0x108] sm:$0xff]  ;;  %v9477_v48 = vld [vmem:[%s9612_s19 + $0x120] sm:$0xff] }
 0x5c2   : > { %v6376_v36 = vmin.f32 %v14325_v14, 20.0  ;;  %v9378_v28 = vpop.eup %9377  ;;  %v6535_v47 = vmul.f32 %v6494_v21, %v6494_v21  ;;  %v6495_v37 = vadd.f32 1.0, %v9376_v51  ;;  %v6454_v7 = vmul.f32 1.442695, %v6375_v56 }
 0x5c3   : > { %v6242_v39 = vpop.f32.mrb[160].mxu1  ;;  %v6777_v60 = vadd.f32 %v9471_v9, %v6736_v31  ;;  %v6737_v23 = vmul.f32 %v9378_v28, %v6614_v17  ;;  %vm15573_vm2 = vnez %v15572_v24  ;;  %v9481_v24 = vld [vmem:[%s9612_s19 + $0x140] sm:$0xf] }
 0x5c4   : > { %v6456_v11 = vmul.f32 1.442695, %v6376_v36  ;;  %v8863_v55 = vpop.f32.mrb[161].mxu1  ;;  %v6658_v2 = vadd.f32 1.0, %v6535_v47  ;;  %v6536_v19 = vmul.f32 %v6495_v37, %v6495_v37  ;;  %v6288_v25 = vadd.f32 %v6242_v39, %v13979_v57  ;;  %v9475_v37 = vld [vmem:[%s9612_s19 + $0x110] sm:$0xff] }
 0x5c5   : > { %v6245_v15 = vpop.f32.mrb[162].mxu1  ;;  %v6818_v52 = vsel %vm15567_vm12, %v6777_v60, 0.0  ;;  %v6778_v0 = vadd.f32 %v9472_v61, %v6737_v23  ;;  %9387 = vpow2.f32 %v6454_v7  ;;  %v6615_v57 = vmul.f32 %v7402_v1, %v14262_v49  ;;  %v9473_v49 = vld [vmem:[%s9612_s19 + $0x100] sm:$0xff]  ;;  %v9476_v55 = vld [vmem:[%s9612_s19 + $0x118] sm:$0xff] }
 0x5c6   : > { %v8864_v5 = vpop.f32.mrb[163].mxu1  ;;  %6859 = vst [vmem:[%s9612_s19 + $0xf0] sm:$0xff] %v6818_v52  ;;  %9389 = vrcp.f32 %v6658_v2  ;;  %v6659_v50 = vadd.f32 1.0, %v6536_v19  ;;  %v14341_v22 = vadd.f32 %v14259_v35, %v6288_v25  ;;  %v7404_v35 = vadd.f32 -1.0, %v6535_v47  ;;  %v15574_v7 = vld [vmem:[#allocation42_spill] sm:$0xff]  ;;  %v15576_v15 = vld [vmem:[#allocation43_spill] sm:$0xff] }
 0x5c7   : > { %v9380_v54 = vpop.eup %9379  ;;  %v6819_v53 = vsel %vm15569_vm15, %v6778_v0, 0.0  ;;  %9391 = vpow2.f32 %v6456_v11  ;;  %v7405_v45 = vadd.f32 -1.0, %v6536_v19  ;;  %vm15575_vm3 = vnez %v15574_v7 }
 0x5c8   : > { %v9382_v34 = vpop.eup %9381  ;;  %6860 = vst [vmem:[%s9612_s19 + $0xf8] sm:$0xff] %v6819_v53  ;;  %9393 = vrcp.f32 %v6659_v50  ;;  %v6496_v41 = vadd.f32 1.0, %v9380_v54  ;;  %v6377_v40 = vmin.f32 %v14341_v22, 20.0  ;;  %v6617_v21 = vmul.f32 %v7404_v35, %v14282_v8  ;;  %v9479_v35 = vld [vmem:[%s9612_s19 + $0x130] sm:$0xff] }
 0x5c9   : > { %v9384_v10 = vpop.eup %9383  ;;  %v6738_v6 = vmul.f32 %v9382_v34, %v6615_v57  ;;  %v6618_v36 = vmul.f32 %v7405_v45, %v14285_v29  ;;  %vm15577_vm14 = vnez %v15576_v15 }
 0x5ca   : > { %v9386_v42 = vpop.eup %9385  ;;  %v6537_v18 = vmul.f32 %v6496_v41, %v6496_v41  ;;  %v6497_v44 = vadd.f32 1.0, %v9384_v10  ;;  %v6458_v4 = vmul.f32 1.442695, %v6377_v40  ;;  %v15578_v10 = vld [vmem:[#allocation44_spill] sm:$0xff] }
 0x5cb   : > { %v6779_v62 = vadd.f32 %v9473_v49, %v6738_v6  ;;  %v6739_v33 = vmul.f32 %v9386_v42, %v6616_v38  ;;  %vm15579_vm8 = vnez %v15578_v10  ;;  %v9478_v6 = vld [vmem:[%s9612_s19 + $0x128] sm:$0xff] }
 0x5cc   : > { %v6660_v27 = vadd.f32 1.0, %v6537_v18  ;;  %v6538_v3 = vmul.f32 %v6497_v44, %v6497_v44  ;;  %9395 = vpow2.f32 %v6458_v4  ;;  %v7406_v60 = vadd.f32 -1.0, %v6537_v18 }
 0x5cd   : > { %v6820_v30 = vsel %vm15571_vm7, %v6779_v62, 0.0  ;;  %v6780_v20 = vadd.f32 %v9474_v13, %v6739_v33  ;;  %v9480_v13 = vld [vmem:[%s9612_s19 + $0x138] sm:$0xff] }
 0x5ce   : > { %6861 = vst [vmem:[%s9612_s19 + $0x100] sm:$0xff] %v6820_v30  ;;  %9397 = vrcp.f32 %v6660_v27  ;;  %v6661_v16 = vadd.f32 1.0, %v6538_v3  ;;  %v7407_v19 = vadd.f32 -1.0, %v6538_v3  ;;  %v6619_v52 = vmul.f32 %v7406_v60, %v14302_v63 }
 0x5cf   : > { %v9388_v59 = vpop.eup %9387  ;;  %v6821_v46 = vsel %vm15573_vm2, %v6780_v20, 0.0 }
 0x5d0   : > { %v9390_v51 = vpop.eup %9389  ;;  %6862 = vst [vmem:[%s9612_s19 + $0x108] sm:$0xff] %v6821_v46  ;;  %9399 = vrcp.f32 %v6661_v16  ;;  %v6498_v31 = vadd.f32 1.0, %v9388_v59  ;;  %v6620_v5 = vmul.f32 %v7407_v19, %v14305_v32  ;;  %v15580_v32 = vld [vmem:[#allocation45_spill] sm:$0xff] }
 0x5d1   : > { %v9392_v17 = vpop.eup %9391  ;;  %v6740_v56 = vmul.f32 %v9390_v51, %v6617_v21  ;;  %vm15581_vm4 = vnez %v15580_v32 }
 0x5d2   : > { %v9394_v28 = vpop.eup %9393  ;;  %v6539_v1 = vmul.f32 %v6498_v31, %v6498_v31  ;;  %v6499_v47 = vadd.f32 1.0, %v9392_v17 }
 0x5d3   : > { %v6781_v39 = vadd.f32 %v9475_v37, %v6740_v56  ;;  %v6741_v9 = vmul.f32 %v9394_v28, %v6618_v36 }
 0x5d4   : > { %v6662_v23 = vadd.f32 1.0, %v6539_v1  ;;  %v6540_v8 = vmul.f32 %v6499_v47, %v6499_v47  ;;  %v7408_v34 = vadd.f32 -1.0, %v6539_v1 }
 0x5d5   : > { %v6822_v11 = vsel %vm15575_vm3, %v6781_v39, 0.0  ;;  %v6782_v2 = vadd.f32 %v9476_v55, %v6741_v9 }
 0x5d6   : > { %6863 = vst [vmem:[%s9612_s19 + $0x110] sm:$0xff] %v6822_v11  ;;  %9401 = vrcp.f32 %v6662_v23  ;;  %v6663_v29 = vadd.f32 1.0, %v6540_v8  ;;  %v9396_v25 = vpop.eup %9395  ;;  %v7409_v40 = vadd.f32 -1.0, %v6540_v8  ;;  %v6621_v18 = vmul.f32 %v7408_v34, %v14322_v26 }
 0x5d7   : > { %v6823_v12 = vsel %vm15577_vm14, %v6782_v2, 0.0  ;;  %v6500_v0 = vadd.f32 1.0, %v9396_v25 }
 0x5d8   : > { %v9398_v61 = vpop.eup %9397  ;;  %6864 = vst [vmem:[%s9612_s19 + $0x118] sm:$0xff] %v6823_v12  ;;  %9403 = vrcp.f32 %v6663_v29  ;;  %v6622_v62 = vmul.f32 %v7409_v40, %v14325_v14 }
 0x5d9   : > { %v6742_v58 = vmul.f32 %v9398_v61, %v6619_v52  ;;  %v6541_v54 = vmul.f32 %v6500_v0, %v6500_v0 }
 0x5da   : > { %v9400_v50 = vpop.eup %9399 }
 0x5db   : > { %v6783_v53 = vadd.f32 %v9477_v48, %v6742_v58  ;;  %v6743_v57 = vmul.f32 %v9400_v50, %v6620_v5  ;;  %v6664_v41 = vadd.f32 1.0, %v6541_v54  ;;  %v7410_v3 = vadd.f32 -1.0, %v6541_v54 }
 0x5dd   : > { %v6824_v63 = vsel %vm15579_vm8, %v6783_v53, 0.0  ;;  %v6784_v38 = vadd.f32 %v9478_v6, %v6743_v57  ;;  %9405 = vrcp.f32 %v6664_v41  ;;  %v6623_v16 = vmul.f32 %v7410_v3, %v14341_v22 }
 0x5de   : > { %6865 = vst [vmem:[%s9612_s19 + $0x120] sm:$0xff] %v6824_v63 }
 0x5df   : > { %v6825_v42 = vsel %vm15581_vm4, %v6784_v38, 0.0 }
 0x5e0   : > { %v9402_v44 = vpop.eup %9401  ;;  %6866 = vst [vmem:[%s9612_s19 + $0x128] sm:$0xff] %v6825_v42 }
 0x5e1   : > { %v6744_v49 = vmul.f32 %v9402_v44, %v6621_v18 }
 0x5e2   : > { %v9404_v33 = vpop.eup %9403 }
 0x5e3   : > { %v6785_v4 = vadd.f32 %v9479_v35, %v6744_v49  ;;  %v6745_v27 = vmul.f32 %v9404_v33, %v6622_v62 }
 0x5e5   : > { %v6826_v30 = vsel %vm12098_vm0, %v6785_v4, 0.0  ;;  %v6786_v20 = vadd.f32 %v9480_v13, %v6745_v27 }
 0x5e6   : > { %6867 = vst [vmem:[%s9612_s19 + $0x130] sm:$0xff] %v6826_v30 }
 0x5e7   : > { %v6827_v45 = vsel %vm12105_vm11, %v6786_v20, 0.0  ;;  %v9406_v59 = vpop.eup %9405 }
 0x5e8   : > { %6868 = vst [vmem:[%s9612_s19 + $0x138] sm:$0xff] %v6827_v45  ;;  %v6746_v14 = vmul.f32 %v9406_v59, %v6623_v16 }
 0x5ea   : > { %v6787_v46 = vadd.f32 %v9481_v24, %v6746_v14 }
 0x5ec   : > { %v6828_v51 = vsel %vm12159_vm10, %v6787_v46, 0.0 }
 0x5ed   : > { %6869 = vst [vmem:[%s9612_s19 + $0x140] sm:$0xf] %v6828_v51 }
 0x5ee PF: > { %s15_s22 = sadd.s32 1, %s9520_s22   ;;  %s15585_s18 = smov %s9512_s20 }
 0x5ef   : > { %p12_p8 = scmp.ge.s32.totalorder %s15_s22, 6   ;;  %s15586_s19 = smov %s9516_s21 }
 0x5f0   : > { %s15587_s20 = smov %s15590_s23  ;;  %s15588_s21 = smov %s15594_s24 }
 0x5f1   :  { %14 = sbr.rel (!%p12_p8) target bundleno = 3 (0x3), region = 94 }

</bundles_post_ra>
